<compile_context>
chip_gen: v6e
topology: v6e:2x2x1
jax: 0.10.0
libtpu: 0.0.40
codegen_flags: <defaults>
</compile_context>

<pallas_src>
import functools

import jax
import jax.numpy as jnp
from jax.experimental import pallas as pl
from jax.experimental.pallas import tpu as pltpu

EPS = 1e-5
TILE_N_CAP = 256  # points per grid tile (keeps the 1024-ch intermediate ~1 MiB f32)


def _choose_tile_n(n, cap=TILE_N_CAP):
    """Largest multiple-of-8 divisor of n that is <= cap (or n itself)."""
    if n <= cap:
        return n
    for t in range(cap - cap % 8, 7, -8):
        if n % t == 0:
            return t
    return n  # fall back to a single full block


# ------------------------------ fused kernels ------------------------------ #

def _stn_chain_kernel(x_ref, w1, s1, t1, w2, s2, t2, w3, s3, t3, o_ref):
    """T-Net conv1->conv2->conv3 (1x1 conv + folded BN + ReLU) fused with global max-pool."""
    t = pl.program_id(1)
    x = x_ref[0]                                                         # (TILE_N, 8) bf16
    h = jnp.dot(x, w1[...], preferred_element_type=jnp.float32)
    h = jnp.maximum(h * s1[...] + t1[...], 0.0)
    h = jnp.dot(h.astype(jnp.bfloat16), w2[...], preferred_element_type=jnp.float32)
    h = jnp.maximum(h * s2[...] + t2[...], 0.0)
    h = jnp.dot(h.astype(jnp.bfloat16), w3[...], preferred_element_type=jnp.float32)
    h = jnp.maximum(h * s3[...] + t3[...], 0.0)                          # (TILE_N, 1024)
    tile_max = jnp.max(h, axis=0, keepdims=True)                         # (1, 1024)

    @pl.when(t == 0)
    def _():
        o_ref[...] = jnp.full(o_ref.shape, -jnp.inf, o_ref.dtype)

    o_ref[0] = jnp.maximum(o_ref[0], tile_max)


def _feat_chain_kernel(x_ref, w1, s1, t1, w2, s2, t2, w3, s3, t3,
                       w4, s4, t4, w5, s5, t5, o_ref):
    """pn_feat conv1..conv5 (+BN, ReLU on 1-4) fused with the global max-pool.

    The 3x3 STN rotation is already folded into the per-batch conv1 weight `w1`.
    """
    t = pl.program_id(1)
    x = x_ref[0]                                                         # (TILE_N, 8) bf16
    h = jnp.dot(x, w1[0], preferred_element_type=jnp.float32)            # per-batch W_eff
    h = jnp.maximum(h * s1[...] + t1[...], 0.0)
    h = jnp.dot(h.astype(jnp.bfloat16), w2[...], preferred_element_type=jnp.float32)
    h = jnp.maximum(h * s2[...] + t2[...], 0.0)
    h = jnp.dot(h.astype(jnp.bfloat16), w3[...], preferred_element_type=jnp.float32)
    h = jnp.maximum(h * s3[...] + t3[...], 0.0)
    h = jnp.dot(h.astype(jnp.bfloat16), w4[...], preferred_element_type=jnp.float32)
    h = jnp.maximum(h * s4[...] + t4[...], 0.0)
    h = jnp.dot(h.astype(jnp.bfloat16), w5[...], preferred_element_type=jnp.float32)
    h = h * s5[...] + t5[...]                                            # conv5: BN, no ReLU
    tile_max = jnp.max(h, axis=0, keepdims=True)                         # (1, dim)

    @pl.when(t == 0)
    def _():
        o_ref[...] = jnp.full(o_ref.shape, -jnp.inf, o_ref.dtype)

    o_ref[0] = jnp.maximum(o_ref[0], tile_max)


def _tnet_head_kernel(x_ref, w1, w2, w3, b3, o_ref):
    """T-Net fc1(ReLU)->fc2(ReLU)->fc3(+bias); the +eye(3) is folded into b3."""
    h = jnp.dot(x_ref[...].astype(jnp.bfloat16), w1[...],
                preferred_element_type=jnp.float32)
    h = jnp.maximum(h, 0.0)
    h = jnp.dot(h.astype(jnp.bfloat16), w2[...], preferred_element_type=jnp.float32)
    h = jnp.maximum(h, 0.0)
    h = jnp.dot(h.astype(jnp.bfloat16), w3[...], preferred_element_type=jnp.float32)
    o_ref[...] = (h + b3[...]).astype(o_ref.dtype)


def _class_head_kernel(x_ref, w1, s1, t1, w2, s2, t2, w3, b3, logits_ref, y_ref):
    """Classifier fc1(BN,ReLU) -> fc2(Dropout=id,BN,ReLU) -> fc3(+bias)."""
    h = jnp.dot(x_ref[...].astype(jnp.bfloat16), w1[...],
                preferred_element_type=jnp.float32)
    h = jnp.maximum(h * s1[...] + t1[...], 0.0)
    # TODO(synk): nn.Dropout(p_drop) is inference-mode identity here (no train RNG mask).
    y = jnp.dot(h.astype(jnp.bfloat16), w2[...], preferred_element_type=jnp.float32)
    y = jnp.maximum(y * s2[...] + t2[...], 0.0)
    y_ref[...] = y.astype(y_ref.dtype)
    logits = jnp.dot(y.astype(jnp.bfloat16), w3[...],
                     preferred_element_type=jnp.float32) + b3[...]
    logits_ref[...] = logits.astype(logits_ref.dtype)


# ------------------------------ call wrappers ------------------------------ #

def _chain_call(kernel, xp8, weight_args, out_channels):
    """Run a fused conv-chain + max-pool kernel over a (batch, point_tile) grid."""
    B, N, cin = xp8.shape
    tile_n = _choose_tile_n(N)
    grid = (B, N // tile_n)

    in_specs = [pl.BlockSpec((1, tile_n, cin), lambda b, t: (b, t, 0))]
    for a in weight_args:
        if a.ndim == 3:      # per-batch conv1 weight (B, 8, 64)
            in_specs.append(pl.BlockSpec((1,) + a.shape[1:], lambda b, t: (b, 0, 0)))
        else:                # shared weight / BN scale / BN shift (resident in VMEM)
            in_specs.append(pl.BlockSpec(a.shape, lambda b, t: (0, 0)))

    out = pl.pallas_call(
        kernel,
        out_shape=jax.ShapeDtypeStruct((B, 1, out_channels), jnp.float32),
        grid=grid,
        in_specs=in_specs,
        out_specs=pl.BlockSpec((1, 1, out_channels), lambda b, t: (b, 0, 0)),
        compiler_params=pltpu.CompilerParams(
            dimension_semantics=("parallel", "arbitrary")),
    )(xp8, *weight_args)
    return out.reshape(B, out_channels)


def _full_spec(shape):
    nd = len(shape)
    return pl.BlockSpec(shape, lambda *_, n=nd: (0,) * n)


def _head_call(kernel, out_shapes, *inputs):
    """Whole-array (M = batch rows) fused FC-head call; everything fits VMEM easily."""
    multi = isinstance(out_shapes, (tuple, list))
    outs = tuple(out_shapes) if multi else (out_shapes,)
    out_specs = tuple(_full_spec(o.shape) for o in outs)
    return pl.pallas_call(
        kernel,
        out_shape=tuple(outs) if multi else out_shapes,
        grid=(1,),
        in_specs=[_full_spec(x.shape) for x in inputs],
        out_specs=out_specs if multi else out_specs[0],
        compiler_params=pltpu.CompilerParams(dimension_semantics=("arbitrary",)),
    )(*inputs)


# ------------------------ deterministic parameter init --------------------- #

def _weight(key, cin, cout):
    return (jax.random.normal(key, (cin, cout), jnp.float32)
            / jnp.sqrt(jnp.float32(cin))).astype(jnp.float32)


def _bn_fold(key, c):
    k1, k2, k3, k4 = jax.random.split(key, 4)
    gamma = 1.0 + 0.1 * jax.random.normal(k1, (c,), jnp.float32)
    beta = 0.1 * jax.random.normal(k2, (c,), jnp.float32)
    mean = 0.1 * jax.random.normal(k3, (c,), jnp.float32)
    var = jax.random.uniform(k4, (c,), jnp.float32, 0.5, 1.5)
    scale = gamma / jnp.sqrt(var + EPS)
    shift = beta - mean * scale
    return scale.reshape(1, c), shift.reshape(1, c)


def init_tnet(key, ch):
    ks = jax.random.split(key, 10)
    p = {'ch': ch}
    p['c1_w'] = _weight(ks[0], ch, 64);    p['c1_s'], p['c1_t'] = _bn_fold(ks[1], 64)
    p['c2_w'] = _weight(ks[2], 64, 128);   p['c2_s'], p['c2_t'] = _bn_fold(ks[3], 128)
    p['c3_w'] = _weight(ks[4], 128, 1024); p['c3_s'], p['c3_t'] = _bn_fold(ks[5], 1024)
    p['fc1_w'] = _weight(ks[6], 1024, 512)
    p['fc2_w'] = _weight(ks[7], 512, 256)
    p['fc3_w'] = _weight(ks[8], 256, ch * ch)
    p['fc3_b'] = (0.01 * jax.random.normal(ks[9], (ch * ch,), jnp.float32)
                  ).reshape(1, ch * ch)
    return p


def init_pn_feat(key, dim):
    ks = jax.random.split(key, 11)
    p = {'dim': dim, 'stn': init_tnet(ks[0], 3)}
    p['c1_w'] = _weight(ks[1], 3, 64);    p['c1_s'], p['c1_t'] = _bn_fold(ks[2], 64)
    p['c2_w'] = _weight(ks[3], 64, 64);   p['c2_s'], p['c2_t'] = _bn_fold(ks[4], 64)
    p['c3_w'] = _weight(ks[5], 64, 64);   p['c3_s'], p['c3_t'] = _bn_fold(ks[6], 64)
    p['c4_w'] = _weight(ks[7], 64, 128);  p['c4_s'], p['c4_t'] = _bn_fold(ks[8], 128)
    p['c5_w'] = _weight(ks[9], 128, dim); p['c5_s'], p['c5_t'] = _bn_fold(ks[10], dim)
    return p


def init_pn_class(key, dim, n_classes):
    ks = jax.random.split(key, 7)
    p = {'n_classes': n_classes, 'feat': init_pn_feat(ks[0], dim)}
    p['fc1_w'] = _weight(ks[1], dim, 512); p['fc1_s'], p['fc1_t'] = _bn_fold(ks[2], 512)
    p['fc2_w'] = _weight(ks[3], 512, 256); p['fc2_s'], p['fc2_t'] = _bn_fold(ks[4], 256)
    p['fc3_w'] = _weight(ks[5], 256, n_classes)
    p['fc3_b'] = (0.01 * jax.random.normal(ks[6], (n_classes,), jnp.float32)
                  ).reshape(1, n_classes)
    return p


# ------------------------------- forward pass ------------------------------ #

def _bf16(w):
    return w.astype(jnp.bfloat16)


def tnet_forward(xp8, p):
    """T-Net on point-major padded xyz (B, N, 8) -> (B, 3, 3)."""
    ch = p['ch']
    w1 = _bf16(jnp.pad(p['c1_w'], ((0, 5), (0, 0))))                 # (8, 64), zero pad rows
    pooled = _chain_call(
        _stn_chain_kernel, xp8,
        (w1, p['c1_s'], p['c1_t'],
         _bf16(p['c2_w']), p['c2_s'], p['c2_t'],
         _bf16(p['c3_w']), p['c3_s'], p['c3_t']),
        1024)                                                        # (B, 1024)
    b3 = p['fc3_b'] + jnp.eye(ch, dtype=jnp.float32).reshape(1, ch * ch)   # fold +eye(ch)
    out = _head_call(
        _tnet_head_kernel,
        jax.ShapeDtypeStruct((pooled.shape[0], ch * ch), jnp.float32),
        pooled, _bf16(p['fc1_w']), _bf16(p['fc2_w']), _bf16(p['fc3_w']), b3)
    return out.reshape(-1, ch, ch)


def pn_feat_forward(verts, feats, p):
    assert feats.shape[1] == 0, "pn_feat.conv1 is Conv1d(3, 64): input must be 3 channels"
    B, _, N = verts.shape

    # Point-major layout, xyz padded 3->8 channels once (weight rows 3..7 are zero).
    xp = jnp.transpose(verts, (0, 2, 1))                             # (B, N, 3)
    xp8 = jnp.pad(xp, ((0, 0), (0, 0), (0, 5))).astype(jnp.bfloat16) # (B, N, 8)

    trans_stn = tnet_forward(xp8, p['stn'])                          # (B, 3, 3)

    # Fold the 3x3 STN into conv1:  (xp @ trans^T) @ W1  ==  xp @ (trans^T @ W1).
    w_eff = jnp.einsum('bij,ik->bjk', trans_stn, p['c1_w'])          # (B, 3, 64), tiny
    w_eff = _bf16(jnp.pad(w_eff, ((0, 0), (0, 5), (0, 0))))          # (B, 8, 64)

    x_class = _chain_call(
        _feat_chain_kernel, xp8,
        (w_eff, p['c1_s'], p['c1_t'],
         _bf16(p['c2_w']), p['c2_s'], p['c2_t'],
         _bf16(p['c3_w']), p['c3_s'], p['c3_t'],
         _bf16(p['c4_w']), p['c4_s'], p['c4_t'],
         _bf16(p['c5_w']), p['c5_s'], p['c5_t']),
        p['dim'])                                                    # (B, dim)

    trans_ftn = None                                                 # ftn_type=None
    return x_class, None, trans_stn, trans_ftn                       # flag_global_feat=True


def pn_class_forward(x, p):
    verts = x[:, :3, :]
    feats = x[:, 3:, :]
    x_class, _x_segm, trans_stn, trans_ftn = pn_feat_forward(verts, feats, p['feat'])
    B = x_class.shape[0]
    logits, y = _head_call(
        _class_head_kernel,
        (jax.ShapeDtypeStruct((B, p['n_classes']), jnp.float32),
         jax.ShapeDtypeStruct((B, 256), jnp.float32)),
        x_class,
        _bf16(p['fc1_w']), p['fc1_s'], p['fc1_t'],
        _bf16(p['fc2_w']), p['fc2_s'], p['fc2_t'],
        _bf16(p['fc3_w']), p['fc3_b'])
    return logits, y, trans_stn, trans_ftn


# ----------------------------------- main ----------------------------------- #

if __name__ == "__main__":
    B, N = 2, 1024            # batch, number of points (4 point-tiles of 256)
    DIM, N_CLASSES = 256, 10

    key = jax.random.PRNGKey(0)
    k_in, k_par = jax.random.split(key)
    x = jax.random.normal(k_in, (B, 3, N), jnp.float32)   # NCW, 3 xyz channels
    params = init_pn_class(k_par, DIM, N_CLASSES)

    fwd = jax.jit(functools.partial(pn_class_forward, p=params))
    logits, y, trans_stn, trans_ftn = fwd(x)
    jax.block_until_ready((logits, y, trans_stn))

    assert logits.shape == (B, N_CLASSES)
    assert y.shape == (B, 256)
    assert trans_stn.shape == (B, 3, 3)
    assert trans_ftn is None
    assert bool(jnp.all(jnp.isfinite(logits)))
    print("KERNEL_OK")
</pallas_src>

<mosaic_0001>
module attributes {stable_mosaic.version = 11 : i64} {
  func.func @_stn_chain_kernel(%arg0: i32, %arg1: i32, %arg2: memref<1x256x8xbf16, #tpu.memory_space<vmem>>, %arg3: memref<8x64xbf16, #tpu.memory_space<vmem>>, %arg4: memref<1x64xf32, #tpu.memory_space<vmem>>, %arg5: memref<1x64xf32, #tpu.memory_space<vmem>>, %arg6: memref<64x128xbf16, #tpu.memory_space<vmem>>, %arg7: memref<1x128xf32, #tpu.memory_space<vmem>>, %arg8: memref<1x128xf32, #tpu.memory_space<vmem>>, %arg9: memref<128x1024xbf16, #tpu.memory_space<vmem>>, %arg10: memref<1x1024xf32, #tpu.memory_space<vmem>>, %arg11: memref<1x1024xf32, #tpu.memory_space<vmem>>, %arg12: memref<1x1x1024xf32, #tpu.memory_space<vmem>>) attributes {dimension_semantics = [#tpu.dimension_semantics<parallel>, #tpu.dimension_semantics<arbitrary>], iteration_bounds = array<i64: 2, 4>, scalar_prefetch = 0 : i64, scratch_operands = 0 : i64, tpu.core_type = #tpu.core_type<tc>, window_params = [{transform_indices = @transform_0, window_bounds = array<i64: 1, 256, 8>}, {pipeline_mode = #tpu.pipeline_mode<synchronous>, transform_indices = @transform_1, window_bounds = array<i64: 8, 64>}, {pipeline_mode = #tpu.pipeline_mode<synchronous>, transform_indices = @transform_2, window_bounds = array<i64: 1, 64>}, {pipeline_mode = #tpu.pipeline_mode<synchronous>, transform_indices = @transform_3, window_bounds = array<i64: 1, 64>}, {pipeline_mode = #tpu.pipeline_mode<synchronous>, transform_indices = @transform_4, window_bounds = array<i64: 64, 128>}, {pipeline_mode = #tpu.pipeline_mode<synchronous>, transform_indices = @transform_5, window_bounds = array<i64: 1, 128>}, {pipeline_mode = #tpu.pipeline_mode<synchronous>, transform_indices = @transform_6, window_bounds = array<i64: 1, 128>}, {pipeline_mode = #tpu.pipeline_mode<synchronous>, transform_indices = @transform_7, window_bounds = array<i64: 128, 1024>}, {pipeline_mode = #tpu.pipeline_mode<synchronous>, transform_indices = @transform_8, window_bounds = array<i64: 1, 1024>}, {pipeline_mode = #tpu.pipeline_mode<synchronous>, transform_indices = @transform_9, window_bounds = array<i64: 1, 1024>}, {transform_indices = @transform_10, window_bounds = array<i64: 1, 1, 1024>}]} {
    %c0 = arith.constant 0 : index
    %c0_0 = arith.constant 0 : index
    %c0_1 = arith.constant 0 : index
    %0 = vector.load %arg2[%c0, %c0_0, %c0_1] : memref<1x256x8xbf16, #tpu.memory_space<vmem>>, vector<1x256x8xbf16>
    %1 = vector.shape_cast %0 : vector<1x256x8xbf16> to vector<256x8xbf16>
    %c0_2 = arith.constant 0 : index
    %c0_3 = arith.constant 0 : index
    %2 = vector.load %arg3[%c0_2, %c0_3] : memref<8x64xbf16, #tpu.memory_space<vmem>>, vector<8x64xbf16>
    %cst = arith.constant dense<0.000000e+00> : vector<256x64xf32>
    %3 = tpu.matmul %1, %2, %cst {dimension_numbers = #tpu.dot_dimension_numbers<[1], [0], [0], [1], [0, 0, 1, 1], [], []>} : vector<256x8xbf16>, vector<8x64xbf16>, vector<256x64xf32> -> vector<256x64xf32>
    %c0_4 = arith.constant 0 : index
    %c0_5 = arith.constant 0 : index
    %4 = vector.load %arg4[%c0_4, %c0_5] : memref<1x64xf32, #tpu.memory_space<vmem>>, vector<1x64xf32>
    %5 = vector.broadcast %4 : vector<1x64xf32> to vector<256x64xf32>
    %6 = arith.mulf %3, %5 : vector<256x64xf32>
    %c0_6 = arith.constant 0 : index
    %c0_7 = arith.constant 0 : index
    %7 = vector.load %arg5[%c0_6, %c0_7] : memref<1x64xf32, #tpu.memory_space<vmem>>, vector<1x64xf32>
    %8 = vector.broadcast %7 : vector<1x64xf32> to vector<256x64xf32>
    %9 = arith.addf %6, %8 : vector<256x64xf32>
    %cst_8 = arith.constant 0.000000e+00 : f32
    %10 = vector.broadcast %cst_8 : f32 to vector<256x64xf32>
    %11 = arith.maximumf %9, %10 : vector<256x64xf32>
    %12 = arith.truncf %11 : vector<256x64xf32> to vector<256x64xbf16>
    %c0_9 = arith.constant 0 : index
    %c0_10 = arith.constant 0 : index
    %13 = vector.load %arg6[%c0_9, %c0_10] : memref<64x128xbf16, #tpu.memory_space<vmem>>, vector<64x128xbf16>
    %cst_11 = arith.constant dense<0.000000e+00> : vector<256x128xf32>
    %14 = tpu.matmul %12, %13, %cst_11 {dimension_numbers = #tpu.dot_dimension_numbers<[1], [0], [0], [1], [0, 0, 1, 1], [], []>} : vector<256x64xbf16>, vector<64x128xbf16>, vector<256x128xf32> -> vector<256x128xf32>
    %c0_12 = arith.constant 0 : index
    %c0_13 = arith.constant 0 : index
    %15 = vector.load %arg7[%c0_12, %c0_13] : memref<1x128xf32, #tpu.memory_space<vmem>>, vector<1x128xf32>
    %16 = vector.broadcast %15 : vector<1x128xf32> to vector<256x128xf32>
    %17 = arith.mulf %14, %16 : vector<256x128xf32>
    %c0_14 = arith.constant 0 : index
    %c0_15 = arith.constant 0 : index
    %18 = vector.load %arg8[%c0_14, %c0_15] : memref<1x128xf32, #tpu.memory_space<vmem>>, vector<1x128xf32>
    %19 = vector.broadcast %18 : vector<1x128xf32> to vector<256x128xf32>
    %20 = arith.addf %17, %19 : vector<256x128xf32>
    %cst_16 = arith.constant 0.000000e+00 : f32
    %21 = vector.broadcast %cst_16 : f32 to vector<256x128xf32>
    %22 = arith.maximumf %20, %21 : vector<256x128xf32>
    %23 = arith.truncf %22 : vector<256x128xf32> to vector<256x128xbf16>
    %c0_17 = arith.constant 0 : index
    %c0_18 = arith.constant 0 : index
    %24 = vector.load %arg9[%c0_17, %c0_18] : memref<128x1024xbf16, #tpu.memory_space<vmem>>, vector<128x1024xbf16>
    %cst_19 = arith.constant dense<0.000000e+00> : vector<256x1024xf32>
    %25 = tpu.matmul %23, %24, %cst_19 {dimension_numbers = #tpu.dot_dimension_numbers<[1], [0], [0], [1], [0, 0, 1, 1], [], []>} : vector<256x128xbf16>, vector<128x1024xbf16>, vector<256x1024xf32> -> vector<256x1024xf32>
    %c0_20 = arith.constant 0 : index
    %c0_21 = arith.constant 0 : index
    %26 = vector.load %arg10[%c0_20, %c0_21] : memref<1x1024xf32, #tpu.memory_space<vmem>>, vector<1x1024xf32>
    %27 = vector.broadcast %26 : vector<1x1024xf32> to vector<256x1024xf32>
    %28 = arith.mulf %25, %27 : vector<256x1024xf32>
    %c0_22 = arith.constant 0 : index
    %c0_23 = arith.constant 0 : index
    %29 = vector.load %arg11[%c0_22, %c0_23] : memref<1x1024xf32, #tpu.memory_space<vmem>>, vector<1x1024xf32>
    %30 = vector.broadcast %29 : vector<1x1024xf32> to vector<256x1024xf32>
    %31 = arith.addf %28, %30 : vector<256x1024xf32>
    %cst_24 = arith.constant 0.000000e+00 : f32
    %32 = vector.broadcast %cst_24 : f32 to vector<256x1024xf32>
    %33 = arith.maximumf %31, %32 : vector<256x1024xf32>
    %cst_25 = arith.constant dense<0xFF800000> : vector<1024xf32>
    %34 = vector.multi_reduction <maximumf>, %33, %cst_25 [0] : vector<256x1024xf32> to vector<1024xf32>
    %35 = vector.shape_cast %34 : vector<1024xf32> to vector<1x1024xf32>
    %c0_i32 = arith.constant 0 : i32
    %36 = arith.cmpi eq, %arg1, %c0_i32 : i32
    %37 = arith.extui %36 : i1 to i32
    %c0_i32_26 = arith.constant 0 : i32
    %38 = arith.cmpi ne, %37, %c0_i32_26 : i32
    scf.if %38 {
      %cst_33 = arith.constant 0xFF800000 : f32
      %45 = vector.broadcast %cst_33 : f32 to vector<1x1x1024xf32>
      %c0_34 = arith.constant 0 : index
      %c0_35 = arith.constant 0 : index
      %c0_36 = arith.constant 0 : index
      %46 = vector.load %arg12[%c0_34, %c0_35, %c0_36] : memref<1x1x1024xf32, #tpu.memory_space<vmem>>, vector<1x1x1024xf32>
      tpu.vector_store %arg12[%c0_34, %c0_35, %c0_36], %45 {strides = array<i32>} : memref<1x1x1024xf32, #tpu.memory_space<vmem>>, vector<1x1x1024xf32>,
    } else {
    }
    %c0_27 = arith.constant 0 : index
    %c0_28 = arith.constant 0 : index
    %c0_29 = arith.constant 0 : index
    %39 = vector.load %arg12[%c0_27, %c0_28, %c0_29] : memref<1x1x1024xf32, #tpu.memory_space<vmem>>, vector<1x1x1024xf32>
    %40 = vector.shape_cast %39 : vector<1x1x1024xf32> to vector<1x1024xf32>
    %41 = arith.maximumf %40, %35 : vector<1x1024xf32>
    %c0_30 = arith.constant 0 : index
    %c0_31 = arith.constant 0 : index
    %c0_32 = arith.constant 0 : index
    %42 = vector.load %arg12[%c0_30, %c0_31, %c0_32] : memref<1x1x1024xf32, #tpu.memory_space<vmem>>, vector<1x1x1024xf32>
    %43 = vector.shape_cast %42 : vector<1x1x1024xf32> to vector<1x1024xf32>
    %44 = vector.shape_cast %41 : vector<1x1024xf32> to vector<1x1x1024xf32>
    tpu.vector_store %arg12[%c0_30, %c0_31, %c0_32], %44 {strides = array<i32>} : memref<1x1x1024xf32, #tpu.memory_space<vmem>>, vector<1x1x1024xf32>,
    return
  }
  func.func @transform_0(%arg0: i32, %arg1: i32) -> (i32, i32, i32) {
    %c0_i32 = arith.constant 0 : i32
    %c0_i32_0 = arith.constant 0 : i32
    return %arg0, %arg1, %c0_i32 : i32, i32, i32
  }
  func.func @transform_1(%arg0: i32, %arg1: i32) -> (i32, i32) {
    %c0_i32 = arith.constant 0 : i32
    %c0_i32_0 = arith.constant 0 : i32
    %c0_i32_1 = arith.constant 0 : i32
    return %c0_i32, %c0_i32_0 : i32, i32
  }
  func.func @transform_2(%arg0: i32, %arg1: i32) -> (i32, i32) {
    %c0_i32 = arith.constant 0 : i32
    %c0_i32_0 = arith.constant 0 : i32
    %c0_i32_1 = arith.constant 0 : i32
    return %c0_i32, %c0_i32_0 : i32, i32
  }
  func.func @transform_3(%arg0: i32, %arg1: i32) -> (i32, i32) {
    %c0_i32 = arith.constant 0 : i32
    %c0_i32_0 = arith.constant 0 : i32
    %c0_i32_1 = arith.constant 0 : i32
    return %c0_i32, %c0_i32_0 : i32, i32
  }
  func.func @transform_4(%arg0: i32, %arg1: i32) -> (i32, i32) {
    %c0_i32 = arith.constant 0 : i32
    %c0_i32_0 = arith.constant 0 : i32
    %c0_i32_1 = arith.constant 0 : i32
    return %c0_i32, %c0_i32_0 : i32, i32
  }
  func.func @transform_5(%arg0: i32, %arg1: i32) -> (i32, i32) {
    %c0_i32 = arith.constant 0 : i32
    %c0_i32_0 = arith.constant 0 : i32
    %c0_i32_1 = arith.constant 0 : i32
    return %c0_i32, %c0_i32_0 : i32, i32
  }
  func.func @transform_6(%arg0: i32, %arg1: i32) -> (i32, i32) {
    %c0_i32 = arith.constant 0 : i32
    %c0_i32_0 = arith.constant 0 : i32
    %c0_i32_1 = arith.constant 0 : i32
    return %c0_i32, %c0_i32_0 : i32, i32
  }
  func.func @transform_7(%arg0: i32, %arg1: i32) -> (i32, i32) {
    %c0_i32 = arith.constant 0 : i32
    %c0_i32_0 = arith.constant 0 : i32
    %c0_i32_1 = arith.constant 0 : i32
    return %c0_i32, %c0_i32_0 : i32, i32
  }
  func.func @transform_8(%arg0: i32, %arg1: i32) -> (i32, i32) {
    %c0_i32 = arith.constant 0 : i32
    %c0_i32_0 = arith.constant 0 : i32
    %c0_i32_1 = arith.constant 0 : i32
    return %c0_i32, %c0_i32_0 : i32, i32
  }
  func.func @transform_9(%arg0: i32, %arg1: i32) -> (i32, i32) {
    %c0_i32 = arith.constant 0 : i32
    %c0_i32_0 = arith.constant 0 : i32
    %c0_i32_1 = arith.constant 0 : i32
    return %c0_i32, %c0_i32_0 : i32, i32
  }
  func.func @transform_10(%arg0: i32, %arg1: i32) -> (i32, i32, i32) {
    %c0_i32 = arith.constant 0 : i32
    %c0_i32_0 = arith.constant 0 : i32
    %c0_i32_1 = arith.constant 0 : i32
    return %arg0, %c0_i32, %c0_i32_0 : i32, i32, i32
  }
}

module attributes {stable_mosaic.version = 11 : i64} {
  func.func @_tnet_head_kernel(%arg0: i32, %arg1: memref<2x1024xf32, #tpu.memory_space<vmem>>, %arg2: memref<1024x512xbf16, #tpu.memory_space<vmem>>, %arg3: memref<512x256xbf16, #tpu.memory_space<vmem>>, %arg4: memref<256x9xbf16, #tpu.memory_space<vmem>>, %arg5: memref<1x9xf32, #tpu.memory_space<vmem>>, %arg6: memref<2x9xf32, #tpu.memory_space<vmem>>) attributes {dimension_semantics = [#tpu.dimension_semantics<arbitrary>], iteration_bounds = array<i64: 1>, scalar_prefetch = 0 : i64, scratch_operands = 0 : i64, tpu.core_type = #tpu.core_type<tc>, window_params = [{pipeline_mode = #tpu.pipeline_mode<synchronous>, transform_indices = @transform_0, window_bounds = array<i64: 2, 1024>}, {pipeline_mode = #tpu.pipeline_mode<synchronous>, transform_indices = @transform_1, window_bounds = array<i64: 1024, 512>}, {pipeline_mode = #tpu.pipeline_mode<synchronous>, transform_indices = @transform_2, window_bounds = array<i64: 512, 256>}, {pipeline_mode = #tpu.pipeline_mode<synchronous>, transform_indices = @transform_3, window_bounds = array<i64: 256, 9>}, {pipeline_mode = #tpu.pipeline_mode<synchronous>, transform_indices = @transform_4, window_bounds = array<i64: 1, 9>}, {pipeline_mode = #tpu.pipeline_mode<synchronous>, transform_indices = @transform_5, window_bounds = array<i64: 2, 9>}]} {
    %c0 = arith.constant 0 : index
    %c0_0 = arith.constant 0 : index
    %0 = vector.load %arg1[%c0, %c0_0] : memref<2x1024xf32, #tpu.memory_space<vmem>>, vector<2x1024xf32>
    %1 = arith.truncf %0 : vector<2x1024xf32> to vector<2x1024xbf16>
    %c0_1 = arith.constant 0 : index
    %c0_2 = arith.constant 0 : index
    %2 = vector.load %arg2[%c0_1, %c0_2] : memref<1024x512xbf16, #tpu.memory_space<vmem>>, vector<1024x512xbf16>
    %cst = arith.constant dense<0.000000e+00> : vector<2x512xf32>
    %3 = tpu.matmul %1, %2, %cst {dimension_numbers = #tpu.dot_dimension_numbers<[1], [0], [0], [1], [0, 0, 1, 1], [], []>} : vector<2x1024xbf16>, vector<1024x512xbf16>, vector<2x512xf32> -> vector<2x512xf32>
    %cst_3 = arith.constant 0.000000e+00 : f32
    %4 = vector.broadcast %cst_3 : f32 to vector<2x512xf32>
    %5 = arith.maximumf %3, %4 : vector<2x512xf32>
    %6 = arith.truncf %5 : vector<2x512xf32> to vector<2x512xbf16>
    %c0_4 = arith.constant 0 : index
    %c0_5 = arith.constant 0 : index
    %7 = vector.load %arg3[%c0_4, %c0_5] : memref<512x256xbf16, #tpu.memory_space<vmem>>, vector<512x256xbf16>
    %cst_6 = arith.constant dense<0.000000e+00> : vector<2x256xf32>
    %8 = tpu.matmul %6, %7, %cst_6 {dimension_numbers = #tpu.dot_dimension_numbers<[1], [0], [0], [1], [0, 0, 1, 1], [], []>} : vector<2x512xbf16>, vector<512x256xbf16>, vector<2x256xf32> -> vector<2x256xf32>
    %cst_7 = arith.constant 0.000000e+00 : f32
    %9 = vector.broadcast %cst_7 : f32 to vector<2x256xf32>
    %10 = arith.maximumf %8, %9 : vector<2x256xf32>
    %11 = arith.truncf %10 : vector<2x256xf32> to vector<2x256xbf16>
    %c0_8 = arith.constant 0 : index
    %c0_9 = arith.constant 0 : index
    %12 = vector.load %arg4[%c0_8, %c0_9] : memref<256x9xbf16, #tpu.memory_space<vmem>>, vector<256x9xbf16>
    %cst_10 = arith.constant dense<0.000000e+00> : vector<2x9xf32>
    %13 = tpu.matmul %11, %12, %cst_10 {dimension_numbers = #tpu.dot_dimension_numbers<[1], [0], [0], [1], [0, 0, 1, 1], [], []>} : vector<2x256xbf16>, vector<256x9xbf16>, vector<2x9xf32> -> vector<2x9xf32>
    %c0_11 = arith.constant 0 : index
    %c0_12 = arith.constant 0 : index
    %14 = vector.load %arg5[%c0_11, %c0_12] : memref<1x9xf32, #tpu.memory_space<vmem>>, vector<1x9xf32>
    %15 = vector.broadcast %14 : vector<1x9xf32> to vector<2x9xf32>
    %16 = arith.addf %13, %15 : vector<2x9xf32>
    %c0_13 = arith.constant 0 : index
    %c0_14 = arith.constant 0 : index
    %17 = vector.load %arg6[%c0_13, %c0_14] : memref<2x9xf32, #tpu.memory_space<vmem>>, vector<2x9xf32>
    tpu.vector_store %arg6[%c0_13, %c0_14], %16 {strides = array<i32>} : memref<2x9xf32, #tpu.memory_space<vmem>>, vector<2x9xf32>,
    return
  }
  func.func @transform_0(%arg0: i32) -> (i32, i32) {
    %c0_i32 = arith.constant 0 : i32
    %c0_i32_0 = arith.constant 0 : i32
    %c0_i32_1 = arith.constant 0 : i32
    return %c0_i32, %c0_i32_0 : i32, i32
  }
  func.func @transform_1(%arg0: i32) -> (i32, i32) {
    %c0_i32 = arith.constant 0 : i32
    %c0_i32_0 = arith.constant 0 : i32
    %c0_i32_1 = arith.constant 0 : i32
    return %c0_i32, %c0_i32_0 : i32, i32
  }
  func.func @transform_2(%arg0: i32) -> (i32, i32) {
    %c0_i32 = arith.constant 0 : i32
    %c0_i32_0 = arith.constant 0 : i32
    %c0_i32_1 = arith.constant 0 : i32
    return %c0_i32, %c0_i32_0 : i32, i32
  }
  func.func @transform_3(%arg0: i32) -> (i32, i32) {
    %c0_i32 = arith.constant 0 : i32
    %c0_i32_0 = arith.constant 0 : i32
    %c0_i32_1 = arith.constant 0 : i32
    return %c0_i32, %c0_i32_0 : i32, i32
  }
  func.func @transform_4(%arg0: i32) -> (i32, i32) {
    %c0_i32 = arith.constant 0 : i32
    %c0_i32_0 = arith.constant 0 : i32
    %c0_i32_1 = arith.constant 0 : i32
    return %c0_i32, %c0_i32_0 : i32, i32
  }
  func.func @transform_5(%arg0: i32) -> (i32, i32) {
    %c0_i32 = arith.constant 0 : i32
    %c0_i32_0 = arith.constant 0 : i32
    %c0_i32_1 = arith.constant 0 : i32
    return %c0_i32, %c0_i32_0 : i32, i32
  }
}

module attributes {stable_mosaic.version = 11 : i64} {
  func.func @_feat_chain_kernel(%arg0: i32, %arg1: i32, %arg2: memref<1x256x8xbf16, #tpu.memory_space<vmem>>, %arg3: memref<1x8x64xbf16, #tpu.memory_space<vmem>>, %arg4: memref<1x64xf32, #tpu.memory_space<vmem>>, %arg5: memref<1x64xf32, #tpu.memory_space<vmem>>, %arg6: memref<64x64xbf16, #tpu.memory_space<vmem>>, %arg7: memref<1x64xf32, #tpu.memory_space<vmem>>, %arg8: memref<1x64xf32, #tpu.memory_space<vmem>>, %arg9: memref<64x64xbf16, #tpu.memory_space<vmem>>, %arg10: memref<1x64xf32, #tpu.memory_space<vmem>>, %arg11: memref<1x64xf32, #tpu.memory_space<vmem>>, %arg12: memref<64x128xbf16, #tpu.memory_space<vmem>>, %arg13: memref<1x128xf32, #tpu.memory_space<vmem>>, %arg14: memref<1x128xf32, #tpu.memory_space<vmem>>, %arg15: memref<128x256xbf16, #tpu.memory_space<vmem>>, %arg16: memref<1x256xf32, #tpu.memory_space<vmem>>, %arg17: memref<1x256xf32, #tpu.memory_space<vmem>>, %arg18: memref<1x1x256xf32, #tpu.memory_space<vmem>>) attributes {dimension_semantics = [#tpu.dimension_semantics<parallel>, #tpu.dimension_semantics<arbitrary>], iteration_bounds = array<i64: 2, 4>, scalar_prefetch = 0 : i64, scratch_operands = 0 : i64, tpu.core_type = #tpu.core_type<tc>, window_params = [{transform_indices = @transform_0, window_bounds = array<i64: 1, 256, 8>}, {transform_indices = @transform_1, window_bounds = array<i64: 1, 8, 64>}, {pipeline_mode = #tpu.pipeline_mode<synchronous>, transform_indices = @transform_2, window_bounds = array<i64: 1, 64>}, {pipeline_mode = #tpu.pipeline_mode<synchronous>, transform_indices = @transform_3, window_bounds = array<i64: 1, 64>}, {pipeline_mode = #tpu.pipeline_mode<synchronous>, transform_indices = @transform_4, window_bounds = array<i64: 64, 64>}, {pipeline_mode = #tpu.pipeline_mode<synchronous>, transform_indices = @transform_5, window_bounds = array<i64: 1, 64>}, {pipeline_mode = #tpu.pipeline_mode<synchronous>, transform_indices = @transform_6, window_bounds = array<i64: 1, 64>}, {pipeline_mode = #tpu.pipeline_mode<synchronous>, transform_indices = @transform_7, window_bounds = array<i64: 64, 64>}, {pipeline_mode = #tpu.pipeline_mode<synchronous>, transform_indices = @transform_8, window_bounds = array<i64: 1, 64>}, {pipeline_mode = #tpu.pipeline_mode<synchronous>, transform_indices = @transform_9, window_bounds = array<i64: 1, 64>}, {pipeline_mode = #tpu.pipeline_mode<synchronous>, transform_indices = @transform_10, window_bounds = array<i64: 64, 128>}, {pipeline_mode = #tpu.pipeline_mode<synchronous>, transform_indices = @transform_11, window_bounds = array<i64: 1, 128>}, {pipeline_mode = #tpu.pipeline_mode<synchronous>, transform_indices = @transform_12, window_bounds = array<i64: 1, 128>}, {pipeline_mode = #tpu.pipeline_mode<synchronous>, transform_indices = @transform_13, window_bounds = array<i64: 128, 256>}, {pipeline_mode = #tpu.pipeline_mode<synchronous>, transform_indices = @transform_14, window_bounds = array<i64: 1, 256>}, {pipeline_mode = #tpu.pipeline_mode<synchronous>, transform_indices = @transform_15, window_bounds = array<i64: 1, 256>}, {transform_indices = @transform_16, window_bounds = array<i64: 1, 1, 256>}]} {
    %c0 = arith.constant 0 : index
    %c0_0 = arith.constant 0 : index
    %c0_1 = arith.constant 0 : index
    %0 = vector.load %arg2[%c0, %c0_0, %c0_1] : memref<1x256x8xbf16, #tpu.memory_space<vmem>>, vector<1x256x8xbf16>
    %1 = vector.shape_cast %0 : vector<1x256x8xbf16> to vector<256x8xbf16>
    %c0_2 = arith.constant 0 : index
    %c0_3 = arith.constant 0 : index
    %c0_4 = arith.constant 0 : index
    %2 = vector.load %arg3[%c0_2, %c0_3, %c0_4] : memref<1x8x64xbf16, #tpu.memory_space<vmem>>, vector<1x8x64xbf16>
    %3 = vector.shape_cast %2 : vector<1x8x64xbf16> to vector<8x64xbf16>
    %cst = arith.constant dense<0.000000e+00> : vector<256x64xf32>
    %4 = tpu.matmul %1, %3, %cst {dimension_numbers = #tpu.dot_dimension_numbers<[1], [0], [0], [1], [0, 0, 1, 1], [], []>} : vector<256x8xbf16>, vector<8x64xbf16>, vector<256x64xf32> -> vector<256x64xf32>
    %c0_5 = arith.constant 0 : index
    %c0_6 = arith.constant 0 : index
    %5 = vector.load %arg4[%c0_5, %c0_6] : memref<1x64xf32, #tpu.memory_space<vmem>>, vector<1x64xf32>
    %6 = vector.broadcast %5 : vector<1x64xf32> to vector<256x64xf32>
    %7 = arith.mulf %4, %6 : vector<256x64xf32>
    %c0_7 = arith.constant 0 : index
    %c0_8 = arith.constant 0 : index
    %8 = vector.load %arg5[%c0_7, %c0_8] : memref<1x64xf32, #tpu.memory_space<vmem>>, vector<1x64xf32>
    %9 = vector.broadcast %8 : vector<1x64xf32> to vector<256x64xf32>
    %10 = arith.addf %7, %9 : vector<256x64xf32>
    %cst_9 = arith.constant 0.000000e+00 : f32
    %11 = vector.broadcast %cst_9 : f32 to vector<256x64xf32>
    %12 = arith.maximumf %10, %11 : vector<256x64xf32>
    %13 = arith.truncf %12 : vector<256x64xf32> to vector<256x64xbf16>
    %c0_10 = arith.constant 0 : index
    %c0_11 = arith.constant 0 : index
    %14 = vector.load %arg6[%c0_10, %c0_11] : memref<64x64xbf16, #tpu.memory_space<vmem>>, vector<64x64xbf16>
    %cst_12 = arith.constant dense<0.000000e+00> : vector<256x64xf32>
    %15 = tpu.matmul %13, %14, %cst_12 {dimension_numbers = #tpu.dot_dimension_numbers<[1], [0], [0], [1], [0, 0, 1, 1], [], []>} : vector<256x64xbf16>, vector<64x64xbf16>, vector<256x64xf32> -> vector<256x64xf32>
    %c0_13 = arith.constant 0 : index
    %c0_14 = arith.constant 0 : index
    %16 = vector.load %arg7[%c0_13, %c0_14] : memref<1x64xf32, #tpu.memory_space<vmem>>, vector<1x64xf32>
    %17 = vector.broadcast %16 : vector<1x64xf32> to vector<256x64xf32>
    %18 = arith.mulf %15, %17 : vector<256x64xf32>
    %c0_15 = arith.constant 0 : index
    %c0_16 = arith.constant 0 : index
    %19 = vector.load %arg8[%c0_15, %c0_16] : memref<1x64xf32, #tpu.memory_space<vmem>>, vector<1x64xf32>
    %20 = vector.broadcast %19 : vector<1x64xf32> to vector<256x64xf32>
    %21 = arith.addf %18, %20 : vector<256x64xf32>
    %cst_17 = arith.constant 0.000000e+00 : f32
    %22 = vector.broadcast %cst_17 : f32 to vector<256x64xf32>
    %23 = arith.maximumf %21, %22 : vector<256x64xf32>
    %24 = arith.truncf %23 : vector<256x64xf32> to vector<256x64xbf16>
    %c0_18 = arith.constant 0 : index
    %c0_19 = arith.constant 0 : index
    %25 = vector.load %arg9[%c0_18, %c0_19] : memref<64x64xbf16, #tpu.memory_space<vmem>>, vector<64x64xbf16>
    %cst_20 = arith.constant dense<0.000000e+00> : vector<256x64xf32>
    %26 = tpu.matmul %24, %25, %cst_20 {dimension_numbers = #tpu.dot_dimension_numbers<[1], [0], [0], [1], [0, 0, 1, 1], [], []>} : vector<256x64xbf16>, vector<64x64xbf16>, vector<256x64xf32> -> vector<256x64xf32>
    %c0_21 = arith.constant 0 : index
    %c0_22 = arith.constant 0 : index
    %27 = vector.load %arg10[%c0_21, %c0_22] : memref<1x64xf32, #tpu.memory_space<vmem>>, vector<1x64xf32>
    %28 = vector.broadcast %27 : vector<1x64xf32> to vector<256x64xf32>
    %29 = arith.mulf %26, %28 : vector<256x64xf32>
    %c0_23 = arith.constant 0 : index
    %c0_24 = arith.constant 0 : index
    %30 = vector.load %arg11[%c0_23, %c0_24] : memref<1x64xf32, #tpu.memory_space<vmem>>, vector<1x64xf32>
    %31 = vector.broadcast %30 : vector<1x64xf32> to vector<256x64xf32>
    %32 = arith.addf %29, %31 : vector<256x64xf32>
    %cst_25 = arith.constant 0.000000e+00 : f32
    %33 = vector.broadcast %cst_25 : f32 to vector<256x64xf32>
    %34 = arith.maximumf %32, %33 : vector<256x64xf32>
    %35 = arith.truncf %34 : vector<256x64xf32> to vector<256x64xbf16>
    %c0_26 = arith.constant 0 : index
    %c0_27 = arith.constant 0 : index
    %36 = vector.load %arg12[%c0_26, %c0_27] : memref<64x128xbf16, #tpu.memory_space<vmem>>, vector<64x128xbf16>
    %cst_28 = arith.constant dense<0.000000e+00> : vector<256x128xf32>
    %37 = tpu.matmul %35, %36, %cst_28 {dimension_numbers = #tpu.dot_dimension_numbers<[1], [0], [0], [1], [0, 0, 1, 1], [], []>} : vector<256x64xbf16>, vector<64x128xbf16>, vector<256x128xf32> -> vector<256x128xf32>
    %c0_29 = arith.constant 0 : index
    %c0_30 = arith.constant 0 : index
    %38 = vector.load %arg13[%c0_29, %c0_30] : memref<1x128xf32, #tpu.memory_space<vmem>>, vector<1x128xf32>
    %39 = vector.broadcast %38 : vector<1x128xf32> to vector<256x128xf32>
    %40 = arith.mulf %37, %39 : vector<256x128xf32>
    %c0_31 = arith.constant 0 : index
    %c0_32 = arith.constant 0 : index
    %41 = vector.load %arg14[%c0_31, %c0_32] : memref<1x128xf32, #tpu.memory_space<vmem>>, vector<1x128xf32>
    %42 = vector.broadcast %41 : vector<1x128xf32> to vector<256x128xf32>
    %43 = arith.addf %40, %42 : vector<256x128xf32>
    %cst_33 = arith.constant 0.000000e+00 : f32
    %44 = vector.broadcast %cst_33 : f32 to vector<256x128xf32>
    %45 = arith.maximumf %43, %44 : vector<256x128xf32>
    %46 = arith.truncf %45 : vector<256x128xf32> to vector<256x128xbf16>
    %c0_34 = arith.constant 0 : index
    %c0_35 = arith.constant 0 : index
    %47 = vector.load %arg15[%c0_34, %c0_35] : memref<128x256xbf16, #tpu.memory_space<vmem>>, vector<128x256xbf16>
    %cst_36 = arith.constant dense<0.000000e+00> : vector<256x256xf32>
    %48 = tpu.matmul %46, %47, %cst_36 {dimension_numbers = #tpu.dot_dimension_numbers<[1], [0], [0], [1], [0, 0, 1, 1], [], []>} : vector<256x128xbf16>, vector<128x256xbf16>, vector<256x256xf32> -> vector<256x256xf32>
    %c0_37 = arith.constant 0 : index
    %c0_38 = arith.constant 0 : index
    %49 = vector.load %arg16[%c0_37, %c0_38] : memref<1x256xf32, #tpu.memory_space<vmem>>, vector<1x256xf32>
    %50 = vector.broadcast %49 : vector<1x256xf32> to vector<256x256xf32>
    %51 = arith.mulf %48, %50 : vector<256x256xf32>
    %c0_39 = arith.constant 0 : index
    %c0_40 = arith.constant 0 : index
    %52 = vector.load %arg17[%c0_39, %c0_40] : memref<1x256xf32, #tpu.memory_space<vmem>>, vector<1x256xf32>
    %53 = vector.broadcast %52 : vector<1x256xf32> to vector<256x256xf32>
    %54 = arith.addf %51, %53 : vector<256x256xf32>
    %cst_41 = arith.constant dense<0xFF800000> : vector<256xf32>
    %55 = vector.multi_reduction <maximumf>, %54, %cst_41 [0] : vector<256x256xf32> to vector<256xf32>
    %56 = vector.shape_cast %55 : vector<256xf32> to vector<1x256xf32>
    %c0_i32 = arith.constant 0 : i32
    %57 = arith.cmpi eq, %arg1, %c0_i32 : i32
    %58 = arith.extui %57 : i1 to i32
    %c0_i32_42 = arith.constant 0 : i32
    %59 = arith.cmpi ne, %58, %c0_i32_42 : i32
    scf.if %59 {
      %cst_49 = arith.constant 0xFF800000 : f32
      %66 = vector.broadcast %cst_49 : f32 to vector<1x1x256xf32>
      %c0_50 = arith.constant 0 : index
      %c0_51 = arith.constant 0 : index
      %c0_52 = arith.constant 0 : index
      %67 = vector.load %arg18[%c0_50, %c0_51, %c0_52] : memref<1x1x256xf32, #tpu.memory_space<vmem>>, vector<1x1x256xf32>
      tpu.vector_store %arg18[%c0_50, %c0_51, %c0_52], %66 {strides = array<i32>} : memref<1x1x256xf32, #tpu.memory_space<vmem>>, vector<1x1x256xf32>,
    } else {
    }
    %c0_43 = arith.constant 0 : index
    %c0_44 = arith.constant 0 : index
    %c0_45 = arith.constant 0 : index
    %60 = vector.load %arg18[%c0_43, %c0_44, %c0_45] : memref<1x1x256xf32, #tpu.memory_space<vmem>>, vector<1x1x256xf32>
    %61 = vector.shape_cast %60 : vector<1x1x256xf32> to vector<1x256xf32>
    %62 = arith.maximumf %61, %56 : vector<1x256xf32>
    %c0_46 = arith.constant 0 : index
    %c0_47 = arith.constant 0 : index
    %c0_48 = arith.constant 0 : index
    %63 = vector.load %arg18[%c0_46, %c0_47, %c0_48] : memref<1x1x256xf32, #tpu.memory_space<vmem>>, vector<1x1x256xf32>
    %64 = vector.shape_cast %63 : vector<1x1x256xf32> to vector<1x256xf32>
    %65 = vector.shape_cast %62 : vector<1x256xf32> to vector<1x1x256xf32>
    tpu.vector_store %arg18[%c0_46, %c0_47, %c0_48], %65 {strides = array<i32>} : memref<1x1x256xf32, #tpu.memory_space<vmem>>, vector<1x1x256xf32>,
    return
  }
  func.func @transform_0(%arg0: i32, %arg1: i32) -> (i32, i32, i32) {
    %c0_i32 = arith.constant 0 : i32
    %c0_i32_0 = arith.constant 0 : i32
    return %arg0, %arg1, %c0_i32 : i32, i32, i32
  }
  func.func @transform_1(%arg0: i32, %arg1: i32) -> (i32, i32, i32) {
    %c0_i32 = arith.constant 0 : i32
    %c0_i32_0 = arith.constant 0 : i32
    %c0_i32_1 = arith.constant 0 : i32
    return %arg0, %c0_i32, %c0_i32_0 : i32, i32, i32
  }
  func.func @transform_2(%arg0: i32, %arg1: i32) -> (i32, i32) {
    %c0_i32 = arith.constant 0 : i32
    %c0_i32_0 = arith.constant 0 : i32
    %c0_i32_1 = arith.constant 0 : i32
    return %c0_i32, %c0_i32_0 : i32, i32
  }
  func.func @transform_3(%arg0: i32, %arg1: i32) -> (i32, i32) {
    %c0_i32 = arith.constant 0 : i32
    %c0_i32_0 = arith.constant 0 : i32
    %c0_i32_1 = arith.constant 0 : i32
    return %c0_i32, %c0_i32_0 : i32, i32
  }
  func.func @transform_4(%arg0: i32, %arg1: i32) -> (i32, i32) {
    %c0_i32 = arith.constant 0 : i32
    %c0_i32_0 = arith.constant 0 : i32
    %c0_i32_1 = arith.constant 0 : i32
    return %c0_i32, %c0_i32_0 : i32, i32
  }
  func.func @transform_5(%arg0: i32, %arg1: i32) -> (i32, i32) {
    %c0_i32 = arith.constant 0 : i32
    %c0_i32_0 = arith.constant 0 : i32
    %c0_i32_1 = arith.constant 0 : i32
    return %c0_i32, %c0_i32_0 : i32, i32
  }
  func.func @transform_6(%arg0: i32, %arg1: i32) -> (i32, i32) {
    %c0_i32 = arith.constant 0 : i32
    %c0_i32_0 = arith.constant 0 : i32
    %c0_i32_1 = arith.constant 0 : i32
    return %c0_i32, %c0_i32_0 : i32, i32
  }
  func.func @transform_7(%arg0: i32, %arg1: i32) -> (i32, i32) {
    %c0_i32 = arith.constant 0 : i32
    %c0_i32_0 = arith.constant 0 : i32
    %c0_i32_1 = arith.constant 0 : i32
    return %c0_i32, %c0_i32_0 : i32, i32
  }
  func.func @transform_8(%arg0: i32, %arg1: i32) -> (i32, i32) {
    %c0_i32 = arith.constant 0 : i32
    %c0_i32_0 = arith.constant 0 : i32
    %c0_i32_1 = arith.constant 0 : i32
    return %c0_i32, %c0_i32_0 : i32, i32
  }
  func.func @transform_9(%arg0: i32, %arg1: i32) -> (i32, i32) {
    %c0_i32 = arith.constant 0 : i32
    %c0_i32_0 = arith.constant 0 : i32
    %c0_i32_1 = arith.constant 0 : i32
    return %c0_i32, %c0_i32_0 : i32, i32
  }
  func.func @transform_10(%arg0: i32, %arg1: i32) -> (i32, i32) {
    %c0_i32 = arith.constant 0 : i32
    %c0_i32_0 = arith.constant 0 : i32
    %c0_i32_1 = arith.constant 0 : i32
    return %c0_i32, %c0_i32_0 : i32, i32
  }
  func.func @transform_11(%arg0: i32, %arg1: i32) -> (i32, i32) {
    %c0_i32 = arith.constant 0 : i32
    %c0_i32_0 = arith.constant 0 : i32
    %c0_i32_1 = arith.constant 0 : i32
    return %c0_i32, %c0_i32_0 : i32, i32
  }
  func.func @transform_12(%arg0: i32, %arg1: i32) -> (i32, i32) {
    %c0_i32 = arith.constant 0 : i32
    %c0_i32_0 = arith.constant 0 : i32
    %c0_i32_1 = arith.constant 0 : i32
    return %c0_i32, %c0_i32_0 : i32, i32
  }
  func.func @transform_13(%arg0: i32, %arg1: i32) -> (i32, i32) {
    %c0_i32 = arith.constant 0 : i32
    %c0_i32_0 = arith.constant 0 : i32
    %c0_i32_1 = arith.constant 0 : i32
    return %c0_i32, %c0_i32_0 : i32, i32
  }
  func.func @transform_14(%arg0: i32, %arg1: i32) -> (i32, i32) {
    %c0_i32 = arith.constant 0 : i32
    %c0_i32_0 = arith.constant 0 : i32
    %c0_i32_1 = arith.constant 0 : i32
    return %c0_i32, %c0_i32_0 : i32, i32
  }
  func.func @transform_15(%arg0: i32, %arg1: i32) -> (i32, i32) {
    %c0_i32 = arith.constant 0 : i32
    %c0_i32_0 = arith.constant 0 : i32
    %c0_i32_1 = arith.constant 0 : i32
    return %c0_i32, %c0_i32_0 : i32, i32
  }
  func.func @transform_16(%arg0: i32, %arg1: i32) -> (i32, i32, i32) {
    %c0_i32 = arith.constant 0 : i32
    %c0_i32_0 = arith.constant 0 : i32
    %c0_i32_1 = arith.constant 0 : i32
    return %arg0, %c0_i32, %c0_i32_0 : i32, i32, i32
  }
}

module attributes {stable_mosaic.version = 11 : i64} {
  func.func @_class_head_kernel(%arg0: i32, %arg1: memref<2x256xf32, #tpu.memory_space<vmem>>, %arg2: memref<256x512xbf16, #tpu.memory_space<vmem>>, %arg3: memref<1x512xf32, #tpu.memory_space<vmem>>, %arg4: memref<1x512xf32, #tpu.memory_space<vmem>>, %arg5: memref<512x256xbf16, #tpu.memory_space<vmem>>, %arg6: memref<1x256xf32, #tpu.memory_space<vmem>>, %arg7: memref<1x256xf32, #tpu.memory_space<vmem>>, %arg8: memref<256x10xbf16, #tpu.memory_space<vmem>>, %arg9: memref<1x10xf32, #tpu.memory_space<vmem>>, %arg10: memref<2x10xf32, #tpu.memory_space<vmem>>, %arg11: memref<2x256xf32, #tpu.memory_space<vmem>>) attributes {dimension_semantics = [#tpu.dimension_semantics<arbitrary>], iteration_bounds = array<i64: 1>, scalar_prefetch = 0 : i64, scratch_operands = 0 : i64, tpu.core_type = #tpu.core_type<tc>, window_params = [{pipeline_mode = #tpu.pipeline_mode<synchronous>, transform_indices = @transform_0, window_bounds = array<i64: 2, 256>}, {pipeline_mode = #tpu.pipeline_mode<synchronous>, transform_indices = @transform_1, window_bounds = array<i64: 256, 512>}, {pipeline_mode = #tpu.pipeline_mode<synchronous>, transform_indices = @transform_2, window_bounds = array<i64: 1, 512>}, {pipeline_mode = #tpu.pipeline_mode<synchronous>, transform_indices = @transform_3, window_bounds = array<i64: 1, 512>}, {pipeline_mode = #tpu.pipeline_mode<synchronous>, transform_indices = @transform_4, window_bounds = array<i64: 512, 256>}, {pipeline_mode = #tpu.pipeline_mode<synchronous>, transform_indices = @transform_5, window_bounds = array<i64: 1, 256>}, {pipeline_mode = #tpu.pipeline_mode<synchronous>, transform_indices = @transform_6, window_bounds = array<i64: 1, 256>}, {pipeline_mode = #tpu.pipeline_mode<synchronous>, transform_indices = @transform_7, window_bounds = array<i64: 256, 10>}, {pipeline_mode = #tpu.pipeline_mode<synchronous>, transform_indices = @transform_8, window_bounds = array<i64: 1, 10>}, {pipeline_mode = #tpu.pipeline_mode<synchronous>, transform_indices = @transform_9, window_bounds = array<i64: 2, 10>}, {pipeline_mode = #tpu.pipeline_mode<synchronous>, transform_indices = @transform_10, window_bounds = array<i64: 2, 256>}]} {
    %c0 = arith.constant 0 : index
    %c0_0 = arith.constant 0 : index
    %0 = vector.load %arg1[%c0, %c0_0] : memref<2x256xf32, #tpu.memory_space<vmem>>, vector<2x256xf32>
    %1 = arith.truncf %0 : vector<2x256xf32> to vector<2x256xbf16>
    %c0_1 = arith.constant 0 : index
    %c0_2 = arith.constant 0 : index
    %2 = vector.load %arg2[%c0_1, %c0_2] : memref<256x512xbf16, #tpu.memory_space<vmem>>, vector<256x512xbf16>
    %cst = arith.constant dense<0.000000e+00> : vector<2x512xf32>
    %3 = tpu.matmul %1, %2, %cst {dimension_numbers = #tpu.dot_dimension_numbers<[1], [0], [0], [1], [0, 0, 1, 1], [], []>} : vector<2x256xbf16>, vector<256x512xbf16>, vector<2x512xf32> -> vector<2x512xf32>
    %c0_3 = arith.constant 0 : index
    %c0_4 = arith.constant 0 : index
    %4 = vector.load %arg3[%c0_3, %c0_4] : memref<1x512xf32, #tpu.memory_space<vmem>>, vector<1x512xf32>
    %5 = vector.broadcast %4 : vector<1x512xf32> to vector<2x512xf32>
    %6 = arith.mulf %3, %5 : vector<2x512xf32>
    %c0_5 = arith.constant 0 : index
    %c0_6 = arith.constant 0 : index
    %7 = vector.load %arg4[%c0_5, %c0_6] : memref<1x512xf32, #tpu.memory_space<vmem>>, vector<1x512xf32>
    %8 = vector.broadcast %7 : vector<1x512xf32> to vector<2x512xf32>
    %9 = arith.addf %6, %8 : vector<2x512xf32>
    %cst_7 = arith.constant 0.000000e+00 : f32
    %10 = vector.broadcast %cst_7 : f32 to vector<2x512xf32>
    %11 = arith.maximumf %9, %10 : vector<2x512xf32>
    %12 = arith.truncf %11 : vector<2x512xf32> to vector<2x512xbf16>
    %c0_8 = arith.constant 0 : index
    %c0_9 = arith.constant 0 : index
    %13 = vector.load %arg5[%c0_8, %c0_9] : memref<512x256xbf16, #tpu.memory_space<vmem>>, vector<512x256xbf16>
    %cst_10 = arith.constant dense<0.000000e+00> : vector<2x256xf32>
    %14 = tpu.matmul %12, %13, %cst_10 {dimension_numbers = #tpu.dot_dimension_numbers<[1], [0], [0], [1], [0, 0, 1, 1], [], []>} : vector<2x512xbf16>, vector<512x256xbf16>, vector<2x256xf32> -> vector<2x256xf32>
    %c0_11 = arith.constant 0 : index
    %c0_12 = arith.constant 0 : index
    %15 = vector.load %arg6[%c0_11, %c0_12] : memref<1x256xf32, #tpu.memory_space<vmem>>, vector<1x256xf32>
    %16 = vector.broadcast %15 : vector<1x256xf32> to vector<2x256xf32>
    %17 = arith.mulf %14, %16 : vector<2x256xf32>
    %c0_13 = arith.constant 0 : index
    %c0_14 = arith.constant 0 : index
    %18 = vector.load %arg7[%c0_13, %c0_14] : memref<1x256xf32, #tpu.memory_space<vmem>>, vector<1x256xf32>
    %19 = vector.broadcast %18 : vector<1x256xf32> to vector<2x256xf32>
    %20 = arith.addf %17, %19 : vector<2x256xf32>
    %cst_15 = arith.constant 0.000000e+00 : f32
    %21 = vector.broadcast %cst_15 : f32 to vector<2x256xf32>
    %22 = arith.maximumf %20, %21 : vector<2x256xf32>
    %c0_16 = arith.constant 0 : index
    %c0_17 = arith.constant 0 : index
    %23 = vector.load %arg11[%c0_16, %c0_17] : memref<2x256xf32, #tpu.memory_space<vmem>>, vector<2x256xf32>
    tpu.vector_store %arg11[%c0_16, %c0_17], %22 {strides = array<i32>} : memref<2x256xf32, #tpu.memory_space<vmem>>, vector<2x256xf32>,
    %24 = arith.truncf %22 : vector<2x256xf32> to vector<2x256xbf16>
    %c0_18 = arith.constant 0 : index
    %c0_19 = arith.constant 0 : index
    %25 = vector.load %arg8[%c0_18, %c0_19] : memref<256x10xbf16, #tpu.memory_space<vmem>>, vector<256x10xbf16>
    %cst_20 = arith.constant dense<0.000000e+00> : vector<2x10xf32>
    %26 = tpu.matmul %24, %25, %cst_20 {dimension_numbers = #tpu.dot_dimension_numbers<[1], [0], [0], [1], [0, 0, 1, 1], [], []>} : vector<2x256xbf16>, vector<256x10xbf16>, vector<2x10xf32> -> vector<2x10xf32>
    %c0_21 = arith.constant 0 : index
    %c0_22 = arith.constant 0 : index
    %27 = vector.load %arg9[%c0_21, %c0_22] : memref<1x10xf32, #tpu.memory_space<vmem>>, vector<1x10xf32>
    %28 = vector.broadcast %27 : vector<1x10xf32> to vector<2x10xf32>
    %29 = arith.addf %26, %28 : vector<2x10xf32>
    %c0_23 = arith.constant 0 : index
    %c0_24 = arith.constant 0 : index
    %30 = vector.load %arg10[%c0_23, %c0_24] : memref<2x10xf32, #tpu.memory_space<vmem>>, vector<2x10xf32>
    tpu.vector_store %arg10[%c0_23, %c0_24], %29 {strides = array<i32>} : memref<2x10xf32, #tpu.memory_space<vmem>>, vector<2x10xf32>,
    return
  }
  func.func @transform_0(%arg0: i32) -> (i32, i32) {
    %c0_i32 = arith.constant 0 : i32
    %c0_i32_0 = arith.constant 0 : i32
    %c0_i32_1 = arith.constant 0 : i32
    return %c0_i32, %c0_i32_0 : i32, i32
  }
  func.func @transform_1(%arg0: i32) -> (i32, i32) {
    %c0_i32 = arith.constant 0 : i32
    %c0_i32_0 = arith.constant 0 : i32
    %c0_i32_1 = arith.constant 0 : i32
    return %c0_i32, %c0_i32_0 : i32, i32
  }
  func.func @transform_2(%arg0: i32) -> (i32, i32) {
    %c0_i32 = arith.constant 0 : i32
    %c0_i32_0 = arith.constant 0 : i32
    %c0_i32_1 = arith.constant 0 : i32
    return %c0_i32, %c0_i32_0 : i32, i32
  }
  func.func @transform_3(%arg0: i32) -> (i32, i32) {
    %c0_i32 = arith.constant 0 : i32
    %c0_i32_0 = arith.constant 0 : i32
    %c0_i32_1 = arith.constant 0 : i32
    return %c0_i32, %c0_i32_0 : i32, i32
  }
  func.func @transform_4(%arg0: i32) -> (i32, i32) {
    %c0_i32 = arith.constant 0 : i32
    %c0_i32_0 = arith.constant 0 : i32
    %c0_i32_1 = arith.constant 0 : i32
    return %c0_i32, %c0_i32_0 : i32, i32
  }
  func.func @transform_5(%arg0: i32) -> (i32, i32) {
    %c0_i32 = arith.constant 0 : i32
    %c0_i32_0 = arith.constant 0 : i32
    %c0_i32_1 = arith.constant 0 : i32
    return %c0_i32, %c0_i32_0 : i32, i32
  }
  func.func @transform_6(%arg0: i32) -> (i32, i32) {
    %c0_i32 = arith.constant 0 : i32
    %c0_i32_0 = arith.constant 0 : i32
    %c0_i32_1 = arith.constant 0 : i32
    return %c0_i32, %c0_i32_0 : i32, i32
  }
  func.func @transform_7(%arg0: i32) -> (i32, i32) {
    %c0_i32 = arith.constant 0 : i32
    %c0_i32_0 = arith.constant 0 : i32
    %c0_i32_1 = arith.constant 0 : i32
    return %c0_i32, %c0_i32_0 : i32, i32
  }
  func.func @transform_8(%arg0: i32) -> (i32, i32) {
    %c0_i32 = arith.constant 0 : i32
    %c0_i32_0 = arith.constant 0 : i32
    %c0_i32_1 = arith.constant 0 : i32
    return %c0_i32, %c0_i32_0 : i32, i32
  }
  func.func @transform_9(%arg0: i32) -> (i32, i32) {
    %c0_i32 = arith.constant 0 : i32
    %c0_i32_0 = arith.constant 0 : i32
    %c0_i32_1 = arith.constant 0 : i32
    return %c0_i32, %c0_i32_0 : i32, i32
  }
  func.func @transform_10(%arg0: i32) -> (i32, i32) {
    %c0_i32 = arith.constant 0 : i32
    %c0_i32_0 = arith.constant 0 : i32
    %c0_i32_1 = arith.constant 0 : i32
    return %c0_i32, %c0_i32_0 : i32, i32
  }
}

</mosaic_0001>

<bundles_post_ra>
// kernel: pn_class_forward.4
= control target key start
LH: loop header
LB: loop body
LE: loop exit
PB: predicated region body
PF: predicated region fallthrough
CT: control target
= control target key end

     0   :  { %s4053_s13 = smov 0   ;;  %s4055_s14 = smov 0   ;;  %s5290_s0 = inlined_call_operand.vmem [shape: bf16[2,1024,8], index: 0, kind: input, shape index: {}]   ;;  %s5291_s1 = inlined_call_operand.vmem [shape: bf16[8,64], index: 1, kind: input, shape index: {}]   ;;  %s5292_s2 = inlined_call_operand.vmem [shape: f32[1,64], index: 2, kind: input, shape index: {}]   ;;  %s5293_s3 = inlined_call_operand.vmem [shape: f32[1,64], index: 3, kind: input, shape index: {}]   ;;  %s5294_s4 = inlined_call_operand.vmem [shape: bf16[64,128], index: 4, kind: input, shape index: {}]   ;;  %s5295_s5 = inlined_call_operand.vmem [shape: f32[1,128], index: 5, kind: input, shape index: {}]   ;;  %s5296_s6 = inlined_call_operand.vmem [shape: f32[1,128], index: 6, kind: input, shape index: {}]   ;;  %s5297_s7 = inlined_call_operand.vmem [shape: bf16[128,1024], index: 7, kind: input, shape index: {}]   ;;  %s5298_s8 = inlined_call_operand.vmem [shape: f32[1,1024], index: 8, kind: input, shape index: {}]   ;;  %s5299_s9 = inlined_call_operand.vmem [shape: f32[1,1024], index: 9, kind: input, shape index: {}]   ;;  %s5300_s10 = inlined_call_operand.vmem [shape: f32[2,1,1024], index: 10, kind: output, shape index: {}]  }
   0x1   :  { %s4057_s15 = smov 0   ;;  %s4059_s16 = smov 0  }
   0x2   :  { %s4061_s17 = smov 0  }
   0x3 LB: > { %s29_s18 = sadd.s32 1, %s3985_s15  ;;  %s32_s19 = sadd.s32 1, %s3989_s16  ;;  %s3993_s17 = sphi %s4061_s17, %s20_s17   ;;  %s3989_s16 = sphi %s4059_s16, %s5304_s16   ;;  %s3985_s15 = sphi %s4057_s15, %s5303_s15   ;;  %s3981_s14 = sphi %s4055_s14, %s5302_s14   ;;  %s3977_s13 = sphi %s4053_s13, %s5301_s13  }
   0x4   : > { %p30_p0 = scmp.ge.s32.totalorder %s29_s18, 4  ;;  %p3652_p1 = scmp.ge.s32.totalorder %s3993_s17, 1 }
   0x5   : > { %p331_p2 = scmp.lt.s32.totalorder %s3993_s17, 9 }
   0x6   : > { %s5306_s18 = smov (%p30_p0, %s29_s18), 0  ;;  %s5308_s19 = smov (!%p30_p0, %s32_s19), %s3989_s16 }
   0x7   : > { %p332_p3 = pnand %p3652_p1, %p331_p2  ;;  %p34_p4 = scmp.ge.s32.totalorder %s5308_s19, 2 }
   0x8   : > { %s3653_s22 = sshll.u32 (!%p332_p3), %s3977_s13, 5  ;;  %p373_p5 = scmp.lt.s32.totalorder (!%p332_p3), %s3981_s14, 1 }
   0x9   : > { %s5310_s19 = smov (%p34_p4, %s5308_s19), 0  ;;  %335 = sbr.rel (%p332_p3) target bundleno = 927 (0x39f), region = 60 }
   0xa   : > { %p375_p6 = scmp.lt.s32.totalorder (!%p332_p3), %s3653_s22, 127  ;;  %p3777_p7 = scmp.ne.s32.totalorder (!%p332_p3), %s3977_s13, 0 }
   0xe   : > { %v419_v0 = vld [vmem:[%s5291_s1] sm:$0xf]  ;;  %vm549_vm0 = vcmask 1043456   ;;  %s5312_s14 = smov (!%p373_p5, %s3981_s14), 1  ;;  %s5314_s22 = smov (!%p375_p6, %s3653_s22), 127  ;;  %vm500_vm1 = vcmask 64512  }
   0xf   : > { %3891 = vmatprep.subr.msk.bf16.mxu0 %vm549_vm0, %v419_v0  ;;  %v551_v1 = vsel %vm549_vm0, %v419_v0, 0  ;;  %s3654_s23 = sshll.u32 %s5312_s14, 7  ;;  %s3656_s24 = sshll.u32 %s5312_s14, 3  ;;  %v3951_v18 = vld [vmem:[%s5294_s4 + $0x18] sm:$0xff]   ;;  %v3952_v19 = vld [vmem:[%s5294_s4 + $0x10] sm:$0xff]   ;;  %v3953_v20 = vld [vmem:[%s5294_s4 + $0x8] sm:$0xff]  }
  0x10   : > { %3818 = vmatpush3.bf16.msra.mxu0 %v551_v1  ;;  %s378_s25 = sadd.s32 %s3654_s23, %s5314_s22  ;;  %s4092_s28 = scalar_lea.vmem %s5300_s10, %s3656_s24  ;;  %3851 = vmatprep.subr.bf16.mxu1 %v3951_v18  ;;  %v3954_v21 = vld [vmem:[%s5294_s4] sm:$0xff]   ;;  %v4152_v24 = vld [vmem:[%s5297_s7 + $0x1c8] sm:$0xff]  ;;  %vm872_vm2 = vcmask 523264  }
  0x11   : > { %s3655_s29 = sshll.u32 %s378_s25, 2  ;;  %3852 = vmatpush3.bf16.msra.mxu1 %v3951_v18  ;;  %v1264_v22 = vld [vmem:[%s5297_s7 + $0x1c0] sm:$0xff]  ;;  %v4157_v27 = vld [vmem:[%s5297_s7 + $0x1e8] sm:$0xff] }
  0x12   : > { %s4097_s12 = scalar_lea.vmem %s5290_s0, %s3655_s29  ;;  %3853 = vmatprep.subr.bf16.mxu1 %v3952_v19  ;;  %v1268_v23 = vld [vmem:[%s5297_s7 + $0x1e0] sm:$0xff]  ;;  %v3771_v30 = vcombine.low %v4152_v24, %v4157_v27  ;;  %v3772_v31 = vcombine.high %v4152_v24, %v4157_v27 }
  0x13   : > { %v3935_v2 = vld [vmem:[%s4097_s12] sm:$0xff]   ;;  %v3936_v3 = vld [vmem:[%s4097_s12 + $0x8] sm:$0xff]   ;;  %v3937_v4 = vld [vmem:[%s4097_s12 + $0x10] sm:$0xff]   ;;  %v3769_v25 = vcombine.low %v1264_v22, %v1268_v23  ;;  %v3770_v26 = vcombine.high %v1264_v22, %v1268_v23 }
  0x14   : > { %3819 = vmatprep.mubr.msk.bf16.mxu0 %vm500_vm1, %v3935_v2  ;;  %v3938_v5 = vld [vmem:[%s4097_s12 + $0x18] sm:$0xff]   ;;  %v3939_v6 = vld [vmem:[%s4097_s12 + $0x20] sm:$0xff]   ;;  %v3940_v7 = vld [vmem:[%s4097_s12 + $0x28] sm:$0xff]  }
  0x15   : > { %3820 = vmatmul.mubr.msk.bf16.vlgmr.msra.gmra.mxu0 %vm500_vm1, %v3936_v3  ;;  %v3941_v8 = vld [vmem:[%s4097_s12 + $0x30] sm:$0xff]   ;;  %v3942_v9 = vld [vmem:[%s4097_s12 + $0x38] sm:$0xff]   ;;  %v3943_v10 = vld [vmem:[%s4097_s12 + $0x40] sm:$0xff]   ;;  %3854 = vmatpush3.bf16.msra.mxu1 %v3952_v19 }
  0x16   : > { %3823 = vmatprep.mubr.msk.bf16.mxu0 %vm500_vm1, %v3937_v4  ;;  %v3944_v11 = vld [vmem:[%s4097_s12 + $0x48] sm:$0xff]   ;;  %v3945_v12 = vld [vmem:[%s4097_s12 + $0x50] sm:$0xff]   ;;  %v3946_v13 = vld [vmem:[%s4097_s12 + $0x58] sm:$0xff]   ;;  %3855 = vmatprep.subr.bf16.mxu1 %v3953_v20 }
  0x17   : > { %v3947_v14 = vld [vmem:[%s4097_s12 + $0x60] sm:$0xff]   ;;  %v3948_v15 = vld [vmem:[%s4097_s12 + $0x68] sm:$0xff]   ;;  %v3949_v16 = vld [vmem:[%s4097_s12 + $0x70] sm:$0xff]   ;;  %1592 = vmatprep.subr.bf16.mxu0 %v3770_v26 }
  0x18   : > { %v3950_v17 = vld [vmem:[%s4097_s12 + $0x78] sm:$0xff]   ;;  %v1256_v28 = vld [vmem:[%s5297_s7 + $0x180] sm:$0xff]  ;;  %1593 = vmatpush1.bf16.msra.mxu0 %v3769_v25  ;;  %v1249_v25 = vld [vmem:[%s5297_s7 + $0x148] sm:$0xff] }
  0x19   : > { %3856 = vmatpush3.bf16.msra.mxu1 %v3953_v20  ;;  %v1260_v29 = vld [vmem:[%s5297_s7 + $0x1a0] sm:$0xff]  ;;  %v1253_v26 = vld [vmem:[%s5297_s7 + $0x168] sm:$0xff] }
  0x1a   : > { %3857 = vmatprep.subr.bf16.mxu1 %v3954_v21  ;;  %v3762_v32 = vcombine.high %v1256_v28, %v1260_v29  ;;  %v1248_v33 = vld [vmem:[%s5297_s7 + $0x140] sm:$0xff]  ;;  %v3761_v35 = vcombine.low %v1256_v28, %v1260_v29 }
  0x1b   : > { %v1252_v34 = vld [vmem:[%s5297_s7 + $0x160] sm:$0xff] }
  0x1c   : > { %1594 = vmatprep.subr.bf16.mxu0 %v3762_v32  ;;  %v3754_v36 = vcombine.high %v1248_v33, %v1252_v34  ;;  %v1240_v37 = vld [vmem:[%s5297_s7 + $0x100] sm:$0xff]  ;;  %v3753_v39 = vcombine.low %v1248_v33, %v1252_v34 }
  0x1d   : > { %3824 = vmatmul.mubr.msk.bf16.gmra.mxu0 %vm500_vm1, %v3938_v5  ;;  %3858 = vmatpush3.bf16.msra.mxu1 %v3954_v21  ;;  %v1244_v38 = vld [vmem:[%s5297_s7 + $0x120] sm:$0xff] }
  0x1e   : > { %3827 = vmatprep.mubr.msk.bf16.mxu0 %vm500_vm1, %v3939_v6  ;;  %1785 = vmatprep.subr.bf16.mxu1 %v3772_v31  ;;  %v3746_v40 = vcombine.high %v1240_v37, %v1244_v38  ;;  %v1232_v41 = vld [vmem:[%s5297_s7 + $0xc0] sm:$0xff]  ;;  %v3745_v43 = vcombine.low %v1240_v37, %v1244_v38  ;;  %v3756_v37 = vcombine.high %v1249_v25, %v1253_v26 }
  0x1f   : > { %1595 = vmatpush1.bf16.msra.mxu0 %v3761_v35  ;;  %v1236_v42 = vld [vmem:[%s5297_s7 + $0xe0] sm:$0xff] }
  0x20   : > { %1596 = vmatprep.subr.bf16.mxu0 %v3754_v36  ;;  %v3738_v44 = vcombine.high %v1232_v41, %v1236_v42  ;;  %v1224_v45 = vld [vmem:[%s5297_s7 + $0x80] sm:$0xff]  ;;  %v3737_v47 = vcombine.low %v1232_v41, %v1236_v42  ;;  %v1245_v41 = vld [vmem:[%s5297_s7 + $0x128] sm:$0xff] }
  0x21   : > { %v1228_v46 = vld [vmem:[%s5297_s7 + $0xa0] sm:$0xff] }
  0x22   : > { %v3730_v48 = vcombine.high %v1224_v45, %v1228_v46  ;;  %v1216_v49 = vld [vmem:[%s5297_s7 + $0x40] sm:$0xff]  ;;  %v3729_v51 = vcombine.low %v1224_v45, %v1228_v46  ;;  %v3755_v45 = vcombine.low %v1249_v25, %v1253_v26 }
  0x23   : > { %1597 = vmatpush1.bf16.msra.mxu0 %v3753_v39  ;;  %v1220_v50 = vld [vmem:[%s5297_s7 + $0x60] sm:$0xff] }
  0x24   : > { %1598 = vmatprep.subr.bf16.mxu0 %v3746_v40  ;;  %v3722_v52 = vcombine.high %v1216_v49, %v1220_v50  ;;  %v3721_v53 = vcombine.low %v1216_v49, %v1220_v50  ;;  %v4202_v55 = vld [vmem:[%s5292_s2] ss:$0 sm:$0xff]  ;;  %v1241_v40 = vld [vmem:[%s5297_s7 + $0x108] sm:$0xff] }
  0x25   : > { %3828 = vmatmul.mubr.msk.bf16.gmra.mxu0 %vm500_vm1, %v3940_v7  ;;  %v4209_v60 = vld [vmem:[%s5293_s3] ss:$0 sm:$0xff]  ;;  %v1233_v50 = vld [vmem:[%s5297_s7 + $0xc8] sm:$0xff] }
  0x26   : > { %3831 = vmatprep.mubr.msk.bf16.mxu0 %vm500_vm1, %v3941_v8 }
  0x27   : > { %1599 = vmatpush1.bf16.msra.mxu0 %v3745_v43 }
  0x28   : > { %1600 = vmatprep.subr.bf16.mxu0 %v3738_v44 }
  0x2b   : > { %1601 = vmatpush1.bf16.msra.mxu0 %v3737_v47  ;;  %v3748_v47 = vcombine.high %v1241_v40, %v1245_v41 }
  0x2c   : > { %1602 = vmatprep.subr.bf16.mxu0 %v3730_v48 }
  0x2d   : > { %3832 = vmatmul.mubr.msk.bf16.gmra.mxu0 %vm500_vm1, %v3942_v9 }
  0x2e   : > { %3835 = vmatprep.mubr.msk.bf16.mxu0 %vm500_vm1, %v3943_v10 }
  0x2f   : > { %1603 = vmatpush1.bf16.msra.mxu0 %v3729_v51  ;;  %v1237_v51 = vld [vmem:[%s5297_s7 + $0xe8] sm:$0xff] }
  0x30   : > { %1604 = vmatprep.subr.bf16.mxu0 %v3722_v52 }
  0x33   : > { %1605 = vmatpush1.bf16.msra.mxu0 %v3721_v53 }
  0x35   : > { %3836 = vmatmul.mubr.msk.bf16.gmra.mxu0 %vm500_vm1, %v3944_v11  ;;  %v1257_v11 = vld [vmem:[%s5297_s7 + $0x188] sm:$0xff] }
  0x36   : > { %3839 = vmatprep.mubr.msk.bf16.mxu0 %vm500_vm1, %v3945_v12  ;;  %v1261_v12 = vld [vmem:[%s5297_s7 + $0x1a8] sm:$0xff] }
  0x37   : > { %v3764_v21 = vcombine.high %v1257_v11, %v1261_v12  ;;  %v3763_v31 = vcombine.low %v1257_v11, %v1261_v12 }
  0x3d   : > { %3840 = vmatmul.mubr.msk.bf16.gmra.mxu0 %vm500_vm1, %v3946_v13 }
  0x3e   : > { %3843 = vmatprep.mubr.msk.bf16.mxu0 %vm500_vm1, %v3947_v14 }
  0x45   : > { %3844 = vmatmul.mubr.msk.bf16.gmra.mxu0 %vm500_vm1, %v3948_v15 }
  0x46   : > { %3847 = vmatprep.mubr.msk.bf16.mxu0 %vm500_vm1, %v3949_v16 }
  0x4d   : > { %3848 = vmatmul.mubr.msk.bf16.gmra.mxu0 %vm500_vm1, %v3950_v17 }
  0xd5   : > { %v3821_v54 = vpop.f32.mrf.mxu0 }
  0xd6   : > { %v723_v58 = vmul.f32 %v3821_v54, %v4202_v55  ;;  %v3747_v54 = vcombine.low %v1241_v40, %v1245_v41 }
  0xd7   : > { %v587_v56 = vpop.f32.mrf.mxu0 }
  0xd8   : > { %v721_v57 = vmul.f32 %v4202_v55, %v587_v56  ;;  %v762_v2 = vadd.f32 %v4209_v60, %v723_v58 }
  0xd9   : > { %v3822_v59 = vpop.f32.mrf.mxu0 }
  0xda   : > { %v724_v61 = vmul.f32 %v3822_v59, %v4202_v55  ;;  %v760_v63 = vadd.f32 %v4209_v60, %v721_v57  ;;  %v794_v13 = vmax.f32 %v762_v2, 0.0  ;;  %v1229_v2 = vld [vmem:[%s5297_s7 + $0xa8] sm:$0xff] }
  0xdb   : > { %v590_v62 = vpop.f32.mrf.mxu0 }
  0xdc   : > { %v763_v0 = vadd.f32 %v4209_v60, %v724_v61  ;;  %v722_v1 = vmul.f32 %v4202_v55, %v590_v62  ;;  %v792_v8 = vmax.f32 %v760_v63, 0.0  ;;  %v3740_v62 = vcombine.high %v1233_v50, %v1237_v51 }
  0xdd   : > { %v3825_v3 = vpop.f32.mrf.mxu0 }
  0xde   : > { %v761_v4 = vadd.f32 %v4209_v60, %v722_v1  ;;  %v727_v5 = vmul.f32 %v3825_v3, %v4202_v55  ;;  %v795_v6 = vmax.f32 %v763_v0, 0.0  ;;  %v1225_v1 = vld [vmem:[%s5297_s7 + $0x88] sm:$0xff] }
  0xdf   : > { %v603_v7 = vpop.f32.mrf.mxu0  ;;  %v3732_v11 = vcombine.high %v1225_v1, %v1229_v2 }
  0xe0   : > { %v725_v9 = vmul.f32 %v4202_v55, %v603_v7  ;;  %v793_v10 = vmax.f32 %v761_v4, 0.0  ;;  %v766_v14 = vadd.f32 %v4209_v60, %v727_v5  ;;  %v825_v19 = vpack.c.bf16 %v795_v6, %v794_v13 }
  0xe1   : > { %v3826_v15 = vpop.f32.mrf.mxu0 }
  0xe2   : > { %v764_v16 = vadd.f32 %v4209_v60, %v725_v9  ;;  %v728_v17 = vmul.f32 %v3826_v15, %v4202_v55  ;;  %v824_v18 = vpack.c.bf16 %v793_v10, %v792_v8  ;;  %v798_v28 = vmax.f32 %v766_v14, 0.0  ;;  %v1217_v14 = vld [vmem:[%s5297_s7 + $0x48] sm:$0xff] }
  0xe3   : > { %v606_v20 = vpop.f32.mrf.mxu0  ;;  %v3739_v9 = vcombine.low %v1233_v50, %v1237_v51  ;;  %v1221_v15 = vld [vmem:[%s5297_s7 + $0x68] sm:$0xff] }
  0xe4   : > { %v767_v22 = vadd.f32 %v4209_v60, %v728_v17  ;;  %v726_v23 = vmul.f32 %v4202_v55, %v606_v20  ;;  %3859 = vmatprep.mubr.msk.bf16.mxu1 %vm872_vm2, %v824_v18  ;;  %v796_v32 = vmax.f32 %v764_v16, 0.0  ;;  %v3731_v18 = vcombine.low %v1225_v1, %v1229_v2 }
  0xe5   : > { %3860 = vmatmul.mubr.msk.bf16.vlgmr.msra.gmra.mxu1 %vm872_vm2, %v825_v19  ;;  %v3829_v29 = vpop.f32.mrf.mxu0  ;;  %v3724_v25 = vcombine.high %v1217_v14, %v1221_v15 }
  0xe6   : > { %v799_v33 = vmax.f32 %v767_v22, 0.0  ;;  %v765_v34 = vadd.f32 %v4209_v60, %v726_v23  ;;  %v731_v35 = vmul.f32 %v3829_v29, %v4202_v55  ;;  %1786 = vmatpush1.bf16.msra.mxu1 %v3771_v30 }
  0xe7   : > { %v619_v36 = vpop.f32.mrf.mxu0  ;;  %1787 = vmatprep.subr.bf16.mxu1 %v3764_v21 }
  0xe8   : > { %v797_v38 = vmax.f32 %v765_v34, 0.0  ;;  %v729_v39 = vmul.f32 %v4202_v55, %v619_v36  ;;  %v827_v42 = vpack.c.bf16 %v799_v33, %v798_v28  ;;  %v770_v43 = vadd.f32 %v4209_v60, %v731_v35 }
  0xe9   : > { %v3830_v44 = vpop.f32.mrf.mxu0  ;;  %v3723_v36 = vcombine.low %v1217_v14, %v1221_v15 }
  0xea   : > { %v826_v24 = vpack.c.bf16 %v797_v38, %v796_v32  ;;  %v768_v27 = vadd.f32 %v4209_v60, %v729_v39  ;;  %v732_v30 = vmul.f32 %v3830_v44, %v4202_v55  ;;  %1788 = vmatpush1.bf16.msra.mxu1 %v3763_v31  ;;  %v802_v52 = vmax.f32 %v770_v43, 0.0 }
  0xeb   : > { %v622_v46 = vpop.f32.mrf.mxu0  ;;  %1789 = vmatprep.subr.bf16.mxu1 %v3756_v37 }
  0xec   : > { %v771_v48 = vadd.f32 %v4209_v60, %v732_v30  ;;  %3863 = vmatprep.mubr.msk.bf16.mxu1 %vm872_vm2, %v826_v24  ;;  %v730_v49 = vmul.f32 %v4202_v55, %v622_v46  ;;  %v800_v56 = vmax.f32 %v768_v27, 0.0 }
  0xed   : > { %3864 = vmatmul.mubr.msk.bf16.gmra.mxu1 %vm872_vm2, %v827_v42  ;;  %v3833_v53 = vpop.f32.mrf.mxu0 }
  0xee   : > { %v803_v57 = vmax.f32 %v771_v48, 0.0  ;;  %v769_v58 = vadd.f32 %v4209_v60, %v730_v49  ;;  %v735_v59 = vmul.f32 %v3833_v53, %v4202_v55  ;;  %1790 = vmatpush1.bf16.msra.mxu1 %v3755_v45 }
  0xef   : > { %v635_v61 = vpop.f32.mrf.mxu0  ;;  %1791 = vmatprep.subr.bf16.mxu1 %v3748_v47 }
  0xf0   : > { %v801_v63 = vmax.f32 %v769_v58, 0.0  ;;  %v733_v0 = vmul.f32 %v4202_v55, %v635_v61  ;;  %v829_v3 = vpack.c.bf16 %v803_v57, %v802_v52  ;;  %v774_v4 = vadd.f32 %v4209_v60, %v735_v59 }
  0xf1   : > { %v3834_v5 = vpop.f32.mrf.mxu0 }
  0xf2   : > { %v828_v6 = vpack.c.bf16 %v801_v63, %v800_v56  ;;  %v772_v7 = vadd.f32 %v4209_v60, %v733_v0  ;;  %v736_v8 = vmul.f32 %v3834_v5, %v4202_v55  ;;  %1792 = vmatpush1.bf16.msra.mxu1 %v3747_v54  ;;  %v806_v16 = vmax.f32 %v774_v4, 0.0 }
  0xf3   : > { %v638_v10 = vpop.f32.mrf.mxu0  ;;  %1793 = vmatprep.subr.bf16.mxu1 %v3740_v62 }
  0xf4   : > { %3867 = vmatprep.mubr.msk.bf16.mxu1 %vm872_vm2, %v828_v6  ;;  %v775_v12 = vadd.f32 %v4209_v60, %v736_v8  ;;  %v734_v13 = vmul.f32 %v4202_v55, %v638_v10  ;;  %v804_v19 = vmax.f32 %v772_v7, 0.0 }
  0xf5   : > { %3868 = vmatmul.mubr.msk.bf16.gmra.mxu1 %vm872_vm2, %v829_v3  ;;  %v3837_v17 = vpop.f32.mrf.mxu0 }
  0xf6   : > { %v807_v20 = vmax.f32 %v775_v12, 0.0  ;;  %v773_v21 = vadd.f32 %v4209_v60, %v734_v13  ;;  %v739_v22 = vmul.f32 %v3837_v17, %v4202_v55  ;;  %1794 = vmatpush1.bf16.msra.mxu1 %v3739_v9 }
  0xf7   : > { %v651_v23 = vpop.f32.mrf.mxu0  ;;  %1795 = vmatprep.subr.bf16.mxu1 %v3732_v11 }
  0xf8   : > { %v805_v26 = vmax.f32 %v773_v21, 0.0  ;;  %v737_v28 = vmul.f32 %v4202_v55, %v651_v23  ;;  %v831_v29 = vpack.c.bf16 %v807_v20, %v806_v16  ;;  %v778_v31 = vadd.f32 %v4209_v60, %v739_v22 }
  0xf9   : > { %v3838_v32 = vpop.f32.mrf.mxu0 }
  0xfa   : > { %v830_v33 = vpack.c.bf16 %v805_v26, %v804_v19  ;;  %v776_v34 = vadd.f32 %v4209_v60, %v737_v28  ;;  %v740_v35 = vmul.f32 %v3838_v32, %v4202_v55  ;;  %1796 = vmatpush1.bf16.msra.mxu1 %v3731_v18  ;;  %v810_v40 = vmax.f32 %v778_v31, 0.0 }
  0xfb   : > { %v654_v37 = vpop.f32.mrf.mxu0  ;;  %1797 = vmatprep.subr.bf16.mxu1 %v3724_v25 }
  0xfc   : > { %3871 = vmatprep.mubr.msk.bf16.mxu1 %vm872_vm2, %v830_v33  ;;  %v779_v38 = vadd.f32 %v4209_v60, %v740_v35  ;;  %v738_v39 = vmul.f32 %v4202_v55, %v654_v37  ;;  %v808_v42 = vmax.f32 %v776_v34, 0.0 }
  0xfd   : > { %3872 = vmatmul.mubr.msk.bf16.gmra.mxu1 %vm872_vm2, %v831_v29  ;;  %v3841_v41 = vpop.f32.mrf.mxu0 }
  0xfe   : > { %v811_v43 = vmax.f32 %v779_v38, 0.0  ;;  %v777_v44 = vadd.f32 %v4209_v60, %v738_v39  ;;  %v743_v24 = vmul.f32 %v3841_v41, %v4202_v55  ;;  %1798 = vmatpush1.bf16.msra.mxu1 %v3723_v36  ;;  %v1208_v39 = vld [vmem:[%s5297_s7] sm:$0xff]  ;;  %v1213_v41 = vld [vmem:[%s5297_s7 + $0x28] sm:$0xff] }
  0xff   : > { %v667_v27 = vpop.f32.mrf.mxu0 }
 0x100   : > { %v809_v30 = vmax.f32 %v777_v44, 0.0  ;;  %v741_v45 = vmul.f32 %v4202_v55, %v667_v27  ;;  %v833_v46 = vpack.c.bf16 %v811_v43, %v810_v40  ;;  %v782_v47 = vadd.f32 %v4209_v60, %v743_v24  ;;  %v1209_v40 = vld [vmem:[%s5297_s7 + $0x8] sm:$0xff]  ;;  %v1266_v27 = vld [vmem:[%s5297_s7 + $0x1d0] sm:$0xff] }
 0x101   : > { %v3842_v48 = vpop.f32.mrf.mxu0  ;;  %v3715_v43 = vcombine.low %v1209_v40, %v1213_v41  ;;  %v3716_v44 = vcombine.high %v1209_v40, %v1213_v41  ;;  %v3995_v24 = vmov 0  }
 0x102   : > { %v832_v49 = vpack.c.bf16 %v809_v30, %v808_v42  ;;  %v780_v50 = vadd.f32 %v4209_v60, %v741_v45  ;;  %v744_v51 = vmul.f32 %v3842_v48, %v4202_v55  ;;  %v814_v56 = vmax.f32 %v782_v47, 0.0  ;;  %1624 = vmatprep.mubr.bf16.mxu0 %v3995_v24  ;;  %v1270_v30 = vld [vmem:[%s5297_s7 + $0x1f0] sm:$0xff]  ;;  %v1267_v45 = vld [vmem:[%s5297_s7 + $0x1d8] sm:$0xff] }
 0x103   : > { %v670_v52 = vpop.f32.mrf.mxu0  ;;  %1799 = vmatprep.subr.bf16.mxu1 %v3716_v44  ;;  %v3774_v47 = vcombine.high %v1266_v27, %v1270_v30  ;;  %v1271_v48 = vld [vmem:[%s5297_s7 + $0x1f8] sm:$0xff] }
 0x104   : > { %3875 = vmatprep.mubr.msk.bf16.mxu1 %vm872_vm2, %v832_v49  ;;  %v783_v53 = vadd.f32 %v4209_v60, %v744_v51  ;;  %v742_v54 = vmul.f32 %v4202_v55, %v670_v52  ;;  %v812_v58 = vmax.f32 %v780_v50, 0.0  ;;  %1800 = vmatpush1.bf16.msra.mxu1 %v3715_v43  ;;  %v3775_v49 = vcombine.low %v1267_v45, %v1271_v48  ;;  %v4357_v52 = vld [vmem:[%s5295_s5] ss:$0 sm:$0xff]  ;;  %v1234_v43 = vld [vmem:[%s5297_s7 + $0xd0] sm:$0xff] }
 0x105   : > { %3876 = vmatmul.mubr.msk.bf16.gmra.mxu1 %vm872_vm2, %v833_v46  ;;  %v3845_v57 = vpop.f32.mrf.mxu0  ;;  %v3773_v46 = vcombine.low %v1266_v27, %v1270_v30  ;;  %v3776_v50 = vcombine.high %v1267_v45, %v1271_v48  ;;  %v1238_v27 = vld [vmem:[%s5297_s7 + $0xf0] sm:$0xff]  ;;  %v1235_v30 = vld [vmem:[%s5297_s7 + $0xd8] sm:$0xff] }
 0x106   : > { %v815_v59 = vmax.f32 %v783_v53, 0.0  ;;  %v781_v61 = vadd.f32 %v4209_v60, %v742_v54  ;;  %v747_v62 = vmul.f32 %v3845_v57, %v4202_v55  ;;  %v4363_v57 = vld [vmem:[%s5296_s6] ss:$0 sm:$0xff]  ;;  %v1239_v45 = vld [vmem:[%s5297_s7 + $0xf8] sm:$0xff] }
 0x107   : > { %v683_v63 = vpop.f32.mrf.mxu0  ;;  %2171 = vmatprep.subr.bf16.mxu1 %v3776_v50 }
 0x108   : > { %v813_v0 = vmax.f32 %v781_v61, 0.0  ;;  %v745_v1 = vmul.f32 %v4202_v55, %v683_v63  ;;  %v835_v2 = vpack.c.bf16 %v815_v59, %v814_v56  ;;  %v786_v3 = vadd.f32 %v4209_v60, %v747_v62 }
 0x109   : > { %v3846_v4 = vpop.f32.mrf.mxu0 }
 0x10a   : > { %v834_v5 = vpack.c.bf16 %v813_v0, %v812_v58  ;;  %v784_v6 = vadd.f32 %v4209_v60, %v745_v1  ;;  %v748_v7 = vmul.f32 %v3846_v4, %v4202_v55  ;;  %v818_v11 = vmax.f32 %v786_v3, 0.0 }
 0x10b   : > { %v686_v8 = vpop.f32.mrf.mxu0 }
 0x10c   : > { %3879 = vmatprep.mubr.msk.bf16.mxu1 %vm872_vm2, %v834_v5  ;;  %v787_v9 = vadd.f32 %v4209_v60, %v748_v7  ;;  %v746_v10 = vmul.f32 %v4202_v55, %v686_v8  ;;  %v816_v13 = vmax.f32 %v784_v6, 0.0  ;;  %v1262_v6 = vld [vmem:[%s5297_s7 + $0x1b0] sm:$0xff]  ;;  %v1259_v7 = vld [vmem:[%s5297_s7 + $0x198] sm:$0xff] }
 0x10d   : > { %3880 = vmatmul.mubr.msk.bf16.gmra.mxu1 %vm872_vm2, %v835_v2  ;;  %v3849_v12 = vpop.f32.mrf.mxu0  ;;  %v1258_v2 = vld [vmem:[%s5297_s7 + $0x190] sm:$0xff]  ;;  %v1263_v8 = vld [vmem:[%s5297_s7 + $0x1b8] sm:$0xff] }
 0x10e   : > { %v819_v14 = vmax.f32 %v787_v9, 0.0  ;;  %v785_v15 = vadd.f32 %v4209_v60, %v746_v10  ;;  %v751_v16 = vmul.f32 %v3849_v12, %v4202_v55  ;;  %v1250_v12 = vld [vmem:[%s5297_s7 + $0x150] sm:$0xff] }
 0x10f   : > { %v699_v17 = vpop.f32.mrf.mxu0 }
 0x110   : > { %v817_v18 = vmax.f32 %v785_v15, 0.0  ;;  %v749_v19 = vmul.f32 %v4202_v55, %v699_v17  ;;  %v837_v20 = vpack.c.bf16 %v819_v14, %v818_v11  ;;  %v790_v21 = vadd.f32 %v4209_v60, %v751_v16  ;;  %v1254_v16 = vld [vmem:[%s5297_s7 + $0x170] sm:$0xff]  ;;  %v1251_v17 = vld [vmem:[%s5297_s7 + $0x158] sm:$0xff] }
 0x111   : > { %v3850_v22 = vpop.f32.mrf.mxu0  ;;  %v3766_v14 = vcombine.high %v1258_v2, %v1262_v6  ;;  %v3768_v15 = vcombine.high %v1259_v7, %v1263_v8 }
 0x112   : > { %v836_v23 = vpack.c.bf16 %v817_v18, %v816_v13  ;;  %v788_v25 = vadd.f32 %v4209_v60, %v749_v19  ;;  %v752_v26 = vmul.f32 %v3850_v22, %v4202_v55  ;;  %v822_v32 = vmax.f32 %v790_v21, 0.0  ;;  %v1255_v18 = vld [vmem:[%s5297_s7 + $0x178] sm:$0xff] }
 0x113   : > { %v702_v28 = vpop.f32.mrf.mxu0  ;;  %v3765_v21 = vcombine.low %v1258_v2, %v1262_v6  ;;  %v3767_v22 = vcombine.low %v1259_v7, %v1263_v8  ;;  %v3759_v40 = vcombine.low %v1251_v17, %v1255_v18  ;;  %v3741_v2 = vcombine.low %v1234_v43, %v1238_v27  ;;  %v4473_v8 = vld [vmem:[%s5297_s7 + $0x50] sm:$0xff] }
 0x114   : > { %3883 = vmatprep.mubr.msk.bf16.mxu1 %vm872_vm2, %v836_v23  ;;  %v791_v29 = vadd.f32 %v4209_v60, %v752_v26  ;;  %v750_v31 = vmul.f32 %v4202_v55, %v702_v28  ;;  %v820_v33 = vmax.f32 %v788_v25, 0.0  ;;  %v1212_v55 = vld [vmem:[%s5297_s7 + $0x20] sm:$0xff]  ;;  %v3758_v26 = vcombine.high %v1250_v12, %v1254_v16 }
 0x115   : > { %3884 = vmatmul.mubr.msk.bf16.gmra.mxu1 %vm872_vm2, %v837_v20  ;;  %v3713_v42 = vcombine.low %v1208_v39, %v1212_v55  ;;  %v3760_v28 = vcombine.high %v1251_v17, %v1255_v18 }
 0x116   : > { %v823_v34 = vmax.f32 %v791_v29, 0.0  ;;  %v789_v35 = vadd.f32 %v4209_v60, %v750_v31  ;;  %v3714_v60 = vcombine.high %v1208_v39, %v1212_v55  ;;  %v1242_v31 = vld [vmem:[%s5297_s7 + $0x110] sm:$0xff] }
 0x118   : > { %v821_v36 = vmax.f32 %v789_v35, 0.0  ;;  %v839_v37 = vpack.c.bf16 %v823_v34, %v822_v32  ;;  %1606 = vmatprep.subr.bf16.mxu0 %v3714_v60  ;;  %v1246_v34 = vld [vmem:[%s5297_s7 + $0x130] sm:$0xff]  ;;  %v1243_v35 = vld [vmem:[%s5297_s7 + $0x118] sm:$0xff] }
 0x119   : > { %1607 = vmatpush1.bf16.msra.mxu0 %v3713_v42  ;;  %v3750_v41 = vcombine.high %v1242_v31, %v1246_v34 }
 0x11a   : > { %v838_v38 = vpack.c.bf16 %v821_v36, %v820_v33  ;;  %1978 = vmatprep.subr.bf16.mxu0 %v3774_v47  ;;  %v1247_v36 = vld [vmem:[%s5297_s7 + $0x138] sm:$0xff] }
 0x11b   : > { %v3752_v42 = vcombine.high %v1243_v35, %v1247_v36  ;;  %v3751_v50 = vcombine.low %v1243_v35, %v1247_v36 }
 0x11c   : > { %3887 = vmatprep.mubr.msk.bf16.mxu1 %vm872_vm2, %v838_v38  ;;  %v3757_v38 = vcombine.low %v1250_v12, %v1254_v16  ;;  %v1219_v12 = vld [vmem:[%s5297_s7 + $0x58] sm:$0xff] }
 0x11d   : > { %3888 = vmatmul.mubr.msk.bf16.gmra.mxu1 %vm872_vm2, %v839_v37 }
 0x11e   : > { %1817 = vmatprep.mubr.bf16.mxu1 %v3995_v24 }
 0x1a5   : > { %v3861_v51 = vpop.f32.mrf.mxu1 }
 0x1a6   : > { %v1091_v3 = vmul.f32 %v3861_v51, %v4357_v52 }
 0x1a7   : > { %v955_v53 = vpop.f32.mrf.mxu1 }
 0x1a8   : > { %v1089_v54 = vmul.f32 %v4357_v52, %v955_v53  ;;  %v1130_v19 = vadd.f32 %v4363_v57, %v1091_v3  ;;  %v3742_v53 = vcombine.high %v1234_v43, %v1238_v27 }
 0x1a9   : > { %v3862_v56 = vpop.f32.mrf.mxu1 }
 0x1aa   : > { %v1128_v59 = vadd.f32 %v4363_v57, %v1089_v54  ;;  %v1092_v63 = vmul.f32 %v3862_v56, %v4357_v52  ;;  %v1162_v32 = vmax.f32 %v1130_v19, 0.0  ;;  %v3744_v54 = vcombine.high %v1235_v30, %v1239_v45  ;;  %v1226_v56 = vld [vmem:[%s5297_s7 + $0x90] sm:$0xff] }
 0x1ab   : > { %v958_v58 = vpop.f32.mrf.mxu1 }
 0x1ac   : > { %v1090_v61 = vmul.f32 %v4357_v52, %v958_v58  ;;  %v1160_v4 = vmax.f32 %v1128_v59, 0.0  ;;  %v1131_v10 = vadd.f32 %v4363_v57, %v1092_v63  ;;  %v1227_v63 = vld [vmem:[%s5297_s7 + $0x98] sm:$0xff] }
 0x1ad   : > { %v4367_v62 = vpop.f32.mrf.mxu1 }
 0x1ae   : > { %v1129_v0 = vadd.f32 %v4363_v57, %v1090_v61  ;;  %v1163_v23 = vmax.f32 %v1131_v10, 0.0  ;;  %v1095_v58 = vmul.f32 %v4367_v62, %v4357_v52  ;;  %v1230_v61 = vld [vmem:[%s5297_s7 + $0xb0] sm:$0xff]  ;;  %v3743_v62 = vcombine.low %v1235_v30, %v1239_v45 }
 0x1af   : > { %v971_v1 = vpop.f32.mrf.mxu1  ;;  %v3734_v6 = vcombine.high %v1226_v56, %v1230_v61  ;;  %v1222_v10 = vld [vmem:[%s5297_s7 + $0x70] sm:$0xff]  ;;  %v3733_v19 = vcombine.low %v1226_v56, %v1230_v61 }
 0x1b0   : > { %v1161_v5 = vmax.f32 %v1129_v0, 0.0  ;;  %v1093_v33 = vmul.f32 %v4357_v52, %v971_v1  ;;  %v4424_v39 = vpack.c.bf16 %v1163_v23, %v1162_v32  ;;  %v1231_v0 = vld [vmem:[%s5297_s7 + $0xb8] sm:$0xff]  ;;  %v3726_v23 = vcombine.high %v4473_v8, %v1222_v10  ;;  %v1214_v32 = vld [vmem:[%s5297_s7 + $0x30] sm:$0xff] }
 0x1b1   : > { %v3866_v9 = vpop.f32.mrf.mxu1  ;;  %v3736_v7 = vcombine.high %v1227_v63, %v1231_v0 }
 0x1b2   : > { %v4385_v11 = vpack.c.bf16 %v1161_v5, %v1160_v4  ;;  %v1132_v44 = vadd.f32 %v4363_v57, %v1093_v33  ;;  %v1096_v47 = vmul.f32 %v3866_v9, %v4357_v52  ;;  %v1134_v9 = vadd.f32 %v4363_v57, %v1095_v58  ;;  %v1211_v33 = vld [vmem:[%s5297_s7 + $0x18] sm:$0xff] }
 0x1b3   : > { %v974_v13 = vpop.f32.mrf.mxu1 }
 0x1b4   : > { %1625 = vmatmul.mubr.bf16.vlgmr.msra.gmra.mxu0 %v4385_v11  ;;  %1818 = vmatmul.mubr.bf16.vlgmr.msra.gmra.mxu1 %v4385_v11  ;;  %v1094_v25 = vmul.f32 %v4357_v52, %v974_v13  ;;  %v1164_v59 = vmax.f32 %v1132_v44, 0.0  ;;  %v1135_v3 = vadd.f32 %v4363_v57, %v1096_v47  ;;  %v1223_v13 = vld [vmem:[%s5297_s7 + $0x78] sm:$0xff] }
 0x1b5   : > { %1979 = vmatpush1.bf16.msra.mxu0 %v3773_v46  ;;  %2172 = vmatpush1.bf16.msra.mxu1 %v3775_v49  ;;  %v4402_v20 = vpop.f32.mrf.mxu1  ;;  %v3749_v49 = vcombine.low %v1242_v31, %v1246_v34  ;;  %v1215_v34 = vld [vmem:[%s5297_s7 + $0x38] sm:$0xff] }
 0x1b6   : > { %1634 = vmatprep.mubr.bf16.mxu0 %v3995_v24  ;;  %1827 = vmatprep.mubr.bf16.mxu1 %v3995_v24  ;;  %v1133_v55 = vadd.f32 %v4363_v57, %v1094_v25  ;;  %v1167_v17 = vmax.f32 %v1135_v3, 0.0  ;;  %v3728_v25 = vcombine.high %v1219_v12, %v1223_v13  ;;  %v3720_v30 = vcombine.high %v1211_v33, %v1215_v34 }
 0x1b7   : > { %v4407_v29 = vpop.f32.mrf.mxu1  ;;  %1980 = vmatprep.subr.bf16.mxu0 %v3766_v14  ;;  %2173 = vmatprep.subr.bf16.mxu1 %v3768_v15 }
 0x1b8   : > { %v1165_v48 = vmax.f32 %v1133_v55, 0.0  ;;  %v1097_v14 = vmul.f32 %v4357_v52, %v4407_v29  ;;  %v3725_v55 = vcombine.low %v4473_v8, %v1222_v10 }
 0x1b9   : > { %v4422_v37 = vpop.f32.mrf.mxu1  ;;  %1981 = vmatpush1.bf16.msra.mxu0 %v3765_v21  ;;  %2174 = vmatpush1.bf16.msra.mxu1 %v3767_v22  ;;  %v3735_v21 = vcombine.low %v1227_v63, %v1231_v0 }
 0x1ba   : > { %1982 = vmatprep.subr.bf16.mxu0 %v3758_v26  ;;  %2175 = vmatprep.subr.bf16.mxu1 %v3760_v28  ;;  %v4466_v4 = vpack.c.bf16 %v1165_v48, %v1164_v59  ;;  %v1210_v26 = vld [vmem:[%s5297_s7 + $0x10] sm:$0xff]  ;;  %v1166_v28 = vmax.f32 %v1134_v9, 0.0  ;;  %v1136_v35 = vadd.f32 %v4363_v57, %v1097_v14 }
 0x1bb   : > { %v990_v60 = vpop.f32.mrf.mxu1  ;;  %v3717_v44 = vcombine.low %v1210_v26, %v1214_v32  ;;  %v3718_v27 = vcombine.high %v1210_v26, %v1214_v32 }
 0x1bc   : > { %1635 = vmatmul.mubr.bf16.gmra.mxu0 %v4424_v39  ;;  %1828 = vmatmul.mubr.bf16.gmra.mxu1 %v4424_v39  ;;  %v1098_v15 = vmul.f32 %v4357_v52, %v990_v60  ;;  %v4511_v60 = vpack.c.bf16 %v1167_v17, %v1166_v28 }
 0x1bd   : > { %1644 = vmatprep.mubr.bf16.mxu0 %v3995_v24  ;;  %1837 = vmatprep.mubr.bf16.mxu1 %v3995_v24  ;;  %v4444_v46 = vpop.f32.mrf.mxu1 }
 0x1be   : > { %1983 = vmatpush1.bf16.msra.mxu0 %v3757_v38  ;;  %2176 = vmatpush1.bf16.msra.mxu1 %v3759_v40  ;;  %v1137_v36 = vadd.f32 %v4363_v57, %v1098_v15  ;;  %v3727_v40 = vcombine.low %v1219_v12, %v1223_v13 }
 0x1bf   : > { %v4447_v51 = vpop.f32.mrf.mxu1  ;;  %1984 = vmatprep.subr.bf16.mxu0 %v3750_v41  ;;  %2177 = vmatprep.subr.bf16.mxu1 %v3752_v42 }
 0x1c0   : > { %v1169_v56 = vmax.f32 %v1137_v36, 0.0 }
 0x1c1   : > { %v4463_v1 = vpop.f32.mrf.mxu1 }
 0x1c2   : > { %1985 = vmatpush1.bf16.msra.mxu0 %v3749_v49  ;;  %2178 = vmatpush1.bf16.msra.mxu1 %v3751_v50  ;;  %v3719_v49 = vcombine.low %v1211_v33, %v1215_v34  ;;  %v1099_v50 = vmul.f32 %v4402_v20, %v4357_v52 }
 0x1c3   : > { %v4468_v5 = vpop.f32.mrf.mxu1  ;;  %1986 = vmatprep.subr.bf16.mxu0 %v3742_v53  ;;  %2179 = vmatprep.subr.bf16.mxu1 %v3744_v54  ;;  %v1168_v53 = vmax.f32 %v1136_v35, 0.0  ;;  %v1100_v54 = vmul.f32 %v4422_v37, %v4357_v52 }
 0x1c4   : > { %1645 = vmatmul.mubr.bf16.gmra.mxu0 %v4466_v4  ;;  %1838 = vmatmul.mubr.bf16.gmra.mxu1 %v4466_v4 }
 0x1c5   : > { %1654 = vmatprep.mubr.bf16.mxu0 %v3995_v24  ;;  %1847 = vmatprep.mubr.bf16.mxu1 %v3995_v24  ;;  %v3877_v16 = vpop.f32.mrf.mxu1  ;;  %v4533_v8 = vpack.c.bf16 %v1169_v56, %v1168_v53 }
 0x1c6   : > { %v1107_v18 = vmul.f32 %v3877_v16, %v4357_v52  ;;  %1987 = vmatpush1.bf16.msra.mxu0 %v3741_v2  ;;  %2180 = vmatpush1.bf16.msra.mxu1 %v3743_v62 }
 0x1c7   : > { %v1019_v22 = vpop.f32.mrf.mxu1  ;;  %1988 = vmatprep.subr.bf16.mxu0 %v3734_v6  ;;  %2181 = vmatprep.subr.bf16.mxu1 %v3736_v7  ;;  %v1138_v6 = vadd.f32 %v4363_v57, %v1099_v50  ;;  %v1139_v7 = vadd.f32 %v4363_v57, %v1100_v54 }
 0x1c8   : > { %v1146_v29 = vadd.f32 %v4363_v57, %v1107_v18  ;;  %v1105_v31 = vmul.f32 %v4357_v52, %v1019_v22  ;;  %v1102_v22 = vmul.f32 %v4357_v52, %v4468_v5 }
 0x1c9   : > { %v3878_v38 = vpop.f32.mrf.mxu1  ;;  %v1170_v18 = vmax.f32 %v1138_v6, 0.0 }
 0x1ca   : > { %v1144_v41 = vadd.f32 %v4363_v57, %v1105_v31  ;;  %v1108_v42 = vmul.f32 %v3878_v38, %v4357_v52  ;;  %1989 = vmatpush1.bf16.msra.mxu0 %v3733_v19  ;;  %2182 = vmatpush1.bf16.msra.mxu1 %v3735_v21  ;;  %v1178_v45 = vmax.f32 %v1146_v29, 0.0  ;;  %v1171_v19 = vmax.f32 %v1139_v7, 0.0 }
 0x1cb   : > { %v1022_v43 = vpop.f32.mrf.mxu1  ;;  %1990 = vmatprep.subr.bf16.mxu0 %v3726_v23  ;;  %2183 = vmatprep.subr.bf16.mxu1 %v3728_v25  ;;  %v1101_v21 = vmul.f32 %v4357_v52, %v4447_v51  ;;  %v1141_v35 = vadd.f32 %v4363_v57, %v1102_v22 }
 0x1cc   : > { %1655 = vmatmul.mubr.bf16.gmra.mxu0 %v4511_v60  ;;  %1848 = vmatmul.mubr.bf16.gmra.mxu1 %v4511_v60  ;;  %v1147_v47 = vadd.f32 %v4363_v57, %v1108_v42  ;;  %v1106_v48 = vmul.f32 %v4357_v52, %v1022_v43  ;;  %v1176_v59 = vmax.f32 %v1144_v41, 0.0  ;;  %v4557_v38 = vpack.c.bf16 %v1171_v19, %v1170_v18 }
 0x1cd   : > { %1664 = vmatprep.mubr.bf16.mxu0 %v3995_v24  ;;  %1857 = vmatprep.mubr.bf16.mxu1 %v3995_v24  ;;  %v3881_v58 = vpop.f32.mrf.mxu1  ;;  %v1140_v5 = vadd.f32 %v4363_v57, %v1101_v21 }
 0x1ce   : > { %v1179_v61 = vmax.f32 %v1147_v47, 0.0  ;;  %v1145_v63 = vadd.f32 %v4363_v57, %v1106_v48  ;;  %v1111_v0 = vmul.f32 %v3881_v58, %v4357_v52  ;;  %1991 = vmatpush1.bf16.msra.mxu0 %v3725_v55  ;;  %2184 = vmatpush1.bf16.msra.mxu1 %v3727_v40  ;;  %v1104_v47 = vmul.f32 %v4463_v1, %v4357_v52 }
 0x1cf   : > { %v1035_v2 = vpop.f32.mrf.mxu1  ;;  %1992 = vmatprep.subr.bf16.mxu0 %v3718_v27  ;;  %2185 = vmatprep.subr.bf16.mxu1 %v3720_v30  ;;  %v1103_v30 = vmul.f32 %v4444_v46, %v4357_v52  ;;  %v1173_v48 = vmax.f32 %v1141_v35, 0.0 }
 0x1d0   : > { %v4527_v20 = vpack.c.bf16 %v1179_v61, %v1178_v45  ;;  %v1177_v37 = vmax.f32 %v1145_v63, 0.0  ;;  %v1150_v3 = vadd.f32 %v4363_v57, %v1111_v0  ;;  %v1109_v62 = vmul.f32 %v4357_v52, %v1035_v2 }
 0x1d1   : > { %v3882_v9 = vpop.f32.mrf.mxu1  ;;  %v1172_v45 = vmax.f32 %v1140_v5, 0.0  ;;  %v1142_v63 = vadd.f32 %v4363_v57, %v1103_v30  ;;  %v1143_v0 = vadd.f32 %v4363_v57, %v1104_v47 }
 0x1d2   : > { %v4535_v10 = vpack.c.bf16 %v1177_v37, %v1176_v59  ;;  %v1148_v12 = vadd.f32 %v4363_v57, %v1109_v62  ;;  %v1112_v13 = vmul.f32 %v3882_v9, %v4357_v52  ;;  %1993 = vmatpush1.bf16.msra.mxu0 %v3717_v44  ;;  %2186 = vmatpush1.bf16.msra.mxu1 %v3719_v49  ;;  %v1182_v15 = vmax.f32 %v1150_v3, 0.0 }
 0x1d3   : > { %v1038_v14 = vpop.f32.mrf.mxu1  ;;  %v4581_v37 = vpack.c.bf16 %v1173_v48, %v1172_v45 }
 0x1d4   : > { %1665 = vmatmul.mubr.bf16.gmra.mxu0 %v4533_v8  ;;  %1858 = vmatmul.mubr.bf16.gmra.mxu1 %v4533_v8  ;;  %v1151_v16 = vadd.f32 %v4363_v57, %v1112_v13  ;;  %v1110_v17 = vmul.f32 %v4357_v52, %v1038_v14  ;;  %v1180_v25 = vmax.f32 %v1148_v12, 0.0  ;;  %v1174_v14 = vmax.f32 %v1142_v63, 0.0 }
 0x1d5   : > { %1674 = vmatprep.mubr.bf16.mxu0 %v3995_v24  ;;  %1867 = vmatprep.mubr.bf16.mxu1 %v3995_v24  ;;  %v3885_v23 = vpop.f32.mrf.mxu1 }
 0x1d6   : > { %v1183_v26 = vmax.f32 %v1151_v16, 0.0  ;;  %v1149_v28 = vadd.f32 %v4363_v57, %v1110_v17  ;;  %v1115_v29 = vmul.f32 %v3885_v23, %v4357_v52 }
 0x1d7   : > { %v1051_v31 = vpop.f32.mrf.mxu1 }
 0x1d8   : > { %v4551_v32 = vpack.c.bf16 %v1183_v26, %v1182_v15  ;;  %v1181_v33 = vmax.f32 %v1149_v28, 0.0  ;;  %v1154_v51 = vadd.f32 %v4363_v57, %v1115_v29  ;;  %v1113_v34 = vmul.f32 %v4357_v52, %v1051_v31  ;;  %v2662_v26 = vld [vmem:[%s5299_s9] sm:$0xff] }
 0x1d9   : > { %v3886_v36 = vpop.f32.mrf.mxu1  ;;  %v1175_v15 = vmax.f32 %v1143_v0, 0.0 }
 0x1da   : > { %v4559_v55 = vpack.c.bf16 %v1181_v33, %v1180_v25  ;;  %v1152_v40 = vadd.f32 %v4363_v57, %v1113_v34  ;;  %v1116_v41 = vmul.f32 %v3886_v36, %v4357_v52  ;;  %v1186_v43 = vmax.f32 %v1154_v51, 0.0 }
 0x1db   : > { %v1054_v42 = vpop.f32.mrf.mxu1  ;;  %v4596_v22 = vpack.c.bf16 %v1175_v15, %v1174_v14 }
 0x1dc   : > { %1675 = vmatmul.mubr.bf16.gmra.mxu0 %v4557_v38  ;;  %1868 = vmatmul.mubr.bf16.gmra.mxu1 %v4557_v38  ;;  %v1155_v44 = vadd.f32 %v4363_v57, %v1116_v41  ;;  %v1114_v27 = vmul.f32 %v4357_v52, %v1054_v42  ;;  %v1184_v50 = vmax.f32 %v1152_v40, 0.0 }
 0x1dd   : > { %1684 = vmatprep.mubr.bf16.mxu0 %v3995_v24  ;;  %1877 = vmatprep.mubr.bf16.mxu1 %v3995_v24  ;;  %v3889_v49 = vpop.f32.mrf.mxu1 }
 0x1de   : > { %v1187_v53 = vmax.f32 %v1155_v44, 0.0  ;;  %v1153_v54 = vadd.f32 %v4363_v57, %v1114_v27  ;;  %v1119_v56 = vmul.f32 %v3889_v49, %v4357_v52 }
 0x1df   : > { %v1067_v58 = vpop.f32.mrf.mxu1 }
 0x1e0   : > { %v4575_v59 = vpack.c.bf16 %v1187_v53, %v1186_v43  ;;  %v1185_v46 = vmax.f32 %v1153_v54, 0.0  ;;  %v1158_v61 = vadd.f32 %v4363_v57, %v1119_v56  ;;  %v1117_v1 = vmul.f32 %v4357_v52, %v1067_v58 }
 0x1e1   : > { %v3890_v2 = vpop.f32.mrf.mxu1 }
 0x1e2   : > { %v4583_v3 = vpack.c.bf16 %v1185_v46, %v1184_v50  ;;  %v1156_v62 = vadd.f32 %v4363_v57, %v1117_v1  ;;  %v1120_v6 = vmul.f32 %v3890_v2, %v4357_v52  ;;  %v1190_v9 = vmax.f32 %v1158_v61, 0.0 }
 0x1e3   : > { %v1070_v7 = vpop.f32.mrf.mxu1 }
 0x1e4   : > { %1685 = vmatmul.mubr.bf16.gmra.mxu0 %v4581_v37  ;;  %1878 = vmatmul.mubr.bf16.gmra.mxu1 %v4581_v37  ;;  %v1159_v12 = vadd.f32 %v4363_v57, %v1120_v6  ;;  %v1118_v13 = vmul.f32 %v4357_v52, %v1070_v7  ;;  %v1188_v16 = vmax.f32 %v1156_v62, 0.0  ;;  %v2366_v52 = vlaneseq }
 0x1e5   : > { %1694 = vmatprep.mubr.bf16.mxu0 %v3995_v24  ;;  %1887 = vmatprep.mubr.bf16.mxu1 %v3995_v24 }
 0x1e6   : > { %v1191_v17 = vmax.f32 %v1159_v12, 0.0  ;;  %v1157_v18 = vadd.f32 %v4363_v57, %v1118_v13  ;;  %v4664_v57 = vshrl.u32 %v2366_v52, 7 }
 0x1e8   : > { %v4594_v19 = vpack.c.bf16 %v1191_v17, %v1190_v9  ;;  %v1189_v21 = vmax.f32 %v1157_v18, 0.0  ;;  %v2384_v35 = vsub.s32 4, %v4664_v57  ;;  %v2392_v36 = vsub.s32 6, %v4664_v57 }
 0x1e9   : > { %v2388_v41 = vsub.s32 5, %v4664_v57  ;;  %v2396_v42 = vsub.s32 7, %v4664_v57 }
 0x1ea   : > { %v4598_v23 = vpack.c.bf16 %v1189_v21, %v1188_v16  ;;  %v4714_v56 = vrot.slane %v2662_v26, %v2384_v35  ;;  %v4716_v58 = vrot.slane %v2662_v26, %v2392_v36 }
 0x1eb   : > { %v4728_v9 = vrot.slane %v2662_v26, %v2388_v41  ;;  %v4730_v12 = vrot.slane %v2662_v26, %v2396_v42 }
 0x1ec   : > { %1695 = vmatmul.mubr.bf16.gmra.mxu0 %v4596_v22  ;;  %1888 = vmatmul.mubr.bf16.gmra.mxu1 %v4596_v22 }
 0x1ed   : > { %1704 = vmatprep.mubr.bf16.mxu0 %v3995_v24  ;;  %1897 = vmatprep.mubr.bf16.mxu1 %v3995_v24 }
 0x1f4   : > { %1705 = vmatmul.mubr.bf16.gmra.mxu0 %v4535_v10  ;;  %1898 = vmatmul.mubr.bf16.gmra.mxu1 %v4535_v10 }
 0x1f5   : > { %1714 = vmatprep.mubr.bf16.mxu0 %v3995_v24  ;;  %1907 = vmatprep.mubr.bf16.mxu1 %v3995_v24 }
 0x1fc   : > { %1715 = vmatmul.mubr.bf16.gmra.mxu0 %v4527_v20  ;;  %1908 = vmatmul.mubr.bf16.gmra.mxu1 %v4527_v20 }
 0x1fd   : > { %1724 = vmatprep.mubr.bf16.mxu0 %v3995_v24  ;;  %1917 = vmatprep.mubr.bf16.mxu1 %v3995_v24 }
 0x204   : > { %1725 = vmatmul.mubr.bf16.gmra.mxu0 %v4559_v55  ;;  %1918 = vmatmul.mubr.bf16.gmra.mxu1 %v4559_v55 }
 0x205   : > { %1734 = vmatprep.mubr.bf16.mxu0 %v3995_v24  ;;  %1927 = vmatprep.mubr.bf16.mxu1 %v3995_v24 }
 0x20c   : > { %1735 = vmatmul.mubr.bf16.gmra.mxu0 %v4551_v32  ;;  %1928 = vmatmul.mubr.bf16.gmra.mxu1 %v4551_v32 }
 0x20d   : > { %1744 = vmatprep.mubr.bf16.mxu0 %v3995_v24  ;;  %1937 = vmatprep.mubr.bf16.mxu1 %v3995_v24 }
 0x214   : > { %1745 = vmatmul.mubr.bf16.gmra.mxu0 %v4583_v3  ;;  %1938 = vmatmul.mubr.bf16.gmra.mxu1 %v4583_v3 }
 0x215   : > { %1754 = vmatprep.mubr.bf16.mxu0 %v3995_v24  ;;  %1947 = vmatprep.mubr.bf16.mxu1 %v3995_v24 }
 0x21c   : > { %1755 = vmatmul.mubr.bf16.gmra.mxu0 %v4575_v59  ;;  %1948 = vmatmul.mubr.bf16.gmra.mxu1 %v4575_v59 }
 0x21d   : > { %1764 = vmatprep.mubr.bf16.mxu0 %v3995_v24  ;;  %1957 = vmatprep.mubr.bf16.mxu1 %v3995_v24 }
 0x224   : > { %1765 = vmatmul.mubr.bf16.gmra.mxu0 %v4598_v23  ;;  %1958 = vmatmul.mubr.bf16.gmra.mxu1 %v4598_v23 }
 0x225   : > { %1774 = vmatprep.mubr.bf16.mxu0 %v3995_v24  ;;  %1967 = vmatprep.mubr.bf16.mxu1 %v3995_v24 }
 0x22c   : > { %1775 = vmatmul.mubr.bf16.gmra.mxu0 %v4594_v19  ;;  %1968 = vmatmul.mubr.bf16.gmra.mxu1 %v4594_v19 }
 0x22d   : > { %2010 = vmatprep.mubr.bf16.mxu0 %v3995_v24  ;;  %2203 = vmatprep.mubr.bf16.mxu1 %v3995_v24 }
 0x234   : > { %2011 = vmatmul.mubr.bf16.vlgmr.msra.gmra.mxu0 %v4385_v11  ;;  %2204 = vmatmul.mubr.bf16.vlgmr.msra.gmra.mxu1 %v4385_v11  ;;  %v2368_v11 = vsub.s32 0, %v4664_v57 }
 0x235   : > { %2020 = vmatprep.mubr.bf16.mxu0 %v3995_v24  ;;  %2213 = vmatprep.mubr.bf16.mxu1 %v3995_v24 }
 0x236   : > { %v4688_v51 = vrot.slane %v2662_v26, %v2368_v11 }
 0x23c   : > { %2021 = vmatmul.mubr.bf16.gmra.mxu0 %v4424_v39  ;;  %2214 = vmatmul.mubr.bf16.gmra.mxu1 %v4424_v39  ;;  %v2376_v39 = vsub.s32 2, %v4664_v57 }
 0x23d   : > { %2030 = vmatprep.mubr.bf16.mxu0 %v3995_v24  ;;  %2223 = vmatprep.mubr.bf16.mxu1 %v3995_v24 }
 0x23e   : > { %v4690_v5 = vrot.slane %v2662_v26, %v2376_v39 }
 0x244   : > { %2031 = vmatmul.mubr.bf16.gmra.mxu0 %v4466_v4  ;;  %2224 = vmatmul.mubr.bf16.gmra.mxu1 %v4466_v4  ;;  %v2364_v4 = vld [vmem:[%s5298_s8] sm:$0xff] }
 0x245   : > { %2040 = vmatprep.mubr.bf16.mxu0 %v3995_v24  ;;  %2233 = vmatprep.mubr.bf16.mxu1 %v3995_v24  ;;  %v4677_v25 = vrot.slane %v2364_v4, %v2368_v11  ;;  %v4682_v28 = vrot.slane %v2364_v4, %v2376_v39  ;;  %v4710_v53 = vrot.slane %v2364_v4, %v2384_v35 }
 0x246   : > { %v4712_v54 = vrot.slane %v2364_v4, %v2392_v36  ;;  %v4718_v46 = vrot.slane %v2364_v4, %v2388_v41  ;;  %v4720_v61 = vrot.slane %v2364_v4, %v2396_v42 }
 0x24c   : > { %2041 = vmatmul.mubr.bf16.gmra.mxu0 %v4511_v60  ;;  %2234 = vmatmul.mubr.bf16.gmra.mxu1 %v4511_v60  ;;  %v2372_v60 = vsub.s32 1, %v4664_v57 }
 0x24d   : > { %2050 = vmatprep.mubr.bf16.mxu0 %v3995_v24  ;;  %2243 = vmatprep.mubr.bf16.mxu1 %v3995_v24 }
 0x24e   : > { %v4684_v29 = vrot.slane %v2364_v4, %v2372_v60  ;;  %v4702_v44 = vrot.slane %v2662_v26, %v2372_v60 }
 0x254   : > { %2051 = vmatmul.mubr.bf16.gmra.mxu0 %v4533_v8  ;;  %2244 = vmatmul.mubr.bf16.gmra.mxu1 %v4533_v8  ;;  %v2380_v8 = vsub.s32 3, %v4664_v57 }
 0x255   : > { %2060 = vmatprep.mubr.bf16.mxu0 %v3995_v24  ;;  %2253 = vmatprep.mubr.bf16.mxu1 %v3995_v24 }
 0x256   : > { %v4686_v31 = vrot.slane %v2364_v4, %v2380_v8  ;;  %v4704_v27 = vrot.slane %v2662_v26, %v2380_v8 }
 0x25c   : > { %2061 = vmatmul.mubr.bf16.gmra.mxu0 %v4557_v38  ;;  %2254 = vmatmul.mubr.bf16.gmra.mxu1 %v4557_v38 }
 0x25d   : > { %2070 = vmatprep.mubr.bf16.mxu0 %v3995_v24  ;;  %2263 = vmatprep.mubr.bf16.mxu1 %v3995_v24 }
 0x264   : > { %2071 = vmatmul.mubr.bf16.gmra.mxu0 %v4581_v37  ;;  %2264 = vmatmul.mubr.bf16.gmra.mxu1 %v4581_v37 }
 0x265   : > { %2080 = vmatprep.mubr.bf16.mxu0 %v3995_v24  ;;  %2273 = vmatprep.mubr.bf16.mxu1 %v3995_v24 }
 0x26c   : > { %2081 = vmatmul.mubr.bf16.gmra.mxu0 %v4596_v22  ;;  %2274 = vmatmul.mubr.bf16.gmra.mxu1 %v4596_v22 }
 0x26d   : > { %2090 = vmatprep.mubr.bf16.mxu0 %v3995_v24  ;;  %2283 = vmatprep.mubr.bf16.mxu1 %v3995_v24 }
 0x274   : > { %v1626_v33 = vpop.f32.mrf.mxu0  ;;  %v1819_v34 = vpop.f32.mrf.mxu1  ;;  %2091 = vmatmul.mubr.bf16.gmra.mxu0 %v4535_v10  ;;  %2284 = vmatmul.mubr.bf16.gmra.mxu1 %v4535_v10 }
 0x275   : > { %v2406_v38 = vmul.f32 %v4677_v25, %v1626_v33  ;;  %v2408_v40 = vmul.f32 %v4682_v28, %v1819_v34  ;;  %2100 = vmatprep.mubr.bf16.mxu0 %v3995_v24  ;;  %2293 = vmatprep.mubr.bf16.mxu1 %v3995_v24 }
 0x276   : > { %v1628_v43 = vpop.f32.mrf.mxu0  ;;  %v1821_v10 = vpop.f32.mrf.mxu1 }
 0x277   : > { %v2407_v30 = vmul.f32 %v4684_v29, %v1628_v43  ;;  %v2409_v45 = vmul.f32 %v4686_v31, %v1821_v10  ;;  %v2704_v47 = vadd.f32 %v4688_v51, %v2406_v38  ;;  %v2706_v48 = vadd.f32 %v4690_v5, %v2408_v40 }
 0x278   : > { %v1630_v49 = vpop.f32.mrf.mxu0  ;;  %v1823_v50 = vpop.f32.mrf.mxu1 }
 0x279   : > { %v2705_v1 = vadd.f32 %v4702_v44, %v2407_v30  ;;  %v2707_v63 = vadd.f32 %v4704_v27, %v2409_v45  ;;  %v2414_v0 = vmul.f32 %v4677_v25, %v1630_v49  ;;  %v2416_v2 = vmul.f32 %v4682_v28, %v1823_v50 }
 0x27a   : > { %v1632_v37 = vpop.f32.mrf.mxu0  ;;  %v1825_v62 = vpop.f32.mrf.mxu1  ;;  %v2960_v13 = vmax.f32 %v2704_v47, 0.0  ;;  %v2962_v14 = vmax.f32 %v2706_v48, 0.0 }
 0x27b   : > { %v2415_v6 = vmul.f32 %v4684_v29, %v1632_v37  ;;  %v2417_v7 = vmul.f32 %v4686_v31, %v1825_v62  ;;  %v2712_v15 = vadd.f32 %v4688_v51, %v2414_v0  ;;  %v2714_v16 = vadd.f32 %v4690_v5, %v2416_v2 }
 0x27c   : > { %v1636_v17 = vpop.f32.mrf.mxu0  ;;  %v1829_v18 = vpop.f32.mrf.mxu1  ;;  %2101 = vmatmul.mubr.bf16.gmra.mxu0 %v4527_v20  ;;  %2294 = vmatmul.mubr.bf16.gmra.mxu1 %v4527_v20  ;;  %v2961_v39 = vmax.f32 %v2705_v1, 0.0  ;;  %v2963_v4 = vmax.f32 %v2707_v63, 0.0 }
 0x27d   : > { %v2713_v21 = vadd.f32 %v4702_v44, %v2415_v6  ;;  %v2715_v22 = vadd.f32 %v4704_v27, %v2417_v7  ;;  %v2422_v52 = vmul.f32 %v4677_v25, %v1636_v17  ;;  %v2424_v11 = vmul.f32 %v4682_v28, %v1829_v18  ;;  %2110 = vmatprep.mubr.bf16.mxu0 %v3995_v24 }
 0x27e   : > { %v2968_v60 = vmax.f32 %v2712_v15, 0.0  ;;  %v2970_v8 = vmax.f32 %v2714_v16, 0.0  ;;  %v1638_v26 = vpop.f32.mrf.mxu0  ;;  %v1831_v33 = vpop.f32.mrf.mxu1  ;;  %2303 = vmatprep.mubr.bf16.mxu1 %v3995_v24 }
 0x27f   : > { %v2969_v34 = vmax.f32 %v2713_v21, 0.0  ;;  %v2971_v20 = vmax.f32 %v2715_v22, 0.0  ;;  %v2720_v35 = vadd.f32 %v4688_v51, %v2422_v52  ;;  %v2722_v36 = vadd.f32 %v4690_v5, %v2424_v11 }
 0x280   : > { %v3216_v38 = vmax.f32 %v2960_v13, %v2968_v60  ;;  %v3290_v40 = vmax.f32 %v2962_v14, %v2970_v8  ;;  %v2423_v41 = vmul.f32 %v4684_v29, %v1638_v26  ;;  %v2425_v42 = vmul.f32 %v4686_v31, %v1831_v33  ;;  %v1640_v43 = vpop.f32.mrf.mxu0  ;;  %v1833_v10 = vpop.f32.mrf.mxu1 }
 0x281   : > { %v3253_v30 = vmax.f32 %v2961_v39, %v2969_v34  ;;  %v3327_v45 = vmax.f32 %v2963_v4, %v2971_v20  ;;  %v2976_v47 = vmax.f32 %v2720_v35, 0.0  ;;  %v2978_v48 = vmax.f32 %v2722_v36, 0.0 }
 0x282   : > { %v2721_v49 = vadd.f32 %v4702_v44, %v2423_v41  ;;  %v2723_v50 = vadd.f32 %v4704_v27, %v2425_v42  ;;  %v2430_v1 = vmul.f32 %v4677_v25, %v1640_v43  ;;  %v2432_v63 = vmul.f32 %v4682_v28, %v1833_v10  ;;  %v1642_v0 = vpop.f32.mrf.mxu0  ;;  %v1835_v2 = vpop.f32.mrf.mxu1 }
 0x283   : > { %v3217_v37 = vmax.f32 %v3216_v38, %v2976_v47  ;;  %v3291_v62 = vmax.f32 %v3290_v40, %v2978_v48  ;;  %v2431_v6 = vmul.f32 %v4684_v29, %v1642_v0  ;;  %v2433_v7 = vmul.f32 %v4686_v31, %v1835_v2 }
 0x284   : > { %v2977_v13 = vmax.f32 %v2721_v49, 0.0  ;;  %v2979_v14 = vmax.f32 %v2723_v50, 0.0  ;;  %v2728_v15 = vadd.f32 %v4688_v51, %v2430_v1  ;;  %v2730_v16 = vadd.f32 %v4690_v5, %v2432_v63  ;;  %v1646_v17 = vpop.f32.mrf.mxu0  ;;  %v1839_v18 = vpop.f32.mrf.mxu1  ;;  %2111 = vmatmul.mubr.bf16.gmra.mxu0 %v4559_v55  ;;  %2304 = vmatmul.mubr.bf16.gmra.mxu1 %v4559_v55 }
 0x285   : > { %v2729_v21 = vadd.f32 %v4702_v44, %v2431_v6  ;;  %v2731_v22 = vadd.f32 %v4704_v27, %v2433_v7  ;;  %v2438_v52 = vmul.f32 %v4677_v25, %v1646_v17  ;;  %v2440_v11 = vmul.f32 %v4682_v28, %v1839_v18  ;;  %2120 = vmatprep.mubr.bf16.mxu0 %v3995_v24 }
 0x286   : > { %v3254_v39 = vmax.f32 %v3253_v30, %v2977_v13  ;;  %v3328_v4 = vmax.f32 %v3327_v45, %v2979_v14  ;;  %v2984_v60 = vmax.f32 %v2728_v15, 0.0  ;;  %v2986_v8 = vmax.f32 %v2730_v16, 0.0  ;;  %v1648_v26 = vpop.f32.mrf.mxu0  ;;  %v1841_v33 = vpop.f32.mrf.mxu1  ;;  %2313 = vmatprep.mubr.bf16.mxu1 %v3995_v24 }
 0x287   : > { %v2985_v34 = vmax.f32 %v2729_v21, 0.0  ;;  %v2987_v55 = vmax.f32 %v2731_v22, 0.0  ;;  %v2736_v20 = vadd.f32 %v4688_v51, %v2438_v52  ;;  %v2738_v35 = vadd.f32 %v4690_v5, %v2440_v11 }
 0x288   : > { %v3218_v36 = vmax.f32 %v3217_v37, %v2984_v60  ;;  %v3292_v38 = vmax.f32 %v3291_v62, %v2986_v8  ;;  %v2439_v40 = vmul.f32 %v4684_v29, %v1648_v26  ;;  %v2441_v41 = vmul.f32 %v4686_v31, %v1841_v33  ;;  %v1650_v42 = vpop.f32.mrf.mxu0  ;;  %v1843_v43 = vpop.f32.mrf.mxu1 }
 0x289   : > { %v3255_v10 = vmax.f32 %v3254_v39, %v2985_v34  ;;  %v3329_v30 = vmax.f32 %v3328_v4, %v2987_v55  ;;  %v2992_v45 = vmax.f32 %v2736_v20, 0.0  ;;  %v2994_v47 = vmax.f32 %v2738_v35, 0.0 }
 0x28a   : > { %v2737_v48 = vadd.f32 %v4702_v44, %v2439_v40  ;;  %v2739_v49 = vadd.f32 %v4704_v27, %v2441_v41  ;;  %v2446_v50 = vmul.f32 %v4677_v25, %v1650_v42  ;;  %v2448_v1 = vmul.f32 %v4682_v28, %v1843_v43  ;;  %v1652_v63 = vpop.f32.mrf.mxu0  ;;  %v1845_v0 = vpop.f32.mrf.mxu1 }
 0x28b   : > { %v3219_v2 = vmax.f32 %v3218_v36, %v2992_v45  ;;  %v3293_v37 = vmax.f32 %v3292_v38, %v2994_v47  ;;  %v2447_v62 = vmul.f32 %v4684_v29, %v1652_v63  ;;  %v2449_v6 = vmul.f32 %v4686_v31, %v1845_v0 }
 0x28c   : > { %v2993_v7 = vmax.f32 %v2737_v48, 0.0  ;;  %v2995_v13 = vmax.f32 %v2739_v49, 0.0  ;;  %v2744_v14 = vadd.f32 %v4688_v51, %v2446_v50  ;;  %v2746_v15 = vadd.f32 %v4690_v5, %v2448_v1  ;;  %v1656_v16 = vpop.f32.mrf.mxu0  ;;  %v1849_v17 = vpop.f32.mrf.mxu1  ;;  %2121 = vmatmul.mubr.bf16.gmra.mxu0 %v4551_v32  ;;  %2314 = vmatmul.mubr.bf16.gmra.mxu1 %v4551_v32 }
 0x28d   : > { %v2745_v18 = vadd.f32 %v4702_v44, %v2447_v62  ;;  %v2747_v21 = vadd.f32 %v4704_v27, %v2449_v6  ;;  %v2454_v22 = vmul.f32 %v4677_v25, %v1656_v16  ;;  %v2456_v52 = vmul.f32 %v4682_v28, %v1849_v17  ;;  %2130 = vmatprep.mubr.bf16.mxu0 %v3995_v24 }
 0x28e   : > { %v3256_v11 = vmax.f32 %v3255_v10, %v2993_v7  ;;  %v3330_v39 = vmax.f32 %v3329_v30, %v2995_v13  ;;  %v3000_v4 = vmax.f32 %v2744_v14, 0.0  ;;  %v3002_v60 = vmax.f32 %v2746_v15, 0.0  ;;  %v1658_v8 = vpop.f32.mrf.mxu0  ;;  %v1851_v26 = vpop.f32.mrf.mxu1  ;;  %2323 = vmatprep.mubr.bf16.mxu1 %v3995_v24 }
 0x28f   : > { %v3001_v33 = vmax.f32 %v2745_v18, 0.0  ;;  %v3003_v32 = vmax.f32 %v2747_v21, 0.0  ;;  %v2752_v34 = vadd.f32 %v4688_v51, %v2454_v22  ;;  %v2754_v55 = vadd.f32 %v4690_v5, %v2456_v52 }
 0x290   : > { %v3220_v20 = vmax.f32 %v3219_v2, %v3000_v4  ;;  %v3294_v35 = vmax.f32 %v3293_v37, %v3002_v60  ;;  %v2455_v36 = vmul.f32 %v4684_v29, %v1658_v8  ;;  %v2457_v38 = vmul.f32 %v4686_v31, %v1851_v26  ;;  %v1660_v40 = vpop.f32.mrf.mxu0  ;;  %v1853_v41 = vpop.f32.mrf.mxu1 }
 0x291   : > { %v3257_v42 = vmax.f32 %v3256_v11, %v3001_v33  ;;  %v3331_v43 = vmax.f32 %v3330_v39, %v3003_v32  ;;  %v3008_v10 = vmax.f32 %v2752_v34, 0.0  ;;  %v3010_v30 = vmax.f32 %v2754_v55, 0.0 }
 0x292   : > { %v2753_v45 = vadd.f32 %v4702_v44, %v2455_v36  ;;  %v2755_v47 = vadd.f32 %v4704_v27, %v2457_v38  ;;  %v2462_v48 = vmul.f32 %v4677_v25, %v1660_v40  ;;  %v2464_v49 = vmul.f32 %v4682_v28, %v1853_v41  ;;  %v1662_v50 = vpop.f32.mrf.mxu0  ;;  %v1855_v1 = vpop.f32.mrf.mxu1 }
 0x293   : > { %v3221_v63 = vmax.f32 %v3220_v20, %v3008_v10  ;;  %v3295_v0 = vmax.f32 %v3294_v35, %v3010_v30  ;;  %v2463_v2 = vmul.f32 %v4684_v29, %v1662_v50  ;;  %v2465_v37 = vmul.f32 %v4686_v31, %v1855_v1 }
 0x294   : > { %v3009_v62 = vmax.f32 %v2753_v45, 0.0  ;;  %v3011_v6 = vmax.f32 %v2755_v47, 0.0  ;;  %v2760_v7 = vadd.f32 %v4688_v51, %v2462_v48  ;;  %v2762_v13 = vadd.f32 %v4690_v5, %v2464_v49  ;;  %v1666_v14 = vpop.f32.mrf.mxu0  ;;  %v1859_v15 = vpop.f32.mrf.mxu1  ;;  %2131 = vmatmul.mubr.bf16.gmra.mxu0 %v4583_v3  ;;  %2324 = vmatmul.mubr.bf16.gmra.mxu1 %v4583_v3 }
 0x295   : > { %v2761_v16 = vadd.f32 %v4702_v44, %v2463_v2  ;;  %v2763_v17 = vadd.f32 %v4704_v27, %v2465_v37  ;;  %v2470_v18 = vmul.f32 %v4677_v25, %v1666_v14  ;;  %v2472_v21 = vmul.f32 %v4682_v28, %v1859_v15  ;;  %2140 = vmatprep.mubr.bf16.mxu0 %v3995_v24 }
 0x296   : > { %v3258_v22 = vmax.f32 %v3257_v42, %v3009_v62  ;;  %v3332_v52 = vmax.f32 %v3331_v43, %v3011_v6  ;;  %v3016_v11 = vmax.f32 %v2760_v7, 0.0  ;;  %v3018_v39 = vmax.f32 %v2762_v13, 0.0  ;;  %v1668_v4 = vpop.f32.mrf.mxu0  ;;  %v1861_v60 = vpop.f32.mrf.mxu1  ;;  %2333 = vmatprep.mubr.bf16.mxu1 %v3995_v24 }
 0x297   : > { %v3017_v8 = vmax.f32 %v2761_v16, 0.0  ;;  %v3019_v3 = vmax.f32 %v2763_v17, 0.0  ;;  %v2768_v26 = vadd.f32 %v4688_v51, %v2470_v18  ;;  %v2770_v33 = vadd.f32 %v4690_v5, %v2472_v21 }
 0x298   : > { %v3222_v32 = vmax.f32 %v3221_v63, %v3016_v11  ;;  %v3296_v34 = vmax.f32 %v3295_v0, %v3018_v39  ;;  %v2471_v55 = vmul.f32 %v4684_v29, %v1668_v4  ;;  %v2473_v20 = vmul.f32 %v4686_v31, %v1861_v60  ;;  %v1670_v35 = vpop.f32.mrf.mxu0  ;;  %v1863_v36 = vpop.f32.mrf.mxu1 }
 0x299   : > { %v3259_v38 = vmax.f32 %v3258_v22, %v3017_v8  ;;  %v3333_v40 = vmax.f32 %v3332_v52, %v3019_v3  ;;  %v3024_v41 = vmax.f32 %v2768_v26, 0.0  ;;  %v3026_v42 = vmax.f32 %v2770_v33, 0.0 }
 0x29a   : > { %v2769_v43 = vadd.f32 %v4702_v44, %v2471_v55  ;;  %v2771_v10 = vadd.f32 %v4704_v27, %v2473_v20  ;;  %v2478_v30 = vmul.f32 %v4677_v25, %v1670_v35  ;;  %v2480_v45 = vmul.f32 %v4682_v28, %v1863_v36  ;;  %v1672_v47 = vpop.f32.mrf.mxu0  ;;  %v1865_v48 = vpop.f32.mrf.mxu1 }
 0x29b   : > { %v3223_v49 = vmax.f32 %v3222_v32, %v3024_v41  ;;  %v3297_v50 = vmax.f32 %v3296_v34, %v3026_v42  ;;  %v2479_v1 = vmul.f32 %v4684_v29, %v1672_v47  ;;  %v2481_v63 = vmul.f32 %v4686_v31, %v1865_v48 }
 0x29c   : > { %v3025_v0 = vmax.f32 %v2769_v43, 0.0  ;;  %v3027_v2 = vmax.f32 %v2771_v10, 0.0  ;;  %v2776_v37 = vadd.f32 %v4688_v51, %v2478_v30  ;;  %v2778_v62 = vadd.f32 %v4690_v5, %v2480_v45  ;;  %v1676_v6 = vpop.f32.mrf.mxu0  ;;  %v1869_v7 = vpop.f32.mrf.mxu1  ;;  %2141 = vmatmul.mubr.bf16.gmra.mxu0 %v4575_v59  ;;  %2334 = vmatmul.mubr.bf16.gmra.mxu1 %v4575_v59 }
 0x29d   : > { %v2777_v13 = vadd.f32 %v4702_v44, %v2479_v1  ;;  %v2779_v14 = vadd.f32 %v4704_v27, %v2481_v63  ;;  %v2486_v15 = vmul.f32 %v4677_v25, %v1676_v6  ;;  %v2488_v16 = vmul.f32 %v4682_v28, %v1869_v7  ;;  %2150 = vmatprep.mubr.bf16.mxu0 %v3995_v24 }
 0x29e   : > { %v3260_v17 = vmax.f32 %v3259_v38, %v3025_v0  ;;  %v3334_v18 = vmax.f32 %v3333_v40, %v3027_v2  ;;  %v3032_v21 = vmax.f32 %v2776_v37, 0.0  ;;  %v3034_v22 = vmax.f32 %v2778_v62, 0.0  ;;  %v1678_v52 = vpop.f32.mrf.mxu0  ;;  %v1871_v11 = vpop.f32.mrf.mxu1  ;;  %2343 = vmatprep.mubr.bf16.mxu1 %v3995_v24 }
 0x29f   : > { %v3033_v39 = vmax.f32 %v2777_v13, 0.0  ;;  %v3035_v59 = vmax.f32 %v2779_v14, 0.0  ;;  %v2784_v4 = vadd.f32 %v4688_v51, %v2486_v15  ;;  %v2786_v60 = vadd.f32 %v4690_v5, %v2488_v16 }
 0x2a0   : > { %v3224_v8 = vmax.f32 %v3223_v49, %v3032_v21  ;;  %v3298_v3 = vmax.f32 %v3297_v50, %v3034_v22  ;;  %v2487_v26 = vmul.f32 %v4684_v29, %v1678_v52  ;;  %v2489_v33 = vmul.f32 %v4686_v31, %v1871_v11  ;;  %v1680_v32 = vpop.f32.mrf.mxu0  ;;  %v1873_v34 = vpop.f32.mrf.mxu1 }
 0x2a1   : > { %v3261_v55 = vmax.f32 %v3260_v17, %v3033_v39  ;;  %v3335_v20 = vmax.f32 %v3334_v18, %v3035_v59  ;;  %v3040_v35 = vmax.f32 %v2784_v4, 0.0  ;;  %v3042_v36 = vmax.f32 %v2786_v60, 0.0 }
 0x2a2   : > { %v2785_v38 = vadd.f32 %v4702_v44, %v2487_v26  ;;  %v2787_v40 = vadd.f32 %v4704_v27, %v2489_v33  ;;  %v2494_v41 = vmul.f32 %v4677_v25, %v1680_v32  ;;  %v2496_v42 = vmul.f32 %v4682_v28, %v1873_v34  ;;  %v1682_v43 = vpop.f32.mrf.mxu0  ;;  %v1875_v10 = vpop.f32.mrf.mxu1 }
 0x2a3   : > { %v3225_v30 = vmax.f32 %v3224_v8, %v3040_v35  ;;  %v3299_v45 = vmax.f32 %v3298_v3, %v3042_v36  ;;  %v2495_v47 = vmul.f32 %v4684_v29, %v1682_v43  ;;  %v2497_v48 = vmul.f32 %v4686_v31, %v1875_v10 }
 0x2a4   : > { %v3041_v49 = vmax.f32 %v2785_v38, 0.0  ;;  %v3043_v50 = vmax.f32 %v2787_v40, 0.0  ;;  %v2792_v1 = vadd.f32 %v4688_v51, %v2494_v41  ;;  %v2794_v63 = vadd.f32 %v4690_v5, %v2496_v42  ;;  %v1686_v0 = vpop.f32.mrf.mxu0  ;;  %v1879_v2 = vpop.f32.mrf.mxu1  ;;  %2151 = vmatmul.mubr.bf16.gmra.mxu0 %v4598_v23  ;;  %2344 = vmatmul.mubr.bf16.gmra.mxu1 %v4598_v23 }
 0x2a5   : > { %v2793_v37 = vadd.f32 %v4702_v44, %v2495_v47  ;;  %v2795_v62 = vadd.f32 %v4704_v27, %v2497_v48  ;;  %v2502_v6 = vmul.f32 %v4677_v25, %v1686_v0  ;;  %v2504_v7 = vmul.f32 %v4682_v28, %v1879_v2  ;;  %2160 = vmatprep.mubr.bf16.mxu0 %v3995_v24 }
 0x2a6   : > { %v3262_v13 = vmax.f32 %v3261_v55, %v3041_v49  ;;  %v3336_v14 = vmax.f32 %v3335_v20, %v3043_v50  ;;  %v3048_v15 = vmax.f32 %v2792_v1, 0.0  ;;  %v3050_v16 = vmax.f32 %v2794_v63, 0.0  ;;  %v1688_v17 = vpop.f32.mrf.mxu0  ;;  %v1881_v18 = vpop.f32.mrf.mxu1  ;;  %2353 = vmatprep.mubr.bf16.mxu1 %v3995_v24 }
 0x2a7   : > { %v3049_v21 = vmax.f32 %v2793_v37, 0.0  ;;  %v3051_v23 = vmax.f32 %v2795_v62, 0.0  ;;  %v2800_v22 = vadd.f32 %v4688_v51, %v2502_v6  ;;  %v2802_v52 = vadd.f32 %v4690_v5, %v2504_v7 }
 0x2a8   : > { %v3226_v11 = vmax.f32 %v3225_v30, %v3048_v15  ;;  %v3300_v39 = vmax.f32 %v3299_v45, %v3050_v16  ;;  %v2503_v59 = vmul.f32 %v4684_v29, %v1688_v17  ;;  %v2505_v4 = vmul.f32 %v4686_v31, %v1881_v18  ;;  %v1690_v60 = vpop.f32.mrf.mxu0  ;;  %v1883_v8 = vpop.f32.mrf.mxu1 }
 0x2a9   : > { %v3263_v3 = vmax.f32 %v3262_v13, %v3049_v21  ;;  %v3337_v26 = vmax.f32 %v3336_v14, %v3051_v23  ;;  %v3056_v33 = vmax.f32 %v2800_v22, 0.0  ;;  %v3058_v32 = vmax.f32 %v2802_v52, 0.0 }
 0x2aa   : > { %v2801_v24 = vadd.f32 %v4702_v44, %v2503_v59  ;;  %v2803_v34 = vadd.f32 %v4704_v27, %v2505_v4  ;;  %v2510_v55 = vmul.f32 %v4677_v25, %v1690_v60  ;;  %v2512_v20 = vmul.f32 %v4682_v28, %v1883_v8  ;;  %v1692_v35 = vpop.f32.mrf.mxu0  ;;  %v1885_v36 = vpop.f32.mrf.mxu1 }
 0x2ab   : > { %v3227_v38 = vmax.f32 %v3226_v11, %v3056_v33  ;;  %v3301_v40 = vmax.f32 %v3300_v39, %v3058_v32  ;;  %v2511_v41 = vmul.f32 %v4684_v29, %v1692_v35  ;;  %v2513_v42 = vmul.f32 %v4686_v31, %v1885_v36 }
 0x2ac   : > { %v3057_v43 = vmax.f32 %v2801_v24, 0.0  ;;  %v3059_v10 = vmax.f32 %v2803_v34, 0.0  ;;  %v2808_v30 = vadd.f32 %v4688_v51, %v2510_v55  ;;  %v2810_v45 = vadd.f32 %v4690_v5, %v2512_v20  ;;  %v1696_v47 = vpop.f32.mrf.mxu0  ;;  %v1889_v48 = vpop.f32.mrf.mxu1  ;;  %2161 = vmatmul.mubr.bf16.gmra.mxu0 %v4594_v19  ;;  %2354 = vmatmul.mubr.bf16.gmra.mxu1 %v4594_v19 }
 0x2ad   : > { %v2809_v49 = vadd.f32 %v4702_v44, %v2511_v41  ;;  %v2811_v50 = vadd.f32 %v4704_v27, %v2513_v42  ;;  %v2518_v1 = vmul.f32 %v4677_v25, %v1696_v47  ;;  %v2520_v63 = vmul.f32 %v4682_v28, %v1889_v48 }
 0x2ae   : > { %v3264_v0 = vmax.f32 %v3263_v3, %v3057_v43  ;;  %v3338_v2 = vmax.f32 %v3337_v26, %v3059_v10  ;;  %v3064_v37 = vmax.f32 %v2808_v30, 0.0  ;;  %v3066_v62 = vmax.f32 %v2810_v45, 0.0  ;;  %v1698_v6 = vpop.f32.mrf.mxu0  ;;  %v1891_v7 = vpop.f32.mrf.mxu1 }
 0x2af   : > { %v3065_v13 = vmax.f32 %v2809_v49, 0.0  ;;  %v3067_v14 = vmax.f32 %v2811_v50, 0.0  ;;  %v2816_v15 = vadd.f32 %v4688_v51, %v2518_v1  ;;  %v2818_v19 = vadd.f32 %v4690_v5, %v2520_v63 }
 0x2b0   : > { %v3228_v16 = vmax.f32 %v3227_v38, %v3064_v37  ;;  %v3302_v17 = vmax.f32 %v3301_v40, %v3066_v62  ;;  %v2519_v18 = vmul.f32 %v4684_v29, %v1698_v6  ;;  %v2521_v21 = vmul.f32 %v4686_v31, %v1891_v7  ;;  %v1700_v23 = vpop.f32.mrf.mxu0  ;;  %v1893_v22 = vpop.f32.mrf.mxu1 }
 0x2b1   : > { %v3265_v52 = vmax.f32 %v3264_v0, %v3065_v13  ;;  %v3339_v11 = vmax.f32 %v3338_v2, %v3067_v14  ;;  %v3072_v39 = vmax.f32 %v2816_v15, 0.0  ;;  %v3074_v59 = vmax.f32 %v2818_v19, 0.0 }
 0x2b2   : > { %v2817_v4 = vadd.f32 %v4702_v44, %v2519_v18  ;;  %v2819_v60 = vadd.f32 %v4704_v27, %v2521_v21  ;;  %v2526_v8 = vmul.f32 %v4677_v25, %v1700_v23  ;;  %v2528_v3 = vmul.f32 %v4682_v28, %v1893_v22  ;;  %v1702_v26 = vpop.f32.mrf.mxu0  ;;  %v1895_v33 = vpop.f32.mrf.mxu1 }
 0x2b3   : > { %v3229_v32 = vmax.f32 %v3228_v16, %v3072_v39  ;;  %v3303_v24 = vmax.f32 %v3302_v17, %v3074_v59  ;;  %v2527_v34 = vmul.f32 %v4684_v29, %v1702_v26  ;;  %v2529_v55 = vmul.f32 %v4686_v31, %v1895_v33 }
 0x2b4   : > { %v3073_v20 = vmax.f32 %v2817_v4, 0.0  ;;  %v3075_v35 = vmax.f32 %v2819_v60, 0.0  ;;  %v2824_v36 = vadd.f32 %v4688_v51, %v2526_v8  ;;  %v2826_v38 = vadd.f32 %v4690_v5, %v2528_v3  ;;  %v1706_v40 = vpop.f32.mrf.mxu0  ;;  %v1899_v41 = vpop.f32.mrf.mxu1 }
 0x2b5   : > { %v2825_v42 = vadd.f32 %v4702_v44, %v2527_v34  ;;  %v2827_v43 = vadd.f32 %v4704_v27, %v2529_v55  ;;  %v2534_v10 = vmul.f32 %v4677_v25, %v1706_v40  ;;  %v2536_v30 = vmul.f32 %v4682_v28, %v1899_v41 }
 0x2b6   : > { %v3266_v45 = vmax.f32 %v3265_v52, %v3073_v20  ;;  %v3340_v47 = vmax.f32 %v3339_v11, %v3075_v35  ;;  %v3080_v48 = vmax.f32 %v2824_v36, 0.0  ;;  %v3082_v49 = vmax.f32 %v2826_v38, 0.0  ;;  %v1708_v50 = vpop.f32.mrf.mxu0  ;;  %v1901_v1 = vpop.f32.mrf.mxu1 }
 0x2b7   : > { %v3081_v63 = vmax.f32 %v2825_v42, 0.0  ;;  %v3083_v0 = vmax.f32 %v2827_v43, 0.0  ;;  %v2832_v2 = vadd.f32 %v4688_v51, %v2534_v10  ;;  %v2834_v37 = vadd.f32 %v4690_v5, %v2536_v30 }
 0x2b8   : > { %v3230_v62 = vmax.f32 %v3229_v32, %v3080_v48  ;;  %v3304_v6 = vmax.f32 %v3303_v24, %v3082_v49  ;;  %v2535_v7 = vmul.f32 %v4684_v29, %v1708_v50  ;;  %v2537_v13 = vmul.f32 %v4686_v31, %v1901_v1  ;;  %v1710_v14 = vpop.f32.mrf.mxu0  ;;  %v1903_v15 = vpop.f32.mrf.mxu1 }
 0x2b9   : > { %v3267_v19 = vmax.f32 %v3266_v45, %v3081_v63  ;;  %v3341_v16 = vmax.f32 %v3340_v47, %v3083_v0  ;;  %v3088_v17 = vmax.f32 %v2832_v2, 0.0  ;;  %v3090_v18 = vmax.f32 %v2834_v37, 0.0 }
 0x2ba   : > { %v2833_v21 = vadd.f32 %v4702_v44, %v2535_v7  ;;  %v2835_v23 = vadd.f32 %v4704_v27, %v2537_v13  ;;  %v2542_v22 = vmul.f32 %v4677_v25, %v1710_v14  ;;  %v2544_v52 = vmul.f32 %v4682_v28, %v1903_v15  ;;  %v1712_v11 = vpop.f32.mrf.mxu0  ;;  %v1905_v39 = vpop.f32.mrf.mxu1 }
 0x2bb   : > { %v3231_v59 = vmax.f32 %v3230_v62, %v3088_v17  ;;  %v3305_v4 = vmax.f32 %v3304_v6, %v3090_v18  ;;  %v2543_v60 = vmul.f32 %v4684_v29, %v1712_v11  ;;  %v2545_v8 = vmul.f32 %v4686_v31, %v1905_v39 }
 0x2bc   : > { %v3089_v3 = vmax.f32 %v2833_v21, 0.0  ;;  %v3091_v26 = vmax.f32 %v2835_v23, 0.0  ;;  %v2840_v33 = vadd.f32 %v4688_v51, %v2542_v22  ;;  %v2842_v32 = vadd.f32 %v4690_v5, %v2544_v52  ;;  %v1716_v24 = vpop.f32.mrf.mxu0  ;;  %v1909_v34 = vpop.f32.mrf.mxu1 }
 0x2bd   : > { %v2841_v55 = vadd.f32 %v4702_v44, %v2543_v60  ;;  %v2843_v20 = vadd.f32 %v4704_v27, %v2545_v8  ;;  %v2550_v35 = vmul.f32 %v4677_v25, %v1716_v24  ;;  %v2552_v36 = vmul.f32 %v4682_v28, %v1909_v34 }
 0x2be   : > { %v3268_v38 = vmax.f32 %v3267_v19, %v3089_v3  ;;  %v3342_v40 = vmax.f32 %v3341_v16, %v3091_v26  ;;  %v3096_v41 = vmax.f32 %v2840_v33, 0.0  ;;  %v3098_v42 = vmax.f32 %v2842_v32, 0.0  ;;  %v1718_v43 = vpop.f32.mrf.mxu0  ;;  %v1911_v10 = vpop.f32.mrf.mxu1 }
 0x2bf   : > { %v3097_v30 = vmax.f32 %v2841_v55, 0.0  ;;  %v3099_v45 = vmax.f32 %v2843_v20, 0.0  ;;  %v2848_v47 = vadd.f32 %v4688_v51, %v2550_v35  ;;  %v2850_v48 = vadd.f32 %v4690_v5, %v2552_v36 }
 0x2c0   : > { %v3232_v49 = vmax.f32 %v3231_v59, %v3096_v41  ;;  %v3306_v50 = vmax.f32 %v3305_v4, %v3098_v42  ;;  %v2551_v1 = vmul.f32 %v4684_v29, %v1718_v43  ;;  %v2553_v63 = vmul.f32 %v4686_v31, %v1911_v10  ;;  %v1720_v0 = vpop.f32.mrf.mxu0  ;;  %v1913_v2 = vpop.f32.mrf.mxu1 }
 0x2c1   : > { %v3269_v37 = vmax.f32 %v3268_v38, %v3097_v30  ;;  %v3343_v62 = vmax.f32 %v3342_v40, %v3099_v45  ;;  %v3104_v6 = vmax.f32 %v2848_v47, 0.0  ;;  %v3106_v7 = vmax.f32 %v2850_v48, 0.0 }
 0x2c2   : > { %v2849_v13 = vadd.f32 %v4702_v44, %v2551_v1  ;;  %v2851_v14 = vadd.f32 %v4704_v27, %v2553_v63  ;;  %v2558_v15 = vmul.f32 %v4677_v25, %v1720_v0  ;;  %v2560_v19 = vmul.f32 %v4682_v28, %v1913_v2  ;;  %v1722_v16 = vpop.f32.mrf.mxu0  ;;  %v1915_v17 = vpop.f32.mrf.mxu1 }
 0x2c3   : > { %v3233_v18 = vmax.f32 %v3232_v49, %v3104_v6  ;;  %v3307_v21 = vmax.f32 %v3306_v50, %v3106_v7  ;;  %v2559_v23 = vmul.f32 %v4684_v29, %v1722_v16  ;;  %v2561_v22 = vmul.f32 %v4686_v31, %v1915_v17 }
 0x2c4   : > { %v3105_v52 = vmax.f32 %v2849_v13, 0.0  ;;  %v3107_v11 = vmax.f32 %v2851_v14, 0.0  ;;  %v2856_v39 = vadd.f32 %v4688_v51, %v2558_v15  ;;  %v2858_v59 = vadd.f32 %v4690_v5, %v2560_v19  ;;  %v1726_v4 = vpop.f32.mrf.mxu0  ;;  %v1919_v60 = vpop.f32.mrf.mxu1 }
 0x2c5   : > { %v2857_v8 = vadd.f32 %v4702_v44, %v2559_v23  ;;  %v2859_v3 = vadd.f32 %v4704_v27, %v2561_v22  ;;  %v2566_v26 = vmul.f32 %v4677_v25, %v1726_v4  ;;  %v2568_v33 = vmul.f32 %v4682_v28, %v1919_v60 }
 0x2c6   : > { %v3270_v32 = vmax.f32 %v3269_v37, %v3105_v52  ;;  %v3344_v24 = vmax.f32 %v3343_v62, %v3107_v11  ;;  %v3112_v34 = vmax.f32 %v2856_v39, 0.0  ;;  %v3114_v55 = vmax.f32 %v2858_v59, 0.0  ;;  %v1728_v20 = vpop.f32.mrf.mxu0  ;;  %v1921_v35 = vpop.f32.mrf.mxu1 }
 0x2c7   : > { %v3113_v36 = vmax.f32 %v2857_v8, 0.0  ;;  %v3115_v38 = vmax.f32 %v2859_v3, 0.0  ;;  %v2864_v40 = vadd.f32 %v4688_v51, %v2566_v26  ;;  %v2866_v41 = vadd.f32 %v4690_v5, %v2568_v33 }
 0x2c8   : > { %v3234_v42 = vmax.f32 %v3233_v18, %v3112_v34  ;;  %v3308_v43 = vmax.f32 %v3307_v21, %v3114_v55  ;;  %v2567_v10 = vmul.f32 %v4684_v29, %v1728_v20  ;;  %v2569_v30 = vmul.f32 %v4686_v31, %v1921_v35  ;;  %v1730_v45 = vpop.f32.mrf.mxu0  ;;  %v1923_v47 = vpop.f32.mrf.mxu1 }
 0x2c9   : > { %v3271_v48 = vmax.f32 %v3270_v32, %v3113_v36  ;;  %v3345_v49 = vmax.f32 %v3344_v24, %v3115_v38  ;;  %v3120_v50 = vmax.f32 %v2864_v40, 0.0  ;;  %v3122_v1 = vmax.f32 %v2866_v41, 0.0 }
 0x2ca   : > { %v2865_v63 = vadd.f32 %v4702_v44, %v2567_v10  ;;  %v2867_v0 = vadd.f32 %v4704_v27, %v2569_v30  ;;  %v2574_v2 = vmul.f32 %v4677_v25, %v1730_v45  ;;  %v2576_v37 = vmul.f32 %v4682_v28, %v1923_v47  ;;  %v1732_v62 = vpop.f32.mrf.mxu0  ;;  %v1925_v6 = vpop.f32.mrf.mxu1 }
 0x2cb   : > { %v3235_v7 = vmax.f32 %v3234_v42, %v3120_v50  ;;  %v3309_v13 = vmax.f32 %v3308_v43, %v3122_v1  ;;  %v2575_v14 = vmul.f32 %v4684_v29, %v1732_v62  ;;  %v2577_v15 = vmul.f32 %v4686_v31, %v1925_v6 }
 0x2cc   : > { %v3121_v19 = vmax.f32 %v2865_v63, 0.0  ;;  %v3123_v16 = vmax.f32 %v2867_v0, 0.0  ;;  %v2872_v17 = vadd.f32 %v4688_v51, %v2574_v2  ;;  %v2874_v18 = vadd.f32 %v4690_v5, %v2576_v37  ;;  %v1736_v21 = vpop.f32.mrf.mxu0  ;;  %v1929_v23 = vpop.f32.mrf.mxu1 }
 0x2cd   : > { %v2873_v22 = vadd.f32 %v4702_v44, %v2575_v14  ;;  %v2875_v52 = vadd.f32 %v4704_v27, %v2577_v15  ;;  %v2582_v11 = vmul.f32 %v4677_v25, %v1736_v21  ;;  %v2584_v39 = vmul.f32 %v4682_v28, %v1929_v23 }
 0x2ce   : > { %v3272_v59 = vmax.f32 %v3271_v48, %v3121_v19  ;;  %v3346_v4 = vmax.f32 %v3345_v49, %v3123_v16  ;;  %v3128_v60 = vmax.f32 %v2872_v17, 0.0  ;;  %v3130_v8 = vmax.f32 %v2874_v18, 0.0  ;;  %v1738_v3 = vpop.f32.mrf.mxu0  ;;  %v1931_v26 = vpop.f32.mrf.mxu1 }
 0x2cf   : > { %v3129_v33 = vmax.f32 %v2873_v22, 0.0  ;;  %v3131_v32 = vmax.f32 %v2875_v52, 0.0  ;;  %v2880_v24 = vadd.f32 %v4688_v51, %v2582_v11  ;;  %v2882_v34 = vadd.f32 %v4690_v5, %v2584_v39 }
 0x2d0   : > { %v3236_v55 = vmax.f32 %v3235_v7, %v3128_v60  ;;  %v3310_v20 = vmax.f32 %v3309_v13, %v3130_v8  ;;  %v2583_v35 = vmul.f32 %v4684_v29, %v1738_v3  ;;  %v2585_v36 = vmul.f32 %v4686_v31, %v1931_v26  ;;  %v1740_v38 = vpop.f32.mrf.mxu0  ;;  %v1933_v40 = vpop.f32.mrf.mxu1 }
 0x2d1   : > { %v3273_v41 = vmax.f32 %v3272_v59, %v3129_v33  ;;  %v3347_v42 = vmax.f32 %v3346_v4, %v3131_v32  ;;  %v3136_v43 = vmax.f32 %v2880_v24, 0.0  ;;  %v3138_v10 = vmax.f32 %v2882_v34, 0.0 }
 0x2d2   : > { %v2881_v30 = vadd.f32 %v4702_v44, %v2583_v35  ;;  %v2883_v45 = vadd.f32 %v4704_v27, %v2585_v36  ;;  %v2590_v47 = vmul.f32 %v4677_v25, %v1740_v38  ;;  %v2592_v48 = vmul.f32 %v4682_v28, %v1933_v40  ;;  %v1742_v49 = vpop.f32.mrf.mxu0  ;;  %v1935_v50 = vpop.f32.mrf.mxu1 }
 0x2d3   : > { %v3237_v1 = vmax.f32 %v3236_v55, %v3136_v43  ;;  %v3311_v63 = vmax.f32 %v3310_v20, %v3138_v10  ;;  %v2591_v0 = vmul.f32 %v4684_v29, %v1742_v49  ;;  %v2593_v2 = vmul.f32 %v4686_v31, %v1935_v50 }
 0x2d4   : > { %v3137_v37 = vmax.f32 %v2881_v30, 0.0  ;;  %v3139_v62 = vmax.f32 %v2883_v45, 0.0  ;;  %v2888_v6 = vadd.f32 %v4688_v51, %v2590_v47  ;;  %v2890_v7 = vadd.f32 %v4690_v5, %v2592_v48  ;;  %v1746_v13 = vpop.f32.mrf.mxu0  ;;  %v1939_v14 = vpop.f32.mrf.mxu1 }
 0x2d5   : > { %v2889_v15 = vadd.f32 %v4702_v44, %v2591_v0  ;;  %v2891_v19 = vadd.f32 %v4704_v27, %v2593_v2  ;;  %v2598_v16 = vmul.f32 %v4677_v25, %v1746_v13  ;;  %v2600_v17 = vmul.f32 %v4682_v28, %v1939_v14 }
 0x2d6   : > { %v3274_v18 = vmax.f32 %v3273_v41, %v3137_v37  ;;  %v3348_v21 = vmax.f32 %v3347_v42, %v3139_v62  ;;  %v3144_v23 = vmax.f32 %v2888_v6, 0.0  ;;  %v3146_v22 = vmax.f32 %v2890_v7, 0.0  ;;  %v1748_v52 = vpop.f32.mrf.mxu0  ;;  %v1941_v11 = vpop.f32.mrf.mxu1 }
 0x2d7   : > { %v3145_v39 = vmax.f32 %v2889_v15, 0.0  ;;  %v3147_v59 = vmax.f32 %v2891_v19, 0.0  ;;  %v2896_v4 = vadd.f32 %v4688_v51, %v2598_v16  ;;  %v2898_v60 = vadd.f32 %v4690_v5, %v2600_v17 }
 0x2d8   : > { %v3238_v8 = vmax.f32 %v3237_v1, %v3144_v23  ;;  %v3312_v3 = vmax.f32 %v3311_v63, %v3146_v22  ;;  %v2599_v26 = vmul.f32 %v4684_v29, %v1748_v52  ;;  %v2601_v33 = vmul.f32 %v4686_v31, %v1941_v11  ;;  %v1750_v32 = vpop.f32.mrf.mxu0  ;;  %v1943_v24 = vpop.f32.mrf.mxu1 }
 0x2d9   : > { %v3275_v34 = vmax.f32 %v3274_v18, %v3145_v39  ;;  %v3349_v55 = vmax.f32 %v3348_v21, %v3147_v59  ;;  %v3152_v20 = vmax.f32 %v2896_v4, 0.0  ;;  %v3154_v35 = vmax.f32 %v2898_v60, 0.0 }
 0x2da   : > { %v2897_v36 = vadd.f32 %v4702_v44, %v2599_v26  ;;  %v2899_v38 = vadd.f32 %v4704_v27, %v2601_v33  ;;  %v2606_v40 = vmul.f32 %v4677_v25, %v1750_v32  ;;  %v2608_v41 = vmul.f32 %v4682_v28, %v1943_v24  ;;  %v1752_v42 = vpop.f32.mrf.mxu0  ;;  %v1945_v43 = vpop.f32.mrf.mxu1 }
 0x2db   : > { %v3239_v10 = vmax.f32 %v3238_v8, %v3152_v20  ;;  %v3313_v30 = vmax.f32 %v3312_v3, %v3154_v35  ;;  %v2607_v45 = vmul.f32 %v4684_v29, %v1752_v42  ;;  %v2609_v47 = vmul.f32 %v4686_v31, %v1945_v43 }
 0x2dc   : > { %v3153_v48 = vmax.f32 %v2897_v36, 0.0  ;;  %v3155_v49 = vmax.f32 %v2899_v38, 0.0  ;;  %v2904_v50 = vadd.f32 %v4688_v51, %v2606_v40  ;;  %v2906_v1 = vadd.f32 %v4690_v5, %v2608_v41  ;;  %v1756_v63 = vpop.f32.mrf.mxu0  ;;  %v1949_v0 = vpop.f32.mrf.mxu1 }
 0x2dd   : > { %v2905_v2 = vadd.f32 %v4702_v44, %v2607_v45  ;;  %v2907_v37 = vadd.f32 %v4704_v27, %v2609_v47  ;;  %v2614_v62 = vmul.f32 %v4677_v25, %v1756_v63  ;;  %v2616_v6 = vmul.f32 %v4682_v28, %v1949_v0 }
 0x2de   : > { %v3276_v7 = vmax.f32 %v3275_v34, %v3153_v48  ;;  %v3350_v13 = vmax.f32 %v3349_v55, %v3155_v49  ;;  %v3160_v14 = vmax.f32 %v2904_v50, 0.0  ;;  %v3162_v15 = vmax.f32 %v2906_v1, 0.0  ;;  %v1758_v19 = vpop.f32.mrf.mxu0  ;;  %v1951_v16 = vpop.f32.mrf.mxu1 }
 0x2df   : > { %v3161_v17 = vmax.f32 %v2905_v2, 0.0  ;;  %v3163_v18 = vmax.f32 %v2907_v37, 0.0  ;;  %v2912_v21 = vadd.f32 %v4688_v51, %v2614_v62  ;;  %v2914_v23 = vadd.f32 %v4690_v5, %v2616_v6 }
 0x2e0   : > { %v3240_v22 = vmax.f32 %v3239_v10, %v3160_v14  ;;  %v3314_v52 = vmax.f32 %v3313_v30, %v3162_v15  ;;  %v2615_v11 = vmul.f32 %v4684_v29, %v1758_v19  ;;  %v2617_v39 = vmul.f32 %v4686_v31, %v1951_v16  ;;  %v1760_v59 = vpop.f32.mrf.mxu0  ;;  %v1953_v4 = vpop.f32.mrf.mxu1 }
 0x2e1   : > { %v3277_v60 = vmax.f32 %v3276_v7, %v3161_v17  ;;  %v3351_v8 = vmax.f32 %v3350_v13, %v3163_v18  ;;  %v3168_v3 = vmax.f32 %v2912_v21, 0.0  ;;  %v3170_v26 = vmax.f32 %v2914_v23, 0.0 }
 0x2e2   : > { %v2913_v33 = vadd.f32 %v4702_v44, %v2615_v11  ;;  %v2915_v32 = vadd.f32 %v4704_v27, %v2617_v39  ;;  %v2622_v24 = vmul.f32 %v4677_v25, %v1760_v59  ;;  %v2624_v34 = vmul.f32 %v4682_v28, %v1953_v4  ;;  %v1762_v55 = vpop.f32.mrf.mxu0  ;;  %v1955_v20 = vpop.f32.mrf.mxu1 }
 0x2e3   : > { %v3241_v35 = vmax.f32 %v3240_v22, %v3168_v3  ;;  %v3315_v36 = vmax.f32 %v3314_v52, %v3170_v26  ;;  %v2623_v38 = vmul.f32 %v4684_v29, %v1762_v55  ;;  %v2625_v40 = vmul.f32 %v4686_v31, %v1955_v20 }
 0x2e4   : > { %v3169_v41 = vmax.f32 %v2913_v33, 0.0  ;;  %v3171_v42 = vmax.f32 %v2915_v32, 0.0  ;;  %v2920_v43 = vadd.f32 %v4688_v51, %v2622_v24  ;;  %v2922_v10 = vadd.f32 %v4690_v5, %v2624_v34  ;;  %v1766_v30 = vpop.f32.mrf.mxu0  ;;  %v1959_v45 = vpop.f32.mrf.mxu1 }
 0x2e5   : > { %v2921_v47 = vadd.f32 %v4702_v44, %v2623_v38  ;;  %v2923_v48 = vadd.f32 %v4704_v27, %v2625_v40  ;;  %v2630_v49 = vmul.f32 %v4677_v25, %v1766_v30  ;;  %v2632_v50 = vmul.f32 %v4682_v28, %v1959_v45 }
 0x2e6   : > { %v3278_v1 = vmax.f32 %v3277_v60, %v3169_v41  ;;  %v3352_v63 = vmax.f32 %v3351_v8, %v3171_v42  ;;  %v3176_v0 = vmax.f32 %v2920_v43, 0.0  ;;  %v3178_v2 = vmax.f32 %v2922_v10, 0.0  ;;  %v1768_v37 = vpop.f32.mrf.mxu0  ;;  %v1961_v62 = vpop.f32.mrf.mxu1 }
 0x2e7   : > { %v3177_v6 = vmax.f32 %v2921_v47, 0.0  ;;  %v3179_v7 = vmax.f32 %v2923_v48, 0.0  ;;  %v2928_v13 = vadd.f32 %v4688_v51, %v2630_v49  ;;  %v2930_v14 = vadd.f32 %v4690_v5, %v2632_v50 }
 0x2e8   : > { %v3242_v15 = vmax.f32 %v3241_v35, %v3176_v0  ;;  %v3316_v19 = vmax.f32 %v3315_v36, %v3178_v2  ;;  %v2631_v16 = vmul.f32 %v4684_v29, %v1768_v37  ;;  %v2633_v17 = vmul.f32 %v4686_v31, %v1961_v62  ;;  %v1770_v18 = vpop.f32.mrf.mxu0  ;;  %v1963_v21 = vpop.f32.mrf.mxu1 }
 0x2e9   : > { %v3279_v23 = vmax.f32 %v3278_v1, %v3177_v6  ;;  %v3353_v22 = vmax.f32 %v3352_v63, %v3179_v7  ;;  %v3184_v52 = vmax.f32 %v2928_v13, 0.0  ;;  %v3186_v11 = vmax.f32 %v2930_v14, 0.0 }
 0x2ea   : > { %v2929_v39 = vadd.f32 %v4702_v44, %v2631_v16  ;;  %v2931_v59 = vadd.f32 %v4704_v27, %v2633_v17  ;;  %v2638_v4 = vmul.f32 %v4677_v25, %v1770_v18  ;;  %v2640_v60 = vmul.f32 %v4682_v28, %v1963_v21  ;;  %v1772_v8 = vpop.f32.mrf.mxu0  ;;  %v1965_v3 = vpop.f32.mrf.mxu1 }
 0x2eb   : > { %v3243_v26 = vmax.f32 %v3242_v15, %v3184_v52  ;;  %v3317_v33 = vmax.f32 %v3316_v19, %v3186_v11  ;;  %v2639_v32 = vmul.f32 %v4684_v29, %v1772_v8  ;;  %v2641_v24 = vmul.f32 %v4686_v31, %v1965_v3 }
 0x2ec   : > { %v3185_v34 = vmax.f32 %v2929_v39, 0.0  ;;  %v3187_v55 = vmax.f32 %v2931_v59, 0.0  ;;  %v2936_v20 = vadd.f32 %v4688_v51, %v2638_v4  ;;  %v2938_v35 = vadd.f32 %v4690_v5, %v2640_v60  ;;  %v1776_v36 = vpop.f32.mrf.mxu0  ;;  %v1969_v38 = vpop.f32.mrf.mxu1 }
 0x2ed   : > { %v2937_v40 = vadd.f32 %v4702_v44, %v2639_v32  ;;  %v2939_v41 = vadd.f32 %v4704_v27, %v2641_v24  ;;  %v2646_v42 = vmul.f32 %v4677_v25, %v1776_v36  ;;  %v2648_v43 = vmul.f32 %v4682_v28, %v1969_v38 }
 0x2ee   : > { %v3280_v10 = vmax.f32 %v3279_v23, %v3185_v34  ;;  %v3354_v30 = vmax.f32 %v3353_v22, %v3187_v55  ;;  %v3192_v45 = vmax.f32 %v2936_v20, 0.0  ;;  %v3194_v47 = vmax.f32 %v2938_v35, 0.0  ;;  %v1778_v48 = vpop.f32.mrf.mxu0  ;;  %v1971_v49 = vpop.f32.mrf.mxu1 }
 0x2ef   : > { %v3193_v50 = vmax.f32 %v2937_v40, 0.0  ;;  %v3195_v1 = vmax.f32 %v2939_v41, 0.0  ;;  %v2944_v63 = vadd.f32 %v4688_v51, %v2646_v42  ;;  %v2946_v0 = vadd.f32 %v4690_v5, %v2648_v43 }
 0x2f0   : > { %v3244_v2 = vmax.f32 %v3243_v26, %v3192_v45  ;;  %v3318_v37 = vmax.f32 %v3317_v33, %v3194_v47  ;;  %v2647_v62 = vmul.f32 %v4684_v29, %v1778_v48  ;;  %v2649_v6 = vmul.f32 %v4686_v31, %v1971_v49  ;;  %v1780_v7 = vpop.f32.mrf.mxu0  ;;  %v1973_v13 = vpop.f32.mrf.mxu1 }
 0x2f1   : > { %v3281_v14 = vmax.f32 %v3280_v10, %v3193_v50  ;;  %v3355_v15 = vmax.f32 %v3354_v30, %v3195_v1  ;;  %v3200_v19 = vmax.f32 %v2944_v63, 0.0  ;;  %v3202_v16 = vmax.f32 %v2946_v0, 0.0 }
 0x2f2   : > { %v2945_v17 = vadd.f32 %v4702_v44, %v2647_v62  ;;  %v2947_v18 = vadd.f32 %v4704_v27, %v2649_v6  ;;  %v2654_v21 = vmul.f32 %v4677_v25, %v1780_v7  ;;  %v2656_v23 = vmul.f32 %v4682_v28, %v1973_v13  ;;  %v1782_v22 = vpop.f32.mrf.mxu0  ;;  %v1975_v52 = vpop.f32.mrf.mxu1 }
 0x2f3   : > { %v3245_v11 = vmax.f32 %v3244_v2, %v3200_v19  ;;  %v3319_v39 = vmax.f32 %v3318_v37, %v3202_v16  ;;  %v2655_v59 = vmul.f32 %v4684_v29, %v1782_v22  ;;  %v2657_v4 = vmul.f32 %v4686_v31, %v1975_v52 }
 0x2f4   : > { %v3201_v60 = vmax.f32 %v2945_v17, 0.0  ;;  %v3203_v8 = vmax.f32 %v2947_v18, 0.0  ;;  %v2952_v3 = vadd.f32 %v4688_v51, %v2654_v21  ;;  %v2954_v26 = vadd.f32 %v4690_v5, %v2656_v23  ;;  %v2012_v33 = vpop.f32.mrf.mxu0  ;;  %v2205_v32 = vpop.f32.mrf.mxu1 }
 0x2f5   : > { %v2953_v25 = vadd.f32 %v4702_v44, %v2655_v59  ;;  %v2955_v28 = vadd.f32 %v4704_v27, %v2657_v4  ;;  %v2410_v24 = vmul.f32 %v4710_v53, %v2012_v33  ;;  %v2412_v34 = vmul.f32 %v4712_v54, %v2205_v32 }
 0x2f6   : > { %v3282_v55 = vmax.f32 %v3281_v14, %v3201_v60  ;;  %v3356_v29 = vmax.f32 %v3355_v15, %v3203_v8  ;;  %v3208_v20 = vmax.f32 %v2952_v3, 0.0  ;;  %v3210_v31 = vmax.f32 %v2954_v26, 0.0  ;;  %v2014_v35 = vpop.f32.mrf.mxu0  ;;  %v2207_v36 = vpop.f32.mrf.mxu1 }
 0x2f7   : > { %v3209_v38 = vmax.f32 %v2953_v25, 0.0  ;;  %v3211_v51 = vmax.f32 %v2955_v28, 0.0  ;;  %v2708_v5 = vadd.f32 %v4714_v56, %v2410_v24  ;;  %v2710_v40 = vadd.f32 %v4716_v58, %v2412_v34 }
 0x2f8   : > { %v3246_v41 = vmax.f32 %v3245_v11, %v3208_v20  ;;  %v3320_v44 = vmax.f32 %v3319_v39, %v3210_v31  ;;  %v2411_v27 = vmul.f32 %v4718_v46, %v2014_v35  ;;  %v2413_v42 = vmul.f32 %v4720_v61, %v2207_v36  ;;  %v2016_v43 = vpop.f32.mrf.mxu0  ;;  %v2209_v10 = vpop.f32.mrf.mxu1 }
 0x2f9   : > { %v3283_v30 = vmax.f32 %v3282_v55, %v3209_v38  ;;  %v3357_v45 = vmax.f32 %v3356_v29, %v3211_v51  ;;  %v2964_v47 = vmax.f32 %v2708_v5, 0.0  ;;  %v2966_v48 = vmax.f32 %v2710_v40, 0.0 }
 0x2fa   : > { %v3247_v49 = vrot.slane %v3246_v41, 4  ;;  %v3321_v50 = vrot.slane %v3320_v44, 4  ;;  %v2709_v1 = vadd.f32 %v4728_v9, %v2411_v27  ;;  %v2711_v63 = vadd.f32 %v4730_v12, %v2413_v42  ;;  %v2018_v0 = vpop.f32.mrf.mxu0  ;;  %v2211_v2 = vpop.f32.mrf.mxu1 }
 0x2fb   : > { %v3284_v37 = vrot.slane %v3283_v30, 4  ;;  %v3358_v62 = vrot.slane %v3357_v45, 4  ;;  %v2418_v6 = vmul.f32 %v4710_v53, %v2016_v43  ;;  %v2420_v7 = vmul.f32 %v4712_v54, %v2209_v10 }
 0x2fc   : > { %v3248_v13 = vmax.f32 %v3246_v41, %v3247_v49  ;;  %v3322_v14 = vmax.f32 %v3320_v44, %v3321_v50  ;;  %v2965_v15 = vmax.f32 %v2709_v1, 0.0  ;;  %v2967_v19 = vmax.f32 %v2711_v63, 0.0  ;;  %v2022_v16 = vpop.f32.mrf.mxu0  ;;  %v2215_v17 = vpop.f32.mrf.mxu1 }
 0x2fd   : > { %v3285_v18 = vmax.f32 %v3283_v30, %v3284_v37  ;;  %v3359_v21 = vmax.f32 %v3357_v45, %v3358_v62  ;;  %v2716_v23 = vadd.f32 %v4714_v56, %v2418_v6  ;;  %v2718_v22 = vadd.f32 %v4716_v58, %v2420_v7 }
 0x2fe   : > { %v3249_v52 = vrot.slane %v3248_v13, 2  ;;  %v3323_v11 = vrot.slane %v3322_v14, 2  ;;  %v2419_v39 = vmul.f32 %v4718_v46, %v2018_v0  ;;  %v2421_v59 = vmul.f32 %v4720_v61, %v2211_v2  ;;  %v2024_v4 = vpop.f32.mrf.mxu0  ;;  %v2217_v60 = vpop.f32.mrf.mxu1 }
 0x2ff   : > { %v3286_v8 = vrot.slane %v3285_v18, 2  ;;  %v3360_v3 = vrot.slane %v3359_v21, 2  ;;  %v2972_v26 = vmax.f32 %v2716_v23, 0.0  ;;  %v2974_v33 = vmax.f32 %v2718_v22, 0.0 }
 0x300   : > { %v3250_v32 = vmax.f32 %v3248_v13, %v3249_v52  ;;  %v3324_v25 = vmax.f32 %v3322_v14, %v3323_v11  ;;  %v2717_v28 = vadd.f32 %v4728_v9, %v2419_v39  ;;  %v2719_v24 = vadd.f32 %v4730_v12, %v2421_v59  ;;  %v2026_v34 = vpop.f32.mrf.mxu0  ;;  %v2219_v55 = vpop.f32.mrf.mxu1 }
 0x301   : > { %v3287_v29 = vmax.f32 %v3285_v18, %v3286_v8  ;;  %v3361_v20 = vmax.f32 %v3359_v21, %v3360_v3  ;;  %v3364_v31 = vmax.f32 %v2964_v47, %v2972_v26  ;;  %v3438_v35 = vmax.f32 %v2966_v48, %v2974_v33 }
 0x302   : > { %v3251_v36 = vrot.slane %v3250_v32, 1  ;;  %v3325_v38 = vrot.slane %v3324_v25, 1  ;;  %v2973_v51 = vmax.f32 %v2717_v28, 0.0  ;;  %v2975_v5 = vmax.f32 %v2719_v24, 0.0  ;;  %v2028_v40 = vpop.f32.mrf.mxu0  ;;  %v2221_v41 = vpop.f32.mrf.mxu1 }
 0x303   : > { %v3288_v44 = vrot.slane %v3287_v29, 1  ;;  %v3362_v27 = vrot.slane %v3361_v20, 1  ;;  %v2426_v42 = vmul.f32 %v4710_v53, %v2022_v16  ;;  %v2428_v43 = vmul.f32 %v4712_v54, %v2215_v17 }
 0x304   : > { %v5020_v10 = vmax.f32 %v3250_v32, %v3251_v36  ;;  %v5022_v30 = vmax.f32 %v3324_v25, %v3325_v38  ;;  %v3401_v45 = vmax.f32 %v2965_v15, %v2973_v51  ;;  %v3475_v49 = vmax.f32 %v2967_v19, %v2975_v5  ;;  %v2032_v47 = vpop.f32.mrf.mxu0  ;;  %v2225_v48 = vpop.f32.mrf.mxu1 }
 0x305   : > { %v5024_v50 = vmax.f32 %v3287_v29, %v3288_v44  ;;  %v5026_v1 = vmax.f32 %v3361_v20, %v3362_v27  ;;  %v2724_v63 = vadd.f32 %v4714_v56, %v2426_v42  ;;  %v2726_v0 = vadd.f32 %v4716_v58, %v2428_v43 }
 0x306   : > { %v2427_v2 = vmul.f32 %v4718_v46, %v2024_v4  ;;  %v2429_v37 = vmul.f32 %v4720_v61, %v2217_v60  ;;  %v2434_v62 = vmul.f32 %v4710_v53, %v2026_v34  ;;  %v2436_v6 = vmul.f32 %v4712_v54, %v2219_v55  ;;  %v2034_v7 = vpop.f32.mrf.mxu0  ;;  %v2227_v13 = vpop.f32.mrf.mxu1 }
 0x307   : > { %v2980_v14 = vmax.f32 %v2724_v63, 0.0  ;;  %v2982_v15 = vmax.f32 %v2726_v0, 0.0  ;;  %v2435_v19 = vmul.f32 %v4718_v46, %v2028_v40  ;;  %v2437_v16 = vmul.f32 %v4720_v61, %v2221_v41 }
 0x308   : > { %v2725_v17 = vadd.f32 %v4728_v9, %v2427_v2  ;;  %v2727_v18 = vadd.f32 %v4730_v12, %v2429_v37  ;;  %v2732_v21 = vadd.f32 %v4714_v56, %v2434_v62  ;;  %v2734_v23 = vadd.f32 %v4716_v58, %v2436_v6  ;;  %v2036_v22 = vpop.f32.mrf.mxu0  ;;  %v2229_v52 = vpop.f32.mrf.mxu1 }
 0x309   : > { %v3365_v11 = vmax.f32 %v3364_v31, %v2980_v14  ;;  %v3439_v39 = vmax.f32 %v3438_v35, %v2982_v15  ;;  %v2733_v59 = vadd.f32 %v4728_v9, %v2435_v19  ;;  %v2735_v4 = vadd.f32 %v4730_v12, %v2437_v16 }
 0x30a   : > { %v2981_v60 = vmax.f32 %v2725_v17, 0.0  ;;  %v2983_v8 = vmax.f32 %v2727_v18, 0.0  ;;  %v2988_v3 = vmax.f32 %v2732_v21, 0.0  ;;  %v2990_v26 = vmax.f32 %v2734_v23, 0.0  ;;  %v2038_v33 = vpop.f32.mrf.mxu0  ;;  %v2231_v32 = vpop.f32.mrf.mxu1 }
 0x30b   : > { %v2989_v25 = vmax.f32 %v2733_v59, 0.0  ;;  %v2991_v28 = vmax.f32 %v2735_v4, 0.0  ;;  %v2442_v24 = vmul.f32 %v4710_v53, %v2032_v47  ;;  %v2444_v34 = vmul.f32 %v4712_v54, %v2225_v48 }
 0x30c   : > { %v3402_v55 = vmax.f32 %v3401_v45, %v2981_v60  ;;  %v3476_v29 = vmax.f32 %v3475_v49, %v2983_v8  ;;  %v3366_v20 = vmax.f32 %v3365_v11, %v2988_v3  ;;  %v3440_v31 = vmax.f32 %v3439_v39, %v2990_v26  ;;  %v2042_v35 = vpop.f32.mrf.mxu0  ;;  %v2235_v36 = vpop.f32.mrf.mxu1 }
 0x30d   : > { %v2740_v38 = vadd.f32 %v4714_v56, %v2442_v24  ;;  %v2742_v51 = vadd.f32 %v4716_v58, %v2444_v34  ;;  %v2443_v5 = vmul.f32 %v4718_v46, %v2034_v7  ;;  %v2445_v40 = vmul.f32 %v4720_v61, %v2227_v13 }
 0x30e   : > { %v3403_v41 = vmax.f32 %v3402_v55, %v2989_v25  ;;  %v3477_v44 = vmax.f32 %v3476_v29, %v2991_v28  ;;  %v2450_v27 = vmul.f32 %v4710_v53, %v2036_v22  ;;  %v2452_v42 = vmul.f32 %v4712_v54, %v2229_v52  ;;  %v2044_v43 = vpop.f32.mrf.mxu0  ;;  %v2237_v45 = vpop.f32.mrf.mxu1 }
 0x30f   : > { %v2996_v49 = vmax.f32 %v2740_v38, 0.0  ;;  %v2998_v47 = vmax.f32 %v2742_v51, 0.0  ;;  %v2741_v48 = vadd.f32 %v4728_v9, %v2443_v5  ;;  %v2743_v63 = vadd.f32 %v4730_v12, %v2445_v40 }
 0x310   : > { %v2748_v0 = vadd.f32 %v4714_v56, %v2450_v27  ;;  %v2750_v2 = vadd.f32 %v4716_v58, %v2452_v42  ;;  %v2451_v37 = vmul.f32 %v4718_v46, %v2038_v33  ;;  %v2453_v62 = vmul.f32 %v4720_v61, %v2231_v32  ;;  %v2046_v6 = vpop.f32.mrf.mxu0  ;;  %v2239_v7 = vpop.f32.mrf.mxu1 }
 0x311   : > { %v3367_v13 = vmax.f32 %v3366_v20, %v2996_v49  ;;  %v3441_v14 = vmax.f32 %v3440_v31, %v2998_v47  ;;  %v2997_v15 = vmax.f32 %v2741_v48, 0.0  ;;  %v2999_v19 = vmax.f32 %v2743_v63, 0.0 }
 0x312   : > { %v3004_v16 = vmax.f32 %v2748_v0, 0.0  ;;  %v3006_v17 = vmax.f32 %v2750_v2, 0.0  ;;  %v2749_v18 = vadd.f32 %v4728_v9, %v2451_v37  ;;  %v2751_v21 = vadd.f32 %v4730_v12, %v2453_v62  ;;  %v2048_v23 = vpop.f32.mrf.mxu0  ;;  %v2241_v22 = vpop.f32.mrf.mxu1 }
 0x313   : > { %v3404_v52 = vmax.f32 %v3403_v41, %v2997_v15  ;;  %v3478_v11 = vmax.f32 %v3477_v44, %v2999_v19  ;;  %v2458_v39 = vmul.f32 %v4710_v53, %v2042_v35  ;;  %v2460_v59 = vmul.f32 %v4712_v54, %v2235_v36 }
 0x314   : > { %v3368_v4 = vmax.f32 %v3367_v13, %v3004_v16  ;;  %v3442_v60 = vmax.f32 %v3441_v14, %v3006_v17  ;;  %v3005_v8 = vmax.f32 %v2749_v18, 0.0  ;;  %v3007_v3 = vmax.f32 %v2751_v21, 0.0  ;;  %v2052_v26 = vpop.f32.mrf.mxu0  ;;  %v2245_v33 = vpop.f32.mrf.mxu1 }
 0x315   : > { %v2756_v32 = vadd.f32 %v4714_v56, %v2458_v39  ;;  %v2758_v25 = vadd.f32 %v4716_v58, %v2460_v59  ;;  %v2459_v28 = vmul.f32 %v4718_v46, %v2044_v43  ;;  %v2461_v24 = vmul.f32 %v4720_v61, %v2237_v45 }
 0x316   : > { %v3405_v34 = vmax.f32 %v3404_v52, %v3005_v8  ;;  %v3479_v55 = vmax.f32 %v3478_v11, %v3007_v3  ;;  %v2466_v29 = vmul.f32 %v4710_v53, %v2046_v6  ;;  %v2468_v20 = vmul.f32 %v4712_v54, %v2239_v7  ;;  %v2054_v31 = vpop.f32.mrf.mxu0  ;;  %v2247_v35 = vpop.f32.mrf.mxu1 }
 0x317   : > { %v3012_v36 = vmax.f32 %v2756_v32, 0.0  ;;  %v3014_v38 = vmax.f32 %v2758_v25, 0.0  ;;  %v2757_v51 = vadd.f32 %v4728_v9, %v2459_v28  ;;  %v2759_v5 = vadd.f32 %v4730_v12, %v2461_v24 }
 0x318   : > { %v2764_v40 = vadd.f32 %v4714_v56, %v2466_v29  ;;  %v2766_v41 = vadd.f32 %v4716_v58, %v2468_v20  ;;  %v2467_v44 = vmul.f32 %v4718_v46, %v2048_v23  ;;  %v2469_v27 = vmul.f32 %v4720_v61, %v2241_v22  ;;  %v2056_v42 = vpop.f32.mrf.mxu0  ;;  %v2249_v43 = vpop.f32.mrf.mxu1 }
 0x319   : > { %v3369_v45 = vmax.f32 %v3368_v4, %v3012_v36  ;;  %v3443_v49 = vmax.f32 %v3442_v60, %v3014_v38  ;;  %v3013_v47 = vmax.f32 %v2757_v51, 0.0  ;;  %v3015_v48 = vmax.f32 %v2759_v5, 0.0 }
 0x31a   : > { %v3020_v63 = vmax.f32 %v2764_v40, 0.0  ;;  %v3022_v0 = vmax.f32 %v2766_v41, 0.0  ;;  %v2765_v2 = vadd.f32 %v4728_v9, %v2467_v44  ;;  %v2767_v37 = vadd.f32 %v4730_v12, %v2469_v27  ;;  %v2058_v62 = vpop.f32.mrf.mxu0  ;;  %v2251_v6 = vpop.f32.mrf.mxu1 }
 0x31b   : > { %v3406_v7 = vmax.f32 %v3405_v34, %v3013_v47  ;;  %v3480_v13 = vmax.f32 %v3479_v55, %v3015_v48  ;;  %v2474_v14 = vmul.f32 %v4710_v53, %v2052_v26  ;;  %v2476_v15 = vmul.f32 %v4712_v54, %v2245_v33 }
 0x31c   : > { %v3370_v19 = vmax.f32 %v3369_v45, %v3020_v63  ;;  %v3444_v16 = vmax.f32 %v3443_v49, %v3022_v0  ;;  %v3021_v17 = vmax.f32 %v2765_v2, 0.0  ;;  %v3023_v18 = vmax.f32 %v2767_v37, 0.0  ;;  %v2062_v21 = vpop.f32.mrf.mxu0  ;;  %v2255_v23 = vpop.f32.mrf.mxu1 }
 0x31d   : > { %v2772_v22 = vadd.f32 %v4714_v56, %v2474_v14  ;;  %v2774_v52 = vadd.f32 %v4716_v58, %v2476_v15  ;;  %v2475_v11 = vmul.f32 %v4718_v46, %v2054_v31  ;;  %v2477_v39 = vmul.f32 %v4720_v61, %v2247_v35 }
 0x31e   : > { %v3407_v59 = vmax.f32 %v3406_v7, %v3021_v17  ;;  %v3481_v4 = vmax.f32 %v3480_v13, %v3023_v18  ;;  %v2482_v60 = vmul.f32 %v4710_v53, %v2056_v42  ;;  %v2484_v8 = vmul.f32 %v4712_v54, %v2249_v43  ;;  %v2064_v3 = vpop.f32.mrf.mxu0  ;;  %v2257_v26 = vpop.f32.mrf.mxu1 }
 0x31f   : > { %v3028_v33 = vmax.f32 %v2772_v22, 0.0  ;;  %v3030_v32 = vmax.f32 %v2774_v52, 0.0  ;;  %v2773_v25 = vadd.f32 %v4728_v9, %v2475_v11  ;;  %v2775_v28 = vadd.f32 %v4730_v12, %v2477_v39 }
 0x320   : > { %v2780_v24 = vadd.f32 %v4714_v56, %v2482_v60  ;;  %v2782_v34 = vadd.f32 %v4716_v58, %v2484_v8  ;;  %v2483_v55 = vmul.f32 %v4718_v46, %v2058_v62  ;;  %v2485_v29 = vmul.f32 %v4720_v61, %v2251_v6  ;;  %v2066_v20 = vpop.f32.mrf.mxu0  ;;  %v2259_v31 = vpop.f32.mrf.mxu1 }
 0x321   : > { %v3371_v35 = vmax.f32 %v3370_v19, %v3028_v33  ;;  %v3445_v36 = vmax.f32 %v3444_v16, %v3030_v32  ;;  %v3029_v38 = vmax.f32 %v2773_v25, 0.0  ;;  %v3031_v51 = vmax.f32 %v2775_v28, 0.0 }
 0x322   : > { %v3036_v5 = vmax.f32 %v2780_v24, 0.0  ;;  %v3038_v40 = vmax.f32 %v2782_v34, 0.0  ;;  %v2781_v41 = vadd.f32 %v4728_v9, %v2483_v55  ;;  %v2783_v44 = vadd.f32 %v4730_v12, %v2485_v29  ;;  %v2068_v27 = vpop.f32.mrf.mxu0  ;;  %v2261_v42 = vpop.f32.mrf.mxu1 }
 0x323   : > { %v3408_v43 = vmax.f32 %v3407_v59, %v3029_v38  ;;  %v3482_v45 = vmax.f32 %v3481_v4, %v3031_v51  ;;  %v2490_v49 = vmul.f32 %v4710_v53, %v2062_v21  ;;  %v2492_v47 = vmul.f32 %v4712_v54, %v2255_v23 }
 0x324   : > { %v3372_v48 = vmax.f32 %v3371_v35, %v3036_v5  ;;  %v3446_v63 = vmax.f32 %v3445_v36, %v3038_v40  ;;  %v3037_v0 = vmax.f32 %v2781_v41, 0.0  ;;  %v3039_v2 = vmax.f32 %v2783_v44, 0.0  ;;  %v2072_v37 = vpop.f32.mrf.mxu0  ;;  %v2265_v62 = vpop.f32.mrf.mxu1 }
 0x325   : > { %v2788_v6 = vadd.f32 %v4714_v56, %v2490_v49  ;;  %v2790_v7 = vadd.f32 %v4716_v58, %v2492_v47  ;;  %v2491_v13 = vmul.f32 %v4718_v46, %v2064_v3  ;;  %v2493_v14 = vmul.f32 %v4720_v61, %v2257_v26 }
 0x326   : > { %v3409_v15 = vmax.f32 %v3408_v43, %v3037_v0  ;;  %v3483_v19 = vmax.f32 %v3482_v45, %v3039_v2  ;;  %v2498_v16 = vmul.f32 %v4710_v53, %v2066_v20  ;;  %v2500_v17 = vmul.f32 %v4712_v54, %v2259_v31  ;;  %v2074_v18 = vpop.f32.mrf.mxu0  ;;  %v2267_v21 = vpop.f32.mrf.mxu1 }
 0x327   : > { %v3044_v23 = vmax.f32 %v2788_v6, 0.0  ;;  %v3046_v22 = vmax.f32 %v2790_v7, 0.0  ;;  %v2789_v52 = vadd.f32 %v4728_v9, %v2491_v13  ;;  %v2791_v11 = vadd.f32 %v4730_v12, %v2493_v14 }
 0x328   : > { %v2796_v39 = vadd.f32 %v4714_v56, %v2498_v16  ;;  %v2798_v59 = vadd.f32 %v4716_v58, %v2500_v17  ;;  %v2499_v4 = vmul.f32 %v4718_v46, %v2068_v27  ;;  %v2501_v60 = vmul.f32 %v4720_v61, %v2261_v42  ;;  %v2076_v8 = vpop.f32.mrf.mxu0  ;;  %v2269_v3 = vpop.f32.mrf.mxu1 }
 0x329   : > { %v3373_v26 = vmax.f32 %v3372_v48, %v3044_v23  ;;  %v3447_v33 = vmax.f32 %v3446_v63, %v3046_v22  ;;  %v3045_v32 = vmax.f32 %v2789_v52, 0.0  ;;  %v3047_v25 = vmax.f32 %v2791_v11, 0.0 }
 0x32a   : > { %v3052_v28 = vmax.f32 %v2796_v39, 0.0  ;;  %v3054_v24 = vmax.f32 %v2798_v59, 0.0  ;;  %v2797_v34 = vadd.f32 %v4728_v9, %v2499_v4  ;;  %v2799_v55 = vadd.f32 %v4730_v12, %v2501_v60  ;;  %v2078_v29 = vpop.f32.mrf.mxu0  ;;  %v2271_v20 = vpop.f32.mrf.mxu1 }
 0x32b   : > { %v3410_v31 = vmax.f32 %v3409_v15, %v3045_v32  ;;  %v3484_v35 = vmax.f32 %v3483_v19, %v3047_v25  ;;  %v2506_v36 = vmul.f32 %v4710_v53, %v2072_v37  ;;  %v2508_v38 = vmul.f32 %v4712_v54, %v2265_v62 }
 0x32c   : > { %v3374_v51 = vmax.f32 %v3373_v26, %v3052_v28  ;;  %v3448_v5 = vmax.f32 %v3447_v33, %v3054_v24  ;;  %v3053_v40 = vmax.f32 %v2797_v34, 0.0  ;;  %v3055_v41 = vmax.f32 %v2799_v55, 0.0  ;;  %v2082_v44 = vpop.f32.mrf.mxu0  ;;  %v2275_v27 = vpop.f32.mrf.mxu1 }
 0x32d   : > { %v2804_v42 = vadd.f32 %v4714_v56, %v2506_v36  ;;  %v2806_v43 = vadd.f32 %v4716_v58, %v2508_v38  ;;  %v2507_v45 = vmul.f32 %v4718_v46, %v2074_v18  ;;  %v2509_v49 = vmul.f32 %v4720_v61, %v2267_v21 }
 0x32e   : > { %v3411_v47 = vmax.f32 %v3410_v31, %v3053_v40  ;;  %v3485_v48 = vmax.f32 %v3484_v35, %v3055_v41  ;;  %v2514_v63 = vmul.f32 %v4710_v53, %v2076_v8  ;;  %v2516_v0 = vmul.f32 %v4712_v54, %v2269_v3  ;;  %v2084_v2 = vpop.f32.mrf.mxu0  ;;  %v2277_v37 = vpop.f32.mrf.mxu1 }
 0x32f   : > { %v3060_v62 = vmax.f32 %v2804_v42, 0.0  ;;  %v3062_v6 = vmax.f32 %v2806_v43, 0.0  ;;  %v2805_v7 = vadd.f32 %v4728_v9, %v2507_v45  ;;  %v2807_v13 = vadd.f32 %v4730_v12, %v2509_v49 }
 0x330   : > { %v2812_v14 = vadd.f32 %v4714_v56, %v2514_v63  ;;  %v2814_v15 = vadd.f32 %v4716_v58, %v2516_v0  ;;  %v2515_v19 = vmul.f32 %v4718_v46, %v2078_v29  ;;  %v2517_v16 = vmul.f32 %v4720_v61, %v2271_v20  ;;  %v2086_v17 = vpop.f32.mrf.mxu0  ;;  %v2279_v18 = vpop.f32.mrf.mxu1 }
 0x331   : > { %v3375_v21 = vmax.f32 %v3374_v51, %v3060_v62  ;;  %v3449_v23 = vmax.f32 %v3448_v5, %v3062_v6  ;;  %v3061_v22 = vmax.f32 %v2805_v7, 0.0  ;;  %v3063_v52 = vmax.f32 %v2807_v13, 0.0 }
 0x332   : > { %v3068_v11 = vmax.f32 %v2812_v14, 0.0  ;;  %v3070_v39 = vmax.f32 %v2814_v15, 0.0  ;;  %v2813_v59 = vadd.f32 %v4728_v9, %v2515_v19  ;;  %v2815_v4 = vadd.f32 %v4730_v12, %v2517_v16  ;;  %v2088_v60 = vpop.f32.mrf.mxu0  ;;  %v2281_v8 = vpop.f32.mrf.mxu1 }
 0x333   : > { %v3412_v3 = vmax.f32 %v3411_v47, %v3061_v22  ;;  %v3486_v26 = vmax.f32 %v3485_v48, %v3063_v52  ;;  %v2522_v33 = vmul.f32 %v4710_v53, %v2082_v44  ;;  %v2524_v32 = vmul.f32 %v4712_v54, %v2275_v27 }
 0x334   : > { %v3376_v25 = vmax.f32 %v3375_v21, %v3068_v11  ;;  %v3450_v28 = vmax.f32 %v3449_v23, %v3070_v39  ;;  %v3069_v24 = vmax.f32 %v2813_v59, 0.0  ;;  %v3071_v34 = vmax.f32 %v2815_v4, 0.0  ;;  %v2092_v55 = vpop.f32.mrf.mxu0  ;;  %v2285_v29 = vpop.f32.mrf.mxu1 }
 0x335   : > { %v2820_v20 = vadd.f32 %v4714_v56, %v2522_v33  ;;  %v2822_v31 = vadd.f32 %v4716_v58, %v2524_v32  ;;  %v2523_v35 = vmul.f32 %v4718_v46, %v2084_v2  ;;  %v2525_v36 = vmul.f32 %v4720_v61, %v2277_v37 }
 0x336   : > { %v3413_v38 = vmax.f32 %v3412_v3, %v3069_v24  ;;  %v3487_v51 = vmax.f32 %v3486_v26, %v3071_v34  ;;  %v2530_v5 = vmul.f32 %v4710_v53, %v2086_v17  ;;  %v2532_v40 = vmul.f32 %v4712_v54, %v2279_v18  ;;  %v2094_v41 = vpop.f32.mrf.mxu0  ;;  %v2287_v44 = vpop.f32.mrf.mxu1 }
 0x337   : > { %v3076_v27 = vmax.f32 %v2820_v20, 0.0  ;;  %v3078_v42 = vmax.f32 %v2822_v31, 0.0  ;;  %v2821_v43 = vadd.f32 %v4728_v9, %v2523_v35  ;;  %v2823_v45 = vadd.f32 %v4730_v12, %v2525_v36 }
 0x338   : > { %v2828_v49 = vadd.f32 %v4714_v56, %v2530_v5  ;;  %v2830_v47 = vadd.f32 %v4716_v58, %v2532_v40  ;;  %v2531_v48 = vmul.f32 %v4718_v46, %v2088_v60  ;;  %v2533_v63 = vmul.f32 %v4720_v61, %v2281_v8  ;;  %v2096_v0 = vpop.f32.mrf.mxu0  ;;  %v2289_v2 = vpop.f32.mrf.mxu1 }
 0x339   : > { %v3377_v37 = vmax.f32 %v3376_v25, %v3076_v27  ;;  %v3451_v62 = vmax.f32 %v3450_v28, %v3078_v42  ;;  %v3077_v6 = vmax.f32 %v2821_v43, 0.0  ;;  %v3079_v7 = vmax.f32 %v2823_v45, 0.0 }
 0x33a   : > { %v3084_v13 = vmax.f32 %v2828_v49, 0.0  ;;  %v3086_v14 = vmax.f32 %v2830_v47, 0.0  ;;  %v2829_v15 = vadd.f32 %v4728_v9, %v2531_v48  ;;  %v2831_v19 = vadd.f32 %v4730_v12, %v2533_v63  ;;  %v2098_v16 = vpop.f32.mrf.mxu0  ;;  %v2291_v17 = vpop.f32.mrf.mxu1 }
 0x33b   : > { %v3414_v18 = vmax.f32 %v3413_v38, %v3077_v6  ;;  %v3488_v21 = vmax.f32 %v3487_v51, %v3079_v7  ;;  %v2538_v23 = vmul.f32 %v4710_v53, %v2092_v55  ;;  %v2540_v22 = vmul.f32 %v4712_v54, %v2285_v29 }
 0x33c   : > { %v3378_v52 = vmax.f32 %v3377_v37, %v3084_v13  ;;  %v3452_v11 = vmax.f32 %v3451_v62, %v3086_v14  ;;  %v3085_v39 = vmax.f32 %v2829_v15, 0.0  ;;  %v3087_v59 = vmax.f32 %v2831_v19, 0.0  ;;  %v2102_v4 = vpop.f32.mrf.mxu0  ;;  %v2295_v60 = vpop.f32.mrf.mxu1 }
 0x33d   : > { %v2836_v8 = vadd.f32 %v4714_v56, %v2538_v23  ;;  %v2838_v3 = vadd.f32 %v4716_v58, %v2540_v22  ;;  %v2539_v26 = vmul.f32 %v4718_v46, %v2094_v41  ;;  %v2541_v33 = vmul.f32 %v4720_v61, %v2287_v44 }
 0x33e   : > { %v3415_v32 = vmax.f32 %v3414_v18, %v3085_v39  ;;  %v3489_v25 = vmax.f32 %v3488_v21, %v3087_v59  ;;  %v2546_v28 = vmul.f32 %v4710_v53, %v2096_v0  ;;  %v2548_v24 = vmul.f32 %v4712_v54, %v2289_v2  ;;  %v2104_v34 = vpop.f32.mrf.mxu0  ;;  %v2297_v55 = vpop.f32.mrf.mxu1 }
 0x33f   : > { %v3092_v29 = vmax.f32 %v2836_v8, 0.0  ;;  %v3094_v20 = vmax.f32 %v2838_v3, 0.0  ;;  %v2837_v31 = vadd.f32 %v4728_v9, %v2539_v26  ;;  %v2839_v35 = vadd.f32 %v4730_v12, %v2541_v33 }
 0x340   : > { %v2844_v36 = vadd.f32 %v4714_v56, %v2546_v28  ;;  %v2846_v38 = vadd.f32 %v4716_v58, %v2548_v24  ;;  %v2547_v51 = vmul.f32 %v4718_v46, %v2098_v16  ;;  %v2549_v5 = vmul.f32 %v4720_v61, %v2291_v17  ;;  %v2106_v40 = vpop.f32.mrf.mxu0  ;;  %v2299_v41 = vpop.f32.mrf.mxu1 }
 0x341   : > { %v3379_v44 = vmax.f32 %v3378_v52, %v3092_v29  ;;  %v3453_v27 = vmax.f32 %v3452_v11, %v3094_v20  ;;  %v3093_v42 = vmax.f32 %v2837_v31, 0.0  ;;  %v3095_v43 = vmax.f32 %v2839_v35, 0.0 }
 0x342   : > { %v3100_v45 = vmax.f32 %v2844_v36, 0.0  ;;  %v3102_v49 = vmax.f32 %v2846_v38, 0.0  ;;  %v2845_v47 = vadd.f32 %v4728_v9, %v2547_v51  ;;  %v2847_v48 = vadd.f32 %v4730_v12, %v2549_v5  ;;  %v2108_v63 = vpop.f32.mrf.mxu0  ;;  %v2301_v0 = vpop.f32.mrf.mxu1 }
 0x343   : > { %v3416_v2 = vmax.f32 %v3415_v32, %v3093_v42  ;;  %v3490_v37 = vmax.f32 %v3489_v25, %v3095_v43  ;;  %v2554_v62 = vmul.f32 %v4710_v53, %v2102_v4  ;;  %v2556_v6 = vmul.f32 %v4712_v54, %v2295_v60 }
 0x344   : > { %v3380_v7 = vmax.f32 %v3379_v44, %v3100_v45  ;;  %v3454_v13 = vmax.f32 %v3453_v27, %v3102_v49  ;;  %v3101_v14 = vmax.f32 %v2845_v47, 0.0  ;;  %v3103_v15 = vmax.f32 %v2847_v48, 0.0  ;;  %v2112_v19 = vpop.f32.mrf.mxu0  ;;  %v2305_v16 = vpop.f32.mrf.mxu1 }
 0x345   : > { %v2852_v17 = vadd.f32 %v4714_v56, %v2554_v62  ;;  %v2854_v18 = vadd.f32 %v4716_v58, %v2556_v6  ;;  %v2555_v21 = vmul.f32 %v4718_v46, %v2104_v34  ;;  %v2557_v23 = vmul.f32 %v4720_v61, %v2297_v55 }
 0x346   : > { %v3417_v22 = vmax.f32 %v3416_v2, %v3101_v14  ;;  %v3491_v52 = vmax.f32 %v3490_v37, %v3103_v15  ;;  %v2562_v11 = vmul.f32 %v4710_v53, %v2106_v40  ;;  %v2564_v39 = vmul.f32 %v4712_v54, %v2299_v41  ;;  %v2114_v59 = vpop.f32.mrf.mxu0  ;;  %v2307_v4 = vpop.f32.mrf.mxu1 }
 0x347   : > { %v3108_v60 = vmax.f32 %v2852_v17, 0.0  ;;  %v3110_v8 = vmax.f32 %v2854_v18, 0.0  ;;  %v2853_v3 = vadd.f32 %v4728_v9, %v2555_v21  ;;  %v2855_v26 = vadd.f32 %v4730_v12, %v2557_v23 }
 0x348   : > { %v2860_v33 = vadd.f32 %v4714_v56, %v2562_v11  ;;  %v2862_v32 = vadd.f32 %v4716_v58, %v2564_v39  ;;  %v2563_v25 = vmul.f32 %v4718_v46, %v2108_v63  ;;  %v2565_v28 = vmul.f32 %v4720_v61, %v2301_v0  ;;  %v2116_v24 = vpop.f32.mrf.mxu0  ;;  %v2309_v34 = vpop.f32.mrf.mxu1 }
 0x349   : > { %v3381_v55 = vmax.f32 %v3380_v7, %v3108_v60  ;;  %v3455_v29 = vmax.f32 %v3454_v13, %v3110_v8  ;;  %v3109_v20 = vmax.f32 %v2853_v3, 0.0  ;;  %v3111_v31 = vmax.f32 %v2855_v26, 0.0 }
 0x34a   : > { %v3116_v35 = vmax.f32 %v2860_v33, 0.0  ;;  %v3118_v36 = vmax.f32 %v2862_v32, 0.0  ;;  %v2861_v38 = vadd.f32 %v4728_v9, %v2563_v25  ;;  %v2863_v51 = vadd.f32 %v4730_v12, %v2565_v28  ;;  %v2118_v5 = vpop.f32.mrf.mxu0  ;;  %v2311_v40 = vpop.f32.mrf.mxu1 }
 0x34b   : > { %v3418_v41 = vmax.f32 %v3417_v22, %v3109_v20  ;;  %v3492_v44 = vmax.f32 %v3491_v52, %v3111_v31  ;;  %v2570_v27 = vmul.f32 %v4710_v53, %v2112_v19  ;;  %v2572_v42 = vmul.f32 %v4712_v54, %v2305_v16 }
 0x34c   : > { %v3382_v43 = vmax.f32 %v3381_v55, %v3116_v35  ;;  %v3456_v45 = vmax.f32 %v3455_v29, %v3118_v36  ;;  %v3117_v49 = vmax.f32 %v2861_v38, 0.0  ;;  %v3119_v47 = vmax.f32 %v2863_v51, 0.0  ;;  %v2122_v48 = vpop.f32.mrf.mxu0  ;;  %v2315_v63 = vpop.f32.mrf.mxu1 }
 0x34d   : > { %v2868_v0 = vadd.f32 %v4714_v56, %v2570_v27  ;;  %v2870_v2 = vadd.f32 %v4716_v58, %v2572_v42  ;;  %v2571_v37 = vmul.f32 %v4718_v46, %v2114_v59  ;;  %v2573_v62 = vmul.f32 %v4720_v61, %v2307_v4 }
 0x34e   : > { %v3419_v6 = vmax.f32 %v3418_v41, %v3117_v49  ;;  %v3493_v7 = vmax.f32 %v3492_v44, %v3119_v47  ;;  %v2578_v13 = vmul.f32 %v4710_v53, %v2116_v24  ;;  %v2580_v14 = vmul.f32 %v4712_v54, %v2309_v34  ;;  %v2124_v15 = vpop.f32.mrf.mxu0  ;;  %v2317_v19 = vpop.f32.mrf.mxu1 }
 0x34f   : > { %v3124_v16 = vmax.f32 %v2868_v0, 0.0  ;;  %v3126_v17 = vmax.f32 %v2870_v2, 0.0  ;;  %v2869_v18 = vadd.f32 %v4728_v9, %v2571_v37  ;;  %v2871_v21 = vadd.f32 %v4730_v12, %v2573_v62 }
 0x350   : > { %v2876_v23 = vadd.f32 %v4714_v56, %v2578_v13  ;;  %v2878_v22 = vadd.f32 %v4716_v58, %v2580_v14  ;;  %v2579_v52 = vmul.f32 %v4718_v46, %v2118_v5  ;;  %v2581_v11 = vmul.f32 %v4720_v61, %v2311_v40  ;;  %v2126_v39 = vpop.f32.mrf.mxu0  ;;  %v2319_v59 = vpop.f32.mrf.mxu1 }
 0x351   : > { %v3383_v4 = vmax.f32 %v3382_v43, %v3124_v16  ;;  %v3457_v60 = vmax.f32 %v3456_v45, %v3126_v17  ;;  %v3125_v8 = vmax.f32 %v2869_v18, 0.0  ;;  %v3127_v3 = vmax.f32 %v2871_v21, 0.0 }
 0x352   : > { %v3132_v26 = vmax.f32 %v2876_v23, 0.0  ;;  %v3134_v33 = vmax.f32 %v2878_v22, 0.0  ;;  %v2877_v32 = vadd.f32 %v4728_v9, %v2579_v52  ;;  %v2879_v25 = vadd.f32 %v4730_v12, %v2581_v11  ;;  %v2128_v28 = vpop.f32.mrf.mxu0  ;;  %v2321_v24 = vpop.f32.mrf.mxu1 }
 0x353   : > { %v3420_v34 = vmax.f32 %v3419_v6, %v3125_v8  ;;  %v3494_v55 = vmax.f32 %v3493_v7, %v3127_v3  ;;  %v2586_v29 = vmul.f32 %v4710_v53, %v2122_v48  ;;  %v2588_v20 = vmul.f32 %v4712_v54, %v2315_v63 }
 0x354   : > { %v3384_v31 = vmax.f32 %v3383_v4, %v3132_v26  ;;  %v3458_v35 = vmax.f32 %v3457_v60, %v3134_v33  ;;  %v3133_v36 = vmax.f32 %v2877_v32, 0.0  ;;  %v3135_v38 = vmax.f32 %v2879_v25, 0.0  ;;  %v2132_v51 = vpop.f32.mrf.mxu0  ;;  %v2325_v5 = vpop.f32.mrf.mxu1 }
 0x355   : > { %v2884_v40 = vadd.f32 %v4714_v56, %v2586_v29  ;;  %v2886_v41 = vadd.f32 %v4716_v58, %v2588_v20  ;;  %v2587_v44 = vmul.f32 %v4718_v46, %v2124_v15  ;;  %v2589_v27 = vmul.f32 %v4720_v61, %v2317_v19 }
 0x356   : > { %v3421_v42 = vmax.f32 %v3420_v34, %v3133_v36  ;;  %v3495_v43 = vmax.f32 %v3494_v55, %v3135_v38  ;;  %v2594_v45 = vmul.f32 %v4710_v53, %v2126_v39  ;;  %v2596_v49 = vmul.f32 %v4712_v54, %v2319_v59  ;;  %v2134_v47 = vpop.f32.mrf.mxu0  ;;  %v2327_v48 = vpop.f32.mrf.mxu1 }
 0x357   : > { %v3140_v63 = vmax.f32 %v2884_v40, 0.0  ;;  %v3142_v0 = vmax.f32 %v2886_v41, 0.0  ;;  %v2885_v2 = vadd.f32 %v4728_v9, %v2587_v44  ;;  %v2887_v37 = vadd.f32 %v4730_v12, %v2589_v27 }
 0x358   : > { %v2892_v62 = vadd.f32 %v4714_v56, %v2594_v45  ;;  %v2894_v6 = vadd.f32 %v4716_v58, %v2596_v49  ;;  %v2595_v7 = vmul.f32 %v4718_v46, %v2128_v28  ;;  %v2597_v13 = vmul.f32 %v4720_v61, %v2321_v24  ;;  %v2136_v14 = vpop.f32.mrf.mxu0  ;;  %v2329_v15 = vpop.f32.mrf.mxu1 }
 0x359   : > { %v3385_v19 = vmax.f32 %v3384_v31, %v3140_v63  ;;  %v3459_v16 = vmax.f32 %v3458_v35, %v3142_v0  ;;  %v3141_v17 = vmax.f32 %v2885_v2, 0.0  ;;  %v3143_v18 = vmax.f32 %v2887_v37, 0.0 }
 0x35a   : > { %v3148_v21 = vmax.f32 %v2892_v62, 0.0  ;;  %v3150_v23 = vmax.f32 %v2894_v6, 0.0  ;;  %v2893_v22 = vadd.f32 %v4728_v9, %v2595_v7  ;;  %v2895_v52 = vadd.f32 %v4730_v12, %v2597_v13  ;;  %v2138_v11 = vpop.f32.mrf.mxu0  ;;  %v2331_v39 = vpop.f32.mrf.mxu1 }
 0x35b   : > { %v3422_v59 = vmax.f32 %v3421_v42, %v3141_v17  ;;  %v3496_v4 = vmax.f32 %v3495_v43, %v3143_v18  ;;  %v2602_v60 = vmul.f32 %v4710_v53, %v2132_v51  ;;  %v2604_v8 = vmul.f32 %v4712_v54, %v2325_v5 }
 0x35c   : > { %v3386_v3 = vmax.f32 %v3385_v19, %v3148_v21  ;;  %v3460_v26 = vmax.f32 %v3459_v16, %v3150_v23  ;;  %v3149_v33 = vmax.f32 %v2893_v22, 0.0  ;;  %v3151_v32 = vmax.f32 %v2895_v52, 0.0  ;;  %v2142_v25 = vpop.f32.mrf.mxu0  ;;  %v2335_v28 = vpop.f32.mrf.mxu1 }
 0x35d   : > { %v2900_v24 = vadd.f32 %v4714_v56, %v2602_v60  ;;  %v2902_v34 = vadd.f32 %v4716_v58, %v2604_v8  ;;  %v2603_v55 = vmul.f32 %v4718_v46, %v2134_v47  ;;  %v2605_v29 = vmul.f32 %v4720_v61, %v2327_v48 }
 0x35e   : > { %v3423_v20 = vmax.f32 %v3422_v59, %v3149_v33  ;;  %v3497_v31 = vmax.f32 %v3496_v4, %v3151_v32  ;;  %v2610_v35 = vmul.f32 %v4710_v53, %v2136_v14  ;;  %v2612_v36 = vmul.f32 %v4712_v54, %v2329_v15  ;;  %v2144_v38 = vpop.f32.mrf.mxu0  ;;  %v2337_v51 = vpop.f32.mrf.mxu1 }
 0x35f   : > { %v3156_v5 = vmax.f32 %v2900_v24, 0.0  ;;  %v3158_v40 = vmax.f32 %v2902_v34, 0.0  ;;  %v2901_v41 = vadd.f32 %v4728_v9, %v2603_v55  ;;  %v2903_v44 = vadd.f32 %v4730_v12, %v2605_v29 }
 0x360   : > { %v2908_v27 = vadd.f32 %v4714_v56, %v2610_v35  ;;  %v2910_v42 = vadd.f32 %v4716_v58, %v2612_v36  ;;  %v2611_v43 = vmul.f32 %v4718_v46, %v2138_v11  ;;  %v2613_v45 = vmul.f32 %v4720_v61, %v2331_v39  ;;  %v2146_v49 = vpop.f32.mrf.mxu0  ;;  %v2339_v47 = vpop.f32.mrf.mxu1 }
 0x361   : > { %v3387_v48 = vmax.f32 %v3386_v3, %v3156_v5  ;;  %v3461_v63 = vmax.f32 %v3460_v26, %v3158_v40  ;;  %v3157_v0 = vmax.f32 %v2901_v41, 0.0  ;;  %v3159_v2 = vmax.f32 %v2903_v44, 0.0 }
 0x362   : > { %v3164_v37 = vmax.f32 %v2908_v27, 0.0  ;;  %v3166_v62 = vmax.f32 %v2910_v42, 0.0  ;;  %v2909_v6 = vadd.f32 %v4728_v9, %v2611_v43  ;;  %v2911_v7 = vadd.f32 %v4730_v12, %v2613_v45  ;;  %v2148_v13 = vpop.f32.mrf.mxu0  ;;  %v2341_v14 = vpop.f32.mrf.mxu1 }
 0x363   : > { %v3424_v15 = vmax.f32 %v3423_v20, %v3157_v0  ;;  %v3498_v19 = vmax.f32 %v3497_v31, %v3159_v2  ;;  %v2618_v16 = vmul.f32 %v4710_v53, %v2142_v25  ;;  %v2620_v17 = vmul.f32 %v4712_v54, %v2335_v28 }
 0x364   : > { %v3388_v18 = vmax.f32 %v3387_v48, %v3164_v37  ;;  %v3462_v21 = vmax.f32 %v3461_v63, %v3166_v62  ;;  %v3165_v23 = vmax.f32 %v2909_v6, 0.0  ;;  %v3167_v22 = vmax.f32 %v2911_v7, 0.0  ;;  %v2152_v52 = vpop.f32.mrf.mxu0  ;;  %v2345_v11 = vpop.f32.mrf.mxu1 }
 0x365   : > { %v2916_v39 = vadd.f32 %v4714_v56, %v2618_v16  ;;  %v2918_v59 = vadd.f32 %v4716_v58, %v2620_v17  ;;  %v2619_v4 = vmul.f32 %v4718_v46, %v2144_v38  ;;  %v2621_v60 = vmul.f32 %v4720_v61, %v2337_v51 }
 0x366   : > { %v3425_v8 = vmax.f32 %v3424_v15, %v3165_v23  ;;  %v3499_v3 = vmax.f32 %v3498_v19, %v3167_v22  ;;  %v2626_v26 = vmul.f32 %v4710_v53, %v2146_v49  ;;  %v2628_v33 = vmul.f32 %v4712_v54, %v2339_v47  ;;  %v2154_v32 = vpop.f32.mrf.mxu0  ;;  %v2347_v25 = vpop.f32.mrf.mxu1 }
 0x367   : > { %v3172_v28 = vmax.f32 %v2916_v39, 0.0  ;;  %v3174_v24 = vmax.f32 %v2918_v59, 0.0  ;;  %v2917_v34 = vadd.f32 %v4728_v9, %v2619_v4  ;;  %v2919_v55 = vadd.f32 %v4730_v12, %v2621_v60 }
 0x368   : > { %v2924_v29 = vadd.f32 %v4714_v56, %v2626_v26  ;;  %v2926_v20 = vadd.f32 %v4716_v58, %v2628_v33  ;;  %v2627_v31 = vmul.f32 %v4718_v46, %v2148_v13  ;;  %v2629_v35 = vmul.f32 %v4720_v61, %v2341_v14  ;;  %v2156_v36 = vpop.f32.mrf.mxu0  ;;  %v2349_v38 = vpop.f32.mrf.mxu1 }
 0x369   : > { %v3389_v51 = vmax.f32 %v3388_v18, %v3172_v28  ;;  %v3463_v5 = vmax.f32 %v3462_v21, %v3174_v24  ;;  %v3173_v40 = vmax.f32 %v2917_v34, 0.0  ;;  %v3175_v41 = vmax.f32 %v2919_v55, 0.0 }
 0x36a   : > { %v3180_v44 = vmax.f32 %v2924_v29, 0.0  ;;  %v3182_v27 = vmax.f32 %v2926_v20, 0.0  ;;  %v2925_v42 = vadd.f32 %v4728_v9, %v2627_v31  ;;  %v2927_v43 = vadd.f32 %v4730_v12, %v2629_v35  ;;  %v2158_v45 = vpop.f32.mrf.mxu0  ;;  %v2351_v49 = vpop.f32.mrf.mxu1 }
 0x36b   : > { %v3426_v47 = vmax.f32 %v3425_v8, %v3173_v40  ;;  %v3500_v48 = vmax.f32 %v3499_v3, %v3175_v41  ;;  %v2634_v63 = vmul.f32 %v4710_v53, %v2152_v52  ;;  %v2636_v0 = vmul.f32 %v4712_v54, %v2345_v11 }
 0x36c   : > { %v3390_v2 = vmax.f32 %v3389_v51, %v3180_v44  ;;  %v3464_v37 = vmax.f32 %v3463_v5, %v3182_v27  ;;  %v3181_v62 = vmax.f32 %v2925_v42, 0.0  ;;  %v3183_v6 = vmax.f32 %v2927_v43, 0.0  ;;  %v2162_v7 = vpop.f32.mrf.mxu0  ;;  %v2355_v13 = vpop.f32.mrf.mxu1 }
 0x36d   : > { %v2932_v14 = vadd.f32 %v4714_v56, %v2634_v63  ;;  %v2934_v15 = vadd.f32 %v4716_v58, %v2636_v0  ;;  %v2635_v19 = vmul.f32 %v4718_v46, %v2154_v32  ;;  %v2637_v16 = vmul.f32 %v4720_v61, %v2347_v25 }
 0x36e   : > { %v3427_v17 = vmax.f32 %v3426_v47, %v3181_v62  ;;  %v3501_v18 = vmax.f32 %v3500_v48, %v3183_v6  ;;  %v2642_v21 = vmul.f32 %v4710_v53, %v2156_v36  ;;  %v2644_v23 = vmul.f32 %v4712_v54, %v2349_v38  ;;  %v2164_v22 = vpop.f32.mrf.mxu0  ;;  %v2357_v52 = vpop.f32.mrf.mxu1 }
 0x36f   : > { %v3188_v11 = vmax.f32 %v2932_v14, 0.0  ;;  %v3190_v39 = vmax.f32 %v2934_v15, 0.0  ;;  %v2933_v59 = vadd.f32 %v4728_v9, %v2635_v19  ;;  %v2935_v4 = vadd.f32 %v4730_v12, %v2637_v16 }
 0x370   : > { %v2940_v60 = vadd.f32 %v4714_v56, %v2642_v21  ;;  %v2942_v8 = vadd.f32 %v4716_v58, %v2644_v23  ;;  %v2643_v3 = vmul.f32 %v4718_v46, %v2158_v45  ;;  %v2645_v26 = vmul.f32 %v4720_v61, %v2351_v49  ;;  %v2166_v24 = vpop.f32.mrf.mxu0  ;;  %v2359_v34 = vpop.f32.mrf.mxu1 }
 0x371   : > { %v3391_v33 = vmax.f32 %v3390_v2, %v3188_v11  ;;  %v3465_v32 = vmax.f32 %v3464_v37, %v3190_v39  ;;  %v3189_v25 = vmax.f32 %v2933_v59, 0.0  ;;  %v3191_v28 = vmax.f32 %v2935_v4, 0.0 }
 0x372   : > { %v3196_v55 = vmax.f32 %v2940_v60, 0.0  ;;  %v3198_v29 = vmax.f32 %v2942_v8, 0.0  ;;  %v2941_v20 = vadd.f32 %v4728_v9, %v2643_v3  ;;  %v2943_v31 = vadd.f32 %v4730_v12, %v2645_v26  ;;  %v2168_v49 = vpop.f32.mrf.mxu0  ;;  %v2361_v47 = vpop.f32.mrf.mxu1 }
 0x373   : > { %v3428_v35 = vmax.f32 %v3427_v17, %v3189_v25  ;;  %v3502_v36 = vmax.f32 %v3501_v18, %v3191_v28  ;;  %v2650_v38 = vmul.f32 %v4710_v53, %v2162_v7  ;;  %v2652_v51 = vmul.f32 %v4712_v54, %v2355_v13 }
 0x374   : > { %v3392_v5 = vmax.f32 %v3391_v33, %v3196_v55  ;;  %v3466_v40 = vmax.f32 %v3465_v32, %v3198_v29  ;;  %v3197_v41 = vmax.f32 %v2941_v20, 0.0  ;;  %v3199_v44 = vmax.f32 %v2943_v31, 0.0 }
 0x375   : > { %v2948_v27 = vadd.f32 %v4714_v56, %v2650_v38  ;;  %v2950_v42 = vadd.f32 %v4716_v58, %v2652_v51  ;;  %v2651_v43 = vmul.f32 %v4718_v46, %v2164_v22  ;;  %v2653_v45 = vmul.f32 %v4720_v61, %v2357_v52 }
 0x376   : > { %v3429_v48 = vmax.f32 %v3428_v35, %v3197_v41  ;;  %v3503_v63 = vmax.f32 %v3502_v36, %v3199_v44  ;;  %v2658_v0 = vmul.f32 %v4710_v53, %v2166_v24  ;;  %v2660_v2 = vmul.f32 %v4712_v54, %v2359_v34 }
 0x377   : > { %v3204_v37 = vmax.f32 %v2948_v27, 0.0  ;;  %v3206_v62 = vmax.f32 %v2950_v42, 0.0  ;;  %v2949_v6 = vadd.f32 %v4728_v9, %v2651_v43  ;;  %v2951_v7 = vadd.f32 %v4730_v12, %v2653_v45 }
 0x378   : > { %v2956_v13 = vadd.f32 %v4714_v56, %v2658_v0  ;;  %v2958_v14 = vadd.f32 %v4716_v58, %v2660_v2  ;;  %v2659_v15 = vmul.f32 %v4718_v46, %v2168_v49  ;;  %v2661_v19 = vmul.f32 %v4720_v61, %v2361_v47 }
 0x379   : > { %v3393_v16 = vmax.f32 %v3392_v5, %v3204_v37  ;;  %v3467_v17 = vmax.f32 %v3466_v40, %v3206_v62  ;;  %v3205_v18 = vmax.f32 %v2949_v6, 0.0  ;;  %v3207_v53 = vmax.f32 %v2951_v7, 0.0 }
 0x37a   : > { %v3212_v21 = vmax.f32 %v2956_v13, 0.0  ;;  %v3214_v54 = vmax.f32 %v2958_v14, 0.0  ;;  %v2957_v23 = vadd.f32 %v4728_v9, %v2659_v15  ;;  %v2959_v22 = vadd.f32 %v4730_v12, %v2661_v19 }
 0x37b   : > { %v3430_v52 = vmax.f32 %v3429_v48, %v3205_v18  ;;  %v3504_v11 = vmax.f32 %v3503_v63, %v3207_v53 }
 0x37c   : > { %v3394_v39 = vmax.f32 %v3393_v16, %v3212_v21  ;;  %v3468_v56 = vmax.f32 %v3467_v17, %v3214_v54  ;;  %v3213_v59 = vmax.f32 %v2957_v23, 0.0  ;;  %v3215_v58 = vmax.f32 %v2959_v22, 0.0 }
 0x37e   : > { %v3395_v4 = vrot.slane %v3394_v39, 4  ;;  %v3469_v46 = vrot.slane %v3468_v56, 4  ;;  %v3431_v60 = vmax.f32 %v3430_v52, %v3213_v59  ;;  %v3505_v61 = vmax.f32 %v3504_v11, %v3215_v58 }
 0x380   : > { %v3396_v8 = vmax.f32 %v3394_v39, %v3395_v4  ;;  %v3470_v3 = vmax.f32 %v3468_v56, %v3469_v46  ;;  %v3432_v26 = vrot.slane %v3431_v60, 4  ;;  %v3506_v33 = vrot.slane %v3505_v61, 4 }
 0x382   : > { %v3397_v32 = vrot.slane %v3396_v8, 2  ;;  %v3471_v25 = vrot.slane %v3470_v3, 2  ;;  %v3433_v28 = vmax.f32 %v3431_v60, %v3432_v26  ;;  %v3507_v9 = vmax.f32 %v3505_v61, %v3506_v33 }
 0x384   : > { %v3398_v24 = vmax.f32 %v3396_v8, %v3397_v32  ;;  %v3472_v12 = vmax.f32 %v3470_v3, %v3471_v25  ;;  %v3434_v34 = vrot.slane %v3433_v28, 2  ;;  %v3508_v55 = vrot.slane %v3507_v9, 2 }
 0x386   : > { %v3399_v29 = vrot.slane %v3398_v24, 1  ;;  %v3473_v20 = vrot.slane %v3472_v12, 1  ;;  %v3435_v31 = vmax.f32 %v3433_v28, %v3434_v34  ;;  %v3509_v35 = vmax.f32 %v3507_v9, %v3508_v55  ;;  %3515 = sbr.rel (%p3777_p7) target bundleno = 909 (0x38d), region = 64 }
 0x388   : > { %v3400_v36 = vmax.f32 %v3398_v24, %v3399_v29  ;;  %v3474_v38 = vmax.f32 %v3472_v12, %v3473_v20  ;;  %v3436_v51 = vrot.slane %v3435_v31, 1  ;;  %v3510_v5 = vrot.slane %v3509_v35, 1 }
 0x38a   : > { %v3437_v40 = vmax.f32 %v3435_v31, %v3436_v51  ;;  %v3511_v41 = vmax.f32 %v3509_v35, %v3510_v5 }
 0x38b   : > { %v3996_v44 = vmov -inf  }
 0x38c   : > { %3516 = vst [vmem:[%s4092_s28] sm:$0xff] %v3996_v44 }
 0x38d PF: > { %v3997_v27 = vmov 1966171168   ;;  %v3526_v43 = vcombine.low %v5020_v10, %v5024_v50  ;;  %v3527_v45 = vcombine.low %v5022_v30, %v5026_v1  ;;  %v3528_v49 = vcombine.low %v3400_v36, %v3437_v40 }
 0x38e   : > { %v3531_v42 = vunpack.c.l.s4 %v3997_v27  ;;  %v3529_v47 = vcombine.low %v3474_v38, %v3511_v41 }
 0x390   : > { %v3532_v48 = vunpack.c.0.s8 %v3531_v42 }
 0x392   : > { %v3535_v63 = vsub.s32 %v3532_v48, %v4664_v57 }
 0x393   : > { %v3517_v15 = vld [vmem:[%s4092_s28] sm:$0xff] }
 0x394   : > { %v3536_v0 = vrot.slane %v3526_v43, %v3535_v63  ;;  %v3543_v2 = vrot.slane %v3527_v45, %v3535_v63  ;;  %v3550_v37 = vrot.slane %v3528_v49, %v3535_v63  ;;  %v3557_v62 = vrot.slane %v3529_v47, %v3535_v63 }
 0x396   : > { %v3558_v6 = vcombine.low %v3536_v0, %v3543_v2  ;;  %v3559_v7 = vcombine.low %v3550_v37, %v3557_v62 }
 0x398   : > { %v3566_v13 = vrot.slane %v3558_v6, %v3535_v63  ;;  %v3573_v14 = vrot.slane %v3559_v7, %v3535_v63 }
 0x39a   : > { %v3574_v19 = vcombine.low %v3566_v13, %v3573_v14 }
 0x39c   : > { %v3576_v10 = vmax.f32 %v3517_v15, %v3574_v19 }
 0x39e   : > { %3577 = vst [vmem:[%s4092_s28] sm:$0xff] %v3576_v10 }
 0x39f PF: > { %s20_s17 = sadd.s32 1, %s3993_s17   ;;  %s5301_s13 = smov %s3985_s15 }
 0x3a0   : > { %p17_p8 = scmp.ge.s32.totalorder %s20_s17, 10   ;;  %s5302_s14 = smov %s3989_s16 }
 0x3a1   : > { %s5303_s15 = smov %s5306_s18  ;;  %s5304_s16 = smov %s5310_s19 }
 0x3a2   :  { %19 = sbr.rel (!%p17_p8) target bundleno = 3 (0x3), region = 94 }

// kernel: pn_class_forward.6
= control target key start
LH: loop header
LB: loop body
LE: loop exit
PB: predicated region body
PF: predicated region fallthrough
CT: control target
= control target key end

     0   :  { %s3352_s21 = smov 0   ;;  %s3354_s22 = smov 0   ;;  %s4157_s0 = inlined_call_operand.vmem [shape: bf16[2,1024,8], index: 0, kind: input, shape index: {}]   ;;  %s4158_s1 = inlined_call_operand.vmem [shape: bf16[2,8,64], index: 1, kind: input, shape index: {}]   ;;  %s4159_s2 = inlined_call_operand.vmem [shape: f32[1,64], index: 2, kind: input, shape index: {}]   ;;  %s4160_s3 = inlined_call_operand.vmem [shape: f32[1,64], index: 3, kind: input, shape index: {}]   ;;  %s4161_s4 = inlined_call_operand.vmem [shape: bf16[64,64], index: 4, kind: input, shape index: {}]   ;;  %s4162_s5 = inlined_call_operand.vmem [shape: f32[1,64], index: 5, kind: input, shape index: {}]   ;;  %s4163_s6 = inlined_call_operand.vmem [shape: f32[1,64], index: 6, kind: input, shape index: {}]   ;;  %s4164_s7 = inlined_call_operand.vmem [shape: bf16[64,64], index: 7, kind: input, shape index: {}]   ;;  %s4165_s8 = inlined_call_operand.vmem [shape: f32[1,64], index: 8, kind: input, shape index: {}]   ;;  %s4166_s9 = inlined_call_operand.vmem [shape: f32[1,64], index: 9, kind: input, shape index: {}]   ;;  %s4167_s10 = inlined_call_operand.vmem [shape: bf16[64,128], index: 10, kind: input, shape index: {}]   ;;  %s4168_s11 = inlined_call_operand.vmem [shape: f32[1,128], index: 11, kind: input, shape index: {}]   ;;  %s4169_s12 = inlined_call_operand.vmem [shape: f32[1,128], index: 12, kind: input, shape index: {}]   ;;  %s4170_s13 = inlined_call_operand.vmem [shape: bf16[128,256], index: 13, kind: input, shape index: {}]   ;;  %s4171_s14 = inlined_call_operand.vmem [shape: f32[1,256], index: 14, kind: input, shape index: {}]   ;;  %s4172_s15 = inlined_call_operand.vmem [shape: f32[1,256], index: 15, kind: input, shape index: {}]   ;;  %s4173_s16 = inlined_call_operand.vmem [shape: f32[2,1,256], index: 16, kind: output, shape index: {}]  }
   0x1   :  { %4178 = sst [smem:[#allocation8_spill]] %s4157_s0  ;;  %s3356_s23 = smov 0  }
   0x2   :  { %4179 = sst [smem:[#allocation9_spill]] %s4172_s15  ;;  %s3358_s24 = smov 0  }
   0x3   :  { %s3360_s25 = smov 0  }
   0x4 LB: > { %4180 = sst [smem:[#allocation2_spill]] %s3246_s21  ;;  %s35_s26 = sadd.s32 1, %s3254_s23  ;;  %s3262_s25 = sphi %s3360_s25, %s26_s25   ;;  %s3258_s24 = sphi %s3358_s24, %s4193_s24   ;;  %s3254_s23 = sphi %s3356_s23, %s4192_s23   ;;  %s3250_s22 = sphi %s3354_s22, %s4191_s22   ;;  %s3246_s21 = sphi %s3352_s21, %s4190_s21  }
   0x5   : > { %4181 = sst [smem:[#allocation3_spill]] %s3254_s23  ;;  %s38_s27 = sadd.s32 1, %s3258_s24 }
   0x6   : > { %4182 = sst [smem:[#allocation4_spill]] %s3258_s24  ;;  %p36_p0 = scmp.ge.s32.totalorder %s35_s26, 4 }
   0x7   : > { %4183 = sst [smem:[#allocation5_spill]] %s3262_s25  ;;  %p2756_p1 = scmp.ge.s32.totalorder %s3262_s25, 1 }
   0x8   : > { %p490_p2 = scmp.lt.s32.totalorder %s3262_s25, 9  ;;  %s4195_s26 = smov (%p36_p0, %s35_s26), 0 }
   0x9   : > { %4184 = sst [smem:[#allocation6_spill]] %s4195_s26  ;;  %s4197_s27 = smov (!%p36_p0, %s38_s27), %s3258_s24 }
   0xa   : > { %p491_p3 = pnand %p2756_p1, %p490_p2  ;;  %p40_p4 = scmp.ge.s32.totalorder %s4197_s27, 2 }
   0xb   : > { %s2757_s28 = sshll.u32 (!%p491_p3), %s3246_s21, 5  ;;  %p548_p5 = scmp.lt.s32.totalorder (!%p491_p3), %s3250_s22, 1 }
   0xc   : > { %s4199_s27 = smov (%p40_p4, %s4197_s27), 0  ;;  %494 = sbr.rel (%p491_p3) target bundleno = 1170 (0x492), region = 84 }
   0xd   : > { %4185 = sst [smem:[#allocation7_spill]] %s4199_s27  ;;  %p550_p6 = scmp.lt.s32.totalorder (!%p491_p3), %s2757_s28, 127 }
   0xe   : > { %s4186_s23 = sld [smem:[#allocation8_spill]] (!%p491_p3) }
   0xf   : > { %s4187_s21 = sld [smem:[#allocation9_spill]] (!%p491_p3) }
  0x11   : > { %vm728_vm0 = vcmask 1043456   ;;  %vm679_vm1 = vcmask 64512   ;;  %s4201_s22 = smov (!%p548_p5, %s3250_s22), 1  ;;  %s4203_s28 = smov (!%p550_p6, %s2757_s28), 127  ;;  %v3188_v18 = vld [vmem:[%s4161_s4 + $0x18] sm:$0xff]   ;;  %v3189_v19 = vld [vmem:[%s4161_s4 + $0x10] sm:$0xff]  }
  0x12   : > { %s2758_s29 = sshll.u32 %s4201_s22, 7  ;;  %s2760_s30 = sshll.u32 %s4201_s22, 2  ;;  %2992 = vmatprep.subr.bf16.mxu1 %v3188_v18  ;;  %v3190_v20 = vld [vmem:[%s4161_s4 + $0x8] sm:$0xff]   ;;  %v3191_v21 = vld [vmem:[%s4161_s4] sm:$0xff]   ;;  %v3192_v22 = vld [vmem:[%s4164_s7 + $0x18] sm:$0xff]   ;;  %vm1051_vm2 = vcmask 523264  }
  0x13   : > { %s553_s0 = sadd.s32 %s2758_s29, %s4203_s28  ;;  %s560_s19 = scalar_lea.vmem %s4158_s1, %s2760_s30  ;;  %2993 = vmatpush3.bf16.msra.mxu1 %v3188_v18  ;;  %v3193_v23 = vld [vmem:[%s4164_s7 + $0x10] sm:$0xff]   ;;  %v3194_v24 = vld [vmem:[%s4164_s7 + $0x8] sm:$0xff]   ;;  %v3195_v25 = vld [vmem:[%s4164_s7] sm:$0xff]  }
  0x14   : > { %s2759_s20 = sshll.u32 %s553_s0, 2  ;;  %s2761_s26 = sshll.u32 %s4201_s22, 1  ;;  %v598_v0 = vld [vmem:[%s560_s19] sm:$0xf]  ;;  %2994 = vmatprep.subr.bf16.mxu1 %v3189_v19 }
  0x15   : > { %s3391_s25 = scalar_lea.vmem %s4186_s23, %s2759_s20  ;;  %s3396_s28 = scalar_lea.vmem %s4173_s16, %s2761_s26  ;;  %3128 = vmatprep.subr.msk.bf16.mxu0 %vm728_vm0, %v598_v0  ;;  %v730_v1 = vsel %vm728_vm0, %v598_v0, 0  ;;  %v3457_v27 = vld [vmem:[%s4159_s2] ss:$0 sm:$0xff] }
  0x16   : > { %2959 = vmatpush3.bf16.msra.mxu0 %v730_v1  ;;  %v3172_v2 = vld [vmem:[%s3391_s25] sm:$0xff]   ;;  %v3173_v3 = vld [vmem:[%s3391_s25 + $0x8] sm:$0xff]   ;;  %v3174_v4 = vld [vmem:[%s3391_s25 + $0x10] sm:$0xff]   ;;  %s4188_s22 = sld [smem:[#allocation2_spill]] }
  0x17   : > { %2960 = vmatprep.mubr.msk.bf16.mxu0 %vm679_vm1, %v3172_v2  ;;  %v3175_v5 = vld [vmem:[%s3391_s25 + $0x18] sm:$0xff]   ;;  %v3176_v6 = vld [vmem:[%s3391_s25 + $0x20] sm:$0xff]   ;;  %v3177_v7 = vld [vmem:[%s3391_s25 + $0x28] sm:$0xff]   ;;  %2995 = vmatpush3.bf16.msra.mxu1 %v3189_v19 }
  0x18   : > { %v3178_v8 = vld [vmem:[%s3391_s25 + $0x30] sm:$0xff]   ;;  %v3179_v9 = vld [vmem:[%s3391_s25 + $0x38] sm:$0xff]   ;;  %v3180_v10 = vld [vmem:[%s3391_s25 + $0x40] sm:$0xff]   ;;  %2996 = vmatprep.subr.bf16.mxu1 %v3190_v20  ;;  %3032 = vmatprep.subr.bf16.mxu0 %v3192_v22 }
  0x19   : > { %2961 = vmatmul.mubr.msk.bf16.vlgmr.msra.gmra.mxu0 %vm679_vm1, %v3173_v3  ;;  %v3181_v11 = vld [vmem:[%s3391_s25 + $0x48] sm:$0xff]   ;;  %v3182_v12 = vld [vmem:[%s3391_s25 + $0x50] sm:$0xff]   ;;  %v3183_v13 = vld [vmem:[%s3391_s25 + $0x58] sm:$0xff]  }
  0x1a   : > { %2964 = vmatprep.mubr.msk.bf16.mxu0 %vm679_vm1, %v3174_v4  ;;  %v3184_v14 = vld [vmem:[%s3391_s25 + $0x60] sm:$0xff]   ;;  %v3185_v15 = vld [vmem:[%s3391_s25 + $0x68] sm:$0xff]   ;;  %v3186_v16 = vld [vmem:[%s3391_s25 + $0x70] sm:$0xff]   ;;  %3033 = vmatpush3.bf16.msra.mxu0 %v3192_v22 }
  0x1b   : > { %v3187_v17 = vld [vmem:[%s3391_s25 + $0x78] sm:$0xff]   ;;  %2997 = vmatpush3.bf16.msra.mxu1 %v3190_v20  ;;  %3034 = vmatprep.subr.bf16.mxu0 %v3193_v23  ;;  %v3464_v32 = vld [vmem:[%s4160_s3] ss:$0 sm:$0xff] }
  0x1c   : > { %2998 = vmatprep.subr.bf16.mxu1 %v3191_v21  ;;  %p2878_p7 = scmp.ne.s32.totalorder %s4188_s22, 0 }
  0x1e   : > { %3035 = vmatpush3.bf16.msra.mxu0 %v3193_v23 }
  0x1f   : > { %2999 = vmatpush3.bf16.msra.mxu1 %v3191_v21  ;;  %3036 = vmatprep.subr.bf16.mxu0 %v3194_v24 }
  0x21   : > { %2965 = vmatmul.mubr.msk.bf16.gmra.mxu0 %vm679_vm1, %v3175_v5 }
  0x22   : > { %2968 = vmatprep.mubr.msk.bf16.mxu0 %vm679_vm1, %v3176_v6  ;;  %3037 = vmatpush3.bf16.msra.mxu0 %v3194_v24 }
  0x23   : > { %3038 = vmatprep.subr.bf16.mxu0 %v3195_v25 }
  0x26   : > { %3039 = vmatpush3.bf16.msra.mxu0 %v3195_v25 }
  0x29   : > { %2969 = vmatmul.mubr.msk.bf16.gmra.mxu0 %vm679_vm1, %v3177_v7 }
  0x2a   : > { %2972 = vmatprep.mubr.msk.bf16.mxu0 %vm679_vm1, %v3178_v8 }
  0x31   : > { %2973 = vmatmul.mubr.msk.bf16.gmra.mxu0 %vm679_vm1, %v3179_v9 }
  0x32   : > { %2976 = vmatprep.mubr.msk.bf16.mxu0 %vm679_vm1, %v3180_v10 }
  0x39   : > { %2977 = vmatmul.mubr.msk.bf16.gmra.mxu0 %vm679_vm1, %v3181_v11 }
  0x3a   : > { %2980 = vmatprep.mubr.msk.bf16.mxu0 %vm679_vm1, %v3182_v12 }
  0x41   : > { %2981 = vmatmul.mubr.msk.bf16.gmra.mxu0 %vm679_vm1, %v3183_v13 }
  0x42   : > { %2984 = vmatprep.mubr.msk.bf16.mxu0 %vm679_vm1, %v3184_v14 }
  0x49   : > { %2985 = vmatmul.mubr.msk.bf16.gmra.mxu0 %vm679_vm1, %v3185_v15 }
  0x4a   : > { %2988 = vmatprep.mubr.msk.bf16.mxu0 %vm679_vm1, %v3186_v16 }
  0x51   : > { %2989 = vmatmul.mubr.msk.bf16.gmra.mxu0 %vm679_vm1, %v3187_v17 }
  0xd9   : > { %v2962_v26 = vpop.f32.mrf.mxu0 }
  0xda   : > { %v902_v30 = vmul.f32 %v2962_v26, %v3457_v27 }
  0xdb   : > { %v766_v28 = vpop.f32.mrf.mxu0 }
  0xdc   : > { %v900_v29 = vmul.f32 %v3457_v27, %v766_v28  ;;  %v941_v38 = vadd.f32 %v3464_v32, %v902_v30 }
  0xdd   : > { %v2963_v31 = vpop.f32.mrf.mxu0 }
  0xde   : > { %v903_v33 = vmul.f32 %v2963_v31, %v3457_v27  ;;  %v939_v35 = vadd.f32 %v3464_v32, %v900_v29  ;;  %v973_v46 = vmax.f32 %v941_v38, 0.0 }
  0xdf   : > { %v769_v34 = vpop.f32.mrf.mxu0 }
  0xe0   : > { %v942_v36 = vadd.f32 %v3464_v32, %v903_v33  ;;  %v901_v37 = vmul.f32 %v3457_v27, %v769_v34  ;;  %v971_v43 = vmax.f32 %v939_v35, 0.0 }
  0xe1   : > { %v2966_v39 = vpop.f32.mrf.mxu0 }
  0xe2   : > { %v940_v40 = vadd.f32 %v3464_v32, %v901_v37  ;;  %v974_v41 = vmax.f32 %v942_v36, 0.0  ;;  %v906_v47 = vmul.f32 %v2966_v39, %v3457_v27 }
  0xe3   : > { %v782_v42 = vpop.f32.mrf.mxu0 }
  0xe4   : > { %v972_v44 = vmax.f32 %v940_v40, 0.0  ;;  %v904_v45 = vmul.f32 %v3457_v27, %v782_v42  ;;  %v1004_v51 = vpack.c.bf16 %v974_v41, %v973_v46  ;;  %v945_v56 = vadd.f32 %v3464_v32, %v906_v47 }
  0xe5   : > { %v2967_v48 = vpop.f32.mrf.mxu0 }
  0xe6   : > { %v907_v49 = vmul.f32 %v2967_v48, %v3457_v27  ;;  %v1003_v50 = vpack.c.bf16 %v972_v44, %v971_v43  ;;  %v943_v53 = vadd.f32 %v3464_v32, %v904_v45  ;;  %v977_v0 = vmax.f32 %v945_v56, 0.0 }
  0xe7   : > { %v785_v52 = vpop.f32.mrf.mxu0 }
  0xe8   : > { %v946_v54 = vadd.f32 %v3464_v32, %v907_v49  ;;  %v905_v55 = vmul.f32 %v3457_v27, %v785_v52  ;;  %3000 = vmatprep.mubr.msk.bf16.mxu1 %vm1051_vm2, %v1003_v50  ;;  %v975_v61 = vmax.f32 %v943_v53, 0.0 }
  0xe9   : > { %v2970_v57 = vpop.f32.mrf.mxu0  ;;  %3001 = vmatmul.mubr.msk.bf16.vlgmr.msra.gmra.mxu1 %vm1051_vm2, %v1004_v51 }
  0xea   : > { %v944_v58 = vadd.f32 %v3464_v32, %v905_v55  ;;  %v978_v59 = vmax.f32 %v946_v54, 0.0  ;;  %v910_v1 = vmul.f32 %v2970_v57, %v3457_v27 }
  0xeb   : > { %v798_v60 = vpop.f32.mrf.mxu0 }
  0xec   : > { %v976_v62 = vmax.f32 %v944_v58, 0.0  ;;  %v908_v63 = vmul.f32 %v3457_v27, %v798_v60  ;;  %v1006_v5 = vpack.c.bf16 %v978_v59, %v977_v0  ;;  %v949_v10 = vadd.f32 %v3464_v32, %v910_v1 }
  0xed   : > { %v2971_v2 = vpop.f32.mrf.mxu0 }
  0xee   : > { %v1005_v3 = vpack.c.bf16 %v976_v62, %v975_v61  ;;  %v911_v4 = vmul.f32 %v2971_v2, %v3457_v27  ;;  %v947_v7 = vadd.f32 %v3464_v32, %v908_v63  ;;  %v981_v18 = vmax.f32 %v949_v10, 0.0 }
  0xef   : > { %v801_v6 = vpop.f32.mrf.mxu0 }
  0xf0   : > { %v950_v8 = vadd.f32 %v3464_v32, %v911_v4  ;;  %v909_v9 = vmul.f32 %v3457_v27, %v801_v6  ;;  %3004 = vmatprep.mubr.msk.bf16.mxu1 %vm1051_vm2, %v1005_v3  ;;  %v979_v15 = vmax.f32 %v947_v7, 0.0 }
  0xf1   : > { %v2974_v11 = vpop.f32.mrf.mxu0  ;;  %3005 = vmatmul.mubr.msk.bf16.gmra.mxu1 %vm1051_vm2, %v1006_v5 }
  0xf2   : > { %v948_v12 = vadd.f32 %v3464_v32, %v909_v9  ;;  %v982_v13 = vmax.f32 %v950_v8, 0.0  ;;  %v914_v19 = vmul.f32 %v2974_v11, %v3457_v27 }
  0xf3   : > { %v814_v14 = vpop.f32.mrf.mxu0 }
  0xf4   : > { %v980_v16 = vmax.f32 %v948_v12, 0.0  ;;  %v912_v17 = vmul.f32 %v3457_v27, %v814_v14  ;;  %v1008_v23 = vpack.c.bf16 %v982_v13, %v981_v18  ;;  %v953_v29 = vadd.f32 %v3464_v32, %v914_v19 }
  0xf5   : > { %v2975_v20 = vpop.f32.mrf.mxu0 }
  0xf6   : > { %v1007_v21 = vpack.c.bf16 %v980_v16, %v979_v15  ;;  %v915_v22 = vmul.f32 %v2975_v20, %v3457_v27  ;;  %v951_v25 = vadd.f32 %v3464_v32, %v912_v17  ;;  %v985_v38 = vmax.f32 %v953_v29, 0.0 }
  0xf7   : > { %v817_v24 = vpop.f32.mrf.mxu0 }
  0xf8   : > { %v954_v26 = vadd.f32 %v3464_v32, %v915_v22  ;;  %v913_v28 = vmul.f32 %v3457_v27, %v817_v24  ;;  %3008 = vmatprep.mubr.msk.bf16.mxu1 %vm1051_vm2, %v1007_v21  ;;  %v983_v35 = vmax.f32 %v951_v25, 0.0 }
  0xf9   : > { %v2978_v30 = vpop.f32.mrf.mxu0  ;;  %3009 = vmatmul.mubr.msk.bf16.gmra.mxu1 %vm1051_vm2, %v1008_v23 }
  0xfa   : > { %v952_v31 = vadd.f32 %v3464_v32, %v913_v28  ;;  %v986_v33 = vmax.f32 %v954_v26, 0.0  ;;  %v918_v39 = vmul.f32 %v2978_v30, %v3457_v27 }
  0xfb   : > { %v830_v34 = vpop.f32.mrf.mxu0 }
  0xfc   : > { %v984_v36 = vmax.f32 %v952_v31, 0.0  ;;  %v916_v37 = vmul.f32 %v3457_v27, %v830_v34  ;;  %v1010_v43 = vpack.c.bf16 %v986_v33, %v985_v38  ;;  %v957_v48 = vadd.f32 %v3464_v32, %v918_v39 }
  0xfd   : > { %v2979_v40 = vpop.f32.mrf.mxu0 }
  0xfe   : > { %v1009_v41 = vpack.c.bf16 %v984_v36, %v983_v35  ;;  %v919_v42 = vmul.f32 %v2979_v40, %v3457_v27  ;;  %v955_v45 = vadd.f32 %v3464_v32, %v916_v37  ;;  %v989_v56 = vmax.f32 %v957_v48, 0.0  ;;  %v3197_v48 = vld [vmem:[%s4167_s10 + $0x10] sm:$0xff]  }
  0xff   : > { %v833_v44 = vpop.f32.mrf.mxu0 }
 0x100   : > { %v958_v46 = vadd.f32 %v3464_v32, %v919_v42  ;;  %v917_v47 = vmul.f32 %v3457_v27, %v833_v44  ;;  %3012 = vmatprep.mubr.msk.bf16.mxu1 %vm1051_vm2, %v1009_v41  ;;  %v987_v53 = vmax.f32 %v955_v45, 0.0 }
 0x101   : > { %v2982_v49 = vpop.f32.mrf.mxu0  ;;  %3013 = vmatmul.mubr.msk.bf16.gmra.mxu1 %vm1051_vm2, %v1010_v43 }
 0x102   : > { %v956_v50 = vadd.f32 %v3464_v32, %v917_v47  ;;  %v990_v51 = vmax.f32 %v958_v46, 0.0  ;;  %v922_v57 = vmul.f32 %v2982_v49, %v3457_v27  ;;  %v3199_v49 = vld [vmem:[%s4167_s10] sm:$0xff]  }
 0x103   : > { %v846_v52 = vpop.f32.mrf.mxu0 }
 0x104   : > { %v988_v54 = vmax.f32 %v956_v50, 0.0  ;;  %v920_v55 = vmul.f32 %v3457_v27, %v846_v52  ;;  %v1012_v61 = vpack.c.bf16 %v990_v51, %v989_v56  ;;  %v961_v2 = vadd.f32 %v3464_v32, %v922_v57  ;;  %v3559_v51 = vld [vmem:[%s4162_s5] ss:$0 sm:$0xff] }
 0x105   : > { %v2983_v58 = vpop.f32.mrf.mxu0  ;;  %v3566_v56 = vld [vmem:[%s4163_s6] ss:$0 sm:$0xff] }
 0x106   : > { %v1011_v59 = vpack.c.bf16 %v988_v54, %v987_v53  ;;  %v923_v60 = vmul.f32 %v2983_v58, %v3457_v27  ;;  %v959_v63 = vadd.f32 %v3464_v32, %v920_v55  ;;  %v993_v11 = vmax.f32 %v961_v2, 0.0 }
 0x107   : > { %v849_v62 = vpop.f32.mrf.mxu0 }
 0x108   : > { %v962_v0 = vadd.f32 %v3464_v32, %v923_v60  ;;  %v921_v1 = vmul.f32 %v3457_v27, %v849_v62  ;;  %3016 = vmatprep.mubr.msk.bf16.mxu1 %vm1051_vm2, %v1011_v59  ;;  %v991_v8 = vmax.f32 %v959_v63, 0.0 }
 0x109   : > { %v2986_v3 = vpop.f32.mrf.mxu0  ;;  %3017 = vmatmul.mubr.msk.bf16.gmra.mxu1 %vm1051_vm2, %v1012_v61 }
 0x10a   : > { %v960_v4 = vadd.f32 %v3464_v32, %v921_v1  ;;  %v926_v5 = vmul.f32 %v2986_v3, %v3457_v27  ;;  %v994_v6 = vmax.f32 %v962_v0, 0.0 }
 0x10b   : > { %v862_v7 = vpop.f32.mrf.mxu0 }
 0x10c   : > { %v992_v9 = vmax.f32 %v960_v4, 0.0  ;;  %v924_v10 = vmul.f32 %v3457_v27, %v862_v7  ;;  %v965_v12 = vadd.f32 %v3464_v32, %v926_v5  ;;  %v1014_v17 = vpack.c.bf16 %v994_v6, %v993_v11 }
 0x10d   : > { %v2987_v13 = vpop.f32.mrf.mxu0 }
 0x10e   : > { %v1013_v14 = vpack.c.bf16 %v992_v9, %v991_v8  ;;  %v963_v15 = vadd.f32 %v3464_v32, %v924_v10  ;;  %v927_v16 = vmul.f32 %v2987_v13, %v3457_v27  ;;  %v997_v21 = vmax.f32 %v965_v12, 0.0 }
 0x10f   : > { %v865_v18 = vpop.f32.mrf.mxu0 }
 0x110   : > { %v966_v19 = vadd.f32 %v3464_v32, %v927_v16  ;;  %v925_v20 = vmul.f32 %v3457_v27, %v865_v18  ;;  %3020 = vmatprep.mubr.msk.bf16.mxu1 %vm1051_vm2, %v1013_v14  ;;  %v995_v23 = vmax.f32 %v963_v15, 0.0 }
 0x111   : > { %v2990_v22 = vpop.f32.mrf.mxu0  ;;  %3021 = vmatmul.mubr.msk.bf16.gmra.mxu1 %vm1051_vm2, %v1014_v17 }
 0x112   : > { %v998_v24 = vmax.f32 %v966_v19, 0.0  ;;  %v964_v25 = vadd.f32 %v3464_v32, %v925_v20  ;;  %v930_v26 = vmul.f32 %v2990_v22, %v3457_v27 }
 0x113   : > { %v878_v28 = vpop.f32.mrf.mxu0 }
 0x114   : > { %v996_v29 = vmax.f32 %v964_v25, 0.0  ;;  %v928_v30 = vmul.f32 %v3457_v27, %v878_v28  ;;  %v1016_v31 = vpack.c.bf16 %v998_v24, %v997_v21  ;;  %v969_v33 = vadd.f32 %v3464_v32, %v930_v26 }
 0x115   : > { %v2991_v34 = vpop.f32.mrf.mxu0 }
 0x116   : > { %v1015_v35 = vpack.c.bf16 %v996_v29, %v995_v23  ;;  %v967_v36 = vadd.f32 %v3464_v32, %v928_v30  ;;  %v931_v37 = vmul.f32 %v2991_v34, %v3457_v27  ;;  %v1001_v41 = vmax.f32 %v969_v33, 0.0 }
 0x117   : > { %v881_v38 = vpop.f32.mrf.mxu0 }
 0x118   : > { %v970_v39 = vadd.f32 %v3464_v32, %v931_v37  ;;  %v929_v40 = vmul.f32 %v3457_v27, %v881_v38  ;;  %3024 = vmatprep.mubr.msk.bf16.mxu1 %vm1051_vm2, %v1015_v35  ;;  %v999_v42 = vmax.f32 %v967_v36, 0.0  ;;  %v3196_v27 = vld [vmem:[%s4167_s10 + $0x18] sm:$0xff]  }
 0x119   : > { %3025 = vmatmul.mubr.msk.bf16.gmra.mxu1 %vm1051_vm2, %v1016_v31  ;;  %3072 = vmatprep.subr.bf16.mxu1 %v3196_v27 }
 0x11a   : > { %v1002_v43 = vmax.f32 %v970_v39, 0.0  ;;  %v968_v44 = vadd.f32 %v3464_v32, %v929_v40  ;;  %3073 = vmatpush3.bf16.msra.mxu1 %v3196_v27  ;;  %v3198_v32 = vld [vmem:[%s4167_s10 + $0x8] sm:$0xff]  }
 0x11b   : > { %3074 = vmatprep.subr.bf16.mxu1 %v3197_v48 }
 0x11c   : > { %v1000_v45 = vmax.f32 %v968_v44, 0.0  ;;  %v1018_v46 = vpack.c.bf16 %v1002_v43, %v1001_v41 }
 0x11e   : > { %v1017_v47 = vpack.c.bf16 %v1000_v45, %v999_v42  ;;  %3075 = vmatpush3.bf16.msra.mxu1 %v3197_v48 }
 0x11f   : > { %3076 = vmatprep.subr.bf16.mxu1 %v3198_v32 }
 0x120   : > { %3028 = vmatprep.mubr.msk.bf16.mxu1 %vm1051_vm2, %v1017_v47 }
 0x121   : > { %3029 = vmatmul.mubr.msk.bf16.gmra.mxu1 %vm1051_vm2, %v1018_v46 }
 0x122   : > { %3077 = vmatpush3.bf16.msra.mxu1 %v3198_v32 }
 0x123   : > { %3078 = vmatprep.subr.bf16.mxu1 %v3199_v49 }
 0x126   : > { %3079 = vmatpush3.bf16.msra.mxu1 %v3199_v49 }
 0x1a9   : > { %v3002_v50 = vpop.f32.mrf.mxu1 }
 0x1aa   : > { %v1270_v54 = vmul.f32 %v3002_v50, %v3559_v51 }
 0x1ab   : > { %v1134_v52 = vpop.f32.mrf.mxu1 }
 0x1ac   : > { %v1268_v53 = vmul.f32 %v3559_v51, %v1134_v52  ;;  %v1309_v62 = vadd.f32 %v3566_v56, %v1270_v54 }
 0x1ad   : > { %v3003_v55 = vpop.f32.mrf.mxu1 }
 0x1ae   : > { %v1271_v57 = vmul.f32 %v3003_v55, %v3559_v51  ;;  %v1307_v59 = vadd.f32 %v3566_v56, %v1268_v53  ;;  %v1341_v6 = vmax.f32 %v1309_v62, 0.0 }
 0x1af   : > { %v1137_v58 = vpop.f32.mrf.mxu1 }
 0x1b0   : > { %v1310_v60 = vadd.f32 %v3566_v56, %v1271_v57  ;;  %v1269_v61 = vmul.f32 %v3559_v51, %v1137_v58  ;;  %v1339_v3 = vmax.f32 %v1307_v59, 0.0 }
 0x1b1   : > { %v3006_v63 = vpop.f32.mrf.mxu1 }
 0x1b2   : > { %v1308_v0 = vadd.f32 %v3566_v56, %v1269_v61  ;;  %v1342_v1 = vmax.f32 %v1310_v60, 0.0  ;;  %v1274_v7 = vmul.f32 %v3006_v63, %v3559_v51 }
 0x1b3   : > { %v1150_v2 = vpop.f32.mrf.mxu1 }
 0x1b4   : > { %v1340_v4 = vmax.f32 %v1308_v0, 0.0  ;;  %v1272_v5 = vmul.f32 %v3559_v51, %v1150_v2  ;;  %v1372_v11 = vpack.c.bf16 %v1342_v1, %v1341_v6  ;;  %v1313_v16 = vadd.f32 %v3566_v56, %v1274_v7 }
 0x1b5   : > { %v3007_v8 = vpop.f32.mrf.mxu1 }
 0x1b6   : > { %v1371_v9 = vpack.c.bf16 %v1340_v4, %v1339_v3  ;;  %v1275_v10 = vmul.f32 %v3007_v8, %v3559_v51  ;;  %v1311_v13 = vadd.f32 %v3566_v56, %v1272_v5  ;;  %v1345_v24 = vmax.f32 %v1313_v16, 0.0 }
 0x1b7   : > { %v1153_v12 = vpop.f32.mrf.mxu1 }
 0x1b8   : > { %v1314_v14 = vadd.f32 %v3566_v56, %v1275_v10  ;;  %v1273_v15 = vmul.f32 %v3559_v51, %v1153_v12  ;;  %3040 = vmatprep.mubr.msk.bf16.mxu0 %vm1051_vm2, %v1371_v9  ;;  %v1343_v21 = vmax.f32 %v1311_v13, 0.0 }
 0x1b9   : > { %v3010_v17 = vpop.f32.mrf.mxu1  ;;  %3041 = vmatmul.mubr.msk.bf16.vlgmr.msra.gmra.mxu0 %vm1051_vm2, %v1372_v11 }
 0x1ba   : > { %v1312_v18 = vadd.f32 %v3566_v56, %v1273_v15  ;;  %v1346_v19 = vmax.f32 %v1314_v14, 0.0  ;;  %v1278_v25 = vmul.f32 %v3010_v17, %v3559_v51 }
 0x1bb   : > { %v1166_v20 = vpop.f32.mrf.mxu1 }
 0x1bc   : > { %v1344_v22 = vmax.f32 %v1312_v18, 0.0  ;;  %v1276_v23 = vmul.f32 %v3559_v51, %v1166_v20  ;;  %v1374_v30 = vpack.c.bf16 %v1346_v19, %v1345_v24  ;;  %v1317_v36 = vadd.f32 %v3566_v56, %v1278_v25 }
 0x1bd   : > { %v3011_v26 = vpop.f32.mrf.mxu1 }
 0x1be   : > { %v1373_v28 = vpack.c.bf16 %v1344_v22, %v1343_v21  ;;  %v1279_v29 = vmul.f32 %v3011_v26, %v3559_v51  ;;  %v1315_v33 = vadd.f32 %v3566_v56, %v1276_v23  ;;  %v1349_v44 = vmax.f32 %v1317_v36, 0.0 }
 0x1bf   : > { %v1169_v31 = vpop.f32.mrf.mxu1 }
 0x1c0   : > { %v1318_v34 = vadd.f32 %v3566_v56, %v1279_v29  ;;  %v1277_v35 = vmul.f32 %v3559_v51, %v1169_v31  ;;  %3044 = vmatprep.mubr.msk.bf16.mxu0 %vm1051_vm2, %v1373_v28  ;;  %v1347_v41 = vmax.f32 %v1315_v33, 0.0 }
 0x1c1   : > { %v3014_v37 = vpop.f32.mrf.mxu1  ;;  %3045 = vmatmul.mubr.msk.bf16.gmra.mxu0 %vm1051_vm2, %v1374_v30 }
 0x1c2   : > { %v1316_v38 = vadd.f32 %v3566_v56, %v1277_v35  ;;  %v1350_v39 = vmax.f32 %v1318_v34, 0.0  ;;  %v1282_v45 = vmul.f32 %v3014_v37, %v3559_v51 }
 0x1c3   : > { %v1182_v40 = vpop.f32.mrf.mxu1 }
 0x1c4   : > { %v1348_v42 = vmax.f32 %v1316_v38, 0.0  ;;  %v1280_v43 = vmul.f32 %v3559_v51, %v1182_v40  ;;  %v1376_v48 = vpack.c.bf16 %v1350_v39, %v1349_v44  ;;  %v1321_v53 = vadd.f32 %v3566_v56, %v1282_v45 }
 0x1c5   : > { %v3015_v46 = vpop.f32.mrf.mxu1 }
 0x1c6   : > { %v1375_v47 = vpack.c.bf16 %v1348_v42, %v1347_v41  ;;  %v1283_v27 = vmul.f32 %v3015_v46, %v3559_v51  ;;  %v1319_v49 = vadd.f32 %v3566_v56, %v1280_v43  ;;  %v1353_v62 = vmax.f32 %v1321_v53, 0.0 }
 0x1c7   : > { %v1185_v32 = vpop.f32.mrf.mxu1 }
 0x1c8   : > { %v1322_v50 = vadd.f32 %v3566_v56, %v1283_v27  ;;  %v1281_v52 = vmul.f32 %v3559_v51, %v1185_v32  ;;  %3048 = vmatprep.mubr.msk.bf16.mxu0 %vm1051_vm2, %v1375_v47  ;;  %v1351_v59 = vmax.f32 %v1319_v49, 0.0 }
 0x1c9   : > { %v3018_v54 = vpop.f32.mrf.mxu1  ;;  %3049 = vmatmul.mubr.msk.bf16.gmra.mxu0 %vm1051_vm2, %v1376_v48 }
 0x1ca   : > { %v1320_v55 = vadd.f32 %v3566_v56, %v1281_v52  ;;  %v1354_v57 = vmax.f32 %v1322_v50, 0.0  ;;  %v1286_v63 = vmul.f32 %v3018_v54, %v3559_v51 }
 0x1cb   : > { %v1198_v58 = vpop.f32.mrf.mxu1 }
 0x1cc   : > { %v1352_v60 = vmax.f32 %v1320_v55, 0.0  ;;  %v1284_v61 = vmul.f32 %v3559_v51, %v1198_v58  ;;  %v1378_v3 = vpack.c.bf16 %v1354_v57, %v1353_v62  ;;  %v1325_v8 = vadd.f32 %v3566_v56, %v1286_v63 }
 0x1cd   : > { %v3019_v0 = vpop.f32.mrf.mxu1 }
 0x1ce   : > { %v1377_v1 = vpack.c.bf16 %v1352_v60, %v1351_v59  ;;  %v1287_v2 = vmul.f32 %v3019_v0, %v3559_v51  ;;  %v1323_v5 = vadd.f32 %v3566_v56, %v1284_v61  ;;  %v1357_v16 = vmax.f32 %v1325_v8, 0.0  ;;  %v3202_v8 = vld [vmem:[%s4170_s13 + $0x74] ss:$8 sps:$4 sm:$0xff]  }
 0x1cf   : > { %v1201_v4 = vpop.f32.mrf.mxu1  ;;  %2217 = vmatprep.subr.bf16.mxu0 %v3202_v8  ;;  %3112 = vmatprep.subr.bf16.mxu1 %v3202_v8 }
 0x1d0   : > { %v1326_v6 = vadd.f32 %v3566_v56, %v1287_v2  ;;  %v1285_v7 = vmul.f32 %v3559_v51, %v1201_v4  ;;  %3052 = vmatprep.mubr.msk.bf16.mxu0 %vm1051_vm2, %v1377_v1  ;;  %v1355_v13 = vmax.f32 %v1323_v5, 0.0 }
 0x1d1   : > { %v3022_v9 = vpop.f32.mrf.mxu1  ;;  %3053 = vmatmul.mubr.msk.bf16.gmra.mxu0 %vm1051_vm2, %v1378_v3 }
 0x1d2   : > { %v1324_v10 = vadd.f32 %v3566_v56, %v1285_v7  ;;  %v1358_v11 = vmax.f32 %v1326_v6, 0.0  ;;  %v1290_v17 = vmul.f32 %v3022_v9, %v3559_v51  ;;  %v3205_v9 = vld [vmem:[%s4170_s13 + $0x64] ss:$8 sps:$4 sm:$0xff]  }
 0x1d3   : > { %v1214_v12 = vpop.f32.mrf.mxu1 }
 0x1d4   : > { %v1356_v14 = vmax.f32 %v1324_v10, 0.0  ;;  %v1288_v15 = vmul.f32 %v3559_v51, %v1214_v12  ;;  %v1380_v21 = vpack.c.bf16 %v1358_v11, %v1357_v16  ;;  %v1329_v26 = vadd.f32 %v3566_v56, %v1290_v17  ;;  %v3663_v10 = vld [vmem:[%s4170_s13 + $0x54] ss:$8 sps:$4 sm:$0xff]   ;;  %v3669_v11 = vld [vmem:[%s4170_s13 + $0x50] ss:$8 sps:$4 sm:$0xff]  }
 0x1d5   : > { %v3023_v18 = vpop.f32.mrf.mxu1  ;;  %v3675_v12 = vld [vmem:[%s4170_s13 + $0x44] ss:$8 sps:$4 sm:$0xff]   ;;  %v3705_v17 = vld [vmem:[%s4170_s13 + $0x20] ss:$8 sps:$4 sm:$0xff]  }
 0x1d6   : > { %v1379_v19 = vpack.c.bf16 %v1356_v14, %v1355_v13  ;;  %v1291_v20 = vmul.f32 %v3023_v18, %v3559_v51  ;;  %v1327_v23 = vadd.f32 %v3566_v56, %v1288_v15  ;;  %v1361_v36 = vmax.f32 %v1329_v26, 0.0  ;;  %v3681_v13 = vld [vmem:[%s4170_s13 + $0x40] ss:$8 sps:$4 sm:$0xff]   ;;  %v3687_v14 = vld [vmem:[%s4170_s13 + $0x34] ss:$8 sps:$4 sm:$0xff]  }
 0x1d7   : > { %v1217_v22 = vpop.f32.mrf.mxu1  ;;  %v3693_v15 = vld [vmem:[%s4170_s13 + $0x30] ss:$8 sps:$4 sm:$0xff]   ;;  %v3699_v16 = vld [vmem:[%s4170_s13 + $0x24] ss:$8 sps:$4 sm:$0xff]  }
 0x1d8   : > { %v1330_v24 = vadd.f32 %v3566_v56, %v1291_v20  ;;  %v1289_v25 = vmul.f32 %v3559_v51, %v1217_v22  ;;  %3056 = vmatprep.mubr.msk.bf16.mxu0 %vm1051_vm2, %v1379_v19  ;;  %v1359_v33 = vmax.f32 %v1327_v23, 0.0  ;;  %v3712_v19 = vld [vmem:[%s4165_s8] ss:$0 sm:$0xff] }
 0x1d9   : > { %v3026_v28 = vpop.f32.mrf.mxu1  ;;  %3057 = vmatmul.mubr.msk.bf16.gmra.mxu0 %vm1051_vm2, %v1380_v21 }
 0x1da   : > { %v1328_v29 = vadd.f32 %v3566_v56, %v1289_v25  ;;  %v1362_v30 = vmax.f32 %v1330_v24, 0.0  ;;  %v1294_v37 = vmul.f32 %v3026_v28, %v3559_v51  ;;  %v3719_v24 = vld [vmem:[%s4166_s9] ss:$0 sm:$0xff] }
 0x1db   : > { %v1230_v31 = vpop.f32.mrf.mxu1 }
 0x1dc   : > { %v1360_v34 = vmax.f32 %v1328_v29, 0.0  ;;  %v1292_v35 = vmul.f32 %v3559_v51, %v1230_v31  ;;  %v1382_v41 = vpack.c.bf16 %v1362_v30, %v1361_v36  ;;  %v1333_v46 = vadd.f32 %v3566_v56, %v1294_v37 }
 0x1dd   : > { %v3027_v38 = vpop.f32.mrf.mxu1 }
 0x1de   : > { %v1381_v39 = vpack.c.bf16 %v1360_v34, %v1359_v33  ;;  %v1295_v40 = vmul.f32 %v3027_v38, %v3559_v51  ;;  %v1331_v43 = vadd.f32 %v3566_v56, %v1292_v35  ;;  %v1365_v54 = vmax.f32 %v1333_v46, 0.0 }
 0x1df   : > { %v1233_v42 = vpop.f32.mrf.mxu1 }
 0x1e0   : > { %v1334_v44 = vadd.f32 %v3566_v56, %v1295_v40  ;;  %v1293_v45 = vmul.f32 %v3559_v51, %v1233_v42  ;;  %3060 = vmatprep.mubr.msk.bf16.mxu0 %vm1051_vm2, %v1381_v39  ;;  %v1363_v50 = vmax.f32 %v1331_v43, 0.0 }
 0x1e1   : > { %v3030_v47 = vpop.f32.mrf.mxu1  ;;  %3061 = vmatmul.mubr.msk.bf16.gmra.mxu0 %vm1051_vm2, %v1382_v41 }
 0x1e2   : > { %v1332_v27 = vadd.f32 %v3566_v56, %v1293_v45  ;;  %v1298_v48 = vmul.f32 %v3030_v47, %v3559_v51  ;;  %v1366_v32 = vmax.f32 %v1334_v44, 0.0 }
 0x1e3   : > { %v1246_v49 = vpop.f32.mrf.mxu1 }
 0x1e4   : > { %v1364_v52 = vmax.f32 %v1332_v27, 0.0  ;;  %v1296_v53 = vmul.f32 %v3559_v51, %v1246_v49  ;;  %v1337_v55 = vadd.f32 %v3566_v56, %v1298_v48  ;;  %v1384_v61 = vpack.c.bf16 %v1366_v32, %v1365_v54 }
 0x1e5   : > { %v3031_v57 = vpop.f32.mrf.mxu1 }
 0x1e6   : > { %v1383_v58 = vpack.c.bf16 %v1364_v52, %v1363_v50  ;;  %v1335_v59 = vadd.f32 %v3566_v56, %v1296_v53  ;;  %v1299_v60 = vmul.f32 %v3031_v57, %v3559_v51  ;;  %v1369_v1 = vmax.f32 %v1337_v55, 0.0 }
 0x1e7   : > { %v1249_v62 = vpop.f32.mrf.mxu1 }
 0x1e8   : > { %v1338_v63 = vadd.f32 %v3566_v56, %v1299_v60  ;;  %v1297_v0 = vmul.f32 %v3559_v51, %v1249_v62  ;;  %3064 = vmatprep.mubr.msk.bf16.mxu0 %vm1051_vm2, %v1383_v58  ;;  %v1367_v2 = vmax.f32 %v1335_v59, 0.0  ;;  %v3200_v51 = vld [vmem:[%s4170_s13 + $0x70] ss:$8 sps:$4 sm:$0xff]  }
 0x1e9   : > { %3065 = vmatmul.mubr.msk.bf16.gmra.mxu0 %vm1051_vm2, %v1384_v61 }
 0x1ea   : > { %v1370_v3 = vmax.f32 %v1338_v63, 0.0  ;;  %v1336_v4 = vadd.f32 %v3566_v56, %v1297_v0  ;;  %2218 = vmatpush1.bf16.msra.mxu0 %v3200_v51  ;;  %v3658_v56 = vld [vmem:[%s4170_s13 + $0x60] ss:$8 sps:$4 sm:$0xff]  }
 0x1eb   : > { %2219 = vmatprep.subr.bf16.mxu0 %v3205_v9 }
 0x1ec   : > { %v1368_v5 = vmax.f32 %v1336_v4, 0.0  ;;  %v1386_v6 = vpack.c.bf16 %v1370_v3, %v1369_v1 }
 0x1ee   : > { %v1385_v7 = vpack.c.bf16 %v1368_v5, %v1367_v2  ;;  %2220 = vmatpush1.bf16.msra.mxu0 %v3658_v56 }
 0x1ef   : > { %2221 = vmatprep.subr.bf16.mxu0 %v3663_v10 }
 0x1f0   : > { %3068 = vmatprep.mubr.msk.bf16.mxu0 %vm1051_vm2, %v1385_v7 }
 0x1f1   : > { %3069 = vmatmul.mubr.msk.bf16.gmra.mxu0 %vm1051_vm2, %v1386_v6 }
 0x1f2   : > { %2222 = vmatpush1.bf16.msra.mxu0 %v3669_v11 }
 0x1f3   : > { %2223 = vmatprep.subr.bf16.mxu0 %v3675_v12 }
 0x1f6   : > { %2224 = vmatpush1.bf16.msra.mxu0 %v3681_v13 }
 0x1f7   : > { %2225 = vmatprep.subr.bf16.mxu0 %v3687_v14 }
 0x1fa   : > { %2226 = vmatpush1.bf16.msra.mxu0 %v3693_v15 }
 0x1fb   : > { %2227 = vmatprep.subr.bf16.mxu0 %v3699_v16 }
 0x1fe   : > { %2228 = vmatpush1.bf16.msra.mxu0 %v3705_v17 }
 0x279   : > { %v3042_v18 = vpop.f32.mrf.mxu0 }
 0x27a   : > { %v1637_v22 = vmul.f32 %v3042_v18, %v3712_v19 }
 0x27b   : > { %v1501_v20 = vpop.f32.mrf.mxu0 }
 0x27c   : > { %v1635_v21 = vmul.f32 %v3712_v19, %v1501_v20  ;;  %v1676_v31 = vadd.f32 %v3719_v24, %v1637_v22 }
 0x27d   : > { %v3043_v23 = vpop.f32.mrf.mxu0 }
 0x27e   : > { %v1638_v25 = vmul.f32 %v3043_v23, %v3712_v19  ;;  %v1674_v28 = vadd.f32 %v3719_v24, %v1635_v21  ;;  %v1708_v40 = vmax.f32 %v1676_v31, 0.0 }
 0x27f   : > { %v1504_v26 = vpop.f32.mrf.mxu0 }
 0x280   : > { %v1677_v29 = vadd.f32 %v3719_v24, %v1638_v25  ;;  %v1636_v30 = vmul.f32 %v3712_v19, %v1504_v26  ;;  %v1706_v37 = vmax.f32 %v1674_v28, 0.0 }
 0x281   : > { %v3046_v33 = vpop.f32.mrf.mxu0 }
 0x282   : > { %v1675_v34 = vadd.f32 %v3719_v24, %v1636_v30  ;;  %v1709_v35 = vmax.f32 %v1677_v29, 0.0  ;;  %v1641_v41 = vmul.f32 %v3046_v33, %v3712_v19 }
 0x283   : > { %v1517_v36 = vpop.f32.mrf.mxu0 }
 0x284   : > { %v1707_v38 = vmax.f32 %v1675_v34, 0.0  ;;  %v1639_v39 = vmul.f32 %v3712_v19, %v1517_v36  ;;  %v1739_v45 = vpack.c.bf16 %v1709_v35, %v1708_v40  ;;  %v1680_v32 = vadd.f32 %v3719_v24, %v1641_v41 }
 0x285   : > { %v3047_v42 = vpop.f32.mrf.mxu0 }
 0x286   : > { %v1738_v43 = vpack.c.bf16 %v1707_v38, %v1706_v37  ;;  %v1642_v44 = vmul.f32 %v3047_v42, %v3712_v19  ;;  %v1678_v47 = vadd.f32 %v3719_v24, %v1639_v39  ;;  %v1712_v58 = vmax.f32 %v1680_v32, 0.0 }
 0x287   : > { %v1520_v46 = vpop.f32.mrf.mxu0 }
 0x288   : > { %v1681_v27 = vadd.f32 %v3719_v24, %v1642_v44  ;;  %v1640_v48 = vmul.f32 %v3712_v19, %v1520_v46  ;;  %3080 = vmatprep.mubr.msk.bf16.mxu1 %vm1051_vm2, %v1738_v43  ;;  %v1710_v54 = vmax.f32 %v1678_v47, 0.0 }
 0x289   : > { %v3050_v49 = vpop.f32.mrf.mxu0  ;;  %3081 = vmatmul.mubr.msk.bf16.vlgmr.msra.gmra.mxu1 %vm1051_vm2, %v1739_v45 }
 0x28a   : > { %v1679_v50 = vadd.f32 %v3719_v24, %v1640_v48  ;;  %3120 = vmatpush1.bf16.msra.mxu1 %v3200_v51  ;;  %v1713_v52 = vmax.f32 %v1681_v27, 0.0  ;;  %v1645_v59 = vmul.f32 %v3050_v49, %v3712_v19 }
 0x28b   : > { %v1533_v53 = vpop.f32.mrf.mxu0  ;;  %3113 = vmatprep.subr.bf16.mxu1 %v3205_v9 }
 0x28c   : > { %v1711_v55 = vmax.f32 %v1679_v50, 0.0  ;;  %v1643_v57 = vmul.f32 %v3712_v19, %v1533_v53  ;;  %v1741_v63 = vpack.c.bf16 %v1713_v52, %v1712_v58  ;;  %v1684_v4 = vadd.f32 %v3719_v24, %v1645_v59 }
 0x28d   : > { %v3051_v60 = vpop.f32.mrf.mxu0 }
 0x28e   : > { %v1740_v61 = vpack.c.bf16 %v1711_v55, %v1710_v54  ;;  %v1646_v62 = vmul.f32 %v3051_v60, %v3712_v19  ;;  %3121 = vmatpush1.bf16.msra.mxu1 %v3658_v56  ;;  %v1682_v1 = vadd.f32 %v3719_v24, %v1643_v57 }
 0x28f   : > { %v1536_v0 = vpop.f32.mrf.mxu0  ;;  %3114 = vmatprep.subr.bf16.mxu1 %v3663_v10  ;;  %v1716_v10 = vmax.f32 %v1684_v4, 0.0 }
 0x290   : > { %v1685_v2 = vadd.f32 %v3719_v24, %v1646_v62  ;;  %v1644_v3 = vmul.f32 %v3712_v19, %v1536_v0  ;;  %3084 = vmatprep.mubr.msk.bf16.mxu1 %vm1051_vm2, %v1740_v61  ;;  %v1714_v8 = vmax.f32 %v1682_v1, 0.0 }
 0x291   : > { %v3054_v5 = vpop.f32.mrf.mxu0  ;;  %3085 = vmatmul.mubr.msk.bf16.gmra.mxu1 %vm1051_vm2, %v1741_v63 }
 0x292   : > { %v1683_v6 = vadd.f32 %v3719_v24, %v1644_v3  ;;  %3122 = vmatpush1.bf16.msra.mxu1 %v3669_v11  ;;  %v1717_v7 = vmax.f32 %v1685_v2, 0.0  ;;  %v1649_v18 = vmul.f32 %v3054_v5, %v3712_v19 }
 0x293   : > { %v1549_v51 = vpop.f32.mrf.mxu0  ;;  %3115 = vmatprep.subr.bf16.mxu1 %v3675_v12 }
 0x294   : > { %v1715_v9 = vmax.f32 %v1683_v6, 0.0  ;;  %v1647_v56 = vmul.f32 %v3712_v19, %v1549_v51  ;;  %v1743_v23 = vpack.c.bf16 %v1717_v7, %v1716_v10  ;;  %v1688_v28 = vadd.f32 %v3719_v24, %v1649_v18 }
 0x295   : > { %v3055_v20 = vpop.f32.mrf.mxu0 }
 0x296   : > { %v1742_v21 = vpack.c.bf16 %v1715_v9, %v1714_v8  ;;  %v1650_v22 = vmul.f32 %v3055_v20, %v3712_v19  ;;  %3123 = vmatpush1.bf16.msra.mxu1 %v3681_v13  ;;  %v1686_v11 = vadd.f32 %v3719_v24, %v1647_v56  ;;  %v1720_v35 = vmax.f32 %v1688_v28, 0.0 }
 0x297   : > { %v1552_v25 = vpop.f32.mrf.mxu0  ;;  %3116 = vmatprep.subr.bf16.mxu1 %v3687_v14 }
 0x298   : > { %v1689_v12 = vadd.f32 %v3719_v24, %v1650_v22  ;;  %v1648_v26 = vmul.f32 %v3712_v19, %v1552_v25  ;;  %3088 = vmatprep.mubr.msk.bf16.mxu1 %vm1051_vm2, %v1742_v21  ;;  %v1718_v14 = vmax.f32 %v1686_v11, 0.0 }
 0x299   : > { %v3058_v29 = vpop.f32.mrf.mxu0  ;;  %3089 = vmatmul.mubr.msk.bf16.gmra.mxu1 %vm1051_vm2, %v1743_v23 }
 0x29a   : > { %v1687_v30 = vadd.f32 %v3719_v24, %v1648_v26  ;;  %3124 = vmatpush1.bf16.msra.mxu1 %v3693_v15  ;;  %v1721_v13 = vmax.f32 %v1689_v12, 0.0  ;;  %v1653_v36 = vmul.f32 %v3058_v29, %v3712_v19 }
 0x29b   : > { %v1565_v31 = vpop.f32.mrf.mxu0  ;;  %3117 = vmatprep.subr.bf16.mxu1 %v3699_v16 }
 0x29c   : > { %v1719_v33 = vmax.f32 %v1687_v30, 0.0  ;;  %v1651_v34 = vmul.f32 %v3712_v19, %v1565_v31  ;;  %v1745_v40 = vpack.c.bf16 %v1721_v13, %v1720_v35  ;;  %v1692_v43 = vadd.f32 %v3719_v24, %v1653_v36 }
 0x29d   : > { %v3059_v37 = vpop.f32.mrf.mxu0 }
 0x29e   : > { %v1744_v38 = vpack.c.bf16 %v1719_v33, %v1718_v14  ;;  %v1654_v39 = vmul.f32 %v3059_v37, %v3712_v19  ;;  %3125 = vmatpush1.bf16.msra.mxu1 %v3705_v17  ;;  %v1690_v15 = vadd.f32 %v3719_v24, %v1651_v34  ;;  %v1724_v32 = vmax.f32 %v1692_v43, 0.0  ;;  %v3220_v43 = vld [vmem:[%s4170_s13 + $0x14] ss:$8 sps:$4 sm:$0xff]  }
 0x29f   : > { %v1568_v41 = vpop.f32.mrf.mxu0  ;;  %2229 = vmatprep.subr.bf16.mxu0 %v3220_v43  ;;  %3118 = vmatprep.subr.bf16.mxu1 %v3220_v43 }
 0x2a0   : > { %v1693_v42 = vadd.f32 %v3719_v24, %v1654_v39  ;;  %v1652_v16 = vmul.f32 %v3712_v19, %v1568_v41  ;;  %3092 = vmatprep.mubr.msk.bf16.mxu1 %vm1051_vm2, %v1744_v38  ;;  %v1722_v17 = vmax.f32 %v1690_v15, 0.0 }
 0x2a1   : > { %v3062_v44 = vpop.f32.mrf.mxu0  ;;  %3093 = vmatmul.mubr.msk.bf16.gmra.mxu1 %vm1051_vm2, %v1745_v40 }
 0x2a2   : > { %v1691_v45 = vadd.f32 %v3719_v24, %v1652_v16  ;;  %v1725_v46 = vmax.f32 %v1693_v42, 0.0  ;;  %v1657_v49 = vmul.f32 %v3062_v44, %v3712_v19  ;;  %v3221_v44 = vld [vmem:[%s4170_s13] ss:$8 sps:$4 sm:$0xff]  }
 0x2a3   : > { %v1581_v47 = vpop.f32.mrf.mxu0 }
 0x2a4   : > { %v1723_v27 = vmax.f32 %v1691_v45, 0.0  ;;  %v1655_v48 = vmul.f32 %v3712_v19, %v1581_v47  ;;  %v1747_v54 = vpack.c.bf16 %v1725_v46, %v1724_v32  ;;  %v1696_v60 = vadd.f32 %v3719_v24, %v1657_v49  ;;  %v3825_v47 = vld [vmem:[%s4168_s11] ss:$0 sm:$0xff] }
 0x2a5   : > { %v3063_v50 = vpop.f32.mrf.mxu0  ;;  %v3264_v45 = vmov 0   ;;  %v3831_v32 = vld [vmem:[%s4169_s12] ss:$0 sm:$0xff] }
 0x2a6   : > { %v1746_v52 = vpack.c.bf16 %v1723_v27, %v1722_v17  ;;  %v1658_v53 = vmul.f32 %v3063_v50, %v3712_v19  ;;  %v1694_v57 = vadd.f32 %v3719_v24, %v1655_v48  ;;  %v1728_v4 = vmax.f32 %v1696_v60, 0.0  ;;  %2249 = vmatprep.mubr.bf16.mxu0 %v3264_v45 }
 0x2a7   : > { %v1584_v55 = vpop.f32.mrf.mxu0 }
 0x2a8   : > { %v1697_v58 = vadd.f32 %v3719_v24, %v1658_v53  ;;  %v1656_v59 = vmul.f32 %v3712_v19, %v1584_v55  ;;  %3096 = vmatprep.mubr.msk.bf16.mxu1 %vm1051_vm2, %v1746_v52  ;;  %v1726_v1 = vmax.f32 %v1694_v57, 0.0 }
 0x2a9   : > { %v3066_v61 = vpop.f32.mrf.mxu0  ;;  %3097 = vmatmul.mubr.msk.bf16.gmra.mxu1 %vm1051_vm2, %v1747_v54 }
 0x2aa   : > { %v1695_v62 = vadd.f32 %v3719_v24, %v1656_v59  ;;  %v1729_v63 = vmax.f32 %v1697_v58, 0.0  ;;  %v1661_v5 = vmul.f32 %v3066_v61, %v3712_v19 }
 0x2ab   : > { %v1597_v0 = vpop.f32.mrf.mxu0 }
 0x2ac   : > { %v1727_v2 = vmax.f32 %v1695_v62, 0.0  ;;  %v1659_v3 = vmul.f32 %v3712_v19, %v1597_v0  ;;  %v1749_v8 = vpack.c.bf16 %v1729_v63, %v1728_v4  ;;  %v1700_v20 = vadd.f32 %v3719_v24, %v1661_v5 }
 0x2ad   : > { %v3067_v6 = vpop.f32.mrf.mxu0 }
 0x2ae   : > { %v1748_v7 = vpack.c.bf16 %v1727_v2, %v1726_v1  ;;  %v1662_v51 = vmul.f32 %v3067_v6, %v3712_v19  ;;  %v1698_v56 = vadd.f32 %v3719_v24, %v1659_v3  ;;  %v1732_v28 = vmax.f32 %v1700_v20, 0.0 }
 0x2af   : > { %v1600_v9 = vpop.f32.mrf.mxu0 }
 0x2b0   : > { %v1701_v10 = vadd.f32 %v3719_v24, %v1662_v51  ;;  %v1660_v18 = vmul.f32 %v3712_v19, %v1600_v9  ;;  %3100 = vmatprep.mubr.msk.bf16.mxu1 %vm1051_vm2, %v1748_v7  ;;  %v1730_v11 = vmax.f32 %v1698_v56, 0.0 }
 0x2b1   : > { %v3070_v21 = vpop.f32.mrf.mxu0  ;;  %3101 = vmatmul.mubr.msk.bf16.gmra.mxu1 %vm1051_vm2, %v1749_v8 }
 0x2b2   : > { %v1699_v22 = vadd.f32 %v3719_v24, %v1660_v18  ;;  %v1733_v23 = vmax.f32 %v1701_v10, 0.0  ;;  %v1665_v29 = vmul.f32 %v3070_v21, %v3712_v19 }
 0x2b3   : > { %v1613_v25 = vpop.f32.mrf.mxu0 }
 0x2b4   : > { %v1731_v12 = vmax.f32 %v1699_v22, 0.0  ;;  %v1663_v26 = vmul.f32 %v3712_v19, %v1613_v25  ;;  %v1751_v14 = vpack.c.bf16 %v1733_v23, %v1732_v28  ;;  %v1704_v37 = vadd.f32 %v3719_v24, %v1665_v29 }
 0x2b5   : > { %v3071_v30 = vpop.f32.mrf.mxu0 }
 0x2b6   : > { %v1750_v13 = vpack.c.bf16 %v1731_v12, %v1730_v11  ;;  %v1666_v31 = vmul.f32 %v3071_v30, %v3712_v19  ;;  %v1702_v34 = vadd.f32 %v3719_v24, %v1663_v26  ;;  %v1736_v15 = vmax.f32 %v1704_v37, 0.0 }
 0x2b7   : > { %v1616_v33 = vpop.f32.mrf.mxu0 }
 0x2b8   : > { %v1705_v35 = vadd.f32 %v3719_v24, %v1666_v31  ;;  %v1664_v36 = vmul.f32 %v3712_v19, %v1616_v33  ;;  %3104 = vmatprep.mubr.msk.bf16.mxu1 %vm1051_vm2, %v1750_v13  ;;  %v1734_v40 = vmax.f32 %v1702_v34, 0.0  ;;  %v3218_v19 = vld [vmem:[%s4170_s13 + $0x10] ss:$8 sps:$4 sm:$0xff]  }
 0x2b9   : > { %3105 = vmatmul.mubr.msk.bf16.gmra.mxu1 %vm1051_vm2, %v1751_v14  ;;  %2230 = vmatpush1.bf16.msra.mxu0 %v3218_v19 }
 0x2ba   : > { %v1703_v38 = vadd.f32 %v3719_v24, %v1664_v36  ;;  %v1737_v39 = vmax.f32 %v1705_v35, 0.0  ;;  %3126 = vmatpush1.bf16.msra.mxu1 %v3218_v19  ;;  %v3223_v24 = vld [vmem:[%s4170_s13 + $0x4] ss:$8 sps:$4 sm:$0xff]  }
 0x2bb   : > { %2231 = vmatprep.subr.bf16.mxu0 %v3223_v24  ;;  %3119 = vmatprep.subr.bf16.mxu1 %v3223_v24 }
 0x2bc   : > { %v1735_v41 = vmax.f32 %v1703_v38, 0.0  ;;  %v1753_v16 = vpack.c.bf16 %v1737_v39, %v1736_v15 }
 0x2bd   : > { %2232 = vmatpush1.bf16.msra.mxu0 %v3221_v44 }
 0x2be   : > { %v1752_v42 = vpack.c.bf16 %v1735_v41, %v1734_v40  ;;  %3127 = vmatpush1.bf16.msra.mxu1 %v3221_v44 }
 0x2c0   : > { %3108 = vmatprep.mubr.msk.bf16.mxu1 %vm1051_vm2, %v1752_v42 }
 0x2c1   : > { %3109 = vmatmul.mubr.msk.bf16.gmra.mxu1 %vm1051_vm2, %v1753_v16 }
 0x2c2   : > { %2339 = vmatprep.mubr.bf16.mxu1 %v3264_v45 }
 0x349   : > { %v3082_v46 = vpop.f32.mrf.mxu1 }
 0x34a   : > { %v2004_v58 = vmul.f32 %v3082_v46, %v3825_v47 }
 0x34b   : > { %v1868_v17 = vpop.f32.mrf.mxu1 }
 0x34c   : > { %v2002_v27 = vmul.f32 %v3825_v47, %v1868_v17  ;;  %v2043_v1 = vadd.f32 %v3831_v32, %v2004_v58 }
 0x34d   : > { %v3083_v48 = vpop.f32.mrf.mxu1 }
 0x34e   : > { %v2041_v50 = vadd.f32 %v3831_v32, %v2002_v27  ;;  %v2005_v54 = vmul.f32 %v3083_v48, %v3825_v47  ;;  %v2075_v6 = vmax.f32 %v2043_v1, 0.0 }
 0x34f   : > { %v1871_v49 = vpop.f32.mrf.mxu1 }
 0x350   : > { %v2003_v52 = vmul.f32 %v3825_v47, %v1871_v49  ;;  %v2073_v59 = vmax.f32 %v2041_v50, 0.0  ;;  %v2044_v62 = vadd.f32 %v3831_v32, %v2005_v54 }
 0x351   : > { %v3086_v53 = vpop.f32.mrf.mxu1 }
 0x352   : > { %v2042_v55 = vadd.f32 %v3831_v32, %v2003_v52  ;;  %v2076_v3 = vmax.f32 %v2044_v62, 0.0  ;;  %v2008_v22 = vmul.f32 %v3086_v53, %v3825_v47 }
 0x353   : > { %v1884_v57 = vpop.f32.mrf.mxu1 }
 0x354   : > { %v2074_v60 = vmax.f32 %v2042_v55, 0.0  ;;  %v2006_v7 = vmul.f32 %v3825_v47, %v1884_v57  ;;  %v2106_v9 = vpack.c.bf16 %v2076_v3, %v2075_v6  ;;  %v2047_v28 = vadd.f32 %v3831_v32, %v2008_v22 }
 0x355   : > { %v3087_v61 = vpop.f32.mrf.mxu1 }
 0x356   : > { %v2105_v63 = vpack.c.bf16 %v2074_v60, %v2073_v59  ;;  %v2045_v10 = vadd.f32 %v3831_v32, %v2006_v7  ;;  %v2009_v18 = vmul.f32 %v3087_v61, %v3825_v47  ;;  %v2079_v33 = vmax.f32 %v2047_v28, 0.0 }
 0x357   : > { %v1887_v0 = vpop.f32.mrf.mxu1 }
 0x358   : > { %2250 = vmatmul.mubr.bf16.vlgmr.msra.gmra.mxu0 %v2105_v63  ;;  %v2007_v4 = vmul.f32 %v3825_v47, %v1887_v0  ;;  %v2077_v25 = vmax.f32 %v2045_v10, 0.0  ;;  %v2048_v11 = vadd.f32 %v3831_v32, %v2009_v18 }
 0x359   : > { %v3090_v2 = vpop.f32.mrf.mxu1  ;;  %2259 = vmatprep.mubr.bf16.mxu0 %v3264_v45 }
 0x35a   : > { %v2046_v8 = vadd.f32 %v3831_v32, %v2007_v4  ;;  %v2080_v30 = vmax.f32 %v2048_v11, 0.0  ;;  %v2012_v49 = vmul.f32 %v3090_v2, %v3825_v47 }
 0x35b   : > { %v1900_v5 = vpop.f32.mrf.mxu1 }
 0x35c   : > { %v2078_v21 = vmax.f32 %v2046_v8, 0.0  ;;  %v2010_v34 = vmul.f32 %v3825_v47, %v1900_v5  ;;  %v2108_v38 = vpack.c.bf16 %v2080_v30, %v2079_v33  ;;  %v2051_v63 = vadd.f32 %v3831_v32, %v2012_v49 }
 0x35d   : > { %v3091_v51 = vpop.f32.mrf.mxu1 }
 0x35e   : > { %v2107_v26 = vpack.c.bf16 %v2078_v21, %v2077_v25  ;;  %v2049_v42 = vadd.f32 %v3831_v32, %v2010_v34  ;;  %v2013_v24 = vmul.f32 %v3091_v51, %v3825_v47 }
 0x35f   : > { %v1903_v56 = vpop.f32.mrf.mxu1 }
 0x360   : > { %2260 = vmatmul.mubr.bf16.gmra.mxu0 %v2106_v9  ;;  %v2011_v31 = vmul.f32 %v3825_v47, %v1903_v56  ;;  %v2081_v50 = vmax.f32 %v2049_v42, 0.0  ;;  %v2052_v59 = vadd.f32 %v3831_v32, %v2013_v24  ;;  %v2083_v56 = vmax.f32 %v2051_v63, 0.0 }
 0x361   : > { %v3846_v20 = vpop.f32.mrf.mxu1  ;;  %2269 = vmatprep.mubr.bf16.mxu0 %v3264_v45 }
 0x362   : > { %v2050_v39 = vadd.f32 %v3831_v32, %v2011_v31  ;;  %v2084_v5 = vmax.f32 %v2052_v59, 0.0 }
 0x363   : > { %v1916_v23 = vpop.f32.mrf.mxu1 }
 0x364   : > { %v2082_v46 = vmax.f32 %v2050_v39, 0.0  ;;  %v2014_v51 = vmul.f32 %v3825_v47, %v1916_v23  ;;  %v2110_v28 = vpack.c.bf16 %v2084_v5, %v2083_v56 }
 0x365   : > { %v3851_v12 = vpop.f32.mrf.mxu1 }
 0x366   : > { %v2109_v60 = vpack.c.bf16 %v2082_v46, %v2081_v50  ;;  %v2053_v30 = vadd.f32 %v3831_v32, %v2014_v51 }
 0x367   : > { %v1919_v29 = vpop.f32.mrf.mxu1 }
 0x368   : > { %2270 = vmatmul.mubr.bf16.gmra.mxu0 %v2107_v26  ;;  %v2015_v2 = vmul.f32 %v3825_v47, %v1919_v29 }
 0x369   : > { %v3098_v13 = vpop.f32.mrf.mxu1  ;;  %2279 = vmatprep.mubr.bf16.mxu0 %v3264_v45 }
 0x36a   : > { %v2020_v14 = vmul.f32 %v3098_v13, %v3825_v47  ;;  %v2054_v22 = vadd.f32 %v3831_v32, %v2015_v2 }
 0x36b   : > { %v1932_v35 = vpop.f32.mrf.mxu1 }
 0x36c   : > { %v2018_v36 = vmul.f32 %v3825_v47, %v1932_v35  ;;  %v2059_v40 = vadd.f32 %v3831_v32, %v2020_v14  ;;  %v2017_v14 = vmul.f32 %v3851_v12, %v3825_v47  ;;  %v2086_v33 = vmax.f32 %v2054_v22, 0.0 }
 0x36d   : > { %v3099_v37 = vpop.f32.mrf.mxu1 }
 0x36e   : > { %v2057_v41 = vadd.f32 %v3831_v32, %v2018_v36  ;;  %v2021_v15 = vmul.f32 %v3099_v37, %v3825_v47  ;;  %v2091_v17 = vmax.f32 %v2059_v40, 0.0  ;;  %v2016_v40 = vmul.f32 %v3846_v20, %v3825_v47 }
 0x36f   : > { %v1935_v16 = vpop.f32.mrf.mxu1  ;;  %v2056_v24 = vadd.f32 %v3831_v32, %v2017_v14  ;;  %v2410_v14 = vld [vmem:[%s4171_s14] sm:$0x3] }
 0x370   : > { %v2060_v19 = vadd.f32 %v3831_v32, %v2021_v15  ;;  %v2019_v43 = vmul.f32 %v3825_v47, %v1935_v16  ;;  %2280 = vmatmul.mubr.bf16.gmra.mxu0 %v2108_v38  ;;  %v2089_v53 = vmax.f32 %v2057_v41, 0.0  ;;  %v2085_v41 = vmax.f32 %v2053_v30, 0.0 }
 0x371   : > { %v3102_v44 = vpop.f32.mrf.mxu1  ;;  %2289 = vmatprep.mubr.bf16.mxu0 %v3264_v45  ;;  %v2055_v49 = vadd.f32 %v3831_v32, %v2016_v40 }
 0x372   : > { %v2092_v27 = vmax.f32 %v2060_v19, 0.0  ;;  %v2058_v48 = vadd.f32 %v3831_v32, %v2019_v43  ;;  %v2024_v8 = vmul.f32 %v3102_v44, %v3825_v47  ;;  %v2111_v46 = vpack.c.bf16 %v2086_v33, %v2085_v41 }
 0x373   : > { %v1948_v52 = vpop.f32.mrf.mxu1 }
 0x374   : > { %v2114_v54 = vpack.c.bf16 %v2092_v27, %v2091_v17  ;;  %v2090_v55 = vmax.f32 %v2058_v48, 0.0  ;;  %v2022_v57 = vmul.f32 %v3825_v47, %v1948_v52  ;;  %v2063_v23 = vadd.f32 %v3831_v32, %v2024_v8 }
 0x375   : > { %v3103_v58 = vpop.f32.mrf.mxu1 }
 0x376   : > { %2340 = vmatmul.mubr.bf16.vlgmr.msra.gmra.mxu1 %v2114_v54  ;;  %v3872_v61 = vpack.c.bf16 %v2090_v55, %v2089_v53  ;;  %v2061_v0 = vadd.f32 %v3831_v32, %v2022_v57  ;;  %v2025_v3 = vmul.f32 %v3103_v58, %v3825_v47  ;;  %v2095_v15 = vmax.f32 %v2063_v23, 0.0 }
 0x377   : > { %v1951_v62 = vpop.f32.mrf.mxu1  ;;  %2349 = vmatprep.mubr.bf16.mxu1 %v3264_v45  ;;  %v2088_v55 = vmax.f32 %v2056_v24, 0.0 }
 0x378   : > { %v2023_v1 = vmul.f32 %v3825_v47, %v1951_v62  ;;  %2290 = vmatmul.mubr.bf16.gmra.mxu0 %v2109_v60  ;;  %v2093_v10 = vmax.f32 %v2061_v0, 0.0  ;;  %v2064_v25 = vadd.f32 %v3831_v32, %v2025_v3  ;;  %v2087_v62 = vmax.f32 %v2055_v49, 0.0 }
 0x379   : > { %v3106_v4 = vpop.f32.mrf.mxu1  ;;  %2299 = vmatprep.mubr.bf16.mxu0 %v3264_v45 }
 0x37a   : > { %v2062_v6 = vadd.f32 %v3831_v32, %v2023_v1  ;;  %v2028_v7 = vmul.f32 %v3106_v4, %v3825_v47  ;;  %v2096_v34 = vmax.f32 %v2064_v25, 0.0  ;;  %v2112_v3 = vpack.c.bf16 %v2088_v55, %v2087_v62 }
 0x37b   : > { %v1964_v9 = vpop.f32.mrf.mxu1 }
 0x37c   : > { %v2094_v18 = vmax.f32 %v2062_v6, 0.0  ;;  %v2067_v21 = vadd.f32 %v3831_v32, %v2028_v7  ;;  %v2026_v12 = vmul.f32 %v3825_v47, %v1964_v9  ;;  %v2116_v48 = vpack.c.bf16 %v2096_v34, %v2095_v15 }
 0x37d   : > { %v3107_v11 = vpop.f32.mrf.mxu1 }
 0x37e   : > { %v2029_v26 = vmul.f32 %v3107_v11, %v3825_v47  ;;  %v2115_v29 = vpack.c.bf16 %v2094_v18, %v2093_v10  ;;  %v2099_v36 = vmax.f32 %v2067_v21, 0.0  ;;  %v2065_v52 = vadd.f32 %v3831_v32, %v2026_v12 }
 0x37f   : > { %v1967_v13 = vpop.f32.mrf.mxu1 }
 0x380   : > { %v2068_v31 = vadd.f32 %v3831_v32, %v2029_v26  ;;  %2300 = vmatmul.mubr.bf16.gmra.mxu0 %v2110_v28  ;;  %2350 = vmatmul.mubr.bf16.gmra.mxu1 %v2115_v29  ;;  %v2027_v38 = vmul.f32 %v3825_v47, %v1967_v13  ;;  %v2097_v63 = vmax.f32 %v2065_v52, 0.0 }
 0x381   : > { %v3110_v35 = vpop.f32.mrf.mxu1  ;;  %2309 = vmatprep.mubr.bf16.mxu0 %v3264_v45  ;;  %2359 = vmatprep.mubr.bf16.mxu1 %v3264_v45 }
 0x382   : > { %v2100_v37 = vmax.f32 %v2068_v31, 0.0  ;;  %v2032_v39 = vmul.f32 %v3110_v35, %v3825_v47  ;;  %v2066_v17 = vadd.f32 %v3831_v32, %v2027_v38 }
 0x383   : > { %v1980_v42 = vpop.f32.mrf.mxu1 }
 0x384   : > { %v2071_v16 = vadd.f32 %v3831_v32, %v2032_v39  ;;  %v2030_v19 = vmul.f32 %v3825_v47, %v1980_v42  ;;  %v2118_v43 = vpack.c.bf16 %v2100_v37, %v2099_v36  ;;  %v2098_v57 = vmax.f32 %v2066_v17, 0.0  ;;  %v2486_v36 = vld [vmem:[%s4187_s21] sm:$0x3] }
 0x385   : > { %v3111_v44 = vpop.f32.mrf.mxu1 }
 0x386   : > { %v2069_v27 = vadd.f32 %v3831_v32, %v2030_v19  ;;  %v2033_v20 = vmul.f32 %v3111_v44, %v3825_v47  ;;  %v2103_v58 = vmax.f32 %v2071_v16, 0.0  ;;  %v2117_v4 = vpack.c.bf16 %v2098_v57, %v2097_v63 }
 0x387   : > { %v1983_v50 = vpop.f32.mrf.mxu1 }
 0x388   : > { %v2072_v53 = vadd.f32 %v3831_v32, %v2033_v20  ;;  %v2031_v54 = vmul.f32 %v3825_v47, %v1983_v50  ;;  %2310 = vmatmul.mubr.bf16.gmra.mxu0 %v2111_v46  ;;  %2360 = vmatmul.mubr.bf16.gmra.mxu1 %v2116_v48  ;;  %v2101_v0 = vmax.f32 %v2069_v27, 0.0 }
 0x389   : > { %2319 = vmatprep.mubr.bf16.mxu0 %v3264_v45  ;;  %2369 = vmatprep.mubr.bf16.mxu1 %v3264_v45 }
 0x38a   : > { %v2104_v59 = vmax.f32 %v2072_v53, 0.0  ;;  %v2070_v60 = vadd.f32 %v3831_v32, %v2031_v54 }
 0x38c   : > { %v2102_v1 = vmax.f32 %v2070_v60, 0.0  ;;  %v2120_v2 = vpack.c.bf16 %v2104_v59, %v2103_v58 }
 0x38e   : > { %v2119_v47 = vpack.c.bf16 %v2102_v1, %v2101_v0 }
 0x390   : > { %2320 = vmatmul.mubr.bf16.gmra.mxu0 %v2112_v3  ;;  %2370 = vmatmul.mubr.bf16.gmra.mxu1 %v2117_v4 }
 0x391   : > { %2329 = vmatprep.mubr.bf16.mxu0 %v3264_v45  ;;  %2379 = vmatprep.mubr.bf16.mxu1 %v3264_v45 }
 0x398   : > { %2330 = vmatmul.mubr.bf16.gmra.mxu0 %v3872_v61  ;;  %2380 = vmatmul.mubr.bf16.gmra.mxu1 %v2118_v43  ;;  %v2412_v61 = vlaneseq }
 0x399   : > { %2389 = vmatprep.mubr.bf16.mxu1 %v3264_v45 }
 0x39a   : > { %v3920_v26 = vshrl.u32 %v2412_v61, 7 }
 0x39c   : > { %v2414_v30 = vsub.s32 0, %v3920_v26  ;;  %v2418_v23 = vsub.s32 1, %v3920_v26 }
 0x39e   : > { %v3933_v35 = vrot.slane %v2410_v14, %v2414_v30  ;;  %v3938_v37 = vrot.slane %v2410_v14, %v2418_v23  ;;  %v3944_v41 = vrot.slane %v2486_v36, %v2414_v30  ;;  %v3948_v12 = vrot.slane %v2486_v36, %v2418_v23 }
 0x3a0   : > { %2390 = vmatmul.mubr.bf16.gmra.mxu1 %v2119_v47 }
 0x3a1   : > { %2399 = vmatprep.mubr.bf16.mxu1 %v3264_v45 }
 0x3a8   : > { %2400 = vmatmul.mubr.bf16.gmra.mxu1 %v2120_v2 }
 0x418   : > { %v2251_v32 = vpop.f32.mrf.mxu0 }
 0x419   : > { %v2422_v15 = vmul.f32 %v3933_v35, %v2251_v32 }
 0x41a   : > { %v2253_v5 = vpop.f32.mrf.mxu0 }
 0x41b   : > { %v2423_v42 = vmul.f32 %v3938_v37, %v2253_v5  ;;  %v2498_v52 = vadd.f32 %v3944_v41, %v2422_v15 }
 0x41c   : > { %v2255_v6 = vpop.f32.mrf.mxu0 }
 0x41d   : > { %v2424_v48 = vmul.f32 %v3933_v35, %v2255_v6  ;;  %v2499_v53 = vadd.f32 %v3948_v12, %v2423_v42 }
 0x41e   : > { %v2257_v7 = vpop.f32.mrf.mxu0 }
 0x41f   : > { %v2425_v49 = vmul.f32 %v3938_v37, %v2257_v7  ;;  %v2500_v32 = vadd.f32 %v3944_v41, %v2424_v48 }
 0x420   : > { %v2261_v51 = vpop.f32.mrf.mxu0 }
 0x421   : > { %v2426_v16 = vmul.f32 %v3933_v35, %v2261_v51  ;;  %v2501_v5 = vadd.f32 %v3948_v12, %v2425_v49 }
 0x422   : > { %v2263_v8 = vpop.f32.mrf.mxu0 }
 0x423   : > { %v2427_v24 = vmul.f32 %v3938_v37, %v2263_v8  ;;  %v2502_v54 = vadd.f32 %v3944_v41, %v2426_v16 }
 0x424   : > { %v2265_v9 = vpop.f32.mrf.mxu0 }
 0x425   : > { %v2428_v44 = vmul.f32 %v3933_v35, %v2265_v9  ;;  %v2503_v59 = vadd.f32 %v3948_v12, %v2427_v24  ;;  %v2562_v51 = vmax.f32 %v2498_v52, %v2502_v54 }
 0x426   : > { %v2267_v56 = vpop.f32.mrf.mxu0 }
 0x427   : > { %v2429_v46 = vmul.f32 %v3938_v37, %v2267_v56  ;;  %v2504_v60 = vadd.f32 %v3944_v41, %v2428_v44 }
 0x428   : > { %v2271_v10 = vpop.f32.mrf.mxu0 }
 0x429   : > { %v2430_v17 = vmul.f32 %v3933_v35, %v2271_v10  ;;  %v2505_v62 = vadd.f32 %v3948_v12, %v2429_v46 }
 0x42a   : > { %v2273_v18 = vpop.f32.mrf.mxu0 }
 0x42b   : > { %v2431_v50 = vmul.f32 %v3938_v37, %v2273_v18  ;;  %v2506_v0 = vadd.f32 %v3944_v41, %v2430_v17  ;;  %v2599_v18 = vmax.f32 %v2499_v53, %v2503_v59 }
 0x42c   : > { %v2275_v21 = vpop.f32.mrf.mxu0 }
 0x42d   : > { %v2432_v55 = vmul.f32 %v3933_v35, %v2275_v21  ;;  %v2507_v6 = vadd.f32 %v3948_v12, %v2431_v50  ;;  %v2563_v21 = vmax.f32 %v2500_v32, %v2504_v60 }
 0x42e   : > { %v2277_v22 = vpop.f32.mrf.mxu0 }
 0x42f   : > { %v2433_v63 = vmul.f32 %v3938_v37, %v2277_v22  ;;  %v2508_v8 = vadd.f32 %v3944_v41, %v2432_v55  ;;  %v2600_v22 = vmax.f32 %v2501_v5, %v2505_v62  ;;  %v2601_v36 = vmax.f32 %v2599_v18, %v2507_v6 }
 0x430   : > { %v2281_v25 = vpop.f32.mrf.mxu0 }
 0x431   : > { %v2434_v1 = vmul.f32 %v3933_v35, %v2281_v25  ;;  %v2509_v25 = vadd.f32 %v3948_v12, %v2433_v63  ;;  %v2565_v16 = vmax.f32 %v2563_v21, %v2508_v8 }
 0x432   : > { %v2283_v11 = vpop.f32.mrf.mxu0 }
 0x433   : > { %v2435_v2 = vmul.f32 %v3938_v37, %v2283_v11  ;;  %v2564_v11 = vmax.f32 %v2562_v51, %v2506_v0  ;;  %v2602_v49 = vmax.f32 %v2600_v22, %v2509_v25 }
 0x434   : > { %v2285_v45 = vpop.f32.mrf.mxu0 }
 0x435   : > { %v2436_v3 = vmul.f32 %v3933_v35, %v2285_v45  ;;  %v2510_v45 = vadd.f32 %v3944_v41, %v2434_v1  ;;  %v2511_v30 = vadd.f32 %v3948_v12, %v2435_v2 }
 0x436   : > { %v2287_v28 = vpop.f32.mrf.mxu0  ;;  %v3922_v29 = vpop.f32.mrf.mxu1 }
 0x437   : > { %v2437_v7 = vmul.f32 %v3938_v37, %v2287_v28  ;;  %v2512_v28 = vadd.f32 %v3944_v41, %v2436_v3  ;;  %v2458_v15 = vmul.f32 %v3933_v35, %v3922_v29  ;;  %v2566_v52 = vmax.f32 %v2564_v11, %v2510_v45 }
 0x438   : > { %v2291_v13 = vpop.f32.mrf.mxu0  ;;  %v3926_v31 = vpop.f32.mrf.mxu1 }
 0x439   : > { %v2438_v9 = vmul.f32 %v3933_v35, %v2291_v13  ;;  %v2513_v13 = vadd.f32 %v3948_v12, %v2437_v7  ;;  %v2459_v44 = vmul.f32 %v3938_v37, %v3926_v31  ;;  %v2567_v53 = vmax.f32 %v2565_v16, %v2512_v28 }
 0x43a   : > { %v2293_v33 = vpop.f32.mrf.mxu0  ;;  %v3931_v34 = vpop.f32.mrf.mxu1 }
 0x43b   : > { %v2439_v42 = vmul.f32 %v3938_v37, %v2293_v33  ;;  %v2514_v24 = vadd.f32 %v3944_v41, %v2438_v9  ;;  %v2460_v50 = vmul.f32 %v3933_v35, %v3931_v34  ;;  %v2603_v33 = vmax.f32 %v2601_v36, %v2511_v30 }
 0x43c   : > { %v2295_v38 = vpop.f32.mrf.mxu0  ;;  %v3940_v39 = vpop.f32.mrf.mxu1  ;;  %v2604_v31 = vmax.f32 %v2602_v49, %v2513_v13  ;;  %v4019_v63 = vadd.f32 %v3948_v12, %v2459_v44 }
 0x43d   : > { %v2440_v46 = vmul.f32 %v3933_v35, %v2295_v38  ;;  %v4014_v38 = vadd.f32 %v3944_v41, %v2458_v15  ;;  %v2515_v60 = vadd.f32 %v3948_v12, %v2439_v42  ;;  %v2568_v34 = vmax.f32 %v2566_v52, %v2514_v24 }
 0x43e   : > { %v3942_v40 = vpop.f32.mrf.mxu0  ;;  %v4027_v2 = vadd.f32 %v3944_v41, %v2460_v50 }
 0x43f   : > { %v2441_v29 = vmul.f32 %v3938_v37, %v3942_v40  ;;  %v2516_v40 = vadd.f32 %v3944_v41, %v2440_v46  ;;  %v2605_v9 = vmax.f32 %v2603_v33, %v2515_v60 }
 0x440   : > { %v2301_v19 = vpop.f32.mrf.mxu0  ;;  %v3951_v43 = vpop.f32.mrf.mxu1 }
 0x441   : > { %v2442_v54 = vmul.f32 %v3933_v35, %v2301_v19  ;;  %v2461_v19 = vmul.f32 %v3938_v37, %v3940_v39  ;;  %v2517_v3 = vadd.f32 %v3948_v12, %v2441_v29  ;;  %v2569_v21 = vmax.f32 %v2567_v53, %v2516_v40 }
 0x442   : > { %v2303_v27 = vpop.f32.mrf.mxu0  ;;  %v3957_v20 = vpop.f32.mrf.mxu1 }
 0x443   : > { %v2443_v62 = vmul.f32 %v3938_v37, %v2303_v27  ;;  %v2462_v27 = vmul.f32 %v3933_v35, %v3951_v43  ;;  %v2518_v5 = vadd.f32 %v3944_v41, %v2442_v54  ;;  %v2463_v6 = vmul.f32 %v3938_v37, %v3957_v20 }
 0x444   : > { %v3966_v57 = vpop.f32.mrf.mxu0  ;;  %v3968_v58 = vpop.f32.mrf.mxu1  ;;  %v4046_v22 = vadd.f32 %v3948_v12, %v2461_v19  ;;  %v2606_v45 = vmax.f32 %v2604_v31, %v2517_v3 }
 0x445   : > { %v2444_v39 = vmul.f32 %v3933_v35, %v3966_v57  ;;  %v2519_v18 = vadd.f32 %v3948_v12, %v2443_v62  ;;  %v2464_v43 = vmul.f32 %v3933_v35, %v3968_v58  ;;  %v2538_v30 = vadd.f32 %v3944_v41, %v2462_v27 }
 0x446   : > { %v3978_v4 = vpop.f32.mrf.mxu0  ;;  %v3980_v47 = vpop.f32.mrf.mxu1  ;;  %v4055_v36 = vadd.f32 %v3948_v12, %v2463_v6 }
 0x447   : > { %v2445_v20 = vmul.f32 %v3938_v37, %v3978_v4  ;;  %v2520_v13 = vadd.f32 %v3944_v41, %v2444_v39  ;;  %v2607_v16 = vmax.f32 %v2605_v9, %v2519_v18  ;;  %v4060_v24 = vadd.f32 %v3944_v41, %v2464_v43 }
 0x448   : > { %v2311_v56 = vpop.f32.mrf.mxu0  ;;  %v3988_v10 = vpop.f32.mrf.mxu1  ;;  %v2465_v53 = vmul.f32 %v3938_v37, %v3980_v47 }
 0x449   : > { %v2446_v32 = vmul.f32 %v3933_v35, %v2311_v56  ;;  %v2466_v49 = vmul.f32 %v3933_v35, %v3988_v10  ;;  %v2571_v62 = vmax.f32 %v2569_v21, %v2520_v13 }
 0x44a   : > { %v2313_v23 = vpop.f32.mrf.mxu0  ;;  %v3994_v14 = vpop.f32.mrf.mxu1 }
 0x44b   : > { %v2447_v7 = vmul.f32 %v3938_v37, %v2313_v23  ;;  %v2522_v28 = vadd.f32 %v3944_v41, %v2446_v32  ;;  %v2570_v23 = vmax.f32 %v2568_v34, %v2518_v5  ;;  %v2467_v40 = vmul.f32 %v3938_v37, %v3994_v14 }
 0x44c   : > { %v2315_v17 = vpop.f32.mrf.mxu0  ;;  %v4004_v48 = vpop.f32.mrf.mxu1  ;;  %v2542_v5 = vadd.f32 %v3944_v41, %v2466_v49 }
 0x44d   : > { %v2448_v57 = vmul.f32 %v3933_v35, %v2315_v17  ;;  %v2523_v15 = vadd.f32 %v3948_v12, %v2447_v7  ;;  %v2521_v17 = vadd.f32 %v3948_v12, %v2445_v20  ;;  %v2572_v54 = vmax.f32 %v2570_v23, %v2522_v28 }
 0x44e   : > { %v2317_v55 = vpop.f32.mrf.mxu0  ;;  %v4011_v59 = vpop.f32.mrf.mxu1  ;;  %v2468_v21 = vmul.f32 %v3933_v35, %v4004_v48 }
 0x44f   : > { %v2524_v50 = vadd.f32 %v3944_v41, %v2448_v57  ;;  %v2449_v29 = vmul.f32 %v3938_v37, %v2317_v55  ;;  %v2609_v34 = vmax.f32 %v2607_v16, %v2523_v15  ;;  %v2608_v32 = vmax.f32 %v2606_v45, %v2521_v17 }
 0x450   : > { %v2321_v0 = vpop.f32.mrf.mxu0  ;;  %v4024_v1 = vpop.f32.mrf.mxu1  ;;  %v2469_v20 = vmul.f32 %v3938_v37, %v4011_v59 }
 0x451   : > { %v2450_v56 = vmul.f32 %v3933_v35, %v2321_v0  ;;  %v2573_v6 = vmax.f32 %v2571_v62, %v2524_v50  ;;  %v2525_v39 = vadd.f32 %v3948_v12, %v2449_v29 }
 0x452   : > { %v2323_v51 = vpop.f32.mrf.mxu0  ;;  %v4039_v8 = vpop.f32.mrf.mxu1 }
 0x453   : > { %v2451_v58 = vmul.f32 %v3938_v37, %v2323_v51  ;;  %v2526_v44 = vadd.f32 %v3944_v41, %v2450_v56  ;;  %v2543_v56 = vadd.f32 %v3948_v12, %v2467_v40  ;;  %v2610_v15 = vmax.f32 %v2608_v32, %v2525_v39 }
 0x454   : > { %v2325_v25 = vpop.f32.mrf.mxu0  ;;  %v2375_v11 = vpop.f32.mrf.mxu1  ;;  %v2471_v48 = vmul.f32 %v3938_v37, %v4039_v8 }
 0x455   : > { %v2452_v46 = vmul.f32 %v3933_v35, %v2325_v25  ;;  %v2527_v31 = vadd.f32 %v3948_v12, %v2451_v58  ;;  %v2574_v55 = vmax.f32 %v2572_v54, %v2526_v44  ;;  %v2472_v44 = vmul.f32 %v3933_v35, %v2375_v11 }
 0x456   : > { %v2327_v4 = vpop.f32.mrf.mxu0  ;;  %v2377_v42 = vpop.f32.mrf.mxu1  ;;  %v2541_v11 = vadd.f32 %v3948_v12, %v2465_v53 }
 0x457   : > { %v2453_v10 = vmul.f32 %v3938_v37, %v2327_v4  ;;  %v2528_v3 = vadd.f32 %v3944_v41, %v2452_v46  ;;  %v2611_v14 = vmax.f32 %v2609_v34, %v2527_v31  ;;  %v2470_v4 = vmul.f32 %v3933_v35, %v4024_v1 }
 0x458   : > { %v2331_v52 = vpop.f32.mrf.mxu0  ;;  %v2381_v33 = vpop.f32.mrf.mxu1  ;;  %v2473_v50 = vmul.f32 %v3938_v37, %v2377_v42 }
 0x459   : > { %v2454_v60 = vmul.f32 %v3933_v35, %v2331_v52  ;;  %v2529_v57 = vadd.f32 %v3948_v12, %v2453_v10  ;;  %v2575_v28 = vmax.f32 %v2573_v6, %v2528_v3  ;;  %v2474_v29 = vmul.f32 %v3933_v35, %v2381_v33 }
 0x45a   : > { %v2333_v19 = vpop.f32.mrf.mxu0  ;;  %v2383_v0 = vpop.f32.mrf.mxu1  ;;  %v2545_v33 = vadd.f32 %v3948_v12, %v2469_v20 }
 0x45b   : > { %v2530_v27 = vadd.f32 %v3944_v41, %v2454_v60  ;;  %v2455_v47 = vmul.f32 %v3938_v37, %v2333_v19  ;;  %v2475_v31 = vmul.f32 %v3938_v37, %v2383_v0  ;;  %v2548_v19 = vadd.f32 %v3944_v41, %v2472_v44 }
 0x45c   : > { %v2335_v7 = vpop.f32.mrf.mxu0  ;;  %v2385_v51 = vpop.f32.mrf.mxu1  ;;  %v2550_v3 = vadd.f32 %v3944_v41, %v2474_v29 }
 0x45d   : > { %v2576_v9 = vmax.f32 %v2574_v55, %v2530_v27  ;;  %v2531_v18 = vadd.f32 %v3948_v12, %v2455_v47  ;;  %v2456_v43 = vmul.f32 %v3933_v35, %v2335_v7  ;;  %v2476_v10 = vmul.f32 %v3933_v35, %v2385_v51 }
 0x45e   : > { %v2337_v25 = vpop.f32.mrf.mxu0  ;;  %v2387_v45 = vpop.f32.mrf.mxu1  ;;  %v2549_v55 = vadd.f32 %v3948_v12, %v2473_v50  ;;  %v2551_v27 = vadd.f32 %v3948_v12, %v2475_v31 }
 0x45f   : > { %v2578_v58 = vmax.f32 %v2576_v9, %v4014_v38  ;;  %v2613_v23 = vmax.f32 %v2611_v14, %v2531_v18  ;;  %v2532_v13 = vadd.f32 %v3944_v41, %v2456_v43  ;;  %v2457_v16 = vmul.f32 %v3938_v37, %v2337_v25 }
 0x460   : > { %v2391_v59 = vpop.f32.mrf.mxu1  ;;  %v2612_v38 = vmax.f32 %v2610_v15, %v2529_v57  ;;  %v2552_v7 = vadd.f32 %v3944_v41, %v2476_v10 }
 0x461   : > { %v2580_v46 = vmax.f32 %v2578_v58, %v2538_v30  ;;  %v2615_v17 = vmax.f32 %v2613_v23, %v4019_v63  ;;  %v2577_v49 = vmax.f32 %v2575_v28, %v2532_v13  ;;  %v2533_v52 = vadd.f32 %v3948_v12, %v2457_v16 }
 0x462   : > { %v2393_v1 = vpop.f32.mrf.mxu1  ;;  %v2544_v63 = vadd.f32 %v3944_v41, %v2468_v21  ;;  %v2546_v30 = vadd.f32 %v3944_v41, %v2470_v4  ;;  %v2478_v6 = vmul.f32 %v3933_v35, %v2391_v59 }
 0x463   : > { %v2582_v54 = vmax.f32 %v2580_v46, %v2542_v5  ;;  %v2617_v8 = vmax.f32 %v2615_v17, %v4055_v36  ;;  %v2579_v60 = vmax.f32 %v2577_v49, %v4027_v2  ;;  %v2614_v62 = vmax.f32 %v2612_v38, %v2533_v52 }
 0x464   : > { %v2395_v42 = vpop.f32.mrf.mxu1  ;;  %v2547_v36 = vadd.f32 %v3948_v12, %v2471_v48  ;;  %v2479_v43 = vmul.f32 %v3938_v37, %v2393_v1  ;;  %v2554_v58 = vadd.f32 %v3944_v41, %v2478_v6 }
 0x465   : > { %v2619_v34 = vmax.f32 %v2617_v8, %v2543_v56  ;;  %v2581_v40 = vmax.f32 %v2579_v60, %v4060_v24  ;;  %v2584_v2 = vmax.f32 %v2582_v54, %v2546_v30  ;;  %v2616_v53 = vmax.f32 %v2614_v62, %v4046_v22 }
 0x466   : > { %v2397_v0 = vpop.f32.mrf.mxu1  ;;  %v2477_v24 = vmul.f32 %v3938_v37, %v2387_v45  ;;  %v2480_v22 = vmul.f32 %v3933_v35, %v2395_v42  ;;  %v2555_v59 = vadd.f32 %v3948_v12, %v2479_v43 }
 0x467   : > { %v2583_v47 = vmax.f32 %v2581_v40, %v2544_v63  ;;  %v2621_v32 = vmax.f32 %v2619_v34, %v2547_v36  ;;  %v2618_v5 = vmax.f32 %v2616_v53, %v2541_v11  ;;  %v2586_v9 = vmax.f32 %v2584_v2, %v2550_v3 }
 0x468   : > { %v2401_v39 = vpop.f32.mrf.mxu1  ;;  %v2481_v56 = vmul.f32 %v3938_v37, %v2397_v0  ;;  %v2553_v45 = vadd.f32 %v3948_v12, %v2477_v24  ;;  %v2556_v13 = vadd.f32 %v3944_v41, %v2480_v22 }
 0x469   : > { %v2585_v51 = vmax.f32 %v2583_v47, %v2548_v19  ;;  %v2482_v14 = vmul.f32 %v3933_v35, %v2401_v39  ;;  %v2620_v18 = vmax.f32 %v2618_v5, %v2545_v33  ;;  %v2623_v25 = vmax.f32 %v2621_v32, %v2551_v27 }
 0x46a   : > { %v2403_v21 = vpop.f32.mrf.mxu1  ;;  %v2588_v16 = vmax.f32 %v2586_v9, %v2554_v58  ;;  %v2557_v44 = vadd.f32 %v3948_v12, %v2481_v56 }
 0x46b   : > { %v2587_v20 = vmax.f32 %v2585_v51, %v2552_v7  ;;  %v2483_v57 = vmul.f32 %v3938_v37, %v2403_v21  ;;  %v2622_v28 = vmax.f32 %v2620_v18, %v2549_v55  ;;  %v2558_v15 = vadd.f32 %v3944_v41, %v2482_v14 }
 0x46c   : > { %v2405_v23 = vpop.f32.mrf.mxu1  ;;  %v2625_v29 = vmax.f32 %v2623_v25, %v2555_v59 }
 0x46d   : > { %v2484_v4 = vmul.f32 %v3933_v35, %v2405_v23  ;;  %v2624_v48 = vmax.f32 %v2622_v28, %v2553_v45  ;;  %v2589_v17 = vmax.f32 %v2587_v20, %v2556_v13  ;;  %v2559_v49 = vadd.f32 %v3948_v12, %v2483_v57 }
 0x46e   : > { %v2407_v46 = vpop.f32.mrf.mxu1  ;;  %v2590_v1 = vmax.f32 %v2588_v16, %v2558_v15 }
 0x46f   : > { %v2560_v38 = vadd.f32 %v3944_v41, %v2484_v4  ;;  %v2485_v50 = vmul.f32 %v3938_v37, %v2407_v46  ;;  %v2626_v52 = vmax.f32 %v2624_v48, %v2557_v44  ;;  %v2627_v8 = vmax.f32 %v2625_v29, %v2559_v49 }
 0x471   : > { %v2591_v54 = vmax.f32 %v2589_v17, %v2560_v38  ;;  %v2561_v35 = vadd.f32 %v3948_v12, %v2485_v50 }
 0x473   : > { %v2592_v31 = vmax.f32 %v2590_v1, %v2591_v54  ;;  %v2628_v60 = vmax.f32 %v2626_v52, %v2561_v35 }
 0x475   : > { %v2593_v11 = vrot.slane %v2592_v31, 4  ;;  %v2629_v63 = vmax.f32 %v2627_v8, %v2628_v60 }
 0x477   : > { %v2594_v30 = vmax.f32 %v2592_v31, %v2593_v11  ;;  %v2630_v62 = vrot.slane %v2629_v63, 4 }
 0x479   : > { %v2595_v42 = vrot.slane %v2594_v30, 2  ;;  %v2631_v33 = vmax.f32 %v2629_v63, %v2630_v62 }
 0x47b   : > { %v2596_v34 = vmax.f32 %v2594_v30, %v2595_v42  ;;  %v2632_v40 = vrot.slane %v2631_v33, 2 }
 0x47d   : > { %v2597_v41 = vrot.slane %v2596_v34, 1  ;;  %v2633_v10 = vmax.f32 %v2631_v33, %v2632_v40  ;;  %2639 = sbr.rel (%p2878_p7) target bundleno = 1156 (0x484), region = 88 }
 0x47f   : > { %v2598_v37 = vmax.f32 %v2596_v34, %v2597_v41  ;;  %v2634_v36 = vrot.slane %v2633_v10, 1 }
 0x481   : > { %v2635_v19 = vmax.f32 %v2633_v10, %v2634_v36 }
 0x482   : > { %vm2642_vm3 = vcmp.lt.s32.totalorder %v2412_v61, 256  ;;  %v3265_v12 = vmov -inf  }
 0x483   : > { %2644 = vst.msk [vmem:[%s3396_s28] sm:$0x3] %vm2642_vm3, %v3265_v12 }
 0x484 PF: > { %v3266_v2 = vmov 1966171168   ;;  %v2648_v0 = vcombine.low %v2598_v37, %v2635_v19  ;;  %vm2667_vm4 = vcmp.lt.s32.totalorder %v2412_v61, 256 }
 0x485   : > { %v2650_v53 = vunpack.c.l.s4 %v3266_v2 }
 0x487   : > { %v2651_v55 = vunpack.c.0.s8 %v2650_v53 }
 0x489   : > { %v2654_v3 = vsub.s32 %v2651_v55, %v3920_v26 }
 0x48a   : > { %v2645_v47 = vld [vmem:[%s3396_s28] sm:$0x3] }
 0x48b   : > { %v2655_v27 = vrot.slane %v2648_v0, %v2654_v3 }
 0x48d   : > { %v2662_v32 = vrot.slane %v2655_v27, %v2654_v3 }
 0x48f   : > { %v2664_v5 = vmax.f32 %v2645_v47, %v2662_v32 }
 0x491   : > { %2669 = vst.msk [vmem:[%s3396_s28] sm:$0x3] %vm2667_vm4, %v2664_v5 }
 0x492 PF: > { %s4189_s23 = sld [smem:[#allocation5_spill]] }
 0x493   : > { %s4190_s21 = sld [smem:[#allocation3_spill]] }
 0x494   : > { %s4191_s22 = sld [smem:[#allocation4_spill]] }
 0x495   : > { %s4193_s24 = sld [smem:[#allocation7_spill]] }
 0x498   : > { %s26_s25 = sadd.s32 1, %s4189_s23   ;;  %s4192_s23 = sld [smem:[#allocation6_spill]] }
 0x499   : > { %p23_p8 = scmp.ge.s32.totalorder %s26_s25, 10  }
 0x49b   :  { %25 = sbr.rel (!%p23_p8) target bundleno = 4 (0x4), region = 121 }

// kernel: pn_class_forward.7
= control target key start
LH: loop header
LB: loop body
LE: loop exit
PB: predicated region body
PF: predicated region fallthrough
CT: control target
= control target key end

     0   :  { %16 = vsyncpa [#allocation3], 0  ;;  %s2240_s0 = inlined_call_operand.vmem [shape: f32[2,256], index: 0, kind: input, shape index: {}]   ;;  %s2241_s1 = inlined_call_operand.vmem [shape: bf16[256,512], index: 1, kind: input, shape index: {}]   ;;  %s2242_s2 = inlined_call_operand.vmem [shape: f32[1,512], index: 2, kind: input, shape index: {}]   ;;  %s2243_s3 = inlined_call_operand.vmem [shape: f32[1,512], index: 3, kind: input, shape index: {}]   ;;  %s2244_s4 = inlined_call_operand.vmem [shape: bf16[512,256], index: 4, kind: input, shape index: {}]   ;;  %s2245_s5 = inlined_call_operand.vmem [shape: f32[1,256], index: 5, kind: input, shape index: {}]   ;;  %s2246_s6 = inlined_call_operand.vmem [shape: f32[1,256], index: 6, kind: input, shape index: {}]   ;;  %s2247_s7 = inlined_call_operand.vmem [shape: bf16[256,10], index: 7, kind: input, shape index: {}]   ;;  %s2248_s8 = inlined_call_operand.vmem [shape: f32[1,10], index: 8, kind: input, shape index: {}]   ;;  %s2249_s9 = inlined_call_operand.hbm [shape: f32[2,10], index: 9, kind: output, shape index: {0}]   ;;  %s2250_s10 = inlined_call_operand.hbm [shape: f32[2,256], index: 10, kind: output, shape index: {1}]  }
   0x1   :  { %v1463_v0 = vld [vmem:[%s2241_s1 + $0xe4] ss:$16 sps:$4 sm:$0xff]   ;;  %v1465_v1 = vld [vmem:[%s2241_s1 + $0xec] ss:$16 sps:$4 sm:$0xff]   ;;  %v1467_v2 = vld [vmem:[%s2241_s1 + $0xe0] ss:$16 sps:$4 sm:$0xff]  }
   0x2   :  { %435 = vmatprep.subr.bf16.mxu0 %v1463_v0  ;;  %v1468_v3 = vld [vmem:[%s2241_s1 + $0xe8] ss:$16 sps:$4 sm:$0xff]   ;;  %476 = vmatprep.subr.bf16.mxu1 %v1465_v1  ;;  %v1469_v4 = vld [vmem:[%s2241_s1 + $0xc4] ss:$16 sps:$4 sm:$0xff]   ;;  %v1471_v5 = vld [vmem:[%s2241_s1 + $0xcc] ss:$16 sps:$4 sm:$0xff]  }
   0x3   :  { %436 = vmatpush1.bf16.msra.mxu0 %v1467_v2  ;;  %477 = vmatpush1.bf16.msra.mxu1 %v1468_v3  ;;  %v1473_v6 = vld [vmem:[%s2241_s1 + $0xc0] ss:$16 sps:$4 sm:$0xff]   ;;  %v1474_v7 = vld [vmem:[%s2241_s1 + $0xc8] ss:$16 sps:$4 sm:$0xff]   ;;  %v1475_v8 = vld [vmem:[%s2241_s1 + $0xa4] ss:$16 sps:$4 sm:$0xff]  }
   0x4   :  { %437 = vmatprep.subr.bf16.mxu0 %v1469_v4  ;;  %478 = vmatprep.subr.bf16.mxu1 %v1471_v5  ;;  %v1477_v9 = vld [vmem:[%s2241_s1 + $0xac] ss:$16 sps:$4 sm:$0xff]   ;;  %v1479_v10 = vld [vmem:[%s2241_s1 + $0xa0] ss:$16 sps:$4 sm:$0xff]   ;;  %v1480_v11 = vld [vmem:[%s2241_s1 + $0xa8] ss:$16 sps:$4 sm:$0xff]  }
   0x5   :  { %v1481_v12 = vld [vmem:[%s2241_s1 + $0x84] ss:$16 sps:$4 sm:$0xff]   ;;  %v1483_v13 = vld [vmem:[%s2241_s1 + $0x8c] ss:$16 sps:$4 sm:$0xff]   ;;  %v1485_v14 = vld [vmem:[%s2241_s1 + $0x80] ss:$16 sps:$4 sm:$0xff]  }
   0x6   :  { %v1486_v15 = vld [vmem:[%s2241_s1 + $0x88] ss:$16 sps:$4 sm:$0xff]   ;;  %v1487_v16 = vld [vmem:[%s2241_s1 + $0x64] ss:$16 sps:$4 sm:$0xff]   ;;  %v1489_v17 = vld [vmem:[%s2241_s1 + $0x6c] ss:$16 sps:$4 sm:$0xff]  }
   0x7   :  { %438 = vmatpush1.bf16.msra.mxu0 %v1473_v6  ;;  %479 = vmatpush1.bf16.msra.mxu1 %v1474_v7  ;;  %v1491_v18 = vld [vmem:[%s2241_s1 + $0x60] ss:$16 sps:$4 sm:$0xff]   ;;  %v1492_v19 = vld [vmem:[%s2241_s1 + $0x68] ss:$16 sps:$4 sm:$0xff]   ;;  %v1493_v20 = vld [vmem:[%s2241_s1 + $0x44] ss:$16 sps:$4 sm:$0xff]  }
   0x8   :  { %439 = vmatprep.subr.bf16.mxu0 %v1475_v8  ;;  %480 = vmatprep.subr.bf16.mxu1 %v1477_v9  ;;  %v1495_v21 = vld [vmem:[%s2241_s1 + $0x4c] ss:$16 sps:$4 sm:$0xff]   ;;  %v1497_v22 = vld [vmem:[%s2241_s1 + $0x40] ss:$16 sps:$4 sm:$0xff]   ;;  %v1498_v23 = vld [vmem:[%s2241_s1 + $0x48] ss:$16 sps:$4 sm:$0xff]  }
   0x9   :  { %v1499_v24 = vld [vmem:[%s2241_s1 + $0x24] ss:$16 sps:$4 sm:$0xff]   ;;  %v1501_v25 = vld [vmem:[%s2241_s1 + $0x2c] ss:$16 sps:$4 sm:$0xff]   ;;  %v1503_v26 = vld [vmem:[%s2241_s1 + $0x20] ss:$16 sps:$4 sm:$0xff]  }
   0xa   :  { %v1504_v27 = vld [vmem:[%s2241_s1 + $0x28] ss:$16 sps:$4 sm:$0xff]   ;;  %v1505_v28 = vld [vmem:[%s2241_s1 + $0x4] ss:$16 sps:$4 sm:$0xff]   ;;  %v1507_v29 = vld [vmem:[%s2241_s1 + $0xc] ss:$16 sps:$4 sm:$0xff]  }
   0xb   :  { %440 = vmatpush1.bf16.msra.mxu0 %v1479_v10  ;;  %481 = vmatpush1.bf16.msra.mxu1 %v1480_v11  ;;  %v1509_v30 = vld [vmem:[%s2241_s1] ss:$16 sps:$4 sm:$0xff]   ;;  %v1510_v31 = vld [vmem:[%s2241_s1 + $0x8] ss:$16 sps:$4 sm:$0xff]   ;;  %v1511_v32 = vld [vmem:[%s2241_s1 + $0x1e4] ss:$16 sps:$4 sm:$0xff]  }
   0xc   :  { %441 = vmatprep.subr.bf16.mxu0 %v1481_v12  ;;  %482 = vmatprep.subr.bf16.mxu1 %v1483_v13  ;;  %v1513_v33 = vld [vmem:[%s2241_s1 + $0x1ec] ss:$16 sps:$4 sm:$0xff]   ;;  %v1515_v34 = vld [vmem:[%s2241_s1 + $0x1e0] ss:$16 sps:$4 sm:$0xff]   ;;  %v1516_v35 = vld [vmem:[%s2241_s1 + $0x1e8] ss:$16 sps:$4 sm:$0xff]  }
   0xd   :  { %v1517_v36 = vld [vmem:[%s2241_s1 + $0x1c4] ss:$16 sps:$4 sm:$0xff]   ;;  %v1519_v37 = vld [vmem:[%s2241_s1 + $0x1cc] ss:$16 sps:$4 sm:$0xff]   ;;  %v1521_v38 = vld [vmem:[%s2241_s1 + $0x1c0] ss:$16 sps:$4 sm:$0xff]  }
   0xe   :  { %v1522_v39 = vld [vmem:[%s2241_s1 + $0x1c8] ss:$16 sps:$4 sm:$0xff]   ;;  %v1523_v40 = vld [vmem:[%s2241_s1 + $0x1a4] ss:$16 sps:$4 sm:$0xff]   ;;  %v1525_v41 = vld [vmem:[%s2241_s1 + $0x1ac] ss:$16 sps:$4 sm:$0xff]  }
   0xf   :  { %442 = vmatpush1.bf16.msra.mxu0 %v1485_v14  ;;  %483 = vmatpush1.bf16.msra.mxu1 %v1486_v15  ;;  %v1527_v42 = vld [vmem:[%s2241_s1 + $0x1a0] ss:$16 sps:$4 sm:$0xff]   ;;  %v1528_v43 = vld [vmem:[%s2241_s1 + $0x1a8] ss:$16 sps:$4 sm:$0xff]   ;;  %v1529_v44 = vld [vmem:[%s2241_s1 + $0x184] ss:$16 sps:$4 sm:$0xff]  }
  0x10   :  { %443 = vmatprep.subr.bf16.mxu0 %v1487_v16  ;;  %484 = vmatprep.subr.bf16.mxu1 %v1489_v17  ;;  %v1531_v45 = vld [vmem:[%s2241_s1 + $0x18c] ss:$16 sps:$4 sm:$0xff]   ;;  %v1292_v46 = vld.sshfl [vmem:[%s2240_s0] sm:$0x33 pattern:$0x76325410] }
  0x11   :  { %v1533_v47 = vld [vmem:[%s2241_s1 + $0x180] ss:$16 sps:$4 sm:$0xff]   ;;  %v1534_v48 = vld [vmem:[%s2241_s1 + $0x188] ss:$16 sps:$4 sm:$0xff]   ;;  %v46_v49 = vcombine.high %v1292_v46, %v1292_v46  ;;  %v1535_v50 = vld [vmem:[%s2241_s1 + $0x164] ss:$16 sps:$4 sm:$0xff]   ;;  %v49_v5 = vpack.c.bf16 %v1292_v46, %v1292_v46 }
  0x12   :  { %v1537_v51 = vld [vmem:[%s2241_s1 + $0x16c] ss:$16 sps:$4 sm:$0xff]   ;;  %v1539_v53 = vld [vmem:[%s2241_s1 + $0x160] ss:$16 sps:$4 sm:$0xff]   ;;  %v1540_v54 = vld [vmem:[%s2241_s1 + $0x168] ss:$16 sps:$4 sm:$0xff]  }
  0x13   :  { %444 = vmatpush1.bf16.msra.mxu0 %v1491_v18  ;;  %485 = vmatpush1.bf16.msra.mxu1 %v1492_v19  ;;  %v50_v52 = vpack.c.bf16 %v46_v49, %v46_v49  ;;  %v1541_v55 = vld [vmem:[%s2241_s1 + $0x144] ss:$16 sps:$4 sm:$0xff]   ;;  %v1543_v56 = vld [vmem:[%s2241_s1 + $0x14c] ss:$16 sps:$4 sm:$0xff]   ;;  %v1545_v57 = vld [vmem:[%s2241_s1 + $0x140] ss:$16 sps:$4 sm:$0xff]  }
  0x14   :  { %445 = vmatprep.subr.bf16.mxu0 %v1493_v20  ;;  %486 = vmatprep.subr.bf16.mxu1 %v1495_v21  ;;  %v1546_v58 = vld [vmem:[%s2241_s1 + $0x148] ss:$16 sps:$4 sm:$0xff]   ;;  %v1547_v59 = vld [vmem:[%s2241_s1 + $0x124] ss:$16 sps:$4 sm:$0xff]   ;;  %v1549_v60 = vld [vmem:[%s2241_s1 + $0x12c] ss:$16 sps:$4 sm:$0xff]  }
  0x15   :  { %467 = vmatprep.mubr.bf16.mxu0 %v50_v52  ;;  %508 = vmatprep.mubr.bf16.mxu1 %v50_v52  ;;  %v1551_v61 = vld [vmem:[%s2241_s1 + $0x120] ss:$16 sps:$4 sm:$0xff]   ;;  %v1552_v62 = vld [vmem:[%s2241_s1 + $0x128] ss:$16 sps:$4 sm:$0xff]   ;;  %v1553_v63 = vld [vmem:[%s2241_s1 + $0x104] ss:$16 sps:$4 sm:$0xff]  }
  0x16   :  { %v1555_v0 = vld [vmem:[%s2241_s1 + $0x10c] ss:$16 sps:$4 sm:$0xff]   ;;  %v1557_v1 = vld [vmem:[%s2241_s1 + $0x100] ss:$16 sps:$4 sm:$0xff]   ;;  %v1558_v2 = vld [vmem:[%s2241_s1 + $0x108] ss:$16 sps:$4 sm:$0xff]  }
  0x17   :  { %446 = vmatpush1.bf16.msra.mxu0 %v1497_v22  ;;  %487 = vmatpush1.bf16.msra.mxu1 %v1498_v23  ;;  %v1561_v3 = vld [vmem:[%s2244_s4 + $0x74] ss:$8 sps:$4 sm:$0xff]   ;;  %v1559_v6 = vld [vmem:[%s2244_s4 + $0x70] ss:$8 sps:$4 sm:$0xff]   ;;  %v1567_v8 = vld [vmem:[%s2244_s4 + $0x64] ss:$8 sps:$4 sm:$0xff]  }
  0x18   :  { %447 = vmatprep.subr.bf16.mxu0 %v1499_v24  ;;  %488 = vmatprep.subr.bf16.mxu1 %v1501_v25  ;;  %v1564_v4 = vld [vmem:[%s2244_s4 + $0x174] ss:$8 sps:$4 sm:$0xff]   ;;  %v1562_v7 = vld [vmem:[%s2244_s4 + $0x170] ss:$8 sps:$4 sm:$0xff]   ;;  %v1570_v9 = vld [vmem:[%s2244_s4 + $0x164] ss:$8 sps:$4 sm:$0xff]  }
  0x19   :  { %v1565_v10 = vld [vmem:[%s2244_s4 + $0x60] ss:$8 sps:$4 sm:$0xff]   ;;  %v1573_v12 = vld [vmem:[%s2244_s4 + $0x54] ss:$8 sps:$4 sm:$0xff]   ;;  %v1571_v14 = vld [vmem:[%s2244_s4 + $0x50] ss:$8 sps:$4 sm:$0xff]  }
  0x1a   :  { %v1568_v11 = vld [vmem:[%s2244_s4 + $0x160] ss:$8 sps:$4 sm:$0xff]   ;;  %v1576_v13 = vld [vmem:[%s2244_s4 + $0x154] ss:$8 sps:$4 sm:$0xff]   ;;  %v1574_v15 = vld [vmem:[%s2244_s4 + $0x150] ss:$8 sps:$4 sm:$0xff]  }
  0x1b   :  { %448 = vmatpush1.bf16.msra.mxu0 %v1503_v26  ;;  %489 = vmatpush1.bf16.msra.mxu1 %v1504_v27  ;;  %v1579_v16 = vld [vmem:[%s2244_s4 + $0x44] ss:$8 sps:$4 sm:$0xff]   ;;  %v1577_v18 = vld [vmem:[%s2244_s4 + $0x40] ss:$8 sps:$4 sm:$0xff]   ;;  %v1585_v20 = vld [vmem:[%s2244_s4 + $0x34] ss:$8 sps:$4 sm:$0xff]  }
  0x1c   :  { %449 = vmatprep.subr.bf16.mxu0 %v1505_v28  ;;  %490 = vmatprep.subr.bf16.mxu1 %v1507_v29  ;;  %v1582_v17 = vld [vmem:[%s2244_s4 + $0x144] ss:$8 sps:$4 sm:$0xff]   ;;  %v1580_v19 = vld [vmem:[%s2244_s4 + $0x140] ss:$8 sps:$4 sm:$0xff]   ;;  %v1588_v21 = vld [vmem:[%s2244_s4 + $0x134] ss:$8 sps:$4 sm:$0xff]  }
  0x1d   :  { %v1583_v22 = vld [vmem:[%s2244_s4 + $0x30] ss:$8 sps:$4 sm:$0xff]   ;;  %v1591_v24 = vld [vmem:[%s2244_s4 + $0x24] ss:$8 sps:$4 sm:$0xff]   ;;  %v1589_v26 = vld [vmem:[%s2244_s4 + $0x20] ss:$8 sps:$4 sm:$0xff]  }
  0x1e   :  { %v1586_v23 = vld [vmem:[%s2244_s4 + $0x130] ss:$8 sps:$4 sm:$0xff]   ;;  %v1594_v25 = vld [vmem:[%s2244_s4 + $0x124] ss:$8 sps:$4 sm:$0xff]   ;;  %v1592_v27 = vld [vmem:[%s2244_s4 + $0x120] ss:$8 sps:$4 sm:$0xff]  }
  0x1f   :  { %450 = vmatpush1.bf16.msra.mxu0 %v1509_v30  ;;  %491 = vmatpush1.bf16.msra.mxu1 %v1510_v31  ;;  %v1597_v28 = vld [vmem:[%s2244_s4 + $0x14] ss:$8 sps:$4 sm:$0xff]   ;;  %v1595_v30 = vld [vmem:[%s2244_s4 + $0x10] ss:$8 sps:$4 sm:$0xff]  }
  0x20   :  { %451 = vmatprep.subr.bf16.mxu0 %v1511_v32  ;;  %492 = vmatprep.subr.bf16.mxu1 %v1513_v33  ;;  %v1600_v29 = vld [vmem:[%s2244_s4 + $0x114] ss:$8 sps:$4 sm:$0xff]   ;;  %v1598_v31 = vld [vmem:[%s2244_s4 + $0x110] ss:$8 sps:$4 sm:$0xff]   ;;  %v1603_v32 = vld [vmem:[%s2244_s4 + $0x4] ss:$8 sps:$4 sm:$0xff]  }
  0x21   :  { %v1606_v33 = vld [vmem:[%s2244_s4 + $0x104] ss:$8 sps:$4 sm:$0xff]  }
  0x23   :  { %452 = vmatpush2.bf16.msra.mxu0 %v1515_v34  ;;  %493 = vmatpush2.bf16.msra.mxu1 %v1516_v35  ;;  %v1601_v34 = vld [vmem:[%s2244_s4] ss:$8 sps:$4 sm:$0xff]  }
  0x24   :  { %453 = vmatprep.subr.bf16.mxu0 %v1517_v36  ;;  %494 = vmatprep.subr.bf16.mxu1 %v1519_v37  ;;  %v1604_v35 = vld [vmem:[%s2244_s4 + $0x100] ss:$8 sps:$4 sm:$0xff]  }
  0x27   :  { %454 = vmatpush2.bf16.msra.mxu0 %v1521_v38  ;;  %495 = vmatpush2.bf16.msra.mxu1 %v1522_v39 }
  0x28   :  { %455 = vmatprep.subr.bf16.mxu0 %v1523_v40  ;;  %496 = vmatprep.subr.bf16.mxu1 %v1525_v41 }
  0x2b   :  { %456 = vmatpush2.bf16.msra.mxu0 %v1527_v42  ;;  %497 = vmatpush2.bf16.msra.mxu1 %v1528_v43 }
  0x2c   :  { %457 = vmatprep.subr.bf16.mxu0 %v1529_v44  ;;  %498 = vmatprep.subr.bf16.mxu1 %v1531_v45 }
  0x2f   :  { %458 = vmatpush2.bf16.msra.mxu0 %v1533_v47  ;;  %499 = vmatpush2.bf16.msra.mxu1 %v1534_v48 }
  0x30   :  { %459 = vmatprep.subr.bf16.mxu0 %v1535_v50  ;;  %500 = vmatprep.subr.bf16.mxu1 %v1537_v51 }
  0x33   :  { %460 = vmatpush2.bf16.msra.mxu0 %v1539_v53  ;;  %501 = vmatpush2.bf16.msra.mxu1 %v1540_v54 }
  0x34   :  { %461 = vmatprep.subr.bf16.mxu0 %v1541_v55  ;;  %502 = vmatprep.subr.bf16.mxu1 %v1543_v56 }
  0x37   :  { %462 = vmatpush2.bf16.msra.mxu0 %v1545_v57  ;;  %503 = vmatpush2.bf16.msra.mxu1 %v1546_v58 }
  0x38   :  { %463 = vmatprep.subr.bf16.mxu0 %v1547_v59  ;;  %504 = vmatprep.subr.bf16.mxu1 %v1549_v60 }
  0x3b   :  { %464 = vmatpush2.bf16.msra.mxu0 %v1551_v61  ;;  %505 = vmatpush2.bf16.msra.mxu1 %v1552_v62 }
  0x3c   :  { %465 = vmatprep.subr.bf16.mxu0 %v1553_v63  ;;  %506 = vmatprep.subr.bf16.mxu1 %v1555_v0 }
  0x3f   :  { %466 = vmatpush2.bf16.msra.mxu0 %v1557_v1  ;;  %507 = vmatpush2.bf16.msra.mxu1 %v1558_v2 }
  0x40   :  { %961 = vmatprep.subr.bf16.mxu0 %v1561_v3  ;;  %1002 = vmatprep.subr.bf16.mxu1 %v1564_v4 }
  0x42   :  { %468 = vmatmul.mubr.bf16.vlgmr.msra.gmra.mxu0 %v49_v5  ;;  %509 = vmatmul.mubr.bf16.vlgmr.msra.gmra.mxu1 %v49_v5 }
  0x43   :  { %962 = vmatpush1.bf16.msra.mxu0 %v1559_v6  ;;  %1003 = vmatpush1.bf16.msra.mxu1 %v1562_v7 }
  0x44   :  { %963 = vmatprep.subr.bf16.mxu0 %v1567_v8  ;;  %1004 = vmatprep.subr.bf16.mxu1 %v1570_v9 }
  0x47   :  { %964 = vmatpush1.bf16.msra.mxu0 %v1565_v10  ;;  %1005 = vmatpush1.bf16.msra.mxu1 %v1568_v11 }
  0x48   :  { %965 = vmatprep.subr.bf16.mxu0 %v1573_v12  ;;  %1006 = vmatprep.subr.bf16.mxu1 %v1576_v13 }
  0x4b   :  { %966 = vmatpush1.bf16.msra.mxu0 %v1571_v14  ;;  %1007 = vmatpush1.bf16.msra.mxu1 %v1574_v15 }
  0x4c   :  { %967 = vmatprep.subr.bf16.mxu0 %v1579_v16  ;;  %1008 = vmatprep.subr.bf16.mxu1 %v1582_v17 }
  0x4f   :  { %968 = vmatpush1.bf16.msra.mxu0 %v1577_v18  ;;  %1009 = vmatpush1.bf16.msra.mxu1 %v1580_v19 }
  0x50   :  { %969 = vmatprep.subr.bf16.mxu0 %v1585_v20  ;;  %1010 = vmatprep.subr.bf16.mxu1 %v1588_v21 }
  0x53   :  { %970 = vmatpush1.bf16.msra.mxu0 %v1583_v22  ;;  %1011 = vmatpush1.bf16.msra.mxu1 %v1586_v23 }
  0x54   :  { %971 = vmatprep.subr.bf16.mxu0 %v1591_v24  ;;  %1012 = vmatprep.subr.bf16.mxu1 %v1594_v25 }
  0x57   :  { %972 = vmatpush1.bf16.msra.mxu0 %v1589_v26  ;;  %1013 = vmatpush1.bf16.msra.mxu1 %v1592_v27 }
  0x58   :  { %973 = vmatprep.subr.bf16.mxu0 %v1597_v28  ;;  %1014 = vmatprep.subr.bf16.mxu1 %v1600_v29 }
  0x5b   :  { %974 = vmatpush1.bf16.msra.mxu0 %v1595_v30  ;;  %1015 = vmatpush1.bf16.msra.mxu1 %v1598_v31 }
  0x5c   :  { %17 = vsyncpa [#allocation5], 0  ;;  %975 = vmatprep.subr.bf16.mxu0 %v1603_v32  ;;  %1016 = vmatprep.subr.bf16.mxu1 %v1606_v33  ;;  %v1609_v36 = vld [vmem:[%s2244_s4 + $0xf4] ss:$8 sps:$4 sm:$0xff]   ;;  %v1607_v38 = vld [vmem:[%s2244_s4 + $0xf0] ss:$8 sps:$4 sm:$0xff]   ;;  %v519_v5 = vlaneseq }
  0x5d   :  { %v1612_v37 = vld [vmem:[%s2244_s4 + $0x1f4] ss:$8 sps:$4 sm:$0xff]   ;;  %v1610_v39 = vld [vmem:[%s2244_s4 + $0x1f0] ss:$8 sps:$4 sm:$0xff]   ;;  %v1615_v40 = vld [vmem:[%s2244_s4 + $0xe4] ss:$8 sps:$4 sm:$0xff]  }
  0x5e   :  { %v1618_v41 = vld [vmem:[%s2244_s4 + $0x1e4] ss:$8 sps:$4 sm:$0xff]   ;;  %v1613_v42 = vld [vmem:[%s2244_s4 + $0xe0] ss:$8 sps:$4 sm:$0xff]   ;;  %v1621_v44 = vld [vmem:[%s2244_s4 + $0xd4] ss:$8 sps:$4 sm:$0xff]  }
  0x5f   :  { %976 = vmatpush1.bf16.msra.mxu0 %v1601_v34  ;;  %1017 = vmatpush1.bf16.msra.mxu1 %v1604_v35  ;;  %v1616_v43 = vld [vmem:[%s2244_s4 + $0x1e0] ss:$8 sps:$4 sm:$0xff]   ;;  %v1624_v45 = vld [vmem:[%s2244_s4 + $0x1d4] ss:$8 sps:$4 sm:$0xff]   ;;  %v1619_v46 = vld [vmem:[%s2244_s4 + $0xd0] ss:$8 sps:$4 sm:$0xff]  }
  0x60   :  { %977 = vmatprep.subr.bf16.mxu0 %v1609_v36  ;;  %1018 = vmatprep.subr.bf16.mxu1 %v1612_v37  ;;  %v1622_v47 = vld [vmem:[%s2244_s4 + $0x1d0] ss:$8 sps:$4 sm:$0xff]   ;;  %v1627_v48 = vld [vmem:[%s2244_s4 + $0xc4] ss:$8 sps:$4 sm:$0xff]   ;;  %v1625_v50 = vld [vmem:[%s2244_s4 + $0xc0] ss:$8 sps:$4 sm:$0xff]  }
  0x61   :  { %v1630_v49 = vld [vmem:[%s2244_s4 + $0x1c4] ss:$8 sps:$4 sm:$0xff]   ;;  %v1628_v51 = vld [vmem:[%s2244_s4 + $0x1c0] ss:$8 sps:$4 sm:$0xff]   ;;  %v1633_v52 = vld [vmem:[%s2244_s4 + $0xb4] ss:$8 sps:$4 sm:$0xff]  }
  0x62   :  { %v1636_v53 = vld [vmem:[%s2244_s4 + $0x1b4] ss:$8 sps:$4 sm:$0xff]   ;;  %v1631_v54 = vld [vmem:[%s2244_s4 + $0xb0] ss:$8 sps:$4 sm:$0xff]   ;;  %v1639_v56 = vld [vmem:[%s2244_s4 + $0xa4] ss:$8 sps:$4 sm:$0xff]  }
  0x63   :  { %978 = vmatpush2.bf16.msra.mxu0 %v1607_v38  ;;  %1019 = vmatpush2.bf16.msra.mxu1 %v1610_v39  ;;  %v1634_v55 = vld [vmem:[%s2244_s4 + $0x1b0] ss:$8 sps:$4 sm:$0xff]   ;;  %v1642_v57 = vld [vmem:[%s2244_s4 + $0x1a4] ss:$8 sps:$4 sm:$0xff]   ;;  %v1637_v58 = vld [vmem:[%s2244_s4 + $0xa0] ss:$8 sps:$4 sm:$0xff]  }
  0x64   :  { %979 = vmatprep.subr.bf16.mxu0 %v1615_v40  ;;  %1020 = vmatprep.subr.bf16.mxu1 %v1618_v41  ;;  %v1640_v59 = vld [vmem:[%s2244_s4 + $0x1a0] ss:$8 sps:$4 sm:$0xff]   ;;  %v1645_v60 = vld [vmem:[%s2244_s4 + $0x94] ss:$8 sps:$4 sm:$0xff]   ;;  %v1643_v62 = vld [vmem:[%s2244_s4 + $0x90] ss:$8 sps:$4 sm:$0xff]  }
  0x65   :  { %v1648_v61 = vld [vmem:[%s2244_s4 + $0x194] ss:$8 sps:$4 sm:$0xff]   ;;  %v1646_v63 = vld [vmem:[%s2244_s4 + $0x190] ss:$8 sps:$4 sm:$0xff]   ;;  %v1651_v0 = vld [vmem:[%s2244_s4 + $0x84] ss:$8 sps:$4 sm:$0xff]  }
  0x66   :  { %v1654_v1 = vld [vmem:[%s2244_s4 + $0x184] ss:$8 sps:$4 sm:$0xff]   ;;  %v1649_v2 = vld [vmem:[%s2244_s4 + $0x80] ss:$8 sps:$4 sm:$0xff]   ;;  %v1655_v4 = vld [vmem:[%s2247_s7 + $0x78] sm:$0xff]   ;;  %v520_v6 = vshrl.u32 %v519_v5, 7 }
  0x67   :  { %980 = vmatpush2.bf16.msra.mxu0 %v1613_v42  ;;  %1021 = vmatpush2.bf16.msra.mxu1 %v1616_v43  ;;  %v1652_v3 = vld [vmem:[%s2244_s4 + $0x180] ss:$8 sps:$4 sm:$0xff]   ;;  %v1656_v43 = vld [vmem:[%s2247_s7 + $0x38] sm:$0xff]  }
  0x68   :  { %981 = vmatprep.subr.bf16.mxu0 %v1621_v44  ;;  %1022 = vmatprep.subr.bf16.mxu1 %v1624_v45  ;;  %v2162_v7 = vsub.s32 0, %v520_v6  ;;  %v529_v8 = vsub.s32 2, %v520_v6  ;;  %v517_v9 = vld [vmem:[%s2242_s2] sm:$0xf]  ;;  %v2167_v10 = vsub.s32 1, %v520_v6  ;;  %v533_v11 = vsub.s32 3, %v520_v6 }
  0x69   :  { %v543_v12 = vld [vmem:[%s2243_s3] sm:$0xf] }
  0x6a   :  { %v522_v13 = vrot.slane %v517_v9, %v2162_v7  ;;  %v530_v14 = vrot.slane %v517_v9, %v529_v8  ;;  %v548_v15 = vrot.slane %v543_v12, %v2162_v7  ;;  %v556_v16 = vrot.slane %v543_v12, %v529_v8 }
  0x6b   :  { %982 = vmatpush2.bf16.msra.mxu0 %v1619_v46  ;;  %1023 = vmatpush2.bf16.msra.mxu1 %v1622_v47  ;;  %v526_v17 = vrot.slane %v517_v9, %v2167_v10  ;;  %v534_v18 = vrot.slane %v517_v9, %v533_v11  ;;  %v552_v23 = vrot.slane %v543_v12, %v2167_v10  ;;  %v1657_v46 = vld [vmem:[%s2247_s7 + $0x70] sm:$0xff]  }
  0x6c   :  { %983 = vmatprep.subr.bf16.mxu0 %v1627_v48  ;;  %1024 = vmatprep.subr.bf16.mxu1 %v1630_v49  ;;  %v560_v24 = vrot.slane %v543_v12, %v533_v11  ;;  %v1658_v47 = vld [vmem:[%s2247_s7 + $0x30] sm:$0xff]   ;;  %v1659_v48 = vld [vmem:[%s2247_s7 + $0x68] sm:$0xff]  }
  0x6d   :  { %v1660_v49 = vld [vmem:[%s2247_s7 + $0x28] sm:$0xff]  }
  0x6f   :  { %984 = vmatpush2.bf16.msra.mxu0 %v1625_v50  ;;  %1025 = vmatpush2.bf16.msra.mxu1 %v1628_v51  ;;  %v1661_v50 = vld [vmem:[%s2247_s7 + $0x60] sm:$0xff]  }
  0x70   :  { %985 = vmatprep.subr.bf16.mxu0 %v1633_v52  ;;  %1026 = vmatprep.subr.bf16.mxu1 %v1636_v53  ;;  %v1662_v51 = vld [vmem:[%s2247_s7 + $0x20] sm:$0xff]   ;;  %v1663_v52 = vld [vmem:[%s2247_s7 + $0x58] sm:$0xff]  }
  0x71   :  { %v1664_v53 = vld [vmem:[%s2247_s7 + $0x18] sm:$0xff]  }
  0x73   :  { %986 = vmatpush2.bf16.msra.mxu0 %v1631_v54  ;;  %1027 = vmatpush2.bf16.msra.mxu1 %v1634_v55  ;;  %v1665_v54 = vld [vmem:[%s2247_s7 + $0x50] sm:$0xff]  }
  0x74   :  { %987 = vmatprep.subr.bf16.mxu0 %v1639_v56  ;;  %1028 = vmatprep.subr.bf16.mxu1 %v1642_v57  ;;  %v1666_v55 = vld [vmem:[%s2247_s7 + $0x10] sm:$0xff]   ;;  %v1667_v56 = vld [vmem:[%s2247_s7 + $0x48] sm:$0xff]  }
  0x75   :  { %v1668_v57 = vld [vmem:[%s2247_s7 + $0x8] sm:$0xff]  }
  0x77   :  { %988 = vmatpush2.bf16.msra.mxu0 %v1637_v58  ;;  %1029 = vmatpush2.bf16.msra.mxu1 %v1640_v59  ;;  %v1669_v58 = vld [vmem:[%s2247_s7 + $0x40] sm:$0xff]  }
  0x78   :  { %989 = vmatprep.subr.bf16.mxu0 %v1645_v60  ;;  %1030 = vmatprep.subr.bf16.mxu1 %v1648_v61  ;;  %v1670_v59 = vld [vmem:[%s2247_s7] sm:$0xff]  }
  0x79   :  { %v1043_v60 = vld [vmem:[%s2245_s5] sm:$0x3]  ;;  %s1715_s5 = smov [#allocation4]  }
  0x7a   :  { %v1057_v61 = vld [vmem:[%s2246_s6] sm:$0x3]  ;;  %s1280_s6 = sshll.u32 %s1715_s5, 4  ;;  %s1281_s6 = int_to_ptr.vmem [resolvable:$true] %s1280_s6 }
  0x7b   :  { %990 = vmatpush2.bf16.msra.mxu0 %v1643_v62  ;;  %1031 = vmatpush2.bf16.msra.mxu1 %v1646_v63  ;;  %v1048_v62 = vrot.slane %v1043_v60, %v2162_v7  ;;  %v1066_v9 = vrot.slane %v1057_v61, %v2167_v10  ;;  %s1671_s7 = scalar_lea.vmem %s1281_s6, 64  ;;  %p1676_p1 = scmp.lt.s32.totalorder %s1281_s6, %s1281_s6 }
  0x7c   :  { %991 = vmatprep.subr.bf16.mxu0 %v1651_v0  ;;  %1032 = vmatprep.subr.bf16.mxu1 %v1654_v1  ;;  %p1672_p0 = scmp.ne.s32.totalorder %s1281_s6, %s1671_s7  ;;  %p1677_p2 = scmp.lt.s32.totalorder %s1671_s7, %s1671_s7 }
  0x7e   :  { %p1678_p3 = por %p1677_p2, %p1676_p1 }
  0x7f   :  { %992 = vmatpush2.bf16.msra.mxu0 %v1649_v2  ;;  %1033 = vmatpush2.bf16.msra.mxu1 %v1652_v3  ;;  %v1062_v2 = vrot.slane %v1057_v61, %v2162_v7  ;;  %v1052_v3 = vrot.slane %v1043_v60, %v2167_v10 }
  0x80   :  { %1439 = vmatprep.subr.bf16.mxu0 %v1655_v4  ;;  %p1679_p4 = pnand %p1678_p3, %p1672_p0 }
 0x102   :  { %v469_v19 = vpop.f32.mrf.mxu0  ;;  %v510_v20 = vpop.f32.mrf.mxu1 }
 0x103   :  { %v539_v21 = vmul.f32 %v522_v13, %v469_v19  ;;  %v541_v22 = vmul.f32 %v530_v14, %v510_v20 }
 0x104   :  { %v471_v25 = vpop.f32.mrf.mxu0  ;;  %v512_v26 = vpop.f32.mrf.mxu1 }
 0x105   :  { %v565_v27 = vadd.f32 %v548_v15, %v539_v21  ;;  %v567_v28 = vadd.f32 %v556_v16, %v541_v22  ;;  %v540_v29 = vmul.f32 %v526_v17, %v471_v25  ;;  %v542_v30 = vmul.f32 %v534_v18, %v512_v26 }
 0x106   :  { %v473_v31 = vpop.f32.mrf.mxu0  ;;  %v514_v32 = vpop.f32.mrf.mxu1 }
 0x107   :  { %v566_v33 = vadd.f32 %v552_v23, %v540_v29  ;;  %v568_v34 = vadd.f32 %v560_v24, %v542_v30  ;;  %v569_v35 = vmax.f32 %v565_v27, 0.0  ;;  %v571_v36 = vmax.f32 %v567_v28, 0.0 }
 0x108   :  { %v474_v37 = vpop.f32.mrf.mxu0  ;;  %v515_v38 = vpop.f32.mrf.mxu1 }
 0x109   :  { %v570_v39 = vmax.f32 %v566_v33, 0.0  ;;  %v572_v40 = vmax.f32 %v568_v34, 0.0  ;;  %v573_v44 = vpack.c.bf16 %v569_v35, %v569_v35  ;;  %v575_v45 = vpack.c.bf16 %v571_v36, %v571_v36 }
 0x10b   :  { %v574_v41 = vpack.c.bf16 %v570_v39, %v570_v39  ;;  %v576_v42 = vpack.c.bf16 %v572_v40, %v572_v40 }
 0x10d   :  { %993 = vmatprep.mubr.bf16.mxu0 %v574_v41  ;;  %1034 = vmatprep.mubr.bf16.mxu1 %v576_v42 }
 0x10e   :  { %994 = vmatmul.mubr.bf16.vlgmr.msra.gmra.mxu0 %v573_v44  ;;  %1035 = vmatmul.mubr.bf16.vlgmr.msra.gmra.mxu1 %v575_v45 }
 0x10f   :  { %1440 = vmatpush3.bf16.msra.mxu0 %v1656_v43 }
 0x110   :  { %1441 = vmatprep.subr.bf16.mxu0 %v1657_v46 }
 0x113   :  { %1442 = vmatpush3.bf16.msra.mxu0 %v1658_v47 }
 0x114   :  { %1443 = vmatprep.subr.bf16.mxu0 %v1659_v48 }
 0x117   :  { %1444 = vmatpush3.bf16.msra.mxu0 %v1660_v49 }
 0x118   :  { %1445 = vmatprep.subr.bf16.mxu0 %v1661_v50 }
 0x11b   :  { %1446 = vmatpush3.bf16.msra.mxu0 %v1662_v51 }
 0x11c   :  { %1447 = vmatprep.subr.bf16.mxu0 %v1663_v52 }
 0x11f   :  { %1448 = vmatpush3.bf16.msra.mxu0 %v1664_v53 }
 0x120   :  { %1449 = vmatprep.subr.bf16.mxu0 %v1665_v54 }
 0x123   :  { %1450 = vmatpush3.bf16.msra.mxu0 %v1666_v55 }
 0x124   :  { %1451 = vmatprep.subr.bf16.mxu0 %v1667_v56 }
 0x127   :  { %1452 = vmatpush3.bf16.msra.mxu0 %v1668_v57 }
 0x128   :  { %1453 = vmatprep.subr.bf16.mxu0 %v1669_v58 }
 0x12b   :  { %1454 = vmatpush3.bf16.msra.mxu0 %v1670_v59 }
 0x1ce   :  { %v995_v63 = vpop.f32.mrf.mxu0  ;;  %v1036_v0 = vpop.f32.mrf.mxu1 }
 0x1cf   :  { %v1037_v1 = vadd.f32 %v1036_v0, %v995_v63 }
 0x1d0   :  { %v997_v4 = vpop.f32.mrf.mxu0  ;;  %v1038_v5 = vpop.f32.mrf.mxu1 }
 0x1d1   :  { %v1055_v6 = vmul.f32 %v1048_v62, %v1037_v1  ;;  %v1039_v8 = vadd.f32 %v1038_v5, %v997_v4 }
 0x1d2   :  { %v999_v11 = vpop.f32.mrf.mxu0  ;;  %v1040_v12 = vpop.f32.mrf.mxu1 }
 0x1d3   :  { %v1069_v13 = vadd.f32 %v1062_v2, %v1055_v6  ;;  %v1056_v14 = vmul.f32 %v1052_v3, %v1039_v8 }
 0x1d4   :  { %v1000_v15 = vpop.f32.mrf.mxu0  ;;  %v1041_v16 = vpop.f32.mrf.mxu1 }
 0x1d5   :  { %v1070_v17 = vadd.f32 %v1066_v9, %v1056_v14  ;;  %v1071_v18 = vmax.f32 %v1069_v13, 0.0 }
 0x1d7   :  { %v1072_v19 = vmax.f32 %v1070_v17, 0.0  ;;  %v1085_v7 = vpack.c.bf16 %v1071_v18, %v1071_v18 }
 0x1d9   :  { %v1086_v20 = vpack.c.bf16 %v1072_v19, %v1072_v19  ;;  %v1075_v21 = vcombine.low %v1071_v18, %v1072_v19 }
 0x1db   :  { %1254 = vmatprep.mubr.bf16.mxu0 %v1086_v20  ;;  %1421 = vst.sshfl [vmem:[#allocation4] sm:$0x33 pattern:$0x76325410] %v1075_v21 }
 0x1dc   :  { %1255 = vmatmul.mubr.bf16.vlgmr.msra.gmra.mxu0 %v1085_v7 }
 0x1dd   :  { %1682 = shalt.err (!%p1679_p4)
}
 0x1de   :  { %1283 = dma.vmem_to_hbm [thread:$0]  %s1281_s6, 64, %s2250_s10, [#allocation5]   ;;  %v1422_v23 = vld [vmem:[%s2248_s8] ss:$0 sm:$0xff]  ;;  %vm1262_vm0 = vcmask 74752  }
 0x1df   :  { %s1716_s12 = smov [#allocation2]  }
 0x1e0   :  { %s1270_s13 = sshll.u32 %s1716_s12, 4  ;;  %s1271_s13 = int_to_ptr.vmem [resolvable:$true] %s1270_s13 }
 0x1e1   :  { %s1691_s14 = scalar_lea.vmem %s1271_s13, 32  ;;  %p1696_p6 = scmp.lt.s32.totalorder %s1271_s13, %s1271_s13 }
 0x1e2   :  { %p1692_p5 = scmp.ne.s32.totalorder %s1271_s13, %s1691_s14  ;;  %p1697_p7 = scmp.lt.s32.totalorder %s1691_s14, %s1691_s14 }
 0x1e4   :  { %p1698_p8 = por %p1697_p7, %p1696_p6 }
 0x1e6   :  { %p1699_p9 = pnand %p1698_p8, %p1692_p5 }
 0x29c   :  { %v1455_v10 = vpop.f32.mrf.mxu0 }
 0x29e   :  { %v1456_v22 = vpop.f32.mrf.mxu0 }
 0x29f   :  { %v1457_v24 = vadd.f32 %v1456_v22, %v1455_v10 }
 0x2a0   :  { %v1458_v25 = vpop.f32.mrf.mxu0 }
 0x2a1   :  { %v1257_v26 = vadd.f32 %v1457_v24, %v1422_v23 }
 0x2a2   :  { %v1459_v27 = vpop.f32.mrf.mxu0 }
 0x2a3   :  { %1263 = vst.msk [vmem:[#allocation2] sm:$0x3] %vm1262_vm0, %v1257_v26 }
 0x2a4   :  { %1702 = shalt.err (!%p1699_p9)
}
 0x2a5   :  { %1273 = dma.vmem_to_hbm [thread:$0]  %s1271_s13, 32, %s2249_s9, [#allocation3]  }
 0x2a6   :  { %1711 = dma.done.wait [#allocation3], 32  }
 0x2a7   :  { %1712 = vsyncadd [#allocation3], 4294967264 }
 0x2a8   :  { %1713 = dma.done.wait [#allocation5], 64  }
 0x2a9   :  { %1714 = vsyncadd [#allocation5], 4294967232 }
 0x2aa   :  { %1290 = vsyncpa [#allocation3], 1 }
 0x2ab   :  { %1291 = vsyncpa [#allocation5], 1 }

// kernel: pn_class_forward.5
= control target key start
LH: loop header
LB: loop body
LE: loop exit
PB: predicated region body
PF: predicated region fallthrough
CT: control target
= control target key end

     0   :  { %v3456_v36 = vmov 1983009808   ;;  %v29_v38 = vlaneseq  ;;  %vm2592_vm0 = vcmask 66560   ;;  %s4560_s1 = inlined_call_operand.vmem [shape: bf16[1024,512], index: 1, kind: input, shape index: {}]   ;;  %s4561_s0 = inlined_call_operand.vmem [shape: f32[2,1024], index: 0, kind: input, shape index: {}]   ;;  %s4562_s2 = inlined_call_operand.vmem [shape: bf16[512,256], index: 2, kind: input, shape index: {}]   ;;  %s4563_s3 = inlined_call_operand.vmem [shape: bf16[256,9], index: 3, kind: input, shape index: {}]   ;;  %s4564_s4 = inlined_call_operand.vmem [shape: f32[1,9], index: 4, kind: input, shape index: {}]   ;;  %s4565_s5 = inlined_call_operand.vmem [shape: f32[2,9], index: 5, kind: output, shape index: {}]  }
   0x1   :  { %v2958_v0 = vld [vmem:[%s4560_s1 + $0xe4] ss:$16 sps:$4 sm:$0xff]   ;;  %v2962_v2 = vld [vmem:[%s4560_s1 + $0xe0] ss:$16 sps:$4 sm:$0xff]   ;;  %v27_v37 = vunpack.c.l.s4 %v3456_v36 }
   0x2   :  { %v2960_v1 = vld [vmem:[%s4560_s1 + $0x2e4] ss:$16 sps:$4 sm:$0xff]   ;;  %1611 = vmatprep.subr.bf16.mxu0 %v2958_v0  ;;  %v2963_v3 = vld [vmem:[%s4560_s1 + $0x2e0] ss:$16 sps:$4 sm:$0xff]   ;;  %v30_v43 = vshrl.u32 %v29_v38, 7 }
   0x3   :  { %1652 = vmatprep.subr.bf16.mxu1 %v2960_v1  ;;  %v2964_v4 = vld [vmem:[%s4560_s1 + $0xc4] ss:$16 sps:$4 sm:$0xff]   ;;  %1612 = vmatpush1.bf16.msra.mxu0 %v2962_v2  ;;  %v2968_v6 = vld [vmem:[%s4560_s1 + $0xc0] ss:$16 sps:$4 sm:$0xff]   ;;  %v28_v42 = vunpack.c.0.s8 %v27_v37 }
   0x4   :  { %1653 = vmatpush1.bf16.msra.mxu1 %v2963_v3  ;;  %v2966_v5 = vld [vmem:[%s4560_s1 + $0x2c4] ss:$16 sps:$4 sm:$0xff]   ;;  %1613 = vmatprep.subr.bf16.mxu0 %v2964_v4  ;;  %v2969_v7 = vld [vmem:[%s4560_s1 + $0x2c0] ss:$16 sps:$4 sm:$0xff]   ;;  %v22_v4 = vld [vmem:[%s4561_s0 + $0x8] sm:$0xff] }
   0x5   :  { %1654 = vmatprep.subr.bf16.mxu1 %v2966_v5  ;;  %v2970_v8 = vld [vmem:[%s4560_s1 + $0xa4] ss:$16 sps:$4 sm:$0xff]   ;;  %v2974_v10 = vld [vmem:[%s4560_s1 + $0xa0] ss:$16 sps:$4 sm:$0xff]   ;;  %v31_v49 = vsub.s32 %v28_v42, %v30_v43 }
   0x6   :  { %v2972_v9 = vld [vmem:[%s4560_s1 + $0x2a4] ss:$16 sps:$4 sm:$0xff]   ;;  %v2975_v11 = vld [vmem:[%s4560_s1 + $0x2a0] ss:$16 sps:$4 sm:$0xff]  }
   0x7   :  { %1614 = vmatpush1.bf16.msra.mxu0 %v2968_v6  ;;  %v2976_v12 = vld [vmem:[%s4560_s1 + $0x84] ss:$16 sps:$4 sm:$0xff]   ;;  %v2980_v14 = vld [vmem:[%s4560_s1 + $0x80] ss:$16 sps:$4 sm:$0xff]  }
   0x8   :  { %1655 = vmatpush1.bf16.msra.mxu1 %v2969_v7  ;;  %1615 = vmatprep.subr.bf16.mxu0 %v2970_v8  ;;  %v2978_v13 = vld [vmem:[%s4560_s1 + $0x284] ss:$16 sps:$4 sm:$0xff]   ;;  %v2981_v15 = vld [vmem:[%s4560_s1 + $0x280] ss:$16 sps:$4 sm:$0xff]  }
   0x9   :  { %1656 = vmatprep.subr.bf16.mxu1 %v2972_v9  ;;  %v2982_v16 = vld [vmem:[%s4560_s1 + $0x64] ss:$16 sps:$4 sm:$0xff]   ;;  %v2986_v18 = vld [vmem:[%s4560_s1 + $0x60] ss:$16 sps:$4 sm:$0xff]   ;;  %v42_v9 = vcombine.high %v22_v4, %v22_v4 }
   0xa   :  { %v2984_v17 = vld [vmem:[%s4560_s1 + $0x264] ss:$16 sps:$4 sm:$0xff]   ;;  %v2987_v19 = vld [vmem:[%s4560_s1 + $0x260] ss:$16 sps:$4 sm:$0xff]  }
   0xb   :  { %1616 = vmatpush1.bf16.msra.mxu0 %v2974_v10  ;;  %v2988_v20 = vld [vmem:[%s4560_s1 + $0x44] ss:$16 sps:$4 sm:$0xff]   ;;  %v2992_v22 = vld [vmem:[%s4560_s1 + $0x40] ss:$16 sps:$4 sm:$0xff]  }
   0xc   :  { %1657 = vmatpush1.bf16.msra.mxu1 %v2975_v11  ;;  %1617 = vmatprep.subr.bf16.mxu0 %v2976_v12  ;;  %v2990_v21 = vld [vmem:[%s4560_s1 + $0x244] ss:$16 sps:$4 sm:$0xff]   ;;  %v2993_v23 = vld [vmem:[%s4560_s1 + $0x240] ss:$16 sps:$4 sm:$0xff]  }
   0xd   :  { %1658 = vmatprep.subr.bf16.mxu1 %v2978_v13  ;;  %v2994_v24 = vld [vmem:[%s4560_s1 + $0x24] ss:$16 sps:$4 sm:$0xff]   ;;  %v2998_v26 = vld [vmem:[%s4560_s1 + $0x20] ss:$16 sps:$4 sm:$0xff]  }
   0xe   :  { %v2996_v25 = vld [vmem:[%s4560_s1 + $0x224] ss:$16 sps:$4 sm:$0xff]   ;;  %v2999_v27 = vld [vmem:[%s4560_s1 + $0x220] ss:$16 sps:$4 sm:$0xff]  }
   0xf   :  { %1618 = vmatpush1.bf16.msra.mxu0 %v2980_v14  ;;  %v3000_v28 = vld [vmem:[%s4560_s1 + $0x4] ss:$16 sps:$4 sm:$0xff]   ;;  %v3004_v30 = vld [vmem:[%s4560_s1] ss:$16 sps:$4 sm:$0xff]   ;;  %v3685_v14 = vrot.slane %v22_v4, %v31_v49 }
  0x10   :  { %1659 = vmatpush1.bf16.msra.mxu1 %v2981_v15  ;;  %1619 = vmatprep.subr.bf16.mxu0 %v2982_v16  ;;  %v3002_v29 = vld [vmem:[%s4560_s1 + $0x204] ss:$16 sps:$4 sm:$0xff]   ;;  %v3005_v31 = vld [vmem:[%s4560_s1 + $0x200] ss:$16 sps:$4 sm:$0xff]   ;;  %v3687_v15 = vrot.slane %v42_v9, %v31_v49 }
  0x11   :  { %1660 = vmatprep.subr.bf16.mxu1 %v2984_v17  ;;  %v3006_v32 = vld [vmem:[%s4560_s1 + $0x1e4] ss:$16 sps:$4 sm:$0xff]   ;;  %v3010_v34 = vld [vmem:[%s4560_s1 + $0x1e0] ss:$16 sps:$4 sm:$0xff]  }
  0x12   :  { %v3008_v33 = vld [vmem:[%s4560_s1 + $0x3e4] ss:$16 sps:$4 sm:$0xff]   ;;  %v3011_v35 = vld [vmem:[%s4560_s1 + $0x3e0] ss:$16 sps:$4 sm:$0xff]  }
  0x13   :  { %1620 = vmatpush1.bf16.msra.mxu0 %v2986_v18  ;;  %v3012_v39 = vld [vmem:[%s4560_s1 + $0x1c4] ss:$16 sps:$4 sm:$0xff]   ;;  %v3016_v41 = vld [vmem:[%s4560_s1 + $0x1c0] ss:$16 sps:$4 sm:$0xff]  }
  0x14   :  { %1661 = vmatpush1.bf16.msra.mxu1 %v2987_v19  ;;  %1621 = vmatprep.subr.bf16.mxu0 %v2988_v20  ;;  %v3014_v40 = vld [vmem:[%s4560_s1 + $0x3c4] ss:$16 sps:$4 sm:$0xff]   ;;  %v3017_v44 = vld [vmem:[%s4560_s1 + $0x3c0] ss:$16 sps:$4 sm:$0xff]   ;;  %v57_v20 = vcombine.high %v3685_v14, %v3685_v14 }
  0x15   :  { %1662 = vmatprep.subr.bf16.mxu1 %v2990_v21  ;;  %v3018_v45 = vld [vmem:[%s4560_s1 + $0x1a4] ss:$16 sps:$4 sm:$0xff]   ;;  %v3022_v47 = vld [vmem:[%s4560_s1 + $0x1a0] ss:$16 sps:$4 sm:$0xff]   ;;  %v58_v21 = vcombine.high %v3687_v15, %v3687_v15 }
  0x16   :  { %v3020_v46 = vld [vmem:[%s4560_s1 + $0x3a4] ss:$16 sps:$4 sm:$0xff]   ;;  %v3023_v48 = vld [vmem:[%s4560_s1 + $0x3a0] ss:$16 sps:$4 sm:$0xff]  }
  0x17   :  { %1622 = vmatpush1.bf16.msra.mxu0 %v2992_v22  ;;  %v3024_v50 = vld [vmem:[%s4560_s1 + $0x184] ss:$16 sps:$4 sm:$0xff]   ;;  %v3028_v55 = vld [vmem:[%s4560_s1 + $0x180] ss:$16 sps:$4 sm:$0xff]  }
  0x18   :  { %1663 = vmatpush1.bf16.msra.mxu1 %v2993_v23  ;;  %1623 = vmatprep.subr.bf16.mxu0 %v2994_v24  ;;  %v3026_v51 = vld [vmem:[%s4560_s1 + $0x384] ss:$16 sps:$4 sm:$0xff]   ;;  %v3029_v56 = vld [vmem:[%s4560_s1 + $0x380] ss:$16 sps:$4 sm:$0xff]  }
  0x19   :  { %1664 = vmatprep.subr.bf16.mxu1 %v2996_v25  ;;  %v21_v52 = vld [vmem:[%s4561_s0] sm:$0xff] }
  0x1a   :  { %v32_v53 = vrot.slane %v21_v52, %v31_v49  ;;  %v25_v54 = vcombine.high %v21_v52, %v21_v52  ;;  %v3030_v57 = vld [vmem:[%s4560_s1 + $0x164] ss:$16 sps:$4 sm:$0xff]   ;;  %v3034_v63 = vld [vmem:[%s4560_s1 + $0x160] ss:$16 sps:$4 sm:$0xff]  }
  0x1b   :  { %1624 = vmatpush1.bf16.msra.mxu0 %v2998_v26  ;;  %v3032_v58 = vld [vmem:[%s4560_s1 + $0x364] ss:$16 sps:$4 sm:$0xff]   ;;  %v3035_v0 = vld [vmem:[%s4560_s1 + $0x360] ss:$16 sps:$4 sm:$0xff]  }
  0x1c   :  { %1665 = vmatpush1.bf16.msra.mxu1 %v2999_v27  ;;  %1625 = vmatprep.subr.bf16.mxu0 %v3000_v28  ;;  %v40_v59 = vcombine.high %v32_v53, %v32_v53  ;;  %v39_v60 = vrot.slane %v25_v54, %v31_v49  ;;  %v3036_v1 = vld [vmem:[%s4560_s1 + $0x144] ss:$16 sps:$4 sm:$0xff]   ;;  %v3040_v5 = vld [vmem:[%s4560_s1 + $0x140] ss:$16 sps:$4 sm:$0xff]   ;;  %v3705_v22 = vpack.c.bf16 %v32_v53, %v32_v53 }
  0x1d   :  { %1666 = vmatprep.subr.bf16.mxu1 %v3002_v29  ;;  %v3038_v2 = vld [vmem:[%s4560_s1 + $0x344] ss:$16 sps:$4 sm:$0xff]   ;;  %v3041_v6 = vld [vmem:[%s4560_s1 + $0x340] ss:$16 sps:$4 sm:$0xff]   ;;  %v3721_v28 = vpack.c.bf16 %v57_v20, %v57_v20  ;;  %v3723_v29 = vpack.c.bf16 %v58_v21, %v58_v21 }
  0x1e   :  { %v3640_v61 = vpack.c.bf16 %v40_v59, %v40_v59  ;;  %v41_v62 = vcombine.high %v39_v60, %v39_v60  ;;  %v3042_v7 = vld [vmem:[%s4560_s1 + $0x124] ss:$16 sps:$4 sm:$0xff]   ;;  %v3046_v10 = vld [vmem:[%s4560_s1 + $0x120] ss:$16 sps:$4 sm:$0xff]   ;;  %v3707_v23 = vpack.c.bf16 %v39_v60, %v39_v60 }
  0x1f   :  { %1626 = vmatpush1.bf16.msra.mxu0 %v3004_v30  ;;  %v3044_v8 = vld [vmem:[%s4560_s1 + $0x324] ss:$16 sps:$4 sm:$0xff]   ;;  %v3047_v11 = vld [vmem:[%s4560_s1 + $0x320] ss:$16 sps:$4 sm:$0xff]  }
  0x20   :  { %1667 = vmatpush1.bf16.msra.mxu1 %v3005_v31  ;;  %1627 = vmatprep.subr.bf16.mxu0 %v3006_v32  ;;  %v3654_v3 = vpack.c.bf16 %v41_v62, %v41_v62  ;;  %v3048_v12 = vld [vmem:[%s4560_s1 + $0x104] ss:$16 sps:$4 sm:$0xff]   ;;  %v3052_v16 = vld [vmem:[%s4560_s1 + $0x100] ss:$16 sps:$4 sm:$0xff]  }
  0x21   :  { %1668 = vmatprep.subr.bf16.mxu1 %v3008_v33  ;;  %1643 = vmatprep.mubr.bf16.mxu0 %v3640_v61  ;;  %v3050_v13 = vld [vmem:[%s4560_s1 + $0x304] ss:$16 sps:$4 sm:$0xff]   ;;  %v3053_v17 = vld [vmem:[%s4560_s1 + $0x300] ss:$16 sps:$4 sm:$0xff]  }
  0x22   :  { %1684 = vmatprep.mubr.bf16.mxu1 %v3654_v3  ;;  %v3058_v18 = vld [vmem:[%s4560_s1 + $0x4e4] ss:$16 sps:$4 sm:$0xff]   ;;  %v3056_v24 = vld [vmem:[%s4560_s1 + $0x4e0] ss:$16 sps:$4 sm:$0xff]  }
  0x23   :  { %1628 = vmatpush2.bf16.msra.mxu0 %v3010_v34  ;;  %v3061_v19 = vld [vmem:[%s4560_s1 + $0x6e4] ss:$16 sps:$4 sm:$0xff]   ;;  %v3059_v25 = vld [vmem:[%s4560_s1 + $0x6e0] ss:$16 sps:$4 sm:$0xff]  }
  0x24   :  { %1669 = vmatpush2.bf16.msra.mxu1 %v3011_v35  ;;  %1629 = vmatprep.subr.bf16.mxu0 %v3012_v39  ;;  %v3064_v26 = vld [vmem:[%s4560_s1 + $0x4c4] ss:$16 sps:$4 sm:$0xff]   ;;  %v3062_v30 = vld [vmem:[%s4560_s1 + $0x4c0] ss:$16 sps:$4 sm:$0xff]  }
  0x25   :  { %1670 = vmatprep.subr.bf16.mxu1 %v3014_v40  ;;  %v3067_v27 = vld [vmem:[%s4560_s1 + $0x6c4] ss:$16 sps:$4 sm:$0xff]   ;;  %v3065_v31 = vld [vmem:[%s4560_s1 + $0x6c0] ss:$16 sps:$4 sm:$0xff]  }
  0x26   :  { %v3070_v32 = vld [vmem:[%s4560_s1 + $0x4a4] ss:$16 sps:$4 sm:$0xff]   ;;  %v3068_v34 = vld [vmem:[%s4560_s1 + $0x4a0] ss:$16 sps:$4 sm:$0xff]  }
  0x27   :  { %1630 = vmatpush2.bf16.msra.mxu0 %v3016_v41  ;;  %v3073_v33 = vld [vmem:[%s4560_s1 + $0x6a4] ss:$16 sps:$4 sm:$0xff]   ;;  %v3071_v35 = vld [vmem:[%s4560_s1 + $0x6a0] ss:$16 sps:$4 sm:$0xff]  }
  0x28   :  { %1671 = vmatpush2.bf16.msra.mxu1 %v3017_v44  ;;  %1631 = vmatprep.subr.bf16.mxu0 %v3018_v45  ;;  %v3076_v36 = vld [vmem:[%s4560_s1 + $0x484] ss:$16 sps:$4 sm:$0xff]   ;;  %v3074_v38 = vld [vmem:[%s4560_s1 + $0x480] ss:$16 sps:$4 sm:$0xff]  }
  0x29   :  { %1672 = vmatprep.subr.bf16.mxu1 %v3020_v46  ;;  %v3079_v37 = vld [vmem:[%s4560_s1 + $0x684] ss:$16 sps:$4 sm:$0xff]   ;;  %v3077_v39 = vld [vmem:[%s4560_s1 + $0x680] ss:$16 sps:$4 sm:$0xff]  }
  0x2a   :  { %v3082_v40 = vld [vmem:[%s4560_s1 + $0x464] ss:$16 sps:$4 sm:$0xff]   ;;  %v3080_v42 = vld [vmem:[%s4560_s1 + $0x460] ss:$16 sps:$4 sm:$0xff]  }
  0x2b   :  { %1632 = vmatpush2.bf16.msra.mxu0 %v3022_v47  ;;  %v3085_v41 = vld [vmem:[%s4560_s1 + $0x664] ss:$16 sps:$4 sm:$0xff]   ;;  %v3083_v43 = vld [vmem:[%s4560_s1 + $0x660] ss:$16 sps:$4 sm:$0xff]  }
  0x2c   :  { %1673 = vmatpush2.bf16.msra.mxu1 %v3023_v48  ;;  %1633 = vmatprep.subr.bf16.mxu0 %v3024_v50  ;;  %v3088_v44 = vld [vmem:[%s4560_s1 + $0x444] ss:$16 sps:$4 sm:$0xff]   ;;  %v3086_v46 = vld [vmem:[%s4560_s1 + $0x440] ss:$16 sps:$4 sm:$0xff]  }
  0x2d   :  { %1674 = vmatprep.subr.bf16.mxu1 %v3026_v51  ;;  %v3091_v45 = vld [vmem:[%s4560_s1 + $0x644] ss:$16 sps:$4 sm:$0xff]   ;;  %v3089_v47 = vld [vmem:[%s4560_s1 + $0x640] ss:$16 sps:$4 sm:$0xff]  }
  0x2e   :  { %v3094_v48 = vld [vmem:[%s4560_s1 + $0x424] ss:$16 sps:$4 sm:$0xff]   ;;  %v3092_v50 = vld [vmem:[%s4560_s1 + $0x420] ss:$16 sps:$4 sm:$0xff]  }
  0x2f   :  { %1634 = vmatpush2.bf16.msra.mxu0 %v3028_v55  ;;  %v3097_v49 = vld [vmem:[%s4560_s1 + $0x624] ss:$16 sps:$4 sm:$0xff]   ;;  %v3095_v51 = vld [vmem:[%s4560_s1 + $0x620] ss:$16 sps:$4 sm:$0xff]  }
  0x30   :  { %1675 = vmatpush2.bf16.msra.mxu1 %v3029_v56  ;;  %1635 = vmatprep.subr.bf16.mxu0 %v3030_v57  ;;  %v3100_v52 = vld [vmem:[%s4560_s1 + $0x404] ss:$16 sps:$4 sm:$0xff]   ;;  %v3098_v54 = vld [vmem:[%s4560_s1 + $0x400] ss:$16 sps:$4 sm:$0xff]  }
  0x31   :  { %1676 = vmatprep.subr.bf16.mxu1 %v3032_v58  ;;  %v3103_v53 = vld [vmem:[%s4560_s1 + $0x604] ss:$16 sps:$4 sm:$0xff]   ;;  %v3101_v55 = vld [vmem:[%s4560_s1 + $0x600] ss:$16 sps:$4 sm:$0xff]  }
  0x32   :  { %v3106_v56 = vld [vmem:[%s4560_s1 + $0x5e4] ss:$16 sps:$4 sm:$0xff]   ;;  %v3104_v58 = vld [vmem:[%s4560_s1 + $0x5e0] ss:$16 sps:$4 sm:$0xff]  }
  0x33   :  { %1636 = vmatpush2.bf16.msra.mxu0 %v3034_v63  ;;  %v3109_v57 = vld [vmem:[%s4560_s1 + $0x7e4] ss:$16 sps:$4 sm:$0xff]   ;;  %v3107_v59 = vld [vmem:[%s4560_s1 + $0x7e0] ss:$16 sps:$4 sm:$0xff]  }
  0x34   :  { %1677 = vmatpush2.bf16.msra.mxu1 %v3035_v0  ;;  %1637 = vmatprep.subr.bf16.mxu0 %v3036_v1  ;;  %v3112_v60 = vld [vmem:[%s4560_s1 + $0x5c4] ss:$16 sps:$4 sm:$0xff]   ;;  %v3110_v63 = vld [vmem:[%s4560_s1 + $0x5c0] ss:$16 sps:$4 sm:$0xff]  }
  0x35   :  { %1678 = vmatprep.subr.bf16.mxu1 %v3038_v2  ;;  %v3115_v62 = vld [vmem:[%s4560_s1 + $0x7c4] ss:$16 sps:$4 sm:$0xff]   ;;  %v3113_v0 = vld [vmem:[%s4560_s1 + $0x7c0] ss:$16 sps:$4 sm:$0xff]  }
  0x36   :  { %v3118_v1 = vld [vmem:[%s4560_s1 + $0x5a4] ss:$16 sps:$4 sm:$0xff]   ;;  %v3116_v4 = vld [vmem:[%s4560_s1 + $0x5a0] ss:$16 sps:$4 sm:$0xff]  }
  0x37   :  { %1638 = vmatpush2.bf16.msra.mxu0 %v3040_v5  ;;  %v3121_v2 = vld [vmem:[%s4560_s1 + $0x7a4] ss:$16 sps:$4 sm:$0xff]   ;;  %v3119_v5 = vld [vmem:[%s4560_s1 + $0x7a0] ss:$16 sps:$4 sm:$0xff]  }
  0x38   :  { %1679 = vmatpush2.bf16.msra.mxu1 %v3041_v6  ;;  %1639 = vmatprep.subr.bf16.mxu0 %v3042_v7  ;;  %v3124_v6 = vld [vmem:[%s4560_s1 + $0x584] ss:$16 sps:$4 sm:$0xff]   ;;  %v3125_v9 = vld [vmem:[%s4560_s1 + $0x780] ss:$16 sps:$4 sm:$0xff]  }
  0x39   :  { %1680 = vmatprep.subr.bf16.mxu1 %v3044_v8  ;;  %v3127_v7 = vld [vmem:[%s4560_s1 + $0x784] ss:$16 sps:$4 sm:$0xff]   ;;  %v3122_v8 = vld [vmem:[%s4560_s1 + $0x580] ss:$16 sps:$4 sm:$0xff]  }
  0x3a   :  { %v3142_v20 = vld [vmem:[%s4560_s1 + $0x524] ss:$16 sps:$4 sm:$0xff]  }
  0x3b   :  { %1640 = vmatpush2.bf16.msra.mxu0 %v3046_v10  ;;  %v3130_v10 = vld [vmem:[%s4560_s1 + $0x564] ss:$16 sps:$4 sm:$0xff]  }
  0x3c   :  { %1681 = vmatpush2.bf16.msra.mxu1 %v3047_v11  ;;  %1641 = vmatprep.subr.bf16.mxu0 %v3048_v12  ;;  %v3133_v11 = vld [vmem:[%s4560_s1 + $0x764] ss:$16 sps:$4 sm:$0xff]   ;;  %v3128_v12 = vld [vmem:[%s4560_s1 + $0x560] ss:$16 sps:$4 sm:$0xff]  }
  0x3d   :  { %1682 = vmatprep.subr.bf16.mxu1 %v3050_v13  ;;  %v3131_v13 = vld [vmem:[%s4560_s1 + $0x760] ss:$16 sps:$4 sm:$0xff]   ;;  %v3145_v21 = vld [vmem:[%s4560_s1 + $0x724] ss:$16 sps:$4 sm:$0xff]  }
  0x3f   :  { %1642 = vmatpush2.bf16.msra.mxu0 %v3052_v16  ;;  %v3136_v16 = vld [vmem:[%s4560_s1 + $0x544] ss:$16 sps:$4 sm:$0xff]  }
  0x40   :  { %1683 = vmatpush2.bf16.msra.mxu1 %v3053_v17  ;;  %1693 = vmatprep.subr.bf16.mxu0 %v3058_v18  ;;  %v3139_v17 = vld [vmem:[%s4560_s1 + $0x744] ss:$16 sps:$4 sm:$0xff]   ;;  %v3134_v18 = vld [vmem:[%s4560_s1 + $0x540] ss:$16 sps:$4 sm:$0xff]  }
  0x41   :  { %1734 = vmatprep.subr.bf16.mxu1 %v3061_v19  ;;  %v3137_v19 = vld [vmem:[%s4560_s1 + $0x740] ss:$16 sps:$4 sm:$0xff]  }
  0x42   :  { %1644 = vmatmul.mubr.bf16.vlgmr.msra.gmra.mxu0 %v3705_v22 }
  0x43   :  { %1685 = vmatmul.mubr.bf16.vlgmr.msra.gmra.mxu1 %v3707_v23  ;;  %1694 = vmatpush1.bf16.msra.mxu0 %v3056_v24  ;;  %v3140_v24 = vld [vmem:[%s4560_s1 + $0x520] ss:$16 sps:$4 sm:$0xff]  }
  0x44   :  { %1735 = vmatpush1.bf16.msra.mxu1 %v3059_v25  ;;  %1695 = vmatprep.subr.bf16.mxu0 %v3064_v26  ;;  %v3143_v25 = vld [vmem:[%s4560_s1 + $0x720] ss:$16 sps:$4 sm:$0xff]   ;;  %v3148_v26 = vld [vmem:[%s4560_s1 + $0x504] ss:$16 sps:$4 sm:$0xff]  }
  0x45   :  { %1736 = vmatprep.subr.bf16.mxu1 %v3067_v27  ;;  %1725 = vmatprep.mubr.bf16.mxu0 %v3721_v28  ;;  %v3151_v27 = vld [vmem:[%s4560_s1 + $0x704] ss:$16 sps:$4 sm:$0xff]  }
  0x46   :  { %1766 = vmatprep.mubr.bf16.mxu1 %v3723_v29 }
  0x47   :  { %1696 = vmatpush1.bf16.msra.mxu0 %v3062_v30  ;;  %v3146_v30 = vld [vmem:[%s4560_s1 + $0x500] ss:$16 sps:$4 sm:$0xff]  }
  0x48   :  { %1737 = vmatpush1.bf16.msra.mxu1 %v3065_v31  ;;  %1697 = vmatprep.subr.bf16.mxu0 %v3070_v32  ;;  %v3149_v31 = vld [vmem:[%s4560_s1 + $0x700] ss:$16 sps:$4 sm:$0xff]   ;;  %v3154_v32 = vld [vmem:[%s4560_s1 + $0xec] ss:$16 sps:$4 sm:$0xff]  }
  0x49   :  { %1738 = vmatprep.subr.bf16.mxu1 %v3073_v33  ;;  %v3157_v33 = vld [vmem:[%s4560_s1 + $0x2ec] ss:$16 sps:$4 sm:$0xff]  }
  0x4b   :  { %1698 = vmatpush1.bf16.msra.mxu0 %v3068_v34  ;;  %v3911_v34 = vpack.c.bf16 %v3685_v14, %v3685_v14  ;;  %v3160_v14 = vld [vmem:[%s4560_s1 + $0xcc] ss:$16 sps:$4 sm:$0xff]  }
  0x4c   :  { %1739 = vmatpush1.bf16.msra.mxu1 %v3071_v35  ;;  %1699 = vmatprep.subr.bf16.mxu0 %v3076_v36  ;;  %v3915_v35 = vpack.c.bf16 %v3687_v15, %v3687_v15  ;;  %v3152_v36 = vld [vmem:[%s4560_s1 + $0xe8] ss:$16 sps:$4 sm:$0xff]   ;;  %v3163_v15 = vld [vmem:[%s4560_s1 + $0x2cc] ss:$16 sps:$4 sm:$0xff]  }
  0x4d   :  { %1740 = vmatprep.subr.bf16.mxu1 %v3079_v37  ;;  %v3155_v37 = vld [vmem:[%s4560_s1 + $0x2e8] ss:$16 sps:$4 sm:$0xff]  }
  0x4f   :  { %1700 = vmatpush1.bf16.msra.mxu0 %v3074_v38  ;;  %v3158_v38 = vld [vmem:[%s4560_s1 + $0xc8] ss:$16 sps:$4 sm:$0xff]  }
  0x50   :  { %1741 = vmatpush1.bf16.msra.mxu1 %v3077_v39  ;;  %1701 = vmatprep.subr.bf16.mxu0 %v3082_v40  ;;  %v3161_v39 = vld [vmem:[%s4560_s1 + $0x2c8] ss:$16 sps:$4 sm:$0xff]   ;;  %v3166_v40 = vld [vmem:[%s4560_s1 + $0xac] ss:$16 sps:$4 sm:$0xff]  }
  0x51   :  { %1742 = vmatprep.subr.bf16.mxu1 %v3085_v41  ;;  %v3169_v41 = vld [vmem:[%s4560_s1 + $0x2ac] ss:$16 sps:$4 sm:$0xff]  }
  0x53   :  { %1702 = vmatpush1.bf16.msra.mxu0 %v3080_v42  ;;  %v3164_v42 = vld [vmem:[%s4560_s1 + $0xa8] ss:$16 sps:$4 sm:$0xff]  }
  0x54   :  { %1743 = vmatpush1.bf16.msra.mxu1 %v3083_v43  ;;  %1703 = vmatprep.subr.bf16.mxu0 %v3088_v44  ;;  %v3167_v43 = vld [vmem:[%s4560_s1 + $0x2a8] ss:$16 sps:$4 sm:$0xff]   ;;  %v3172_v44 = vld [vmem:[%s4560_s1 + $0x8c] ss:$16 sps:$4 sm:$0xff]  }
  0x55   :  { %1744 = vmatprep.subr.bf16.mxu1 %v3091_v45  ;;  %v3173_v45 = vld [vmem:[%s4560_s1 + $0x288] ss:$16 sps:$4 sm:$0xff]  }
  0x57   :  { %1704 = vmatpush1.bf16.msra.mxu0 %v3086_v46  ;;  %v3178_v46 = vld [vmem:[%s4560_s1 + $0x6c] ss:$16 sps:$4 sm:$0xff]  }
  0x58   :  { %1745 = vmatpush1.bf16.msra.mxu1 %v3089_v47  ;;  %1705 = vmatprep.subr.bf16.mxu0 %v3094_v48  ;;  %v3181_v47 = vld [vmem:[%s4560_s1 + $0x26c] ss:$16 sps:$4 sm:$0xff]   ;;  %v3176_v48 = vld [vmem:[%s4560_s1 + $0x68] ss:$16 sps:$4 sm:$0xff]  }
  0x59   :  { %1746 = vmatprep.subr.bf16.mxu1 %v3097_v49  ;;  %v3179_v49 = vld [vmem:[%s4560_s1 + $0x268] ss:$16 sps:$4 sm:$0xff]  }
  0x5b   :  { %1706 = vmatpush1.bf16.msra.mxu0 %v3092_v50  ;;  %v3184_v50 = vld [vmem:[%s4560_s1 + $0x4c] ss:$16 sps:$4 sm:$0xff]  }
  0x5c   :  { %1747 = vmatpush1.bf16.msra.mxu1 %v3095_v51  ;;  %1707 = vmatprep.subr.bf16.mxu0 %v3100_v52  ;;  %v3187_v51 = vld [vmem:[%s4560_s1 + $0x24c] ss:$16 sps:$4 sm:$0xff]   ;;  %v3182_v52 = vld [vmem:[%s4560_s1 + $0x48] ss:$16 sps:$4 sm:$0xff]  }
  0x5d   :  { %1748 = vmatprep.subr.bf16.mxu1 %v3103_v53  ;;  %v3185_v53 = vld [vmem:[%s4560_s1 + $0x248] ss:$16 sps:$4 sm:$0xff]  }
  0x5f   :  { %1708 = vmatpush1.bf16.msra.mxu0 %v3098_v54  ;;  %v3190_v54 = vld [vmem:[%s4560_s1 + $0x2c] ss:$16 sps:$4 sm:$0xff]  }
  0x60   :  { %1749 = vmatpush1.bf16.msra.mxu1 %v3101_v55  ;;  %1709 = vmatprep.subr.bf16.mxu0 %v3106_v56  ;;  %v3193_v55 = vld [vmem:[%s4560_s1 + $0x22c] ss:$16 sps:$4 sm:$0xff]   ;;  %v3188_v56 = vld [vmem:[%s4560_s1 + $0x28] ss:$16 sps:$4 sm:$0xff]  }
  0x61   :  { %1750 = vmatprep.subr.bf16.mxu1 %v3109_v57  ;;  %v3191_v57 = vld [vmem:[%s4560_s1 + $0x228] ss:$16 sps:$4 sm:$0xff]  }
  0x63   :  { %1710 = vmatpush2.bf16.msra.mxu0 %v3104_v58  ;;  %v3196_v58 = vld [vmem:[%s4560_s1 + $0xc] ss:$16 sps:$4 sm:$0xff]  }
  0x64   :  { %1751 = vmatpush2.bf16.msra.mxu1 %v3107_v59  ;;  %1711 = vmatprep.subr.bf16.mxu0 %v3112_v60  ;;  %v3199_v59 = vld [vmem:[%s4560_s1 + $0x20c] ss:$16 sps:$4 sm:$0xff]   ;;  %v3194_v60 = vld [vmem:[%s4560_s1 + $0x8] ss:$16 sps:$4 sm:$0xff]  }
  0x65   :  { %1752 = vmatprep.subr.bf16.mxu1 %v3115_v62  ;;  %v3197_v62 = vld [vmem:[%s4560_s1 + $0x208] ss:$16 sps:$4 sm:$0xff]  }
  0x67   :  { %1712 = vmatpush2.bf16.msra.mxu0 %v3110_v63  ;;  %v3202_v63 = vld [vmem:[%s4560_s1 + $0x1ec] ss:$16 sps:$4 sm:$0xff]  }
  0x68   :  { %1753 = vmatpush2.bf16.msra.mxu1 %v3113_v0  ;;  %1713 = vmatprep.subr.bf16.mxu0 %v3118_v1  ;;  %v3205_v0 = vld [vmem:[%s4560_s1 + $0x3ec] ss:$16 sps:$4 sm:$0xff]   ;;  %v3200_v1 = vld [vmem:[%s4560_s1 + $0x1e8] ss:$16 sps:$4 sm:$0xff]  }
  0x69   :  { %1754 = vmatprep.subr.bf16.mxu1 %v3121_v2  ;;  %v3203_v2 = vld [vmem:[%s4560_s1 + $0x3e8] ss:$16 sps:$4 sm:$0xff]  }
  0x6b   :  { %1714 = vmatpush2.bf16.msra.mxu0 %v3116_v4  ;;  %v3208_v4 = vld [vmem:[%s4560_s1 + $0x1cc] ss:$16 sps:$4 sm:$0xff]  }
  0x6c   :  { %1755 = vmatpush2.bf16.msra.mxu1 %v3119_v5  ;;  %1715 = vmatprep.subr.bf16.mxu0 %v3124_v6  ;;  %v3211_v5 = vld [vmem:[%s4560_s1 + $0x3cc] ss:$16 sps:$4 sm:$0xff]   ;;  %v3206_v6 = vld [vmem:[%s4560_s1 + $0x1c8] ss:$16 sps:$4 sm:$0xff]  }
  0x6d   :  { %1756 = vmatprep.subr.bf16.mxu1 %v3127_v7  ;;  %v3209_v7 = vld [vmem:[%s4560_s1 + $0x3c8] ss:$16 sps:$4 sm:$0xff]  }
  0x6f   :  { %1716 = vmatpush2.bf16.msra.mxu0 %v3122_v8  ;;  %v3214_v8 = vld [vmem:[%s4560_s1 + $0x1ac] ss:$16 sps:$4 sm:$0xff]  }
  0x70   :  { %1757 = vmatpush2.bf16.msra.mxu1 %v3125_v9  ;;  %1717 = vmatprep.subr.bf16.mxu0 %v3130_v10  ;;  %v3217_v9 = vld [vmem:[%s4560_s1 + $0x3ac] ss:$16 sps:$4 sm:$0xff]   ;;  %v3212_v10 = vld [vmem:[%s4560_s1 + $0x1a8] ss:$16 sps:$4 sm:$0xff]  }
  0x71   :  { %1758 = vmatprep.subr.bf16.mxu1 %v3133_v11  ;;  %v3215_v11 = vld [vmem:[%s4560_s1 + $0x3a8] ss:$16 sps:$4 sm:$0xff]  }
  0x73   :  { %1718 = vmatpush2.bf16.msra.mxu0 %v3128_v12  ;;  %v3220_v12 = vld [vmem:[%s4560_s1 + $0x18c] ss:$16 sps:$4 sm:$0xff]  }
  0x74   :  { %1759 = vmatpush2.bf16.msra.mxu1 %v3131_v13  ;;  %1719 = vmatprep.subr.bf16.mxu0 %v3136_v16  ;;  %v3223_v13 = vld [vmem:[%s4560_s1 + $0x38c] ss:$16 sps:$4 sm:$0xff]   ;;  %v3218_v16 = vld [vmem:[%s4560_s1 + $0x188] ss:$16 sps:$4 sm:$0xff]  }
  0x75   :  { %1760 = vmatprep.subr.bf16.mxu1 %v3139_v17  ;;  %v3221_v17 = vld [vmem:[%s4560_s1 + $0x388] ss:$16 sps:$4 sm:$0xff]  }
  0x77   :  { %1720 = vmatpush2.bf16.msra.mxu0 %v3134_v18  ;;  %v3226_v18 = vld [vmem:[%s4560_s1 + $0x16c] ss:$16 sps:$4 sm:$0xff]  }
  0x78   :  { %1761 = vmatpush2.bf16.msra.mxu1 %v3137_v19  ;;  %1721 = vmatprep.subr.bf16.mxu0 %v3142_v20  ;;  %v3229_v19 = vld [vmem:[%s4560_s1 + $0x36c] ss:$16 sps:$4 sm:$0xff]   ;;  %v3224_v20 = vld [vmem:[%s4560_s1 + $0x168] ss:$16 sps:$4 sm:$0xff]  }
  0x79   :  { %1762 = vmatprep.subr.bf16.mxu1 %v3145_v21  ;;  %v3227_v21 = vld [vmem:[%s4560_s1 + $0x368] ss:$16 sps:$4 sm:$0xff]  }
  0x7b   :  { %1722 = vmatpush2.bf16.msra.mxu0 %v3140_v24  ;;  %v3232_v24 = vld [vmem:[%s4560_s1 + $0x14c] ss:$16 sps:$4 sm:$0xff]  }
  0x7c   :  { %1763 = vmatpush2.bf16.msra.mxu1 %v3143_v25  ;;  %1723 = vmatprep.subr.bf16.mxu0 %v3148_v26  ;;  %v3235_v25 = vld [vmem:[%s4560_s1 + $0x34c] ss:$16 sps:$4 sm:$0xff]   ;;  %v3230_v26 = vld [vmem:[%s4560_s1 + $0x148] ss:$16 sps:$4 sm:$0xff]  }
  0x7d   :  { %1764 = vmatprep.subr.bf16.mxu1 %v3151_v27  ;;  %v3233_v27 = vld [vmem:[%s4560_s1 + $0x348] ss:$16 sps:$4 sm:$0xff]  }
  0x7f   :  { %1724 = vmatpush2.bf16.msra.mxu0 %v3146_v30  ;;  %v3238_v30 = vld [vmem:[%s4560_s1 + $0x12c] ss:$16 sps:$4 sm:$0xff]  }
  0x80   :  { %1765 = vmatpush2.bf16.msra.mxu1 %v3149_v31  ;;  %1775 = vmatprep.subr.bf16.mxu0 %v3154_v32  ;;  %v3241_v31 = vld [vmem:[%s4560_s1 + $0x32c] ss:$16 sps:$4 sm:$0xff]   ;;  %v3236_v32 = vld [vmem:[%s4560_s1 + $0x128] ss:$16 sps:$4 sm:$0xff]  }
  0x81   :  { %1816 = vmatprep.subr.bf16.mxu1 %v3157_v33  ;;  %v3239_v33 = vld [vmem:[%s4560_s1 + $0x328] ss:$16 sps:$4 sm:$0xff]  }
  0x82   :  { %1726 = vmatmul.mubr.bf16.vlgmr.msra.gmra.mxu0 %v3911_v34 }
  0x83   :  { %1767 = vmatmul.mubr.bf16.vlgmr.msra.gmra.mxu1 %v3915_v35  ;;  %1776 = vmatpush1.bf16.msra.mxu0 %v3152_v36  ;;  %v3244_v36 = vld [vmem:[%s4560_s1 + $0x10c] ss:$16 sps:$4 sm:$0xff]  }
  0x84   :  { %1817 = vmatpush1.bf16.msra.mxu1 %v3155_v37  ;;  %1777 = vmatprep.subr.bf16.mxu0 %v3160_v14  ;;  %v3247_v37 = vld [vmem:[%s4560_s1 + $0x30c] ss:$16 sps:$4 sm:$0xff]   ;;  %v3242_v14 = vld [vmem:[%s4560_s1 + $0x108] ss:$16 sps:$4 sm:$0xff]  }
  0x85   :  { %1818 = vmatprep.subr.bf16.mxu1 %v3163_v15  ;;  %1807 = vmatprep.mubr.bf16.mxu0 %v3640_v61  ;;  %v3175_v61 = vld [vmem:[%s4560_s1 + $0x28c] ss:$16 sps:$4 sm:$0xff]   ;;  %v3245_v15 = vld [vmem:[%s4560_s1 + $0x308] ss:$16 sps:$4 sm:$0xff]  }
  0x86   :  { %1848 = vmatprep.mubr.bf16.mxu1 %v3654_v3  ;;  %v3170_v3 = vld [vmem:[%s4560_s1 + $0x88] ss:$16 sps:$4 sm:$0xff]  }
  0x87   :  { %1778 = vmatpush1.bf16.msra.mxu0 %v3158_v38  ;;  %v3250_v38 = vld [vmem:[%s4560_s1 + $0x4ec] ss:$16 sps:$4 sm:$0xff]  }
  0x88   :  { %1819 = vmatpush1.bf16.msra.mxu1 %v3161_v39  ;;  %1779 = vmatprep.subr.bf16.mxu0 %v3166_v40  ;;  %v3253_v39 = vld [vmem:[%s4560_s1 + $0x6ec] ss:$16 sps:$4 sm:$0xff]   ;;  %v3248_v40 = vld [vmem:[%s4560_s1 + $0x4e8] ss:$16 sps:$4 sm:$0xff]  }
  0x89   :  { %1820 = vmatprep.subr.bf16.mxu1 %v3169_v41  ;;  %v3251_v41 = vld [vmem:[%s4560_s1 + $0x6e8] ss:$16 sps:$4 sm:$0xff]  }
  0x8b   :  { %1780 = vmatpush1.bf16.msra.mxu0 %v3164_v42  ;;  %v3256_v42 = vld [vmem:[%s4560_s1 + $0x4cc] ss:$16 sps:$4 sm:$0xff]  }
  0x8c   :  { %1821 = vmatpush1.bf16.msra.mxu1 %v3167_v43  ;;  %1781 = vmatprep.subr.bf16.mxu0 %v3172_v44  ;;  %v3259_v43 = vld [vmem:[%s4560_s1 + $0x6cc] ss:$16 sps:$4 sm:$0xff]   ;;  %v3254_v44 = vld [vmem:[%s4560_s1 + $0x4c8] ss:$16 sps:$4 sm:$0xff]  }
  0x8d   :  { %1822 = vmatprep.subr.bf16.mxu1 %v3175_v61  ;;  %v3257_v61 = vld [vmem:[%s4560_s1 + $0x6c8] ss:$16 sps:$4 sm:$0xff]  }
  0x8f   :  { %1782 = vmatpush1.bf16.msra.mxu0 %v3170_v3  ;;  %v3262_v3 = vld [vmem:[%s4560_s1 + $0x4ac] ss:$16 sps:$4 sm:$0xff]  }
  0x90   :  { %1823 = vmatpush1.bf16.msra.mxu1 %v3173_v45  ;;  %1783 = vmatprep.subr.bf16.mxu0 %v3178_v46  ;;  %v3265_v45 = vld [vmem:[%s4560_s1 + $0x6ac] ss:$16 sps:$4 sm:$0xff]   ;;  %v3260_v46 = vld [vmem:[%s4560_s1 + $0x4a8] ss:$16 sps:$4 sm:$0xff]  }
  0x91   :  { %1824 = vmatprep.subr.bf16.mxu1 %v3181_v47  ;;  %v3271_v47 = vld [vmem:[%s4560_s1 + $0x68c] ss:$16 sps:$4 sm:$0xff]  }
  0x93   :  { %1784 = vmatpush1.bf16.msra.mxu0 %v3176_v48  ;;  %v3274_v48 = vld [vmem:[%s4560_s1 + $0x46c] ss:$16 sps:$4 sm:$0xff]  }
  0x94   :  { %1825 = vmatpush1.bf16.msra.mxu1 %v3179_v49  ;;  %1785 = vmatprep.subr.bf16.mxu0 %v3184_v50  ;;  %v3277_v49 = vld [vmem:[%s4560_s1 + $0x66c] ss:$16 sps:$4 sm:$0xff]   ;;  %v3272_v50 = vld [vmem:[%s4560_s1 + $0x468] ss:$16 sps:$4 sm:$0xff]  }
  0x95   :  { %1826 = vmatprep.subr.bf16.mxu1 %v3187_v51  ;;  %v3275_v51 = vld [vmem:[%s4560_s1 + $0x668] ss:$16 sps:$4 sm:$0xff]  }
  0x97   :  { %1786 = vmatpush1.bf16.msra.mxu0 %v3182_v52  ;;  %v3280_v52 = vld [vmem:[%s4560_s1 + $0x44c] ss:$16 sps:$4 sm:$0xff]  }
  0x98   :  { %1827 = vmatpush1.bf16.msra.mxu1 %v3185_v53  ;;  %1787 = vmatprep.subr.bf16.mxu0 %v3190_v54  ;;  %v3283_v53 = vld [vmem:[%s4560_s1 + $0x64c] ss:$16 sps:$4 sm:$0xff]   ;;  %v3278_v54 = vld [vmem:[%s4560_s1 + $0x448] ss:$16 sps:$4 sm:$0xff]  }
  0x99   :  { %1828 = vmatprep.subr.bf16.mxu1 %v3193_v55  ;;  %v3281_v55 = vld [vmem:[%s4560_s1 + $0x648] ss:$16 sps:$4 sm:$0xff]  }
  0x9b   :  { %1788 = vmatpush1.bf16.msra.mxu0 %v3188_v56  ;;  %v3286_v56 = vld [vmem:[%s4560_s1 + $0x42c] ss:$16 sps:$4 sm:$0xff]  }
  0x9c   :  { %1829 = vmatpush1.bf16.msra.mxu1 %v3191_v57  ;;  %1789 = vmatprep.subr.bf16.mxu0 %v3196_v58  ;;  %v3289_v57 = vld [vmem:[%s4560_s1 + $0x62c] ss:$16 sps:$4 sm:$0xff]   ;;  %v3284_v58 = vld [vmem:[%s4560_s1 + $0x428] ss:$16 sps:$4 sm:$0xff]  }
  0x9d   :  { %1830 = vmatprep.subr.bf16.mxu1 %v3199_v59  ;;  %v3287_v59 = vld [vmem:[%s4560_s1 + $0x628] ss:$16 sps:$4 sm:$0xff]  }
  0x9f   :  { %1790 = vmatpush1.bf16.msra.mxu0 %v3194_v60  ;;  %v3292_v60 = vld [vmem:[%s4560_s1 + $0x40c] ss:$16 sps:$4 sm:$0xff]  }
  0xa0   :  { %1831 = vmatpush1.bf16.msra.mxu1 %v3197_v62  ;;  %1791 = vmatprep.subr.bf16.mxu0 %v3202_v63  ;;  %v3295_v62 = vld [vmem:[%s4560_s1 + $0x60c] ss:$16 sps:$4 sm:$0xff]   ;;  %v3290_v63 = vld [vmem:[%s4560_s1 + $0x408] ss:$16 sps:$4 sm:$0xff]  }
  0xa1   :  { %1832 = vmatprep.subr.bf16.mxu1 %v3205_v0  ;;  %v3293_v0 = vld [vmem:[%s4560_s1 + $0x608] ss:$16 sps:$4 sm:$0xff]  }
  0xa3   :  { %1792 = vmatpush2.bf16.msra.mxu0 %v3200_v1  ;;  %v3298_v1 = vld [vmem:[%s4560_s1 + $0x5ec] ss:$16 sps:$4 sm:$0xff]  }
  0xa4   :  { %1833 = vmatpush2.bf16.msra.mxu1 %v3203_v2  ;;  %1793 = vmatprep.subr.bf16.mxu0 %v3208_v4  ;;  %v3301_v2 = vld [vmem:[%s4560_s1 + $0x7ec] ss:$16 sps:$4 sm:$0xff]   ;;  %v3296_v4 = vld [vmem:[%s4560_s1 + $0x5e8] ss:$16 sps:$4 sm:$0xff]  }
  0xa5   :  { %1834 = vmatprep.subr.bf16.mxu1 %v3211_v5  ;;  %v3299_v5 = vld [vmem:[%s4560_s1 + $0x7e8] ss:$16 sps:$4 sm:$0xff]  }
  0xa7   :  { %1794 = vmatpush2.bf16.msra.mxu0 %v3206_v6  ;;  %v3304_v6 = vld [vmem:[%s4560_s1 + $0x5cc] ss:$16 sps:$4 sm:$0xff]  }
  0xa8   :  { %1835 = vmatpush2.bf16.msra.mxu1 %v3209_v7  ;;  %1795 = vmatprep.subr.bf16.mxu0 %v3214_v8  ;;  %v3307_v7 = vld [vmem:[%s4560_s1 + $0x7cc] ss:$16 sps:$4 sm:$0xff]   ;;  %v3302_v8 = vld [vmem:[%s4560_s1 + $0x5c8] ss:$16 sps:$4 sm:$0xff]  }
  0xa9   :  { %1836 = vmatprep.subr.bf16.mxu1 %v3217_v9  ;;  %v3305_v9 = vld [vmem:[%s4560_s1 + $0x7c8] ss:$16 sps:$4 sm:$0xff]  }
  0xab   :  { %1796 = vmatpush2.bf16.msra.mxu0 %v3212_v10  ;;  %v3310_v10 = vld [vmem:[%s4560_s1 + $0x5ac] ss:$16 sps:$4 sm:$0xff]  }
  0xac   :  { %1837 = vmatpush2.bf16.msra.mxu1 %v3215_v11  ;;  %1797 = vmatprep.subr.bf16.mxu0 %v3220_v12  ;;  %v3313_v11 = vld [vmem:[%s4560_s1 + $0x7ac] ss:$16 sps:$4 sm:$0xff]   ;;  %v3308_v12 = vld [vmem:[%s4560_s1 + $0x5a8] ss:$16 sps:$4 sm:$0xff]  }
  0xad   :  { %1838 = vmatprep.subr.bf16.mxu1 %v3223_v13  ;;  %v3311_v13 = vld [vmem:[%s4560_s1 + $0x7a8] ss:$16 sps:$4 sm:$0xff]  }
  0xaf   :  { %1798 = vmatpush2.bf16.msra.mxu0 %v3218_v16  ;;  %v3316_v16 = vld [vmem:[%s4560_s1 + $0x58c] ss:$16 sps:$4 sm:$0xff]  }
  0xb0   :  { %1839 = vmatpush2.bf16.msra.mxu1 %v3221_v17  ;;  %1799 = vmatprep.subr.bf16.mxu0 %v3226_v18  ;;  %v3319_v17 = vld [vmem:[%s4560_s1 + $0x78c] ss:$16 sps:$4 sm:$0xff]   ;;  %v3314_v18 = vld [vmem:[%s4560_s1 + $0x588] ss:$16 sps:$4 sm:$0xff]  }
  0xb1   :  { %1840 = vmatprep.subr.bf16.mxu1 %v3229_v19  ;;  %v3317_v19 = vld [vmem:[%s4560_s1 + $0x788] ss:$16 sps:$4 sm:$0xff]  }
  0xb3   :  { %1800 = vmatpush2.bf16.msra.mxu0 %v3224_v20  ;;  %v3322_v20 = vld [vmem:[%s4560_s1 + $0x56c] ss:$16 sps:$4 sm:$0xff]  }
  0xb4   :  { %1841 = vmatpush2.bf16.msra.mxu1 %v3227_v21  ;;  %1801 = vmatprep.subr.bf16.mxu0 %v3232_v24  ;;  %v3325_v21 = vld [vmem:[%s4560_s1 + $0x76c] ss:$16 sps:$4 sm:$0xff]   ;;  %v3320_v24 = vld [vmem:[%s4560_s1 + $0x568] ss:$16 sps:$4 sm:$0xff]  }
  0xb5   :  { %1842 = vmatprep.subr.bf16.mxu1 %v3235_v25  ;;  %v3323_v25 = vld [vmem:[%s4560_s1 + $0x768] ss:$16 sps:$4 sm:$0xff]  }
  0xb7   :  { %1802 = vmatpush2.bf16.msra.mxu0 %v3230_v26  ;;  %v3328_v26 = vld [vmem:[%s4560_s1 + $0x54c] ss:$16 sps:$4 sm:$0xff]  }
  0xb8   :  { %1843 = vmatpush2.bf16.msra.mxu1 %v3233_v27  ;;  %1803 = vmatprep.subr.bf16.mxu0 %v3238_v30  ;;  %v3331_v27 = vld [vmem:[%s4560_s1 + $0x74c] ss:$16 sps:$4 sm:$0xff]   ;;  %v3326_v30 = vld [vmem:[%s4560_s1 + $0x548] ss:$16 sps:$4 sm:$0xff]  }
  0xb9   :  { %1844 = vmatprep.subr.bf16.mxu1 %v3241_v31  ;;  %v3329_v31 = vld [vmem:[%s4560_s1 + $0x748] ss:$16 sps:$4 sm:$0xff]  }
  0xbb   :  { %1804 = vmatpush2.bf16.msra.mxu0 %v3236_v32  ;;  %v3334_v32 = vld [vmem:[%s4560_s1 + $0x52c] ss:$16 sps:$4 sm:$0xff]  }
  0xbc   :  { %1845 = vmatpush2.bf16.msra.mxu1 %v3239_v33  ;;  %1805 = vmatprep.subr.bf16.mxu0 %v3244_v36  ;;  %v3337_v33 = vld [vmem:[%s4560_s1 + $0x72c] ss:$16 sps:$4 sm:$0xff]   ;;  %v3332_v36 = vld [vmem:[%s4560_s1 + $0x528] ss:$16 sps:$4 sm:$0xff]  }
  0xbd   :  { %1846 = vmatprep.subr.bf16.mxu1 %v3247_v37  ;;  %v3335_v37 = vld [vmem:[%s4560_s1 + $0x728] ss:$16 sps:$4 sm:$0xff]  }
  0xbf   :  { %1806 = vmatpush2.bf16.msra.mxu0 %v3242_v14  ;;  %v3340_v14 = vld [vmem:[%s4560_s1 + $0x50c] ss:$16 sps:$4 sm:$0xff]  }
  0xc0   :  { %1847 = vmatpush2.bf16.msra.mxu1 %v3245_v15  ;;  %1857 = vmatprep.subr.bf16.mxu0 %v3250_v38  ;;  %v3343_v15 = vld [vmem:[%s4560_s1 + $0x70c] ss:$16 sps:$4 sm:$0xff]   ;;  %v3338_v38 = vld [vmem:[%s4560_s1 + $0x508] ss:$16 sps:$4 sm:$0xff]  }
  0xc1   :  { %1898 = vmatprep.subr.bf16.mxu1 %v3253_v39  ;;  %v3341_v39 = vld [vmem:[%s4560_s1 + $0x708] ss:$16 sps:$4 sm:$0xff]  }
  0xc2   :  { %1808 = vmatmul.mubr.bf16.vlgmr.msra.gmra.mxu0 %v3705_v22  ;;  %v3263_v22 = vld [vmem:[%s4560_s1 + $0x6a8] ss:$16 sps:$4 sm:$0xff]  }
  0xc3   :  { %1849 = vmatmul.mubr.bf16.vlgmr.msra.gmra.mxu1 %v3707_v23  ;;  %1858 = vmatpush1.bf16.msra.mxu0 %v3248_v40  ;;  %v3268_v23 = vld [vmem:[%s4560_s1 + $0x48c] ss:$16 sps:$4 sm:$0xff]  }
  0xc4   :  { %1899 = vmatpush1.bf16.msra.mxu1 %v3251_v41  ;;  %1859 = vmatprep.subr.bf16.mxu0 %v3256_v42  ;;  %v3346_v40 = vld [vmem:[%s4562_s2 + $0x74] ss:$8 sps:$4 sm:$0xff]   ;;  %v3344_v41 = vld [vmem:[%s4562_s2 + $0x70] ss:$8 sps:$4 sm:$0xff]   ;;  %v3349_v42 = vld [vmem:[%s4562_s2 + $0x64] ss:$8 sps:$4 sm:$0xff]  }
  0xc5   :  { %1900 = vmatprep.subr.bf16.mxu1 %v3259_v43  ;;  %1889 = vmatprep.mubr.bf16.mxu0 %v3721_v28  ;;  %v3266_v28 = vld [vmem:[%s4560_s1 + $0x488] ss:$16 sps:$4 sm:$0xff]  }
  0xc6   :  { %1930 = vmatprep.mubr.bf16.mxu1 %v3723_v29  ;;  %v3269_v29 = vld [vmem:[%s4560_s1 + $0x688] ss:$16 sps:$4 sm:$0xff]  }
  0xc7   :  { %1860 = vmatpush1.bf16.msra.mxu0 %v3254_v44 }
  0xc8   :  { %1901 = vmatpush1.bf16.msra.mxu1 %v3257_v61  ;;  %1861 = vmatprep.subr.bf16.mxu0 %v3262_v3  ;;  %v3347_v3 = vld [vmem:[%s4562_s2 + $0x60] ss:$8 sps:$4 sm:$0xff]  }
  0xc9   :  { %1902 = vmatprep.subr.bf16.mxu1 %v3265_v45 }
  0xcb   :  { %1862 = vmatpush1.bf16.msra.mxu0 %v3260_v46 }
  0xcc   :  { %1903 = vmatpush1.bf16.msra.mxu1 %v3263_v22  ;;  %1863 = vmatprep.subr.bf16.mxu0 %v3268_v23  ;;  %v3352_v22 = vld [vmem:[%s4562_s2 + $0x54] ss:$8 sps:$4 sm:$0xff]  }
  0xcd   :  { %1904 = vmatprep.subr.bf16.mxu1 %v3271_v47 }
  0xcf   :  { %1864 = vmatpush1.bf16.msra.mxu0 %v3266_v28 }
  0xd0   :  { %1905 = vmatpush1.bf16.msra.mxu1 %v3269_v29  ;;  %1865 = vmatprep.subr.bf16.mxu0 %v3274_v48  ;;  %v3355_v29 = vld [vmem:[%s4562_s2 + $0x44] ss:$8 sps:$4 sm:$0xff]   ;;  %v3392_v48 = vld [vmem:[%s4562_s2 + $0x170] ss:$8 sps:$4 sm:$0xff]  }
  0xd1   :  { %1906 = vmatprep.subr.bf16.mxu1 %v3277_v49  ;;  %v3394_v49 = vld [vmem:[%s4562_s2 + $0x174] ss:$8 sps:$4 sm:$0xff]  }
  0xd3   :  { %1866 = vmatpush1.bf16.msra.mxu0 %v3272_v50  ;;  %v3397_v50 = vld [vmem:[%s4562_s2 + $0x164] ss:$8 sps:$4 sm:$0xff]  }
  0xd4   :  { %1907 = vmatpush1.bf16.msra.mxu1 %v3275_v51  ;;  %1867 = vmatprep.subr.bf16.mxu0 %v3280_v52  ;;  %v3353_v51 = vld [vmem:[%s4562_s2 + $0x40] ss:$8 sps:$4 sm:$0xff]  }
  0xd5   :  { %1908 = vmatprep.subr.bf16.mxu1 %v3283_v53  ;;  %v3395_v52 = vld [vmem:[%s4562_s2 + $0x160] ss:$8 sps:$4 sm:$0xff]   ;;  %v3358_v53 = vld [vmem:[%s4562_s2 + $0x34] ss:$8 sps:$4 sm:$0xff]  }
  0xd7   :  { %1868 = vmatpush1.bf16.msra.mxu0 %v3278_v54  ;;  %v3400_v54 = vld [vmem:[%s4562_s2 + $0x154] ss:$8 sps:$4 sm:$0xff]  }
  0xd8   :  { %1909 = vmatpush1.bf16.msra.mxu1 %v3281_v55  ;;  %1869 = vmatprep.subr.bf16.mxu0 %v3286_v56  ;;  %v3356_v55 = vld [vmem:[%s4562_s2 + $0x30] ss:$8 sps:$4 sm:$0xff]  }
  0xd9   :  { %1910 = vmatprep.subr.bf16.mxu1 %v3289_v57  ;;  %v3398_v56 = vld [vmem:[%s4562_s2 + $0x150] ss:$8 sps:$4 sm:$0xff]   ;;  %v3361_v57 = vld [vmem:[%s4562_s2 + $0x24] ss:$8 sps:$4 sm:$0xff]  }
  0xdb   :  { %1870 = vmatpush1.bf16.msra.mxu0 %v3284_v58  ;;  %v3403_v58 = vld [vmem:[%s4562_s2 + $0x144] ss:$8 sps:$4 sm:$0xff]  }
  0xdc   :  { %1911 = vmatpush1.bf16.msra.mxu1 %v3287_v59  ;;  %1871 = vmatprep.subr.bf16.mxu0 %v3292_v60  ;;  %v3359_v59 = vld [vmem:[%s4562_s2 + $0x20] ss:$8 sps:$4 sm:$0xff]  }
  0xdd   :  { %1912 = vmatprep.subr.bf16.mxu1 %v3295_v62  ;;  %v3401_v60 = vld [vmem:[%s4562_s2 + $0x140] ss:$8 sps:$4 sm:$0xff]   ;;  %v3364_v62 = vld [vmem:[%s4562_s2 + $0x14] ss:$8 sps:$4 sm:$0xff]  }
  0xdf   :  { %1872 = vmatpush1.bf16.msra.mxu0 %v3290_v63  ;;  %v3406_v63 = vld [vmem:[%s4562_s2 + $0x134] ss:$8 sps:$4 sm:$0xff]  }
  0xe0   :  { %1913 = vmatpush1.bf16.msra.mxu1 %v3293_v0  ;;  %1873 = vmatprep.subr.bf16.mxu0 %v3298_v1  ;;  %v3362_v0 = vld [vmem:[%s4562_s2 + $0x10] ss:$8 sps:$4 sm:$0xff]  }
  0xe1   :  { %1914 = vmatprep.subr.bf16.mxu1 %v3301_v2  ;;  %v3404_v1 = vld [vmem:[%s4562_s2 + $0x130] ss:$8 sps:$4 sm:$0xff]   ;;  %v3367_v2 = vld [vmem:[%s4562_s2 + $0x4] ss:$8 sps:$4 sm:$0xff]  }
  0xe3   :  { %1874 = vmatpush2.bf16.msra.mxu0 %v3296_v4  ;;  %v3409_v4 = vld [vmem:[%s4562_s2 + $0x124] ss:$8 sps:$4 sm:$0xff]  }
  0xe4   :  { %1915 = vmatpush2.bf16.msra.mxu1 %v3299_v5  ;;  %1875 = vmatprep.subr.bf16.mxu0 %v3304_v6  ;;  %v3365_v5 = vld [vmem:[%s4562_s2] ss:$8 sps:$4 sm:$0xff]  }
  0xe5   :  { %1916 = vmatprep.subr.bf16.mxu1 %v3307_v7  ;;  %v3407_v6 = vld [vmem:[%s4562_s2 + $0x120] ss:$8 sps:$4 sm:$0xff]   ;;  %v3370_v7 = vld [vmem:[%s4562_s2 + $0xf4] ss:$8 sps:$4 sm:$0xff]  }
  0xe7   :  { %1876 = vmatpush2.bf16.msra.mxu0 %v3302_v8  ;;  %v3412_v8 = vld [vmem:[%s4562_s2 + $0x114] ss:$8 sps:$4 sm:$0xff]  }
  0xe8   :  { %1917 = vmatpush2.bf16.msra.mxu1 %v3305_v9  ;;  %1877 = vmatprep.subr.bf16.mxu0 %v3310_v10  ;;  %v3368_v9 = vld [vmem:[%s4562_s2 + $0xf0] ss:$8 sps:$4 sm:$0xff]  }
  0xe9   :  { %1918 = vmatprep.subr.bf16.mxu1 %v3313_v11  ;;  %v3410_v10 = vld [vmem:[%s4562_s2 + $0x110] ss:$8 sps:$4 sm:$0xff]   ;;  %v3373_v11 = vld [vmem:[%s4562_s2 + $0xe4] ss:$8 sps:$4 sm:$0xff]  }
  0xeb   :  { %1878 = vmatpush2.bf16.msra.mxu0 %v3308_v12  ;;  %v3415_v12 = vld [vmem:[%s4562_s2 + $0x104] ss:$8 sps:$4 sm:$0xff]  }
  0xec   :  { %1919 = vmatpush2.bf16.msra.mxu1 %v3311_v13  ;;  %1879 = vmatprep.subr.bf16.mxu0 %v3316_v16  ;;  %v3371_v13 = vld [vmem:[%s4562_s2 + $0xe0] ss:$8 sps:$4 sm:$0xff]  }
  0xed   :  { %1920 = vmatprep.subr.bf16.mxu1 %v3319_v17  ;;  %v3413_v16 = vld [vmem:[%s4562_s2 + $0x100] ss:$8 sps:$4 sm:$0xff]   ;;  %v3376_v17 = vld [vmem:[%s4562_s2 + $0xd4] ss:$8 sps:$4 sm:$0xff]  }
  0xef   :  { %1880 = vmatpush2.bf16.msra.mxu0 %v3314_v18  ;;  %v3418_v18 = vld [vmem:[%s4562_s2 + $0x1f4] ss:$8 sps:$4 sm:$0xff]  }
  0xf0   :  { %1921 = vmatpush2.bf16.msra.mxu1 %v3317_v19  ;;  %1881 = vmatprep.subr.bf16.mxu0 %v3322_v20  ;;  %v3374_v19 = vld [vmem:[%s4562_s2 + $0xd0] ss:$8 sps:$4 sm:$0xff]  }
  0xf1   :  { %1922 = vmatprep.subr.bf16.mxu1 %v3325_v21  ;;  %v3416_v20 = vld [vmem:[%s4562_s2 + $0x1f0] ss:$8 sps:$4 sm:$0xff]   ;;  %v3379_v21 = vld [vmem:[%s4562_s2 + $0xc4] ss:$8 sps:$4 sm:$0xff]  }
  0xf3   :  { %1882 = vmatpush2.bf16.msra.mxu0 %v3320_v24  ;;  %v3421_v24 = vld [vmem:[%s4562_s2 + $0x1e4] ss:$8 sps:$4 sm:$0xff]  }
  0xf4   :  { %1923 = vmatpush2.bf16.msra.mxu1 %v3323_v25  ;;  %1883 = vmatprep.subr.bf16.mxu0 %v3328_v26  ;;  %v3377_v25 = vld [vmem:[%s4562_s2 + $0xc0] ss:$8 sps:$4 sm:$0xff]  }
  0xf5   :  { %1924 = vmatprep.subr.bf16.mxu1 %v3331_v27  ;;  %v3419_v26 = vld [vmem:[%s4562_s2 + $0x1e0] ss:$8 sps:$4 sm:$0xff]   ;;  %v3382_v27 = vld [vmem:[%s4562_s2 + $0xb4] ss:$8 sps:$4 sm:$0xff]  }
  0xf7   :  { %1884 = vmatpush2.bf16.msra.mxu0 %v3326_v30  ;;  %v3424_v30 = vld [vmem:[%s4562_s2 + $0x1d4] ss:$8 sps:$4 sm:$0xff]  }
  0xf8   :  { %1925 = vmatpush2.bf16.msra.mxu1 %v3329_v31  ;;  %1885 = vmatprep.subr.bf16.mxu0 %v3334_v32  ;;  %v3380_v31 = vld [vmem:[%s4562_s2 + $0xb0] ss:$8 sps:$4 sm:$0xff]  }
  0xf9   :  { %1926 = vmatprep.subr.bf16.mxu1 %v3337_v33  ;;  %v3422_v32 = vld [vmem:[%s4562_s2 + $0x1d0] ss:$8 sps:$4 sm:$0xff]   ;;  %v3385_v33 = vld [vmem:[%s4562_s2 + $0xa4] ss:$8 sps:$4 sm:$0xff]  }
  0xfb   :  { %1886 = vmatpush2.bf16.msra.mxu0 %v3332_v36  ;;  %v3427_v36 = vld [vmem:[%s4562_s2 + $0x1c4] ss:$8 sps:$4 sm:$0xff]  }
  0xfc   :  { %1927 = vmatpush2.bf16.msra.mxu1 %v3335_v37  ;;  %1887 = vmatprep.subr.bf16.mxu0 %v3340_v14  ;;  %v3383_v37 = vld [vmem:[%s4562_s2 + $0xa0] ss:$8 sps:$4 sm:$0xff]  }
  0xfd   :  { %1928 = vmatprep.subr.bf16.mxu1 %v3343_v15  ;;  %v3425_v14 = vld [vmem:[%s4562_s2 + $0x1c0] ss:$8 sps:$4 sm:$0xff]   ;;  %v3388_v15 = vld [vmem:[%s4562_s2 + $0x94] ss:$8 sps:$4 sm:$0xff]  }
  0xff   :  { %1888 = vmatpush2.bf16.msra.mxu0 %v3338_v38  ;;  %v3430_v38 = vld [vmem:[%s4562_s2 + $0x1b4] ss:$8 sps:$4 sm:$0xff]  }
 0x100   :  { %1929 = vmatpush2.bf16.msra.mxu1 %v3341_v39  ;;  %2331 = vmatprep.subr.bf16.mxu0 %v3346_v40  ;;  %v3386_v39 = vld [vmem:[%s4562_s2 + $0x90] ss:$8 sps:$4 sm:$0xff]  }
 0x101   :  { %2372 = vmatprep.subr.bf16.mxu1 %v3394_v49  ;;  %v3428_v40 = vld [vmem:[%s4562_s2 + $0x1b0] ss:$8 sps:$4 sm:$0xff]  }
 0x102   :  { %v1645_v43 = vpop.f32.mrf.mxu0  ;;  %1890 = vmatmul.mubr.bf16.vlgmr.msra.gmra.mxu0 %v3911_v34  ;;  %v3434_v49 = vld [vmem:[%s4562_s2 + $0x190] ss:$8 sps:$4 sm:$0xff]  }
 0x103   :  { %v1686_v44 = vpop.f32.mrf.mxu1  ;;  %1931 = vmatmul.mubr.bf16.vlgmr.msra.gmra.mxu1 %v3915_v35  ;;  %2332 = vmatpush1.bf16.msra.mxu0 %v3344_v41  ;;  %v3350_v35 = vld [vmem:[%s4562_s2 + $0x50] ss:$8 sps:$4 sm:$0xff]   ;;  %v3391_v41 = vld [vmem:[%s4562_s2 + $0x84] ss:$8 sps:$4 sm:$0xff]  }
 0x104   :  { %v4314_v61 = vadd.f32 %v1686_v44, %v1645_v43  ;;  %v4319_v45 = vpop.f32.mrf.mxu0  ;;  %2333 = vmatprep.subr.bf16.mxu0 %v3349_v42  ;;  %2373 = vmatpush1.bf16.msra.mxu1 %v3392_v48  ;;  %v3389_v42 = vld [vmem:[%s4562_s2 + $0x80] ss:$8 sps:$4 sm:$0xff]   ;;  %v3433_v43 = vld [vmem:[%s4562_s2 + $0x1a4] ss:$8 sps:$4 sm:$0xff]  }
 0x105   :  { %v4321_v46 = vpop.f32.mrf.mxu1  ;;  %2374 = vmatprep.subr.bf16.mxu1 %v3397_v50  ;;  %v3431_v44 = vld [vmem:[%s4562_s2 + $0x1a0] ss:$8 sps:$4 sm:$0xff]  }
 0x106   :  { %v1649_v23 = vpop.f32.mrf.mxu0 }
 0x107   :  { %v1690_v34 = vpop.f32.mrf.mxu1  ;;  %2334 = vmatpush1.bf16.msra.mxu0 %v3347_v3  ;;  %v1689_v23 = vadd.f32 %v4321_v46, %v4319_v45 }
 0x108   :  { %v1650_v47 = vpop.f32.mrf.mxu0  ;;  %2335 = vmatprep.subr.bf16.mxu0 %v3352_v22  ;;  %2375 = vmatpush1.bf16.msra.mxu1 %v3395_v52 }
 0x109   :  { %v1691_v28 = vpop.f32.mrf.mxu1  ;;  %2376 = vmatprep.subr.bf16.mxu1 %v3400_v54 }
 0x10a   :  { %v3436_v28 = vld [vmem:[%s4562_s2 + $0x194] ss:$8 sps:$4 sm:$0xff]  }
 0x10b   :  { %2336 = vmatpush1.bf16.msra.mxu0 %v3350_v35 }
 0x10c   :  { %2337 = vmatprep.subr.bf16.mxu0 %v3355_v29  ;;  %2377 = vmatpush1.bf16.msra.mxu1 %v3398_v56 }
 0x10d   :  { %2378 = vmatprep.subr.bf16.mxu1 %v3403_v58 }
 0x10f   :  { %2338 = vmatpush1.bf16.msra.mxu0 %v3353_v51 }
 0x110   :  { %2339 = vmatprep.subr.bf16.mxu0 %v3358_v53  ;;  %2379 = vmatpush1.bf16.msra.mxu1 %v3401_v60  ;;  %v3439_v53 = vld [vmem:[%s4562_s2 + $0x184] ss:$8 sps:$4 sm:$0xff]  }
 0x111   :  { %2380 = vmatprep.subr.bf16.mxu1 %v3406_v63 }
 0x113   :  { %2340 = vmatpush1.bf16.msra.mxu0 %v3356_v55  ;;  %v3437_v55 = vld [vmem:[%s4562_s2 + $0x180] ss:$8 sps:$4 sm:$0xff]  }
 0x114   :  { %2341 = vmatprep.subr.bf16.mxu0 %v3361_v57  ;;  %2381 = vmatpush1.bf16.msra.mxu1 %v3404_v1 }
 0x115   :  { %2382 = vmatprep.subr.bf16.mxu1 %v3409_v4 }
 0x117   :  { %2342 = vmatpush1.bf16.msra.mxu0 %v3359_v59 }
 0x118   :  { %2343 = vmatprep.subr.bf16.mxu0 %v3364_v62  ;;  %2383 = vmatpush1.bf16.msra.mxu1 %v3407_v6  ;;  %v3441_v6 = vld [vmem:[%s4563_s3 + $0x38] sm:$0xff]  }
 0x119   :  { %2384 = vmatprep.subr.bf16.mxu1 %v3412_v8  ;;  %v3443_v8 = vld [vmem:[%s4563_s3 + $0x30] sm:$0xff]  }
 0x11b   :  { %2344 = vmatpush1.bf16.msra.mxu0 %v3362_v0 }
 0x11c   :  { %2345 = vmatprep.subr.bf16.mxu0 %v3367_v2  ;;  %2385 = vmatpush1.bf16.msra.mxu1 %v3410_v10  ;;  %v3445_v10 = vld [vmem:[%s4563_s3 + $0x28] sm:$0xff]  }
 0x11d   :  { %2386 = vmatprep.subr.bf16.mxu1 %v3415_v12  ;;  %v3447_v12 = vld [vmem:[%s4563_s3 + $0x20] sm:$0xff]  }
 0x11f   :  { %2346 = vmatpush1.bf16.msra.mxu0 %v3365_v5  ;;  %v3440_v5 = vld [vmem:[%s4563_s3 + $0x78] sm:$0xff]  }
 0x120   :  { %2347 = vmatprep.subr.bf16.mxu0 %v3370_v7  ;;  %2387 = vmatpush1.bf16.msra.mxu1 %v3413_v16  ;;  %v3442_v7 = vld [vmem:[%s4563_s3 + $0x70] sm:$0xff]   ;;  %v3449_v16 = vld [vmem:[%s4563_s3 + $0x18] sm:$0xff]  }
 0x121   :  { %2388 = vmatprep.subr.bf16.mxu1 %v3418_v18  ;;  %v3451_v18 = vld [vmem:[%s4563_s3 + $0x10] sm:$0xff]  }
 0x123   :  { %2348 = vmatpush2.bf16.msra.mxu0 %v3368_v9  ;;  %v3444_v9 = vld [vmem:[%s4563_s3 + $0x68] sm:$0xff]  }
 0x124   :  { %2349 = vmatprep.subr.bf16.mxu0 %v3373_v11  ;;  %2389 = vmatpush2.bf16.msra.mxu1 %v3416_v20  ;;  %v3446_v11 = vld [vmem:[%s4563_s3 + $0x60] sm:$0xff]  }
 0x125   :  { %2390 = vmatprep.subr.bf16.mxu1 %v3421_v24 }
 0x127   :  { %2350 = vmatpush2.bf16.msra.mxu0 %v3371_v13  ;;  %v3448_v13 = vld [vmem:[%s4563_s3 + $0x58] sm:$0xff]  }
 0x128   :  { %2351 = vmatprep.subr.bf16.mxu0 %v3376_v17  ;;  %2391 = vmatpush2.bf16.msra.mxu1 %v3419_v26  ;;  %v3450_v17 = vld [vmem:[%s4563_s3 + $0x50] sm:$0xff]  }
 0x129   :  { %2392 = vmatprep.subr.bf16.mxu1 %v3424_v30 }
 0x12b   :  { %2352 = vmatpush2.bf16.msra.mxu0 %v3374_v19 }
 0x12c   :  { %2353 = vmatprep.subr.bf16.mxu0 %v3379_v21  ;;  %2393 = vmatpush2.bf16.msra.mxu1 %v3422_v32 }
 0x12d   :  { %2394 = vmatprep.subr.bf16.mxu1 %v3427_v36 }
 0x12f   :  { %2354 = vmatpush2.bf16.msra.mxu0 %v3377_v25 }
 0x130   :  { %2355 = vmatprep.subr.bf16.mxu0 %v3382_v27  ;;  %2395 = vmatpush2.bf16.msra.mxu1 %v3425_v14 }
 0x131   :  { %2396 = vmatprep.subr.bf16.mxu1 %v3430_v38 }
 0x133   :  { %2356 = vmatpush2.bf16.msra.mxu0 %v3380_v31 }
 0x134   :  { %2357 = vmatprep.subr.bf16.mxu0 %v3385_v33  ;;  %2397 = vmatpush2.bf16.msra.mxu1 %v3428_v40 }
 0x135   :  { %2398 = vmatprep.subr.bf16.mxu1 %v3433_v43 }
 0x137   :  { %2358 = vmatpush2.bf16.msra.mxu0 %v3383_v37 }
 0x138   :  { %2359 = vmatprep.subr.bf16.mxu0 %v3388_v15  ;;  %2399 = vmatpush2.bf16.msra.mxu1 %v3431_v44 }
 0x139   :  { %2400 = vmatprep.subr.bf16.mxu1 %v3436_v28 }
 0x13b   :  { %2360 = vmatpush2.bf16.msra.mxu0 %v3386_v39 }
 0x13c   :  { %2361 = vmatprep.subr.bf16.mxu0 %v3391_v41  ;;  %2401 = vmatpush2.bf16.msra.mxu1 %v3434_v49  ;;  %v3452_v41 = vld [vmem:[%s4563_s3 + $0x48] sm:$0xff]  }
 0x13d   :  { %2402 = vmatprep.subr.bf16.mxu1 %v3439_v53 }
 0x13f   :  { %2362 = vmatpush2.bf16.msra.mxu0 %v3389_v42  ;;  %v3453_v42 = vld [vmem:[%s4563_s3 + $0x8] sm:$0xff]  }
 0x140   :  { %2403 = vmatpush2.bf16.msra.mxu1 %v3437_v55  ;;  %2935 = vmatprep.subr.bf16.mxu0 %v3440_v5 }
 0x142   :  { %v1727_v3 = vpop.f32.mrf.mxu0 }
 0x143   :  { %v1768_v22 = vpop.f32.mrf.mxu1  ;;  %v1728_v34 = vadd.f32 %v1727_v3, %v4314_v61  ;;  %v3454_v3 = vld [vmem:[%s4563_s3 + $0x40] sm:$0xff]  }
 0x144   :  { %v1729_v35 = vpop.f32.mrf.mxu0 }
 0x145   :  { %v1770_v47 = vpop.f32.mrf.mxu1  ;;  %v1769_v29 = vadd.f32 %v1768_v22, %v1728_v34  ;;  %v1730_v48 = vadd.f32 %v1729_v35, %v1689_v23  ;;  %v3455_v22 = vld [vmem:[%s4563_s3] sm:$0xff]  }
 0x146   :  { %v1731_v50 = vpop.f32.mrf.mxu0 }
 0x147   :  { %v1772_v51 = vpop.f32.mrf.mxu1  ;;  %v1771_v52 = vadd.f32 %v1770_v47, %v1730_v48  ;;  %v1939_v45 = vmax.f32 %v1769_v29, 0.0 }
 0x148   :  { %v1732_v61 = vpop.f32.mrf.mxu0 }
 0x149   :  { %v1773_v46 = vpop.f32.mrf.mxu1  ;;  %v1940_v54 = vmax.f32 %v1771_v52, 0.0  ;;  %v1943_v57 = vpack.c.bf16 %v1939_v45, %v1939_v45  ;;  %v2918_v61 = vld [vmem:[%s4564_s4] ss:$0 sm:$0xff] }
 0x14b   :  { %v1944_v56 = vpack.c.bf16 %v1940_v54, %v1940_v54 }
 0x14d   :  { %2363 = vmatprep.mubr.bf16.mxu0 %v1944_v56 }
 0x14e   :  { %2364 = vmatmul.mubr.bf16.vlgmr.msra.gmra.mxu0 %v1943_v57 }
 0x14f   :  { %2936 = vmatpush3.bf16.msra.mxu0 %v3441_v6 }
 0x150   :  { %2937 = vmatprep.subr.bf16.mxu0 %v3442_v7 }
 0x153   :  { %2938 = vmatpush3.bf16.msra.mxu0 %v3443_v8 }
 0x154   :  { %2939 = vmatprep.subr.bf16.mxu0 %v3444_v9 }
 0x157   :  { %2940 = vmatpush3.bf16.msra.mxu0 %v3445_v10 }
 0x158   :  { %2941 = vmatprep.subr.bf16.mxu0 %v3446_v11 }
 0x15b   :  { %2942 = vmatpush3.bf16.msra.mxu0 %v3447_v12 }
 0x15c   :  { %2943 = vmatprep.subr.bf16.mxu0 %v3448_v13 }
 0x15f   :  { %2944 = vmatpush3.bf16.msra.mxu0 %v3449_v16 }
 0x160   :  { %2945 = vmatprep.subr.bf16.mxu0 %v3450_v17 }
 0x163   :  { %2946 = vmatpush3.bf16.msra.mxu0 %v3451_v18 }
 0x164   :  { %2947 = vmatprep.subr.bf16.mxu0 %v3452_v41 }
 0x167   :  { %2948 = vmatpush3.bf16.msra.mxu0 %v3453_v42 }
 0x168   :  { %2949 = vmatprep.subr.bf16.mxu0 %v3454_v3 }
 0x16b   :  { %2950 = vmatpush3.bf16.msra.mxu0 %v3455_v22 }
 0x182   :  { %v1809_v58 = vpop.f32.mrf.mxu0 }
 0x183   :  { %v1850_v59 = vpop.f32.mrf.mxu1 }
 0x184   :  { %v1851_v60 = vadd.f32 %v1850_v59, %v1809_v58  ;;  %v1811_v62 = vpop.f32.mrf.mxu0 }
 0x185   :  { %v1852_v63 = vpop.f32.mrf.mxu1 }
 0x186   :  { %v1813_v0 = vpop.f32.mrf.mxu0  ;;  %v1853_v21 = vadd.f32 %v1852_v63, %v1811_v62 }
 0x187   :  { %v1854_v1 = vpop.f32.mrf.mxu1 }
 0x188   :  { %v1814_v2 = vpop.f32.mrf.mxu0 }
 0x189   :  { %v1855_v4 = vpop.f32.mrf.mxu1 }
 0x1c2   :  { %v1891_v19 = vpop.f32.mrf.mxu0 }
 0x1c3   :  { %v1932_v20 = vpop.f32.mrf.mxu1  ;;  %v1892_v24 = vadd.f32 %v1891_v19, %v1851_v60 }
 0x1c4   :  { %v1893_v25 = vpop.f32.mrf.mxu0 }
 0x1c5   :  { %v1934_v26 = vpop.f32.mrf.mxu1  ;;  %v1933_v27 = vadd.f32 %v1932_v20, %v1892_v24  ;;  %v1894_v30 = vadd.f32 %v1893_v25, %v1853_v21 }
 0x1c6   :  { %v1895_v31 = vpop.f32.mrf.mxu0 }
 0x1c7   :  { %v1936_v32 = vpop.f32.mrf.mxu1  ;;  %v1935_v33 = vadd.f32 %v1934_v26, %v1894_v30  ;;  %v1941_v36 = vmax.f32 %v1933_v27, 0.0 }
 0x1c8   :  { %v1896_v37 = vpop.f32.mrf.mxu0 }
 0x1c9   :  { %v1937_v14 = vpop.f32.mrf.mxu1  ;;  %v1942_v15 = vmax.f32 %v1935_v33, 0.0  ;;  %v1945_v39 = vpack.c.bf16 %v1941_v36, %v1941_v36 }
 0x1cb   :  { %v1946_v38 = vpack.c.bf16 %v1942_v15, %v1942_v15 }
 0x1cd   :  { %2404 = vmatprep.mubr.bf16.mxu1 %v1946_v38 }
 0x1ce   :  { %2405 = vmatmul.mubr.bf16.vlgmr.msra.gmra.mxu1 %v1945_v39 }
 0x20e   :  { %v2365_v40 = vpop.f32.mrf.mxu0 }
 0x210   :  { %v2367_v43 = vpop.f32.mrf.mxu0 }
 0x212   :  { %v2369_v44 = vpop.f32.mrf.mxu0 }
 0x214   :  { %v2370_v23 = vpop.f32.mrf.mxu0 }
 0x28e   :  { %v2406_v34 = vpop.f32.mrf.mxu1 }
 0x28f   :  { %v2407_v35 = vadd.f32 %v2406_v34, %v2365_v40 }
 0x290   :  { %v2408_v47 = vpop.f32.mrf.mxu1 }
 0x291   :  { %v2409_v28 = vadd.f32 %v2408_v47, %v2367_v43  ;;  %v2413_v29 = vmax.f32 %v2407_v35, 0.0 }
 0x292   :  { %v2410_v48 = vpop.f32.mrf.mxu1 }
 0x293   :  { %v2414_v49 = vmax.f32 %v2409_v28, 0.0  ;;  %v2415_v52 = vpack.c.bf16 %v2413_v29, %v2413_v29 }
 0x294   :  { %v2411_v50 = vpop.f32.mrf.mxu1 }
 0x295   :  { %v2416_v51 = vpack.c.bf16 %v2414_v49, %v2414_v49 }
 0x297   :  { %2584 = vmatprep.mubr.bf16.mxu0 %v2416_v51 }
 0x298   :  { %2585 = vmatmul.mubr.bf16.vlgmr.msra.gmra.mxu0 %v2415_v52 }
 0x358   :  { %v2951_v45 = vpop.f32.mrf.mxu0 }
 0x35a   :  { %v2952_v46 = vpop.f32.mrf.mxu0 }
 0x35b   :  { %v2953_v53 = vadd.f32 %v2952_v46, %v2951_v45 }
 0x35c   :  { %v2954_v54 = vpop.f32.mrf.mxu0 }
 0x35d   :  { %v2587_v55 = vadd.f32 %v2953_v53, %v2918_v61 }
 0x35e   :  { %v2955_v56 = vpop.f32.mrf.mxu0 }
 0x35f   :  { %2593 = vst.msk [vmem:[%s4565_s5] sm:$0x3] %vm2592_vm0, %v2587_v55 }

</bundles_post_ra>
